<compile_context>
chip_gen: v6e
topology: v6e:2x2x1
jax: 0.10.0
libtpu: 0.0.40
codegen_flags: <defaults>
</compile_context>

<pallas_src>
import jax
import jax.numpy as jnp
import numpy as np
from jax.experimental import pallas as pl
from jax.experimental.pallas import tpu as pltpu


# ----------------------------------------------------------------------------
# Kernel 1: fused point-wise MLP chain + max-over-points reduction.
#   Per (tm, Cin) tile of points:
#     h1 = relu(x @ W1[b] + b1); h2 = relu(h1 @ W2 + b2); h3 = h2 @ W3
#     acc[b] = max(acc[b], rowmax(h3))        (raw units)
#   On the last tile of the N axis:
#     out[b] = relu(acc[b] + b3)              (exact: relu/+const commute w/ max)
# ----------------------------------------------------------------------------
def _fused_mlp_max_kernel(x_ref, w1_ref, b1_ref, w2_ref, b2_ref, w3_ref, b3_ref,
                          o_ref):
    n_id = pl.program_id(1)
    n_last = pl.num_programs(1) - 1

    # x / weights are bf16; f32 MXU accumulation; f32 epilogue shift + ReLU.
    h = jnp.dot(x_ref[0], w1_ref[0], preferred_element_type=jnp.float32)
    h = jnp.maximum(h + b1_ref[...], 0.0)
    h = jnp.dot(h.astype(jnp.bfloat16), w2_ref[...],
                preferred_element_type=jnp.float32)
    h = jnp.maximum(h + b2_ref[...], 0.0)
    h = jnp.dot(h.astype(jnp.bfloat16), w3_ref[...],
                preferred_element_type=jnp.float32)          # (tm, C3) raw

    tile_max = jnp.max(h, axis=0, keepdims=True)[None]       # (1, 1, C3)

    @pl.when(n_id == 0)
    def _init():
        o_ref[...] = tile_max

    @pl.when(n_id > 0)
    def _acc():
        o_ref[...] = jnp.maximum(o_ref[...], tile_max)

    @pl.when(n_id == n_last)
    def _epilogue():
        # bias-3 + ReLU applied once, after the running max (exact fold).
        o_ref[...] = jnp.maximum(o_ref[...] + b3_ref[...], 0.0)


def fused_mlp_max(x_bnc, w1_b, b1, w2, b2, w3, b3, *, tm):
    """x_bnc: (B, Npad, Cin) bf16.  w1_b: (B, Cin, C1) bf16 per-batch first-layer
    weight; w2/w3: shared bf16 weights; b*: (1, C) f32 shifts (BN folded).
    Returns the max over points of the chained MLP: (B, C3) f32."""
    b, n, cin = x_bnc.shape
    c1 = w1_b.shape[2]
    c2 = w2.shape[1]
    c3 = w3.shape[1]
    assert n % tm == 0, "points axis must be padded to a multiple of tm"

    out = pl.pallas_call(
        _fused_mlp_max_kernel,
        out_shape=jax.ShapeDtypeStruct((b, 1, c3), jnp.float32),
        grid=(b, n // tm),
        in_specs=[
            pl.BlockSpec((1, tm, cin), lambda i, j: (i, j, 0)),
            pl.BlockSpec((1, cin, c1), lambda i, j: (i, 0, 0)),
            pl.BlockSpec((1, c1), lambda i, j: (0, 0)),
            pl.BlockSpec((c1, c2), lambda i, j: (0, 0)),
            pl.BlockSpec((1, c2), lambda i, j: (0, 0)),
            pl.BlockSpec((c2, c3), lambda i, j: (0, 0)),
            pl.BlockSpec((1, c3), lambda i, j: (0, 0)),
        ],
        out_specs=pl.BlockSpec((1, 1, c3), lambda i, j: (i, 0, 0)),
        compiler_params=pltpu.CompilerParams(
            dimension_semantics=("parallel", "arbitrary"),
            # tm<=2048 -> ~14 MiB of intermediates; 48 MiB scoped is safe on
            # v7x (64 MiB physical) and comfortable on v5e/v6e (128 MiB).
            vmem_limit_bytes=48 * 1024 * 1024,
        ),
    )(x_bnc, w1_b, b1, w2, b2, w3, b3)
    return out.reshape(b, c3)


# ----------------------------------------------------------------------------
# Kernel 2: fused 3-layer FC stack over B rows (all operands resident in VMEM).
#   y = (relu(relu(x@W1 + b1) @ W2 + b2)) @ W3 + b3   (last layer no ReLU)
# Weights are bf16 (halves the dominant HBM transfer); f32 accumulation.
# ----------------------------------------------------------------------------
def _fc_stack_kernel(x_ref, w1_ref, b1_ref, w2_ref, b2_ref, w3_ref, b3_ref,
                     o_ref):
    h = jnp.dot(x_ref[...].astype(jnp.bfloat16), w1_ref[...],
                preferred_element_type=jnp.float32)
    h = jnp.maximum(h + b1_ref[...], 0.0)
    h = jnp.dot(h.astype(jnp.bfloat16), w2_ref[...],
                preferred_element_type=jnp.float32)
    h = jnp.maximum(h + b2_ref[...], 0.0)
    o_ref[...] = jnp.dot(h.astype(jnp.bfloat16), w3_ref[...],
                         preferred_element_type=jnp.float32) + b3_ref[...]


def fc_stack(x, w1, b1, w2, b2, w3, b3):
    m = x.shape[0]
    cout = w3.shape[1]
    # No grid: whole arrays pinned in VMEM (~1.3 MiB of bf16 weights), one
    # launch instead of three HBM round trips for the tiny (B, .) activations.
    vmem_spec = pl.BlockSpec(memory_space=pltpu.MemorySpace.VMEM)
    return pl.pallas_call(
        _fc_stack_kernel,
        out_shape=jax.ShapeDtypeStruct((m, cout), jnp.float32),
        in_specs=[vmem_spec] * 7,
        out_specs=vmem_spec,
    )(x, w1, b1, w2, b2, w3, b3)


# ----------------------------------------------------------------------------
# Small helpers
# ----------------------------------------------------------------------------
def _pick_tiling(n, cap=2048):
    """Choose (tm, Npad): tm is the row tile (multiple of 8, <= cap), Npad the
    padded points count (= tm * num_tiles, minimal padding)."""
    n8 = ((n + 7) // 8) * 8
    num_tiles = max(1, -(-n8 // cap))
    tm = -(-n8 // num_tiles)
    tm = ((tm + 7) // 8) * 8
    return tm, tm * num_tiles


def _pad_points(x_bnc, npad):
    """Pad the points axis to npad by repeating the last point (duplicates do
    not change the max-over-points)."""
    b, n, c = x_bnc.shape
    if npad != n:
        x_bnc = jnp.pad(x_bnc, ((0, 0), (0, npad - n), (0, 0)), mode="edge")
    return x_bnc


def _pad_lanes(w, bias, lanes=128):
    """Pad last dim of a (Cin, Cout) weight / (1, Cout) bias to a multiple of
    128 so the kernel output store is lane-dense; slice back in the wrapper."""
    cout = w.shape[1]
    padded = ((cout + lanes - 1) // lanes) * lanes
    if padded != cout:
        w = jnp.pad(w, ((0, 0), (0, padded - cout)))
        bias = jnp.pad(bias, ((0, 0), (0, padded - cout)))
    return w, bias, cout


# ----------------------------------------------------------------------------
# Deterministic parameter construction.  Eval-mode BN is folded at init time:
#   y = (x @ W) * s + t  ==  x @ (W * s) + t     (scale folded into columns)
# ----------------------------------------------------------------------------
def _make_layer(key, cin, cout, *, bn=True, w_scale=0.05, eps=1e-5):
    if bn:
        k1, k2, k3, k4, k5 = jax.random.split(key, 5)
        w = w_scale * jax.random.normal(k1, (cin, cout), jnp.float32)
        gamma = 1.0 + 0.1 * jax.random.normal(k2, (cout,), jnp.float32)
        beta = 0.1 * jax.random.normal(k3, (cout,), jnp.float32)
        mean = 0.1 * jax.random.normal(k4, (cout,), jnp.float32)
        var = 1.0 + 0.1 * jax.random.uniform(k5, (cout,), jnp.float32)
        s = gamma / jnp.sqrt(var + eps)
        return dict(w=w * s[None, :], b=(beta - mean * s)[None, :])
    k1, k2 = jax.random.split(key, 2)
    return dict(w=w_scale * jax.random.normal(k1, (cin, cout), jnp.float32),
                b=0.05 * jax.random.normal(k2, (1, cout), jnp.float32))


def init_params(key, in_channels, num_classes):
    keys = iter(jax.random.split(key, 32))
    nk = lambda: next(keys)
    k = in_channels if in_channels <= 3 else 3
    tnet = dict(
        c1=_make_layer(nk(), k, 64), c2=_make_layer(nk(), 64, 128),
        c3=_make_layer(nk(), 128, 1024),
        f1=_make_layer(nk(), 1024, 512), f2=_make_layer(nk(), 512, 256),
        f3=_make_layer(nk(), 256, k * k, bn=False),
    )
    head = dict(
        f1=_make_layer(nk(), 1024, 512), f2=_make_layer(nk(), 512, 256),
        f3=_make_layer(nk(), 256, num_classes, bn=False),
    )
    return dict(
        tnet_in=tnet,
        feat_c1=_make_layer(nk(), in_channels, 64),
        feat_m1=_make_layer(nk(), 64, 128),
        feat_m2=_make_layer(nk(), 128, 1024),
        head=head,
    )


# ----------------------------------------------------------------------------
# Model forward (glue in plain JAX, all heavy compute in the two kernels)
# ----------------------------------------------------------------------------
def pointnet_cls_forward(x_bcn, params, *, tm_cap=2048):
    # layout: x_bcn is (B, C, N) (PyTorch Conv1d NCW). Kernels work on
    # points-as-rows (B, N, C).
    b, c, n = x_bcn.shape
    assert c <= 3  # TODO(synk): in_channels > 3 split/concat branch.
    bf16 = jnp.bfloat16
    tm, npad = _pick_tiling(n, tm_cap)

    x_bnc = jnp.transpose(x_bcn, (0, 2, 1))                  # (B, N, C)
    # Pre-cast to bf16 once: halves the only streamed DMA in kernel 1.
    x_pad = _pad_points(x_bnc, npad).astype(bf16)             # (B, Npad, C)

    t = params["tnet_in"]

    # --- TNet: point-wise chain + max pool, one fused kernel ---------------
    w1_t = jnp.broadcast_to(t["c1"]["w"].astype(bf16)[None], (b, c, 64))
    g = fused_mlp_max(x_pad, w1_t, t["c1"]["b"],
                      t["c2"]["w"].astype(bf16), t["c2"]["b"],
                      t["c3"]["w"].astype(bf16), t["c3"]["b"], tm=tm)

    # --- TNet regression head: one fused FC-stack kernel (bf16 weights) ----
    w3p, b3p, kk = _pad_lanes(t["f3"]["w"], t["f3"]["b"])
    tout = fc_stack(g, t["f1"]["w"].astype(bf16), t["f1"]["b"],
                    t["f2"]["w"].astype(bf16), t["f2"]["b"],
                    w3p.astype(bf16), b3p)
    trans_in = tout[:, :kk].reshape(b, c, c) + jnp.eye(c, dtype=jnp.float32)[None]

    # --- Fold the input transform into the first feature-conv weight -------
    #   relu(((x @ T) @ W1)*s + t) == relu(x @ (T @ (W1*s)) + t)
    w_eff = jnp.einsum("bij,jk->bik", trans_in, params["feat_c1"]["w"],
                       precision=jax.lax.Precision.HIGHEST).astype(bf16)

    # --- Feature net: point-wise chain + max pool, one fused kernel --------
    gf = fused_mlp_max(x_pad, w_eff, params["feat_c1"]["b"],
                       params["feat_m1"]["w"].astype(bf16), params["feat_m1"]["b"],
                       params["feat_m2"]["w"].astype(bf16), params["feat_m2"]["b"],
                       tm=tm)                                # (B, 1024) global feat

    # --- Classification head (Dropout p=0.3 is identity in eval) -----------
    h = params["head"]
    hw3p, hb3p, ncls = _pad_lanes(h["f3"]["w"], h["f3"]["b"])
    lout = fc_stack(gf, h["f1"]["w"].astype(bf16), h["f1"]["b"],
                    h["f2"]["w"].astype(bf16), h["f2"]["b"],
                    hw3p.astype(bf16), hb3p)
    logits = lout[:, :ncls]

    trans_feat = None  # feature_transform=False
    return logits, trans_in, trans_feat


# ----------------------------------------------------------------------------
# Pure-JAX f32 reference (for correctness check only)
# ----------------------------------------------------------------------------
def ref_forward(x_bcn, params):
    b, c, n = x_bcn.shape
    x = jnp.transpose(x_bcn, (0, 2, 1))

    def layer(h, p, relu=True):
        y = h @ p["w"] + p["b"]
        return jnp.maximum(y, 0.0) if relu else y

    t = params["tnet_in"]
    h = x.reshape(b * n, c)
    h = layer(h, t["c1"]); h = layer(h, t["c2"]); h = layer(h, t["c3"])
    g = jnp.max(h.reshape(b, n, -1), axis=1)
    g = layer(g, t["f1"]); g = layer(g, t["f2"])
    g = layer(g, t["f3"], relu=False)
    trans = g.reshape(b, c, c) + jnp.eye(c, dtype=jnp.float32)[None]

    xt = jnp.einsum("bnk,bkm->bnm", x, trans)
    h = xt.reshape(b * n, c)
    h = layer(h, params["feat_c1"]); h = layer(h, params["feat_m1"])
    h = layer(h, params["feat_m2"])
    gf = jnp.max(h.reshape(b, n, -1), axis=1)

    hd = params["head"]
    y = layer(gf, hd["f1"]); y = layer(y, hd["f2"])
    logits = layer(y, hd["f3"], relu=False)
    return logits, trans, None


if __name__ == "__main__":
    # N=2500 exercises edge-padding and the multi-tile (init/accumulate/
    # epilogue) path of the fused max kernel with the default tm_cap=2048.
    B, C, N, NUM_CLASSES = 2, 3, 2500, 10
    key = jax.random.PRNGKey(0)
    kx, kp = jax.random.split(key)
    x = jax.random.normal(kx, (B, C, N), jnp.float32)   # (batch, channels, points)
    params = init_params(kp, in_channels=C, num_classes=NUM_CLASSES)

    fwd = jax.jit(pointnet_cls_forward)
    logits, trans_in, trans_feat = fwd(x, params)
    jax.block_until_ready((logits, trans_in))

    assert logits.shape == (B, NUM_CLASSES)
    assert trans_in.shape == (B, C, C)
    assert trans_feat is None

    ref_logits, ref_trans, _ = jax.jit(ref_forward)(x, params)
    np.testing.assert_allclose(np.asarray(logits), np.asarray(ref_logits),
                               rtol=3e-2, atol=3e-2)
    np.testing.assert_allclose(np.asarray(trans_in), np.asarray(ref_trans),
                               rtol=3e-2, atol=3e-2)
    print("KERNEL_OK")
</pallas_src>

<mosaic_0001>
module attributes {stable_mosaic.version = 11 : i64} {
  func.func @_fused_mlp_max_kernel(%arg0: i32, %arg1: i32, %arg2: memref<1x1256x3xbf16, #tpu.memory_space<vmem>>, %arg3: memref<1x3x64xbf16, #tpu.memory_space<vmem>>, %arg4: memref<1x64xf32, #tpu.memory_space<vmem>>, %arg5: memref<64x128xbf16, #tpu.memory_space<vmem>>, %arg6: memref<1x128xf32, #tpu.memory_space<vmem>>, %arg7: memref<128x1024xbf16, #tpu.memory_space<vmem>>, %arg8: memref<1x1024xf32, #tpu.memory_space<vmem>>, %arg9: memref<1x1x1024xf32, #tpu.memory_space<vmem>>) attributes {dimension_semantics = [#tpu.dimension_semantics<parallel>, #tpu.dimension_semantics<arbitrary>], iteration_bounds = array<i64: 2, 2>, scalar_prefetch = 0 : i64, scratch_operands = 0 : i64, tpu.core_type = #tpu.core_type<tc>, window_params = [{transform_indices = @transform_0, window_bounds = array<i64: 1, 1256, 3>}, {transform_indices = @transform_1, window_bounds = array<i64: 1, 3, 64>}, {pipeline_mode = #tpu.pipeline_mode<synchronous>, transform_indices = @transform_2, window_bounds = array<i64: 1, 64>}, {pipeline_mode = #tpu.pipeline_mode<synchronous>, transform_indices = @transform_3, window_bounds = array<i64: 64, 128>}, {pipeline_mode = #tpu.pipeline_mode<synchronous>, transform_indices = @transform_4, window_bounds = array<i64: 1, 128>}, {pipeline_mode = #tpu.pipeline_mode<synchronous>, transform_indices = @transform_5, window_bounds = array<i64: 128, 1024>}, {pipeline_mode = #tpu.pipeline_mode<synchronous>, transform_indices = @transform_6, window_bounds = array<i64: 1, 1024>}, {transform_indices = @transform_7, window_bounds = array<i64: 1, 1, 1024>}]} {
    %c0 = arith.constant 0 : index
    %c0_0 = arith.constant 0 : index
    %c0_1 = arith.constant 0 : index
    %0 = vector.load %arg2[%c0, %c0_0, %c0_1] : memref<1x1256x3xbf16, #tpu.memory_space<vmem>>, vector<1x1256x3xbf16>
    %1 = vector.shape_cast %0 : vector<1x1256x3xbf16> to vector<1256x3xbf16>
    %c0_2 = arith.constant 0 : index
    %c0_3 = arith.constant 0 : index
    %c0_4 = arith.constant 0 : index
    %2 = vector.load %arg3[%c0_2, %c0_3, %c0_4] : memref<1x3x64xbf16, #tpu.memory_space<vmem>>, vector<1x3x64xbf16>
    %3 = vector.shape_cast %2 : vector<1x3x64xbf16> to vector<3x64xbf16>
    %cst = arith.constant dense<0.000000e+00> : vector<1256x64xf32>
    %4 = tpu.matmul %1, %3, %cst {dimension_numbers = #tpu.dot_dimension_numbers<[1], [0], [0], [1], [0, 0, 1, 1], [], []>} : vector<1256x3xbf16>, vector<3x64xbf16>, vector<1256x64xf32> -> vector<1256x64xf32>
    %c0_5 = arith.constant 0 : index
    %c0_6 = arith.constant 0 : index
    %5 = vector.load %arg4[%c0_5, %c0_6] : memref<1x64xf32, #tpu.memory_space<vmem>>, vector<1x64xf32>
    %6 = vector.broadcast %5 : vector<1x64xf32> to vector<1256x64xf32>
    %7 = arith.addf %4, %6 : vector<1256x64xf32>
    %cst_7 = arith.constant 0.000000e+00 : f32
    %8 = vector.broadcast %cst_7 : f32 to vector<1256x64xf32>
    %9 = arith.maximumf %7, %8 : vector<1256x64xf32>
    %10 = arith.truncf %9 : vector<1256x64xf32> to vector<1256x64xbf16>
    %c0_8 = arith.constant 0 : index
    %c0_9 = arith.constant 0 : index
    %11 = vector.load %arg5[%c0_8, %c0_9] : memref<64x128xbf16, #tpu.memory_space<vmem>>, vector<64x128xbf16>
    %cst_10 = arith.constant dense<0.000000e+00> : vector<1256x128xf32>
    %12 = tpu.matmul %10, %11, %cst_10 {dimension_numbers = #tpu.dot_dimension_numbers<[1], [0], [0], [1], [0, 0, 1, 1], [], []>} : vector<1256x64xbf16>, vector<64x128xbf16>, vector<1256x128xf32> -> vector<1256x128xf32>
    %c0_11 = arith.constant 0 : index
    %c0_12 = arith.constant 0 : index
    %13 = vector.load %arg6[%c0_11, %c0_12] : memref<1x128xf32, #tpu.memory_space<vmem>>, vector<1x128xf32>
    %14 = vector.broadcast %13 : vector<1x128xf32> to vector<1256x128xf32>
    %15 = arith.addf %12, %14 : vector<1256x128xf32>
    %cst_13 = arith.constant 0.000000e+00 : f32
    %16 = vector.broadcast %cst_13 : f32 to vector<1256x128xf32>
    %17 = arith.maximumf %15, %16 : vector<1256x128xf32>
    %18 = arith.truncf %17 : vector<1256x128xf32> to vector<1256x128xbf16>
    %c0_14 = arith.constant 0 : index
    %c0_15 = arith.constant 0 : index
    %19 = vector.load %arg7[%c0_14, %c0_15] : memref<128x1024xbf16, #tpu.memory_space<vmem>>, vector<128x1024xbf16>
    %cst_16 = arith.constant dense<0.000000e+00> : vector<1256x1024xf32>
    %20 = tpu.matmul %18, %19, %cst_16 {dimension_numbers = #tpu.dot_dimension_numbers<[1], [0], [0], [1], [0, 0, 1, 1], [], []>} : vector<1256x128xbf16>, vector<128x1024xbf16>, vector<1256x1024xf32> -> vector<1256x1024xf32>
    %cst_17 = arith.constant dense<0xFF800000> : vector<1024xf32>
    %21 = vector.multi_reduction <maximumf>, %20, %cst_17 [0] : vector<1256x1024xf32> to vector<1024xf32>
    %22 = vector.shape_cast %21 : vector<1024xf32> to vector<1x1024xf32>
    %23 = vector.shape_cast %22 : vector<1x1024xf32> to vector<1x1x1024xf32>
    %c0_i32 = arith.constant 0 : i32
    %24 = arith.cmpi eq, %arg1, %c0_i32 : i32
    %25 = arith.extui %24 : i1 to i32
    %c0_i32_18 = arith.constant 0 : i32
    %26 = arith.cmpi ne, %25, %c0_i32_18 : i32
    scf.if %26 {
      %c0_22 = arith.constant 0 : index
      %c0_23 = arith.constant 0 : index
      %c0_24 = arith.constant 0 : index
      %33 = vector.load %arg9[%c0_22, %c0_23, %c0_24] : memref<1x1x1024xf32, #tpu.memory_space<vmem>>, vector<1x1x1024xf32>
      tpu.vector_store %arg9[%c0_22, %c0_23, %c0_24], %23 {strides = array<i32>} : memref<1x1x1024xf32, #tpu.memory_space<vmem>>, vector<1x1x1024xf32>,
    } else {
    }
    %c0_i32_19 = arith.constant 0 : i32
    %27 = arith.cmpi sgt, %arg1, %c0_i32_19 : i32
    %28 = arith.extui %27 : i1 to i32
    %c0_i32_20 = arith.constant 0 : i32
    %29 = arith.cmpi ne, %28, %c0_i32_20 : i32
    scf.if %29 {
      %c0_22 = arith.constant 0 : index
      %c0_23 = arith.constant 0 : index
      %c0_24 = arith.constant 0 : index
      %33 = vector.load %arg9[%c0_22, %c0_23, %c0_24] : memref<1x1x1024xf32, #tpu.memory_space<vmem>>, vector<1x1x1024xf32>
      %34 = arith.maximumf %33, %23 : vector<1x1x1024xf32>
      %c0_25 = arith.constant 0 : index
      %c0_26 = arith.constant 0 : index
      %c0_27 = arith.constant 0 : index
      %35 = vector.load %arg9[%c0_25, %c0_26, %c0_27] : memref<1x1x1024xf32, #tpu.memory_space<vmem>>, vector<1x1x1024xf32>
      tpu.vector_store %arg9[%c0_25, %c0_26, %c0_27], %34 {strides = array<i32>} : memref<1x1x1024xf32, #tpu.memory_space<vmem>>, vector<1x1x1024xf32>,
    } else {
    }
    %c1_i32 = arith.constant 1 : i32
    %30 = arith.cmpi eq, %arg1, %c1_i32 : i32
    %31 = arith.extui %30 : i1 to i32
    %c0_i32_21 = arith.constant 0 : i32
    %32 = arith.cmpi ne, %31, %c0_i32_21 : i32
    scf.if %32 {
      %c0_22 = arith.constant 0 : index
      %c0_23 = arith.constant 0 : index
      %c0_24 = arith.constant 0 : index
      %33 = vector.load %arg9[%c0_22, %c0_23, %c0_24] : memref<1x1x1024xf32, #tpu.memory_space<vmem>>, vector<1x1x1024xf32>
      %c0_25 = arith.constant 0 : index
      %c0_26 = arith.constant 0 : index
      %34 = vector.load %arg8[%c0_25, %c0_26] : memref<1x1024xf32, #tpu.memory_space<vmem>>, vector<1x1024xf32>
      %35 = vector.shape_cast %34 : vector<1x1024xf32> to vector<1x1x1024xf32>
      %36 = arith.addf %33, %35 : vector<1x1x1024xf32>
      %cst_27 = arith.constant 0.000000e+00 : f32
      %37 = vector.broadcast %cst_27 : f32 to vector<1x1x1024xf32>
      %38 = arith.maximumf %36, %37 : vector<1x1x1024xf32>
      %c0_28 = arith.constant 0 : index
      %c0_29 = arith.constant 0 : index
      %c0_30 = arith.constant 0 : index
      %39 = vector.load %arg9[%c0_28, %c0_29, %c0_30] : memref<1x1x1024xf32, #tpu.memory_space<vmem>>, vector<1x1x1024xf32>
      tpu.vector_store %arg9[%c0_28, %c0_29, %c0_30], %38 {strides = array<i32>} : memref<1x1x1024xf32, #tpu.memory_space<vmem>>, vector<1x1x1024xf32>,
    } else {
    }
    return
  }
  func.func @transform_0(%arg0: i32, %arg1: i32) -> (i32, i32, i32) {
    %c0_i32 = arith.constant 0 : i32
    %c0_i32_0 = arith.constant 0 : i32
    return %arg0, %arg1, %c0_i32 : i32, i32, i32
  }
  func.func @transform_1(%arg0: i32, %arg1: i32) -> (i32, i32, i32) {
    %c0_i32 = arith.constant 0 : i32
    %c0_i32_0 = arith.constant 0 : i32
    %c0_i32_1 = arith.constant 0 : i32
    return %arg0, %c0_i32, %c0_i32_0 : i32, i32, i32
  }
  func.func @transform_2(%arg0: i32, %arg1: i32) -> (i32, i32) {
    %c0_i32 = arith.constant 0 : i32
    %c0_i32_0 = arith.constant 0 : i32
    %c0_i32_1 = arith.constant 0 : i32
    return %c0_i32, %c0_i32_0 : i32, i32
  }
  func.func @transform_3(%arg0: i32, %arg1: i32) -> (i32, i32) {
    %c0_i32 = arith.constant 0 : i32
    %c0_i32_0 = arith.constant 0 : i32
    %c0_i32_1 = arith.constant 0 : i32
    return %c0_i32, %c0_i32_0 : i32, i32
  }
  func.func @transform_4(%arg0: i32, %arg1: i32) -> (i32, i32) {
    %c0_i32 = arith.constant 0 : i32
    %c0_i32_0 = arith.constant 0 : i32
    %c0_i32_1 = arith.constant 0 : i32
    return %c0_i32, %c0_i32_0 : i32, i32
  }
  func.func @transform_5(%arg0: i32, %arg1: i32) -> (i32, i32) {
    %c0_i32 = arith.constant 0 : i32
    %c0_i32_0 = arith.constant 0 : i32
    %c0_i32_1 = arith.constant 0 : i32
    return %c0_i32, %c0_i32_0 : i32, i32
  }
  func.func @transform_6(%arg0: i32, %arg1: i32) -> (i32, i32) {
    %c0_i32 = arith.constant 0 : i32
    %c0_i32_0 = arith.constant 0 : i32
    %c0_i32_1 = arith.constant 0 : i32
    return %c0_i32, %c0_i32_0 : i32, i32
  }
  func.func @transform_7(%arg0: i32, %arg1: i32) -> (i32, i32, i32) {
    %c0_i32 = arith.constant 0 : i32
    %c0_i32_0 = arith.constant 0 : i32
    %c0_i32_1 = arith.constant 0 : i32
    return %arg0, %c0_i32, %c0_i32_0 : i32, i32, i32
  }
}

module attributes {stable_mosaic.version = 11 : i64} {
  func.func @_fc_stack_kernel(%arg0: memref<2x1024xf32, #tpu.memory_space<vmem>>, %arg1: memref<1024x512xbf16, #tpu.memory_space<vmem>>, %arg2: memref<1x512xf32, #tpu.memory_space<vmem>>, %arg3: memref<512x256xbf16, #tpu.memory_space<vmem>>, %arg4: memref<1x256xf32, #tpu.memory_space<vmem>>, %arg5: memref<256x128xbf16, #tpu.memory_space<vmem>>, %arg6: memref<1x128xf32, #tpu.memory_space<vmem>>, %arg7: memref<2x128xf32, #tpu.memory_space<vmem>>) attributes {dimension_semantics = [], scalar_prefetch = 0 : i64, scratch_operands = 0 : i64, tpu.core_type = #tpu.core_type<tc>} {
    %c0 = arith.constant 0 : index
    %c0_0 = arith.constant 0 : index
    %0 = vector.load %arg0[%c0, %c0_0] : memref<2x1024xf32, #tpu.memory_space<vmem>>, vector<2x1024xf32>
    %1 = arith.truncf %0 : vector<2x1024xf32> to vector<2x1024xbf16>
    %c0_1 = arith.constant 0 : index
    %c0_2 = arith.constant 0 : index
    %2 = vector.load %arg1[%c0_1, %c0_2] : memref<1024x512xbf16, #tpu.memory_space<vmem>>, vector<1024x512xbf16>
    %cst = arith.constant dense<0.000000e+00> : vector<2x512xf32>
    %3 = tpu.matmul %1, %2, %cst {dimension_numbers = #tpu.dot_dimension_numbers<[1], [0], [0], [1], [0, 0, 1, 1], [], []>} : vector<2x1024xbf16>, vector<1024x512xbf16>, vector<2x512xf32> -> vector<2x512xf32>
    %c0_3 = arith.constant 0 : index
    %c0_4 = arith.constant 0 : index
    %4 = vector.load %arg2[%c0_3, %c0_4] : memref<1x512xf32, #tpu.memory_space<vmem>>, vector<1x512xf32>
    %5 = vector.broadcast %4 : vector<1x512xf32> to vector<2x512xf32>
    %6 = arith.addf %3, %5 : vector<2x512xf32>
    %cst_5 = arith.constant 0.000000e+00 : f32
    %7 = vector.broadcast %cst_5 : f32 to vector<2x512xf32>
    %8 = arith.maximumf %6, %7 : vector<2x512xf32>
    %9 = arith.truncf %8 : vector<2x512xf32> to vector<2x512xbf16>
    %c0_6 = arith.constant 0 : index
    %c0_7 = arith.constant 0 : index
    %10 = vector.load %arg3[%c0_6, %c0_7] : memref<512x256xbf16, #tpu.memory_space<vmem>>, vector<512x256xbf16>
    %cst_8 = arith.constant dense<0.000000e+00> : vector<2x256xf32>
    %11 = tpu.matmul %9, %10, %cst_8 {dimension_numbers = #tpu.dot_dimension_numbers<[1], [0], [0], [1], [0, 0, 1, 1], [], []>} : vector<2x512xbf16>, vector<512x256xbf16>, vector<2x256xf32> -> vector<2x256xf32>
    %c0_9 = arith.constant 0 : index
    %c0_10 = arith.constant 0 : index
    %12 = vector.load %arg4[%c0_9, %c0_10] : memref<1x256xf32, #tpu.memory_space<vmem>>, vector<1x256xf32>
    %13 = vector.broadcast %12 : vector<1x256xf32> to vector<2x256xf32>
    %14 = arith.addf %11, %13 : vector<2x256xf32>
    %cst_11 = arith.constant 0.000000e+00 : f32
    %15 = vector.broadcast %cst_11 : f32 to vector<2x256xf32>
    %16 = arith.maximumf %14, %15 : vector<2x256xf32>
    %17 = arith.truncf %16 : vector<2x256xf32> to vector<2x256xbf16>
    %c0_12 = arith.constant 0 : index
    %c0_13 = arith.constant 0 : index
    %18 = vector.load %arg5[%c0_12, %c0_13] : memref<256x128xbf16, #tpu.memory_space<vmem>>, vector<256x128xbf16>
    %cst_14 = arith.constant dense<0.000000e+00> : vector<2x128xf32>
    %19 = tpu.matmul %17, %18, %cst_14 {dimension_numbers = #tpu.dot_dimension_numbers<[1], [0], [0], [1], [0, 0, 1, 1], [], []>} : vector<2x256xbf16>, vector<256x128xbf16>, vector<2x128xf32> -> vector<2x128xf32>
    %c0_15 = arith.constant 0 : index
    %c0_16 = arith.constant 0 : index
    %20 = vector.load %arg6[%c0_15, %c0_16] : memref<1x128xf32, #tpu.memory_space<vmem>>, vector<1x128xf32>
    %21 = vector.broadcast %20 : vector<1x128xf32> to vector<2x128xf32>
    %22 = arith.addf %19, %21 : vector<2x128xf32>
    %c0_17 = arith.constant 0 : index
    %c0_18 = arith.constant 0 : index
    %23 = vector.load %arg7[%c0_17, %c0_18] : memref<2x128xf32, #tpu.memory_space<vmem>>, vector<2x128xf32>
    tpu.vector_store %arg7[%c0_17, %c0_18], %22 {strides = array<i32>} : memref<2x128xf32, #tpu.memory_space<vmem>>, vector<2x128xf32>,
    return
  }
}

module attributes {stable_mosaic.version = 11 : i64} {
  func.func @_fc_stack_kernel(%arg0: memref<2x1024xf32, #tpu.memory_space<vmem>>, %arg1: memref<1024x512xbf16, #tpu.memory_space<vmem>>, %arg2: memref<1x512xf32, #tpu.memory_space<vmem>>, %arg3: memref<512x256xbf16, #tpu.memory_space<vmem>>, %arg4: memref<1x256xf32, #tpu.memory_space<vmem>>, %arg5: memref<256x128xbf16, #tpu.memory_space<vmem>>, %arg6: memref<1x128xf32, #tpu.memory_space<vmem>>, %arg7: memref<2x128xf32, #tpu.memory_space<vmem>>) attributes {dimension_semantics = [], scalar_prefetch = 0 : i64, scratch_operands = 0 : i64, tpu.core_type = #tpu.core_type<tc>} {
    %c0 = arith.constant 0 : index
    %c0_0 = arith.constant 0 : index
    %0 = vector.load %arg0[%c0, %c0_0] : memref<2x1024xf32, #tpu.memory_space<vmem>>, vector<2x1024xf32>
    %1 = arith.truncf %0 : vector<2x1024xf32> to vector<2x1024xbf16>
    %c0_1 = arith.constant 0 : index
    %c0_2 = arith.constant 0 : index
    %2 = vector.load %arg1[%c0_1, %c0_2] : memref<1024x512xbf16, #tpu.memory_space<vmem>>, vector<1024x512xbf16>
    %cst = arith.constant dense<0.000000e+00> : vector<2x512xf32>
    %3 = tpu.matmul %1, %2, %cst {dimension_numbers = #tpu.dot_dimension_numbers<[1], [0], [0], [1], [0, 0, 1, 1], [], []>} : vector<2x1024xbf16>, vector<1024x512xbf16>, vector<2x512xf32> -> vector<2x512xf32>
    %c0_3 = arith.constant 0 : index
    %c0_4 = arith.constant 0 : index
    %4 = vector.load %arg2[%c0_3, %c0_4] : memref<1x512xf32, #tpu.memory_space<vmem>>, vector<1x512xf32>
    %5 = vector.broadcast %4 : vector<1x512xf32> to vector<2x512xf32>
    %6 = arith.addf %3, %5 : vector<2x512xf32>
    %cst_5 = arith.constant 0.000000e+00 : f32
    %7 = vector.broadcast %cst_5 : f32 to vector<2x512xf32>
    %8 = arith.maximumf %6, %7 : vector<2x512xf32>
    %9 = arith.truncf %8 : vector<2x512xf32> to vector<2x512xbf16>
    %c0_6 = arith.constant 0 : index
    %c0_7 = arith.constant 0 : index
    %10 = vector.load %arg3[%c0_6, %c0_7] : memref<512x256xbf16, #tpu.memory_space<vmem>>, vector<512x256xbf16>
    %cst_8 = arith.constant dense<0.000000e+00> : vector<2x256xf32>
    %11 = tpu.matmul %9, %10, %cst_8 {dimension_numbers = #tpu.dot_dimension_numbers<[1], [0], [0], [1], [0, 0, 1, 1], [], []>} : vector<2x512xbf16>, vector<512x256xbf16>, vector<2x256xf32> -> vector<2x256xf32>
    %c0_9 = arith.constant 0 : index
    %c0_10 = arith.constant 0 : index
    %12 = vector.load %arg4[%c0_9, %c0_10] : memref<1x256xf32, #tpu.memory_space<vmem>>, vector<1x256xf32>
    %13 = vector.broadcast %12 : vector<1x256xf32> to vector<2x256xf32>
    %14 = arith.addf %11, %13 : vector<2x256xf32>
    %cst_11 = arith.constant 0.000000e+00 : f32
    %15 = vector.broadcast %cst_11 : f32 to vector<2x256xf32>
    %16 = arith.maximumf %14, %15 : vector<2x256xf32>
    %17 = arith.truncf %16 : vector<2x256xf32> to vector<2x256xbf16>
    %c0_12 = arith.constant 0 : index
    %c0_13 = arith.constant 0 : index
    %18 = vector.load %arg5[%c0_12, %c0_13] : memref<256x128xbf16, #tpu.memory_space<vmem>>, vector<256x128xbf16>
    %cst_14 = arith.constant dense<0.000000e+00> : vector<2x128xf32>
    %19 = tpu.matmul %17, %18, %cst_14 {dimension_numbers = #tpu.dot_dimension_numbers<[1], [0], [0], [1], [0, 0, 1, 1], [], []>} : vector<2x256xbf16>, vector<256x128xbf16>, vector<2x128xf32> -> vector<2x128xf32>
    %c0_15 = arith.constant 0 : index
    %c0_16 = arith.constant 0 : index
    %20 = vector.load %arg6[%c0_15, %c0_16] : memref<1x128xf32, #tpu.memory_space<vmem>>, vector<1x128xf32>
    %21 = vector.broadcast %20 : vector<1x128xf32> to vector<2x128xf32>
    %22 = arith.addf %19, %21 : vector<2x128xf32>
    %c0_17 = arith.constant 0 : index
    %c0_18 = arith.constant 0 : index
    %23 = vector.load %arg7[%c0_17, %c0_18] : memref<2x128xf32, #tpu.memory_space<vmem>>, vector<2x128xf32>
    tpu.vector_store %arg7[%c0_17, %c0_18], %22 {strides = array<i32>} : memref<2x128xf32, #tpu.memory_space<vmem>>, vector<2x128xf32>,
    return
  }
}

</mosaic_0001>

<bundles_post_ra>
// kernel: pointnet_cls_forward.4
= control target key start
LH: loop header
LB: loop body
LE: loop exit
PB: predicated region body
PF: predicated region fallthrough
CT: control target
= control target key end

     0   :  { %s9734_s24 = smov 0   ;;  %s9736_s25 = smov 0   ;;  %s11763_s0 = inlined_call_operand.vmem [shape: bf16[2,2512,3], index: 0, kind: input, shape index: {}]   ;;  %s11764_s1 = inlined_call_operand.vmem [shape: bf16[2,3,64], index: 1, kind: input, shape index: {}]   ;;  %s11765_s2 = inlined_call_operand.vmem [shape: f32[1,64], index: 2, kind: input, shape index: {}]   ;;  %s11766_s3 = inlined_call_operand.vmem [shape: bf16[64,128], index: 3, kind: input, shape index: {}]   ;;  %s11767_s4 = inlined_call_operand.vmem [shape: f32[1,128], index: 4, kind: input, shape index: {}]   ;;  %s11768_s5 = inlined_call_operand.vmem [shape: bf16[128,1024], index: 5, kind: input, shape index: {}]   ;;  %s11769_s6 = inlined_call_operand.vmem [shape: f32[1,1024], index: 6, kind: input, shape index: {}]   ;;  %s11770_s7 = inlined_call_operand.vmem [shape: f32[2,1,1024], index: 7, kind: output, shape index: {}]  }
   0x1   :  { %s9738_s26 = smov 0   ;;  %s9740_s27 = smov 0  }
   0x2   :  { %s9742_s28 = smov 0  }
   0x3 LB: > { %s26_s29 = sadd.s32 1, %s9678_s26  ;;  %s29_s30 = sadd.s32 1, %s9682_s27  ;;  %s9686_s28 = sphi %s9742_s28, %s17_s28   ;;  %s9682_s27 = sphi %s9740_s27, %s12067_s27   ;;  %s9678_s26 = sphi %s9738_s26, %s12066_s26   ;;  %s9674_s25 = sphi %s9736_s25, %s12065_s25   ;;  %s9670_s24 = sphi %s9734_s24, %s12064_s24  }
   0x4   : > { %p27_p0 = scmp.ge.s32.totalorder %s26_s29, 2  ;;  %p8390_p1 = scmp.ge.s32.totalorder %s9686_s28, 1 }
   0x5   : > { %p265_p2 = scmp.lt.s32.totalorder %s9686_s28, 5 }
   0x6   : > { %s12069_s29 = smov (%p27_p0, %s26_s29), 0  ;;  %s12071_s30 = smov (!%p27_p0, %s29_s30), %s9682_s27 }
   0x7   : > { %p266_p3 = pnand %p8390_p1, %p265_p2  ;;  %p31_p4 = scmp.ge.s32.totalorder %s12071_s30, 2 }
   0x9   : > { %s12073_s30 = smov (%p31_p4, %s12071_s30), 0  ;;  %269 = sbr.rel (%p266_p3) target bundleno = 2379 (0x94b), region = 48 }
   0xe   : > { %s304_s8 = smul.u32 157, %s9670_s24  ;;  %p305_p5 = scmp.lt.s32.totalorder %s9674_s25, 1  ;;  %vm1119_vm0 = vcmask 1040384   ;;  %v11771_v0 = vmov 0.0   ;;  %vm1120_vm1 = vcmask 1041408   ;;  %v9689_v1 = vmov 65535  }
   0xf   : > { %8869 = vmatprep.subr.bf16.mxu0 %v11771_v0  ;;  %9187 = vmatprep.subr.bf16.mxu1 %v11771_v0  ;;  %v1121_v2 = vsel %vm1119_vm0, 4294967295, %v9689_v1  ;;  %vm9690_vm2 = vmmov 0   ;;  %vm881_vm3 = vcmask 23552   ;;  %v9582_v14 = vld [vmem:[%s11766_s3 + $0x18] sm:$0xff]   ;;  %v9583_v15 = vld [vmem:[%s11766_s3 + $0x10] sm:$0xff]   ;;  %v9585_v17 = vld [vmem:[%s11766_s3 + $0x8] sm:$0xff]  }
  0x10   : > { %s12075_s25 = smov (!%p305_p5, %s9674_s25), 1  ;;  %8871 = vmatprep.mubr.msk.bf16.mxu0 %vm9690_vm2, %v11771_v0  ;;  %9195 = vmatprep.mubr.msk.bf16.mxu1 %vm9690_vm2, %v11771_v0  ;;  %p307_p6 = scmp.lt.s32.totalorder %s304_s8, 313  ;;  %v1122_v3 = vsel %vm1120_vm1, %v1121_v2, 0  ;;  %v9586_v19 = vld [vmem:[%s11766_s3] sm:$0xff]   ;;  %v9850_v22 = vld [vmem:[%s11768_s5 + $0x1c8] sm:$0xff]  ;;  %vm2065_vm4 = vcmask 523264  }
  0x11   : > { %s9511_s9 = smul.u32 314, %s12075_s25  ;;  %s8392_s10 = sshll.u32 %s12075_s25, 1  ;;  %9188 = vmatpush3.bf16.msra.mxu1 %v9582_v14  ;;  %v3259_v20 = vld [vmem:[%s11768_s5 + $0x1c0] sm:$0xff]  ;;  %v9856_v26 = vld [vmem:[%s11768_s5 + $0x1e8] sm:$0xff] }
  0x12   : > { %s12077_s8 = smov (!%p307_p6, %s304_s8), 313  ;;  %s317_s13 = scalar_lea.vmem %s11764_s1, %s8392_s10  ;;  %9189 = vmatprep.subr.bf16.mxu1 %v11771_v0  ;;  %v3263_v21 = vld [vmem:[%s11768_s5 + $0x1e0] sm:$0xff]  ;;  %v8695_v27 = vcombine.low %v9850_v22, %v9856_v26  ;;  %v8696_v28 = vcombine.high %v9850_v22, %v9856_v26  ;;  %v3252_v55 = vld [vmem:[%s11768_s5 + $0x188] sm:$0xff] }
  0x13   : > { %s8393_s14 = sshll.u32 %s12075_s25, 3  ;;  %s310_s15 = sadd.s32 %s9511_s9, %s12077_s8  ;;  %v480_v4 = vld [vmem:[%s317_s13] sm:$0x3]  ;;  %v8693_v24 = vcombine.low %v3259_v20, %v3263_v21  ;;  %v8694_v25 = vcombine.high %v3259_v20, %v3263_v21  ;;  %v3256_v56 = vld [vmem:[%s11768_s5 + $0x1a8] sm:$0xff] }
  0x14   : > { %s9779_s18 = scalar_lea.vmem %s11770_s7, %s8393_s14  ;;  %s8391_s19 = sshll.u32 %s310_s15, 2  ;;  %v1124_v5 = vand.u32 %v1122_v3, %v480_v4  ;;  %v3251_v38 = vld [vmem:[%s11768_s5 + $0x180] sm:$0xff]  ;;  %v8688_v61 = vcombine.high %v3252_v55, %v3256_v56  ;;  %v8687_v3 = vcombine.low %v3252_v55, %v3256_v56 }
  0x15   : > { %s9784_s22 = scalar_lea.vmem %s11763_s0, %s8391_s19  ;;  %9190 = vmatpush3.bf16.msra.mxu1 %v9583_v15  ;;  %v3255_v39 = vld [vmem:[%s11768_s5 + $0x1a0] sm:$0xff]  ;;  %p8701_p7 = scmp.ne.s32.totalorder %s9670_s24, 0 }
  0x16   : > { %8870 = vmatpush3.bf16.msra.mxu0 %v1124_v5  ;;  %v9558_v6 = vld [vmem:[%s9784_s22] sm:$0xff]   ;;  %v9559_v7 = vld [vmem:[%s9784_s22 + $0x8] sm:$0xff]   ;;  %v9560_v8 = vld [vmem:[%s9784_s22 + $0x10] sm:$0xff]   ;;  %9191 = vmatprep.subr.bf16.mxu1 %v11771_v0  ;;  %v8685_v41 = vcombine.low %v3251_v38, %v3255_v39  ;;  %v8686_v42 = vcombine.high %v3251_v38, %v3255_v39 }
  0x17   : > { %v9561_v9 = vld [vmem:[%s9784_s22 + $0x18] sm:$0xff]   ;;  %v9562_v10 = vld [vmem:[%s9784_s22 + $0x20] sm:$0xff]   ;;  %v9563_v11 = vld [vmem:[%s9784_s22 + $0x28] sm:$0xff]   ;;  %3587 = vmatprep.subr.bf16.mxu0 %v8694_v25 }
  0x18   : > { %v9564_v12 = vld [vmem:[%s9784_s22 + $0x30] sm:$0xff]   ;;  %v9565_v13 = vld [vmem:[%s9784_s22 + $0x38] sm:$0xff]   ;;  %v9566_v16 = vld [vmem:[%s9784_s22 + $0x40] sm:$0xff]  }
  0x19   : > { %8872 = vmatmul.mubr.msk.bf16.vlgmr.msra.gmra.mxu0 %vm881_vm3, %v9558_v6  ;;  %v9567_v18 = vld [vmem:[%s9784_s22 + $0x48] sm:$0xff]   ;;  %9192 = vmatpush3.bf16.msra.mxu1 %v9585_v17  ;;  %v9568_v23 = vld [vmem:[%s9784_s22 + $0x50] sm:$0xff]   ;;  %v9569_v29 = vld [vmem:[%s9784_s22 + $0x58] sm:$0xff]  }
  0x1a   : > { %8875 = vmatprep.mubr.msk.bf16.mxu0 %vm9690_vm2, %v11771_v0  ;;  %9193 = vmatprep.subr.bf16.mxu1 %v11771_v0  ;;  %v9570_v30 = vld [vmem:[%s9784_s22 + $0x60] sm:$0xff]   ;;  %v9571_v31 = vld [vmem:[%s9784_s22 + $0x68] sm:$0xff]   ;;  %v9572_v32 = vld [vmem:[%s9784_s22 + $0x70] sm:$0xff]  }
  0x1b   : > { %3588 = vmatpush1.bf16.msra.mxu0 %v8693_v24  ;;  %v9573_v33 = vld [vmem:[%s9784_s22 + $0x78] sm:$0xff]   ;;  %v9574_v34 = vld [vmem:[%s9784_s22 + $0x80] sm:$0xff]   ;;  %v9575_v35 = vld [vmem:[%s9784_s22 + $0x88] sm:$0xff]  }
  0x1c   : > { %v9576_v36 = vld [vmem:[%s9784_s22 + $0x90] sm:$0xff]   ;;  %v9577_v37 = vld [vmem:[%s9784_s22 + $0x98] sm:$0xff]   ;;  %v9578_v40 = vld [vmem:[%s9784_s22 + $0xa0] sm:$0xff]   ;;  %3589 = vmatprep.subr.bf16.mxu0 %v8686_v42 }
  0x1d   : > { %9194 = vmatpush3.bf16.msra.mxu1 %v9586_v19  ;;  %v9579_v43 = vld [vmem:[%s9784_s22 + $0xa8] sm:$0xff]   ;;  %v9580_v44 = vld [vmem:[%s9784_s22 + $0xb0] sm:$0xff]   ;;  %v9581_v45 = vld [vmem:[%s9784_s22 + $0xb8] sm:$0xff]  }
  0x1e   : > { %4408 = vmatprep.subr.bf16.mxu1 %v8696_v28  ;;  %v9584_v46 = vld [vmem:[%s9784_s22 + $0xc0] sm:$0xff]   ;;  %v9587_v52 = vld [vmem:[%s9784_s22 + $0xc8] sm:$0xff]   ;;  %v9588_v2 = vld [vmem:[%s9784_s22 + $0xd0] sm:$0xff]  }
  0x1f   : > { %3590 = vmatpush1.bf16.msra.mxu0 %v8685_v41  ;;  %v9927_v47 = vld [vmem:[%s11765_s2] ss:$0 sm:$0xff] }
  0x20   : > { %v3243_v42 = vld [vmem:[%s11768_s5 + $0x140] sm:$0xff] }
  0x21   : > { %8876 = vmatmul.mubr.msk.bf16.gmra.mxu0 %vm881_vm3, %v9559_v7 }
  0x22   : > { %8879 = vmatprep.mubr.msk.bf16.mxu0 %vm9690_vm2, %v11771_v0 }
  0x29   : > { %8880 = vmatmul.mubr.msk.bf16.gmra.mxu0 %vm881_vm3, %v9560_v8 }
  0x2a   : > { %8883 = vmatprep.mubr.msk.bf16.mxu0 %vm9690_vm2, %v11771_v0 }
  0x31   : > { %8884 = vmatmul.mubr.msk.bf16.gmra.mxu0 %vm881_vm3, %v9561_v9 }
  0x32   : > { %8887 = vmatprep.mubr.msk.bf16.mxu0 %vm9690_vm2, %v11771_v0 }
  0x39   : > { %8888 = vmatmul.mubr.msk.bf16.gmra.mxu0 %vm881_vm3, %v9562_v10 }
  0x3a   : > { %8891 = vmatprep.mubr.msk.bf16.mxu0 %vm9690_vm2, %v11771_v0 }
  0x41   : > { %8892 = vmatmul.mubr.msk.bf16.gmra.mxu0 %vm881_vm3, %v9563_v11 }
  0x42   : > { %8895 = vmatprep.mubr.msk.bf16.mxu0 %vm9690_vm2, %v11771_v0 }
  0x49   : > { %8896 = vmatmul.mubr.msk.bf16.gmra.mxu0 %vm881_vm3, %v9564_v12 }
  0x4a   : > { %8899 = vmatprep.mubr.msk.bf16.mxu0 %vm9690_vm2, %v11771_v0 }
  0x51   : > { %8900 = vmatmul.mubr.msk.bf16.gmra.mxu0 %vm881_vm3, %v9565_v13  ;;  %v9589_v13 = vld [vmem:[%s9784_s22 + $0xd8] sm:$0xff]  }
  0x52   : > { %8903 = vmatprep.mubr.msk.bf16.mxu0 %vm9690_vm2, %v11771_v0 }
  0x59   : > { %8904 = vmatmul.mubr.msk.bf16.gmra.mxu0 %vm881_vm3, %v9566_v16 }
  0x5a   : > { %8907 = vmatprep.mubr.msk.bf16.mxu0 %vm9690_vm2, %v11771_v0 }
  0x61   : > { %8908 = vmatmul.mubr.msk.bf16.gmra.mxu0 %vm881_vm3, %v9567_v18 }
  0x62   : > { %8911 = vmatprep.mubr.msk.bf16.mxu0 %vm9690_vm2, %v11771_v0 }
  0x69   : > { %8912 = vmatmul.mubr.msk.bf16.gmra.mxu0 %vm881_vm3, %v9568_v23  ;;  %v9590_v23 = vld [vmem:[%s9784_s22 + $0xe0] sm:$0xff]  }
  0x6a   : > { %8915 = vmatprep.mubr.msk.bf16.mxu0 %vm9690_vm2, %v11771_v0 }
  0x71   : > { %8916 = vmatmul.mubr.msk.bf16.gmra.mxu0 %vm881_vm3, %v9569_v29 }
  0x72   : > { %8919 = vmatprep.mubr.msk.bf16.mxu0 %vm9690_vm2, %v11771_v0 }
  0x79   : > { %8920 = vmatmul.mubr.msk.bf16.gmra.mxu0 %vm881_vm3, %v9570_v30 }
  0x7a   : > { %8923 = vmatprep.mubr.msk.bf16.mxu0 %vm9690_vm2, %v11771_v0 }
  0x81   : > { %8924 = vmatmul.mubr.msk.bf16.gmra.mxu0 %vm881_vm3, %v9571_v31 }
  0x82   : > { %8927 = vmatprep.mubr.msk.bf16.mxu0 %vm9690_vm2, %v11771_v0 }
  0x89   : > { %8928 = vmatmul.mubr.msk.bf16.gmra.mxu0 %vm881_vm3, %v9572_v32 }
  0x8a   : > { %8931 = vmatprep.mubr.msk.bf16.mxu0 %vm9690_vm2, %v11771_v0 }
  0x91   : > { %8932 = vmatmul.mubr.msk.bf16.gmra.mxu0 %vm881_vm3, %v9573_v33  ;;  %v9591_v33 = vld [vmem:[%s9784_s22 + $0xe8] sm:$0xff]  }
  0x92   : > { %8935 = vmatprep.mubr.msk.bf16.mxu0 %vm9690_vm2, %v11771_v0 }
  0x99   : > { %8936 = vmatmul.mubr.msk.bf16.gmra.mxu0 %vm881_vm3, %v9574_v34 }
  0x9a   : > { %8939 = vmatprep.mubr.msk.bf16.mxu0 %vm9690_vm2, %v11771_v0 }
  0xa1   : > { %8940 = vmatmul.mubr.msk.bf16.gmra.mxu0 %vm881_vm3, %v9575_v35 }
  0xa2   : > { %8943 = vmatprep.mubr.msk.bf16.mxu0 %vm9690_vm2, %v11771_v0 }
  0xa9   : > { %8944 = vmatmul.mubr.msk.bf16.gmra.mxu0 %vm881_vm3, %v9576_v36 }
  0xaa   : > { %8947 = vmatprep.mubr.msk.bf16.mxu0 %vm9690_vm2, %v11771_v0 }
  0xb1   : > { %8948 = vmatmul.mubr.msk.bf16.gmra.mxu0 %vm881_vm3, %v9577_v37 }
  0xb2   : > { %8951 = vmatprep.mubr.msk.bf16.mxu0 %vm9690_vm2, %v11771_v0 }
  0xb9   : > { %8952 = vmatmul.mubr.msk.bf16.gmra.mxu0 %vm881_vm3, %v9578_v40 }
  0xba   : > { %8955 = vmatprep.mubr.msk.bf16.mxu0 %vm9690_vm2, %v11771_v0 }
  0xc1   : > { %8956 = vmatmul.mubr.msk.bf16.gmra.mxu0 %vm881_vm3, %v9579_v43  ;;  %v3247_v43 = vld [vmem:[%s11768_s5 + $0x160] sm:$0xff] }
  0xc2   : > { %8959 = vmatprep.mubr.msk.bf16.mxu0 %vm9690_vm2, %v11771_v0 }
  0xc9   : > { %8960 = vmatmul.mubr.msk.bf16.gmra.mxu0 %vm881_vm3, %v9580_v44  ;;  %v3244_v44 = vld [vmem:[%s11768_s5 + $0x148] sm:$0xff] }
  0xca   : > { %8963 = vmatprep.mubr.msk.bf16.mxu0 %vm9690_vm2, %v11771_v0 }
  0xd1   : > { %8964 = vmatmul.mubr.msk.bf16.gmra.mxu0 %vm881_vm3, %v9581_v45 }
  0xd2   : > { %8967 = vmatprep.mubr.msk.bf16.mxu0 %vm9690_vm2, %v11771_v0 }
  0xd9   : > { %v1160_v48 = vpop.f32.mrf.mxu0  ;;  %8968 = vmatmul.mubr.msk.bf16.gmra.mxu0 %vm881_vm3, %v9584_v46  ;;  %v9592_v46 = vld [vmem:[%s9784_s22 + $0xf0] sm:$0xff]  }
  0xda   : > { %8971 = vmatprep.mubr.msk.bf16.mxu0 %vm9690_vm2, %v11771_v0  ;;  %v1161_v50 = vadd.f32 %v9927_v47, %v1160_v48  ;;  %v8677_v48 = vcombine.low %v3243_v42, %v3247_v43 }
  0xdb   : > { %v8873_v49 = vpop.f32.mrf.mxu0 }
  0xdc   : > { %v1790_v57 = vmax.f32 %v1161_v50, 0.0  ;;  %v8678_v49 = vcombine.high %v3243_v42, %v3247_v43  ;;  %v3248_v50 = vld [vmem:[%s11768_s5 + $0x168] sm:$0xff] }
  0xdd   : > { %v1163_v51 = vpop.f32.mrf.mxu0 }
  0xde   : > { %v1164_v53 = vadd.f32 %v9927_v47, %v1163_v51  ;;  %3591 = vmatprep.subr.bf16.mxu0 %v8678_v49 }
  0xdf   : > { %v8874_v54 = vpop.f32.mrf.mxu0  ;;  %3592 = vmatpush1.bf16.msra.mxu0 %v8677_v48 }
  0xe0   : > { %v1791_v58 = vmax.f32 %v1164_v53, 0.0  ;;  %v8680_v53 = vcombine.high %v3244_v44, %v3248_v50 }
  0xe1   : > { %v1168_v59 = vpop.f32.mrf.mxu0  ;;  %8972 = vmatmul.mubr.msk.bf16.gmra.mxu0 %vm881_vm3, %v9587_v52  ;;  %v8679_v52 = vcombine.low %v3244_v44, %v3248_v50  ;;  %v9598_v50 = vld [vmem:[%s9784_s22 + $0x120] sm:$0xff]  }
  0xe2   : > { %v1947_v60 = vpack.c.bf16 %v1791_v58, %v1790_v57  ;;  %8975 = vmatprep.mubr.msk.bf16.mxu0 %vm9690_vm2, %v11771_v0  ;;  %v1169_v63 = vadd.f32 %v9927_v47, %v1168_v59 }
  0xe3   : > { %v8877_v62 = vpop.f32.mrf.mxu0 }
  0xe4   : > { %9196 = vmatmul.mubr.msk.bf16.vlgmr.msra.gmra.mxu1 %vm2065_vm4, %v1947_v60  ;;  %v1792_v6 = vmax.f32 %v1169_v63, 0.0  ;;  %v9593_v62 = vld [vmem:[%s9784_s22 + $0xf8] sm:$0xff]  }
  0xe5   : > { %4409 = vmatpush1.bf16.msra.mxu1 %v8695_v27  ;;  %v1171_v1 = vpop.f32.mrf.mxu0  ;;  %9199 = vmatprep.mubr.msk.bf16.mxu1 %vm9690_vm2, %v11771_v0 }
  0xe6   : > { %v1172_v4 = vadd.f32 %v9927_v47, %v1171_v1  ;;  %4410 = vmatprep.subr.bf16.mxu1 %v8688_v61 }
  0xe7   : > { %v8878_v5 = vpop.f32.mrf.mxu0 }
  0xe8   : > { %v1793_v7 = vmax.f32 %v1172_v4, 0.0 }
  0xe9   : > { %v1176_v8 = vpop.f32.mrf.mxu0  ;;  %8976 = vmatmul.mubr.msk.bf16.gmra.mxu0 %vm881_vm3, %v9588_v2  ;;  %4411 = vmatpush1.bf16.msra.mxu1 %v8687_v3 }
  0xea   : > { %v1948_v9 = vpack.c.bf16 %v1793_v7, %v1792_v6  ;;  %8979 = vmatprep.mubr.msk.bf16.mxu0 %vm9690_vm2, %v11771_v0  ;;  %v1177_v11 = vadd.f32 %v9927_v47, %v1176_v8  ;;  %4412 = vmatprep.subr.bf16.mxu1 %v8680_v53 }
  0xeb   : > { %v8881_v10 = vpop.f32.mrf.mxu0 }
  0xec   : > { %9200 = vmatmul.mubr.msk.bf16.gmra.mxu1 %vm2065_vm4, %v1948_v9  ;;  %v1794_v16 = vmax.f32 %v1177_v11, 0.0  ;;  %v9594_v9 = vld [vmem:[%s9784_s22 + $0x100] sm:$0xff]  }
  0xed   : > { %v1179_v12 = vpop.f32.mrf.mxu0  ;;  %9203 = vmatprep.mubr.msk.bf16.mxu1 %vm9690_vm2, %v11771_v0  ;;  %4413 = vmatpush1.bf16.msra.mxu1 %v8679_v52 }
  0xee   : > { %v1180_v14 = vadd.f32 %v9927_v47, %v1179_v12 }
  0xef   : > { %v8882_v15 = vpop.f32.mrf.mxu0 }
  0xf0   : > { %v1795_v17 = vmax.f32 %v1180_v14, 0.0 }
  0xf1   : > { %v1184_v18 = vpop.f32.mrf.mxu0  ;;  %8980 = vmatmul.mubr.msk.bf16.gmra.mxu0 %vm881_vm3, %v9589_v13 }
  0xf2   : > { %v1949_v19 = vpack.c.bf16 %v1795_v17, %v1794_v16  ;;  %8983 = vmatprep.mubr.msk.bf16.mxu0 %vm9690_vm2, %v11771_v0  ;;  %v1185_v21 = vadd.f32 %v9927_v47, %v1184_v18 }
  0xf3   : > { %v8885_v20 = vpop.f32.mrf.mxu0 }
  0xf4   : > { %9204 = vmatmul.mubr.msk.bf16.gmra.mxu1 %vm2065_vm4, %v1949_v19  ;;  %v1796_v26 = vmax.f32 %v1185_v21, 0.0  ;;  %v9595_v19 = vld [vmem:[%s9784_s22 + $0x108] sm:$0xff]  }
  0xf5   : > { %v1187_v22 = vpop.f32.mrf.mxu0  ;;  %9207 = vmatprep.mubr.msk.bf16.mxu1 %vm9690_vm2, %v11771_v0 }
  0xf6   : > { %v1188_v24 = vadd.f32 %v9927_v47, %v1187_v22 }
  0xf7   : > { %v8886_v25 = vpop.f32.mrf.mxu0 }
  0xf8   : > { %v1797_v27 = vmax.f32 %v1188_v24, 0.0 }
  0xf9   : > { %v1192_v28 = vpop.f32.mrf.mxu0  ;;  %8984 = vmatmul.mubr.msk.bf16.gmra.mxu0 %vm881_vm3, %v9590_v23 }
  0xfa   : > { %v1950_v29 = vpack.c.bf16 %v1797_v27, %v1796_v26  ;;  %8987 = vmatprep.mubr.msk.bf16.mxu0 %vm9690_vm2, %v11771_v0  ;;  %v1193_v31 = vadd.f32 %v9927_v47, %v1192_v28 }
  0xfb   : > { %v8889_v30 = vpop.f32.mrf.mxu0 }
  0xfc   : > { %9208 = vmatmul.mubr.msk.bf16.gmra.mxu1 %vm2065_vm4, %v1950_v29  ;;  %v1798_v36 = vmax.f32 %v1193_v31, 0.0  ;;  %v9596_v29 = vld [vmem:[%s9784_s22 + $0x110] sm:$0xff]  }
  0xfd   : > { %v1195_v32 = vpop.f32.mrf.mxu0  ;;  %9211 = vmatprep.mubr.msk.bf16.mxu1 %vm9690_vm2, %v11771_v0 }
  0xfe   : > { %v1196_v34 = vadd.f32 %v9927_v47, %v1195_v32 }
  0xff   : > { %v8890_v35 = vpop.f32.mrf.mxu0 }
 0x100   : > { %v1799_v37 = vmax.f32 %v1196_v34, 0.0 }
 0x101   : > { %v1200_v38 = vpop.f32.mrf.mxu0  ;;  %8988 = vmatmul.mubr.msk.bf16.gmra.mxu0 %vm881_vm3, %v9591_v33 }
 0x102   : > { %v1951_v39 = vpack.c.bf16 %v1799_v37, %v1798_v36  ;;  %8991 = vmatprep.mubr.msk.bf16.mxu0 %vm9690_vm2, %v11771_v0  ;;  %v1201_v41 = vadd.f32 %v9927_v47, %v1200_v38 }
 0x103   : > { %v8893_v40 = vpop.f32.mrf.mxu0 }
 0x104   : > { %9212 = vmatmul.mubr.msk.bf16.gmra.mxu1 %vm2065_vm4, %v1951_v39  ;;  %v1800_v55 = vmax.f32 %v1201_v41, 0.0  ;;  %v9597_v39 = vld [vmem:[%s9784_s22 + $0x118] sm:$0xff]  }
 0x105   : > { %v1203_v45 = vpop.f32.mrf.mxu0  ;;  %9215 = vmatprep.mubr.msk.bf16.mxu1 %vm9690_vm2, %v11771_v0 }
 0x106   : > { %v1204_v51 = vadd.f32 %v9927_v47, %v1203_v45 }
 0x107   : > { %v8894_v54 = vpop.f32.mrf.mxu0 }
 0x108   : > { %v1801_v56 = vmax.f32 %v1204_v51, 0.0 }
 0x109   : > { %v1208_v57 = vpop.f32.mrf.mxu0  ;;  %8992 = vmatmul.mubr.msk.bf16.gmra.mxu0 %vm881_vm3, %v9592_v46 }
 0x10a   : > { %v1952_v58 = vpack.c.bf16 %v1801_v56, %v1800_v55  ;;  %8995 = vmatprep.mubr.msk.bf16.mxu0 %vm9690_vm2, %v11771_v0  ;;  %v1209_v60 = vadd.f32 %v9927_v47, %v1208_v57 }
 0x10b   : > { %v8897_v59 = vpop.f32.mrf.mxu0 }
 0x10c   : > { %9216 = vmatmul.mubr.msk.bf16.gmra.mxu1 %vm2065_vm4, %v1952_v58  ;;  %v1802_v2 = vmax.f32 %v1209_v60, 0.0  ;;  %v9599_v60 = vld [vmem:[%s9784_s22 + $0x128] sm:$0xff]  }
 0x10d   : > { %v1211_v61 = vpop.f32.mrf.mxu0  ;;  %9219 = vmatprep.mubr.msk.bf16.mxu1 %vm9690_vm2, %v11771_v0 }
 0x10e   : > { %v1212_v63 = vadd.f32 %v9927_v47, %v1211_v61 }
 0x10f   : > { %v8898_v1 = vpop.f32.mrf.mxu0 }
 0x110   : > { %v1803_v3 = vmax.f32 %v1212_v63, 0.0 }
 0x111   : > { %v1216_v4 = vpop.f32.mrf.mxu0  ;;  %8996 = vmatmul.mubr.msk.bf16.gmra.mxu0 %vm881_vm3, %v9593_v62 }
 0x112   : > { %v1953_v5 = vpack.c.bf16 %v1803_v3, %v1802_v2  ;;  %8999 = vmatprep.mubr.msk.bf16.mxu0 %vm9690_vm2, %v11771_v0  ;;  %v1217_v7 = vadd.f32 %v9927_v47, %v1216_v4 }
 0x113   : > { %v8901_v6 = vpop.f32.mrf.mxu0 }
 0x114   : > { %9220 = vmatmul.mubr.msk.bf16.gmra.mxu1 %vm2065_vm4, %v1953_v5  ;;  %v1804_v12 = vmax.f32 %v1217_v7, 0.0  ;;  %v9600_v7 = vld [vmem:[%s9784_s22 + $0x130] sm:$0xff]  }
 0x115   : > { %v1219_v8 = vpop.f32.mrf.mxu0  ;;  %9223 = vmatprep.mubr.msk.bf16.mxu1 %vm9690_vm2, %v11771_v0 }
 0x116   : > { %v1220_v10 = vadd.f32 %v9927_v47, %v1219_v8 }
 0x117   : > { %v8902_v11 = vpop.f32.mrf.mxu0 }
 0x118   : > { %v1805_v13 = vmax.f32 %v1220_v10, 0.0 }
 0x119   : > { %v1224_v14 = vpop.f32.mrf.mxu0  ;;  %9000 = vmatmul.mubr.msk.bf16.gmra.mxu0 %vm881_vm3, %v9594_v9 }
 0x11a   : > { %v1954_v15 = vpack.c.bf16 %v1805_v13, %v1804_v12  ;;  %9003 = vmatprep.mubr.msk.bf16.mxu0 %vm9690_vm2, %v11771_v0  ;;  %v1225_v17 = vadd.f32 %v9927_v47, %v1224_v14 }
 0x11b   : > { %v8905_v16 = vpop.f32.mrf.mxu0 }
 0x11c   : > { %9224 = vmatmul.mubr.msk.bf16.gmra.mxu1 %vm2065_vm4, %v1954_v15  ;;  %v1806_v22 = vmax.f32 %v1225_v17, 0.0  ;;  %v9601_v17 = vld [vmem:[%s9784_s22 + $0x138] sm:$0xff]  }
 0x11d   : > { %v1227_v18 = vpop.f32.mrf.mxu0  ;;  %9227 = vmatprep.mubr.msk.bf16.mxu1 %vm9690_vm2, %v11771_v0 }
 0x11e   : > { %v1228_v20 = vadd.f32 %v9927_v47, %v1227_v18 }
 0x11f   : > { %v8906_v21 = vpop.f32.mrf.mxu0 }
 0x120   : > { %v1807_v23 = vmax.f32 %v1228_v20, 0.0 }
 0x121   : > { %v1232_v24 = vpop.f32.mrf.mxu0  ;;  %9004 = vmatmul.mubr.msk.bf16.gmra.mxu0 %vm881_vm3, %v9595_v19 }
 0x122   : > { %v1955_v25 = vpack.c.bf16 %v1807_v23, %v1806_v22  ;;  %9007 = vmatprep.mubr.msk.bf16.mxu0 %vm9690_vm2, %v11771_v0  ;;  %v1233_v27 = vadd.f32 %v9927_v47, %v1232_v24 }
 0x123   : > { %v8909_v26 = vpop.f32.mrf.mxu0 }
 0x124   : > { %9228 = vmatmul.mubr.msk.bf16.gmra.mxu1 %vm2065_vm4, %v1955_v25  ;;  %v1808_v32 = vmax.f32 %v1233_v27, 0.0  ;;  %v9602_v26 = vld [vmem:[%s9784_s22 + $0x140] sm:$0xff]  }
 0x125   : > { %v1235_v28 = vpop.f32.mrf.mxu0  ;;  %9231 = vmatprep.mubr.msk.bf16.mxu1 %vm9690_vm2, %v11771_v0 }
 0x126   : > { %v1236_v30 = vadd.f32 %v9927_v47, %v1235_v28  ;;  %v3235_v28 = vld [vmem:[%s11768_s5 + $0x100] sm:$0xff] }
 0x127   : > { %v8910_v31 = vpop.f32.mrf.mxu0 }
 0x128   : > { %v1809_v33 = vmax.f32 %v1236_v30, 0.0  ;;  %v3236_v30 = vld [vmem:[%s11768_s5 + $0x108] sm:$0xff] }
 0x129   : > { %v1240_v34 = vpop.f32.mrf.mxu0  ;;  %9008 = vmatmul.mubr.msk.bf16.gmra.mxu0 %vm881_vm3, %v9596_v29  ;;  %v3239_v29 = vld [vmem:[%s11768_s5 + $0x120] sm:$0xff] }
 0x12a   : > { %v1956_v35 = vpack.c.bf16 %v1809_v33, %v1808_v32  ;;  %9011 = vmatprep.mubr.msk.bf16.mxu0 %vm9690_vm2, %v11771_v0  ;;  %v1241_v37 = vadd.f32 %v9927_v47, %v1240_v34  ;;  %v8669_v32 = vcombine.low %v3235_v28, %v3239_v29  ;;  %v8670_v33 = vcombine.high %v3235_v28, %v3239_v29  ;;  %v3240_v34 = vld [vmem:[%s11768_s5 + $0x128] sm:$0xff] }
 0x12b   : > { %v8913_v36 = vpop.f32.mrf.mxu0 }
 0x12c   : > { %9232 = vmatmul.mubr.msk.bf16.gmra.mxu1 %vm2065_vm4, %v1956_v35  ;;  %v1810_v42 = vmax.f32 %v1241_v37, 0.0  ;;  %v8671_v36 = vcombine.low %v3236_v30, %v3240_v34  ;;  %v8672_v37 = vcombine.high %v3236_v30, %v3240_v34  ;;  %3593 = vmatprep.subr.bf16.mxu0 %v8670_v33  ;;  %v9608_v33 = vld [vmem:[%s9784_s22 + $0x170] sm:$0xff]  }
 0x12d   : > { %v1243_v38 = vpop.f32.mrf.mxu0  ;;  %9235 = vmatprep.mubr.msk.bf16.mxu1 %vm9690_vm2, %v11771_v0  ;;  %3594 = vmatpush1.bf16.msra.mxu0 %v8669_v32 }
 0x12e   : > { %v1244_v40 = vadd.f32 %v9927_v47, %v1243_v38  ;;  %4414 = vmatprep.subr.bf16.mxu1 %v8672_v37 }
 0x12f   : > { %v8914_v41 = vpop.f32.mrf.mxu0  ;;  %4415 = vmatpush1.bf16.msra.mxu1 %v8671_v36 }
 0x130   : > { %v1811_v43 = vmax.f32 %v1244_v40, 0.0 }
 0x131   : > { %v1248_v44 = vpop.f32.mrf.mxu0  ;;  %9012 = vmatmul.mubr.msk.bf16.gmra.mxu0 %vm881_vm3, %v9597_v39 }
 0x132   : > { %v1957_v45 = vpack.c.bf16 %v1811_v43, %v1810_v42  ;;  %9015 = vmatprep.mubr.msk.bf16.mxu0 %vm9690_vm2, %v11771_v0  ;;  %v1249_v48 = vadd.f32 %v9927_v47, %v1248_v44 }
 0x133   : > { %v8917_v46 = vpop.f32.mrf.mxu0 }
 0x134   : > { %9236 = vmatmul.mubr.msk.bf16.gmra.mxu1 %vm2065_vm4, %v1957_v45  ;;  %v1812_v53 = vmax.f32 %v1249_v48, 0.0  ;;  %v9603_v45 = vld [vmem:[%s9784_s22 + $0x148] sm:$0xff]  }
 0x135   : > { %v1251_v49 = vpop.f32.mrf.mxu0  ;;  %9239 = vmatprep.mubr.msk.bf16.mxu1 %vm9690_vm2, %v11771_v0 }
 0x136   : > { %v1252_v51 = vadd.f32 %v9927_v47, %v1251_v49 }
 0x137   : > { %v8918_v52 = vpop.f32.mrf.mxu0 }
 0x138   : > { %v1813_v54 = vmax.f32 %v1252_v51, 0.0 }
 0x139   : > { %v1256_v55 = vpop.f32.mrf.mxu0  ;;  %9016 = vmatmul.mubr.msk.bf16.gmra.mxu0 %vm881_vm3, %v9598_v50 }
 0x13a   : > { %v1958_v56 = vpack.c.bf16 %v1813_v54, %v1812_v53  ;;  %9019 = vmatprep.mubr.msk.bf16.mxu0 %vm9690_vm2, %v11771_v0  ;;  %v1257_v58 = vadd.f32 %v9927_v47, %v1256_v55 }
 0x13b   : > { %v8921_v57 = vpop.f32.mrf.mxu0 }
 0x13c   : > { %9240 = vmatmul.mubr.msk.bf16.gmra.mxu1 %vm2065_vm4, %v1958_v56  ;;  %v1814_v63 = vmax.f32 %v1257_v58, 0.0  ;;  %v9604_v56 = vld [vmem:[%s9784_s22 + $0x150] sm:$0xff]  }
 0x13d   : > { %v1259_v59 = vpop.f32.mrf.mxu0  ;;  %9243 = vmatprep.mubr.msk.bf16.mxu1 %vm9690_vm2, %v11771_v0 }
 0x13e   : > { %v1260_v61 = vadd.f32 %v9927_v47, %v1259_v59 }
 0x13f   : > { %v8922_v62 = vpop.f32.mrf.mxu0 }
 0x140   : > { %v1815_v1 = vmax.f32 %v1260_v61, 0.0 }
 0x141   : > { %v1264_v2 = vpop.f32.mrf.mxu0  ;;  %9020 = vmatmul.mubr.msk.bf16.gmra.mxu0 %vm881_vm3, %v9599_v60 }
 0x142   : > { %v1959_v3 = vpack.c.bf16 %v1815_v1, %v1814_v63  ;;  %9023 = vmatprep.mubr.msk.bf16.mxu0 %vm9690_vm2, %v11771_v0  ;;  %v1265_v5 = vadd.f32 %v9927_v47, %v1264_v2 }
 0x143   : > { %v8925_v4 = vpop.f32.mrf.mxu0 }
 0x144   : > { %9244 = vmatmul.mubr.msk.bf16.gmra.mxu1 %vm2065_vm4, %v1959_v3  ;;  %v1816_v10 = vmax.f32 %v1265_v5, 0.0  ;;  %v9605_v3 = vld [vmem:[%s9784_s22 + $0x158] sm:$0xff]  }
 0x145   : > { %v1267_v6 = vpop.f32.mrf.mxu0  ;;  %9247 = vmatprep.mubr.msk.bf16.mxu1 %vm9690_vm2, %v11771_v0 }
 0x146   : > { %v1268_v8 = vadd.f32 %v9927_v47, %v1267_v6 }
 0x147   : > { %v8926_v9 = vpop.f32.mrf.mxu0 }
 0x148   : > { %v1817_v11 = vmax.f32 %v1268_v8, 0.0 }
 0x149   : > { %v1272_v12 = vpop.f32.mrf.mxu0  ;;  %9024 = vmatmul.mubr.msk.bf16.gmra.mxu0 %vm881_vm3, %v9600_v7 }
 0x14a   : > { %v1960_v13 = vpack.c.bf16 %v1817_v11, %v1816_v10  ;;  %9027 = vmatprep.mubr.msk.bf16.mxu0 %vm9690_vm2, %v11771_v0  ;;  %v1273_v15 = vadd.f32 %v9927_v47, %v1272_v12 }
 0x14b   : > { %v8929_v14 = vpop.f32.mrf.mxu0 }
 0x14c   : > { %9248 = vmatmul.mubr.msk.bf16.gmra.mxu1 %vm2065_vm4, %v1960_v13  ;;  %v1818_v20 = vmax.f32 %v1273_v15, 0.0  ;;  %v9606_v13 = vld [vmem:[%s9784_s22 + $0x160] sm:$0xff]  }
 0x14d   : > { %v1275_v16 = vpop.f32.mrf.mxu0  ;;  %9251 = vmatprep.mubr.msk.bf16.mxu1 %vm9690_vm2, %v11771_v0 }
 0x14e   : > { %v1276_v18 = vadd.f32 %v9927_v47, %v1275_v16 }
 0x14f   : > { %v8930_v19 = vpop.f32.mrf.mxu0 }
 0x150   : > { %v1819_v21 = vmax.f32 %v1276_v18, 0.0 }
 0x151   : > { %v1280_v22 = vpop.f32.mrf.mxu0  ;;  %9028 = vmatmul.mubr.msk.bf16.gmra.mxu0 %vm881_vm3, %v9601_v17 }
 0x152   : > { %v1961_v23 = vpack.c.bf16 %v1819_v21, %v1818_v20  ;;  %9031 = vmatprep.mubr.msk.bf16.mxu0 %vm9690_vm2, %v11771_v0  ;;  %v1281_v25 = vadd.f32 %v9927_v47, %v1280_v22 }
 0x153   : > { %v8933_v24 = vpop.f32.mrf.mxu0 }
 0x154   : > { %9252 = vmatmul.mubr.msk.bf16.gmra.mxu1 %vm2065_vm4, %v1961_v23  ;;  %v1820_v38 = vmax.f32 %v1281_v25, 0.0  ;;  %v9607_v23 = vld [vmem:[%s9784_s22 + $0x168] sm:$0xff]  }
 0x155   : > { %v1283_v27 = vpop.f32.mrf.mxu0  ;;  %9255 = vmatprep.mubr.msk.bf16.mxu1 %vm9690_vm2, %v11771_v0 }
 0x156   : > { %v1284_v31 = vadd.f32 %v9927_v47, %v1283_v27 }
 0x157   : > { %v8934_v35 = vpop.f32.mrf.mxu0 }
 0x158   : > { %v1821_v39 = vmax.f32 %v1284_v31, 0.0 }
 0x159   : > { %v1288_v40 = vpop.f32.mrf.mxu0  ;;  %9032 = vmatmul.mubr.msk.bf16.gmra.mxu0 %vm881_vm3, %v9602_v26 }
 0x15a   : > { %v1962_v41 = vpack.c.bf16 %v1821_v39, %v1820_v38  ;;  %9035 = vmatprep.mubr.msk.bf16.mxu0 %vm9690_vm2, %v11771_v0  ;;  %v1289_v43 = vadd.f32 %v9927_v47, %v1288_v40 }
 0x15b   : > { %v8937_v42 = vpop.f32.mrf.mxu0 }
 0x15c   : > { %9256 = vmatmul.mubr.msk.bf16.gmra.mxu1 %vm2065_vm4, %v1962_v41  ;;  %v1822_v49 = vmax.f32 %v1289_v43, 0.0  ;;  %v9609_v43 = vld [vmem:[%s9784_s22 + $0x178] sm:$0xff]  }
 0x15d   : > { %v1291_v44 = vpop.f32.mrf.mxu0  ;;  %9259 = vmatprep.mubr.msk.bf16.mxu1 %vm9690_vm2, %v11771_v0 }
 0x15e   : > { %v1292_v46 = vadd.f32 %v9927_v47, %v1291_v44 }
 0x15f   : > { %v8938_v48 = vpop.f32.mrf.mxu0 }
 0x160   : > { %v1823_v50 = vmax.f32 %v1292_v46, 0.0 }
 0x161   : > { %v1296_v51 = vpop.f32.mrf.mxu0  ;;  %9036 = vmatmul.mubr.msk.bf16.gmra.mxu0 %vm881_vm3, %v9603_v45 }
 0x162   : > { %v1963_v52 = vpack.c.bf16 %v1823_v50, %v1822_v49  ;;  %9039 = vmatprep.mubr.msk.bf16.mxu0 %vm9690_vm2, %v11771_v0  ;;  %v1297_v54 = vadd.f32 %v9927_v47, %v1296_v51 }
 0x163   : > { %v8941_v53 = vpop.f32.mrf.mxu0 }
 0x164   : > { %9260 = vmatmul.mubr.msk.bf16.gmra.mxu1 %vm2065_vm4, %v1963_v52  ;;  %v1824_v59 = vmax.f32 %v1297_v54, 0.0  ;;  %v9610_v54 = vld [vmem:[%s9784_s22 + $0x180] sm:$0xff]  }
 0x165   : > { %v1299_v55 = vpop.f32.mrf.mxu0  ;;  %9263 = vmatprep.mubr.msk.bf16.mxu1 %vm9690_vm2, %v11771_v0 }
 0x166   : > { %v1300_v57 = vadd.f32 %v9927_v47, %v1299_v55 }
 0x167   : > { %v8942_v58 = vpop.f32.mrf.mxu0 }
 0x168   : > { %v1825_v60 = vmax.f32 %v1300_v57, 0.0 }
 0x169   : > { %v1304_v61 = vpop.f32.mrf.mxu0  ;;  %9040 = vmatmul.mubr.msk.bf16.gmra.mxu0 %vm881_vm3, %v9604_v56 }
 0x16a   : > { %v1964_v62 = vpack.c.bf16 %v1825_v60, %v1824_v59  ;;  %9043 = vmatprep.mubr.msk.bf16.mxu0 %vm9690_vm2, %v11771_v0  ;;  %v1305_v1 = vadd.f32 %v9927_v47, %v1304_v61 }
 0x16b   : > { %v8945_v63 = vpop.f32.mrf.mxu0 }
 0x16c   : > { %9264 = vmatmul.mubr.msk.bf16.gmra.mxu1 %vm2065_vm4, %v1964_v62  ;;  %v1826_v6 = vmax.f32 %v1305_v1, 0.0  ;;  %v9611_v1 = vld [vmem:[%s9784_s22 + $0x188] sm:$0xff]  }
 0x16d   : > { %v1307_v2 = vpop.f32.mrf.mxu0  ;;  %9267 = vmatprep.mubr.msk.bf16.mxu1 %vm9690_vm2, %v11771_v0 }
 0x16e   : > { %v1308_v4 = vadd.f32 %v9927_v47, %v1307_v2 }
 0x16f   : > { %v8946_v5 = vpop.f32.mrf.mxu0 }
 0x170   : > { %v1827_v7 = vmax.f32 %v1308_v4, 0.0 }
 0x171   : > { %v1312_v8 = vpop.f32.mrf.mxu0  ;;  %9044 = vmatmul.mubr.msk.bf16.gmra.mxu0 %vm881_vm3, %v9605_v3 }
 0x172   : > { %v1965_v9 = vpack.c.bf16 %v1827_v7, %v1826_v6  ;;  %9047 = vmatprep.mubr.msk.bf16.mxu0 %vm9690_vm2, %v11771_v0  ;;  %v1313_v11 = vadd.f32 %v9927_v47, %v1312_v8  ;;  %v3227_v8 = vld [vmem:[%s11768_s5 + $0xc0] sm:$0xff] }
 0x173   : > { %v8949_v10 = vpop.f32.mrf.mxu0 }
 0x174   : > { %9268 = vmatmul.mubr.msk.bf16.gmra.mxu1 %vm2065_vm4, %v1965_v9  ;;  %v1828_v16 = vmax.f32 %v1313_v11, 0.0  ;;  %v3231_v9 = vld [vmem:[%s11768_s5 + $0xe0] sm:$0xff]  ;;  %v3228_v10 = vld [vmem:[%s11768_s5 + $0xc8] sm:$0xff] }
 0x175   : > { %v1315_v12 = vpop.f32.mrf.mxu0  ;;  %9271 = vmatprep.mubr.msk.bf16.mxu1 %vm9690_vm2, %v11771_v0 }
 0x176   : > { %v1316_v14 = vadd.f32 %v9927_v47, %v1315_v12  ;;  %v8661_v12 = vcombine.low %v3227_v8, %v3231_v9 }
 0x177   : > { %v8950_v15 = vpop.f32.mrf.mxu0 }
 0x178   : > { %v1829_v17 = vmax.f32 %v1316_v14, 0.0  ;;  %v3232_v14 = vld [vmem:[%s11768_s5 + $0xe8] sm:$0xff] }
 0x179   : > { %v1320_v18 = vpop.f32.mrf.mxu0  ;;  %9048 = vmatmul.mubr.msk.bf16.gmra.mxu0 %vm881_vm3, %v9606_v13  ;;  %v8662_v13 = vcombine.high %v3227_v8, %v3231_v9 }
 0x17a   : > { %v1966_v19 = vpack.c.bf16 %v1829_v17, %v1828_v16  ;;  %9051 = vmatprep.mubr.msk.bf16.mxu0 %vm9690_vm2, %v11771_v0  ;;  %v1321_v21 = vadd.f32 %v9927_v47, %v1320_v18  ;;  %v10203_v16 = vld [vmem:[%s11767_s4] ss:$0 sm:$0xff]  ;;  %v8663_v18 = vcombine.low %v3228_v10, %v3232_v14 }
 0x17b   : > { %v8953_v20 = vpop.f32.mrf.mxu0  ;;  %3595 = vmatprep.subr.bf16.mxu0 %v8662_v13 }
 0x17c   : > { %9272 = vmatmul.mubr.msk.bf16.gmra.mxu1 %vm2065_vm4, %v1966_v19  ;;  %v1830_v26 = vmax.f32 %v1321_v21, 0.0  ;;  %v8664_v19 = vcombine.high %v3228_v10, %v3232_v14  ;;  %v9612_v21 = vld [vmem:[%s9784_s22 + $0x190] sm:$0xff]   ;;  %3596 = vmatpush1.bf16.msra.mxu0 %v8661_v12 }
 0x17d   : > { %v1323_v22 = vpop.f32.mrf.mxu0  ;;  %9275 = vmatprep.mubr.msk.bf16.mxu1 %vm9690_vm2, %v11771_v0 }
 0x17e   : > { %v1324_v24 = vadd.f32 %v9927_v47, %v1323_v22  ;;  %4416 = vmatprep.subr.bf16.mxu1 %v8664_v19 }
 0x17f   : > { %v8954_v25 = vpop.f32.mrf.mxu0  ;;  %4417 = vmatpush1.bf16.msra.mxu1 %v8663_v18 }
 0x180   : > { %v1831_v27 = vmax.f32 %v1324_v24, 0.0 }
 0x181   : > { %v1328_v28 = vpop.f32.mrf.mxu0  ;;  %9052 = vmatmul.mubr.msk.bf16.gmra.mxu0 %vm881_vm3, %v9607_v23 }
 0x182   : > { %v1967_v29 = vpack.c.bf16 %v1831_v27, %v1830_v26  ;;  %9055 = vmatprep.mubr.msk.bf16.mxu0 %vm9690_vm2, %v11771_v0  ;;  %v1329_v31 = vadd.f32 %v9927_v47, %v1328_v28 }
 0x183   : > { %v8957_v30 = vpop.f32.mrf.mxu0 }
 0x184   : > { %9276 = vmatmul.mubr.msk.bf16.gmra.mxu1 %vm2065_vm4, %v1967_v29  ;;  %v1832_v36 = vmax.f32 %v1329_v31, 0.0 }
 0x185   : > { %v1331_v32 = vpop.f32.mrf.mxu0  ;;  %9279 = vmatprep.mubr.msk.bf16.mxu1 %vm9690_vm2, %v11771_v0 }
 0x186   : > { %v1332_v34 = vadd.f32 %v9927_v47, %v1331_v32 }
 0x187   : > { %v8958_v35 = vpop.f32.mrf.mxu0 }
 0x188   : > { %v1833_v37 = vmax.f32 %v1332_v34, 0.0 }
 0x189   : > { %v1336_v38 = vpop.f32.mrf.mxu0  ;;  %9056 = vmatmul.mubr.msk.bf16.gmra.mxu0 %vm881_vm3, %v9608_v33 }
 0x18a   : > { %v1968_v39 = vpack.c.bf16 %v1833_v37, %v1832_v36  ;;  %9059 = vmatprep.mubr.msk.bf16.mxu0 %vm9690_vm2, %v11771_v0  ;;  %v1337_v41 = vadd.f32 %v9927_v47, %v1336_v38 }
 0x18b   : > { %v8961_v40 = vpop.f32.mrf.mxu0 }
 0x18c   : > { %9280 = vmatmul.mubr.msk.bf16.gmra.mxu1 %vm2065_vm4, %v1968_v39  ;;  %v1834_v46 = vmax.f32 %v1337_v41, 0.0  ;;  %v9613_v40 = vld [vmem:[%s9784_s22 + $0x198] sm:$0xff]  }
 0x18d   : > { %v1339_v42 = vpop.f32.mrf.mxu0  ;;  %9283 = vmatprep.mubr.msk.bf16.mxu1 %vm9690_vm2, %v11771_v0 }
 0x18e   : > { %v1340_v44 = vadd.f32 %v9927_v47, %v1339_v42 }
 0x18f   : > { %v8962_v45 = vpop.f32.mrf.mxu0 }
 0x190   : > { %v1835_v48 = vmax.f32 %v1340_v44, 0.0 }
 0x191   : > { %v1344_v49 = vpop.f32.mrf.mxu0  ;;  %9060 = vmatmul.mubr.msk.bf16.gmra.mxu0 %vm881_vm3, %v9609_v43 }
 0x192   : > { %v1969_v50 = vpack.c.bf16 %v1835_v48, %v1834_v46  ;;  %9063 = vmatprep.mubr.msk.bf16.mxu0 %vm9690_vm2, %v11771_v0  ;;  %v1345_v52 = vadd.f32 %v9927_v47, %v1344_v49 }
 0x193   : > { %v8965_v51 = vpop.f32.mrf.mxu0 }
 0x194   : > { %9284 = vmatmul.mubr.msk.bf16.gmra.mxu1 %vm2065_vm4, %v1969_v50  ;;  %v1836_v57 = vmax.f32 %v1345_v52, 0.0 }
 0x195   : > { %v1347_v53 = vpop.f32.mrf.mxu0  ;;  %9287 = vmatprep.mubr.msk.bf16.mxu1 %vm9690_vm2, %v11771_v0 }
 0x196   : > { %v1348_v55 = vadd.f32 %v9927_v47, %v1347_v53 }
 0x197   : > { %v8966_v56 = vpop.f32.mrf.mxu0 }
 0x198   : > { %v1837_v58 = vmax.f32 %v1348_v55, 0.0 }
 0x199   : > { %v1352_v59 = vpop.f32.mrf.mxu0  ;;  %9064 = vmatmul.mubr.msk.bf16.gmra.mxu0 %vm881_vm3, %v9610_v54 }
 0x19a   : > { %v1970_v60 = vpack.c.bf16 %v1837_v58, %v1836_v57  ;;  %9067 = vmatprep.mubr.msk.bf16.mxu0 %vm9690_vm2, %v11771_v0  ;;  %v1353_v62 = vadd.f32 %v9927_v47, %v1352_v59 }
 0x19b   : > { %v8969_v61 = vpop.f32.mrf.mxu0 }
 0x19c   : > { %9288 = vmatmul.mubr.msk.bf16.gmra.mxu1 %vm2065_vm4, %v1970_v60  ;;  %v1838_v4 = vmax.f32 %v1353_v62, 0.0  ;;  %v9614_v60 = vld [vmem:[%s9784_s22 + $0x1a0] sm:$0xff]  }
 0x19d   : > { %v1355_v63 = vpop.f32.mrf.mxu0  ;;  %9291 = vmatprep.mubr.msk.bf16.mxu1 %vm9690_vm2, %v11771_v0 }
 0x19e   : > { %v1356_v2 = vadd.f32 %v9927_v47, %v1355_v63 }
 0x19f   : > { %v8970_v3 = vpop.f32.mrf.mxu0 }
 0x1a0   : > { %v1839_v5 = vmax.f32 %v1356_v2, 0.0 }
 0x1a1   : > { %v1360_v6 = vpop.f32.mrf.mxu0  ;;  %9068 = vmatmul.mubr.msk.bf16.gmra.mxu0 %vm881_vm3, %v9611_v1 }
 0x1a2   : > { %v1971_v7 = vpack.c.bf16 %v1839_v5, %v1838_v4  ;;  %9071 = vmatprep.mubr.msk.bf16.mxu0 %vm9690_vm2, %v11771_v0  ;;  %v1361_v15 = vadd.f32 %v9927_v47, %v1360_v6 }
 0x1a3   : > { %v8973_v11 = vpop.f32.mrf.mxu0 }
 0x1a4   : > { %v2337_v17 = vpop.f32.mrf.mxu1  ;;  %9292 = vmatmul.mubr.msk.bf16.gmra.mxu1 %vm2065_vm4, %v1971_v7  ;;  %v1840_v26 = vmax.f32 %v1361_v15, 0.0 }
 0x1a5   : > { %v1363_v20 = vpop.f32.mrf.mxu0  ;;  %9295 = vmatprep.mubr.msk.bf16.mxu1 %vm9690_vm2, %v11771_v0  ;;  %v2338_v24 = vadd.f32 %v10203_v16, %v2337_v17  ;;  %v9615_v17 = vld [vmem:[%s9784_s22 + $0x1a8] sm:$0xff]  }
 0x1a6   : > { %v1364_v22 = vadd.f32 %v9927_v47, %v1363_v20  ;;  %v9197_v23 = vpop.f32.mrf.mxu1 }
 0x1a7   : > { %v8974_v25 = vpop.f32.mrf.mxu0  ;;  %v2967_v33 = vmax.f32 %v2338_v24, 0.0 }
 0x1a8   : > { %v1841_v27 = vmax.f32 %v1364_v22, 0.0  ;;  %v2340_v28 = vpop.f32.mrf.mxu1 }
 0x1a9   : > { %v2341_v29 = vadd.f32 %v10203_v16, %v2340_v28  ;;  %v1368_v30 = vpop.f32.mrf.mxu0  ;;  %9072 = vmatmul.mubr.msk.bf16.gmra.mxu0 %vm881_vm3, %v9612_v21 }
 0x1aa   : > { %v1972_v31 = vpack.c.bf16 %v1841_v27, %v1840_v26  ;;  %v9198_v32 = vpop.f32.mrf.mxu1  ;;  %9075 = vmatprep.mubr.msk.bf16.mxu0 %vm9690_vm2, %v11771_v0  ;;  %v1369_v36 = vadd.f32 %v9927_v47, %v1368_v30 }
 0x1ab   : > { %v2968_v34 = vmax.f32 %v2341_v29, 0.0  ;;  %v8977_v35 = vpop.f32.mrf.mxu0 }
 0x1ac   : > { %v2345_v37 = vpop.f32.mrf.mxu1  ;;  %9296 = vmatmul.mubr.msk.bf16.gmra.mxu1 %vm2065_vm4, %v1972_v31  ;;  %v1842_v45 = vmax.f32 %v1369_v36, 0.0  ;;  %v9616_v36 = vld [vmem:[%s9784_s22 + $0x1b0] sm:$0xff]  }
 0x1ad   : > { %v10217_v38 = vpack.c.bf16 %v2968_v34, %v2967_v33  ;;  %v1371_v39 = vpop.f32.mrf.mxu0  ;;  %9299 = vmatprep.mubr.msk.bf16.mxu1 %vm9690_vm2, %v11771_v0  ;;  %v2346_v43 = vadd.f32 %v10203_v16, %v2345_v37 }
 0x1ae   : > { %v1372_v41 = vadd.f32 %v9927_v47, %v1371_v39  ;;  %v9201_v42 = vpop.f32.mrf.mxu1 }
 0x1af   : > { %11905 = vst [vmem:[#allocation2_spill] sm:$0xff] %v10217_v38  ;;  %v8978_v44 = vpop.f32.mrf.mxu0  ;;  %v2969_v53 = vmax.f32 %v2346_v43, 0.0 }
 0x1b0   : > { %v1843_v46 = vmax.f32 %v1372_v41, 0.0  ;;  %v2348_v48 = vpop.f32.mrf.mxu1 }
 0x1b1   : > { %v2349_v49 = vadd.f32 %v10203_v16, %v2348_v48  ;;  %v1376_v50 = vpop.f32.mrf.mxu0  ;;  %9076 = vmatmul.mubr.msk.bf16.gmra.mxu0 %vm881_vm3, %v9613_v40 }
 0x1b2   : > { %v1973_v51 = vpack.c.bf16 %v1843_v46, %v1842_v45  ;;  %v9202_v52 = vpop.f32.mrf.mxu1  ;;  %9079 = vmatprep.mubr.msk.bf16.mxu0 %vm9690_vm2, %v11771_v0  ;;  %v1377_v56 = vadd.f32 %v9927_v47, %v1376_v50 }
 0x1b3   : > { %v2970_v54 = vmax.f32 %v2349_v49, 0.0  ;;  %v8981_v55 = vpop.f32.mrf.mxu0  ;;  %v10270_v52 = vld [vmem:[%s11765_s2] ss:$0 sm:$0xff] }
 0x1b4   : > { %v2353_v57 = vpop.f32.mrf.mxu1  ;;  %9300 = vmatmul.mubr.msk.bf16.gmra.mxu1 %vm2065_vm4, %v1973_v51  ;;  %v1844_v2 = vmax.f32 %v1377_v56, 0.0 }
 0x1b5   : > { %v10230_v58 = vpack.c.bf16 %v2970_v54, %v2969_v53  ;;  %v1379_v59 = vpop.f32.mrf.mxu0  ;;  %9303 = vmatprep.mubr.msk.bf16.mxu1 %vm9690_vm2, %v11771_v0  ;;  %v2354_v63 = vadd.f32 %v10203_v16, %v2353_v57  ;;  %v9617_v57 = vld [vmem:[%s9784_s22 + $0x1b8] sm:$0xff]  }
 0x1b6   : > { %v1380_v61 = vadd.f32 %v9927_v47, %v1379_v59  ;;  %v9205_v62 = vpop.f32.mrf.mxu1 }
 0x1b7   : > { %11906 = vst [vmem:[#allocation3_spill] sm:$0xff] %v10230_v58  ;;  %v8982_v1 = vpop.f32.mrf.mxu0  ;;  %v2971_v9 = vmax.f32 %v2354_v63, 0.0 }
 0x1b8   : > { %v1845_v3 = vmax.f32 %v1380_v61, 0.0  ;;  %v2356_v4 = vpop.f32.mrf.mxu1 }
 0x1b9   : > { %v2357_v5 = vadd.f32 %v10203_v16, %v2356_v4  ;;  %v1384_v6 = vpop.f32.mrf.mxu0  ;;  %9080 = vmatmul.mubr.msk.bf16.gmra.mxu0 %vm881_vm3, %v9614_v60 }
 0x1ba   : > { %v1974_v7 = vpack.c.bf16 %v1845_v3, %v1844_v2  ;;  %v9206_v8 = vpop.f32.mrf.mxu1  ;;  %9083 = vmatprep.mubr.msk.bf16.mxu0 %vm9690_vm2, %v11771_v0  ;;  %v1385_v12 = vadd.f32 %v9927_v47, %v1384_v6 }
 0x1bb   : > { %v2972_v10 = vmax.f32 %v2357_v5, 0.0  ;;  %v8985_v11 = vpop.f32.mrf.mxu0 }
 0x1bc   : > { %v2361_v13 = vpop.f32.mrf.mxu1  ;;  %9304 = vmatmul.mubr.msk.bf16.gmra.mxu1 %vm2065_vm4, %v1974_v7  ;;  %v1846_v22 = vmax.f32 %v1385_v12, 0.0 }
 0x1bd   : > { %v10243_v14 = vpack.c.bf16 %v2972_v10, %v2971_v9  ;;  %v1387_v15 = vpop.f32.mrf.mxu0  ;;  %9307 = vmatprep.mubr.msk.bf16.mxu1 %vm9690_vm2, %v11771_v0  ;;  %v2362_v20 = vadd.f32 %v10203_v16, %v2361_v13 }
 0x1be   : > { %v1388_v18 = vadd.f32 %v9927_v47, %v1387_v15  ;;  %v9209_v19 = vpop.f32.mrf.mxu1  ;;  %v9618_v15 = vld [vmem:[%s9784_s22 + $0x1c0] sm:$0xff]  }
 0x1bf   : > { %11907 = vst [vmem:[#allocation4_spill] sm:$0xff] %v10243_v14  ;;  %v8986_v21 = vpop.f32.mrf.mxu0  ;;  %v2973_v29 = vmax.f32 %v2362_v20, 0.0 }
 0x1c0   : > { %v1847_v23 = vmax.f32 %v1388_v18, 0.0  ;;  %v2364_v24 = vpop.f32.mrf.mxu1 }
 0x1c1   : > { %v2365_v25 = vadd.f32 %v10203_v16, %v2364_v24  ;;  %v1392_v26 = vpop.f32.mrf.mxu0  ;;  %9084 = vmatmul.mubr.msk.bf16.gmra.mxu0 %vm881_vm3, %v9615_v17 }
 0x1c2   : > { %v1975_v27 = vpack.c.bf16 %v1847_v23, %v1846_v22  ;;  %v9210_v28 = vpop.f32.mrf.mxu1  ;;  %9087 = vmatprep.mubr.msk.bf16.mxu0 %vm9690_vm2, %v11771_v0  ;;  %v1393_v32 = vadd.f32 %v9927_v47, %v1392_v26 }
 0x1c3   : > { %v2974_v30 = vmax.f32 %v2365_v25, 0.0  ;;  %v8989_v31 = vpop.f32.mrf.mxu0 }
 0x1c4   : > { %v2369_v33 = vpop.f32.mrf.mxu1  ;;  %9308 = vmatmul.mubr.msk.bf16.gmra.mxu1 %vm2065_vm4, %v1975_v27  ;;  %v1848_v42 = vmax.f32 %v1393_v32, 0.0 }
 0x1c5   : > { %v10256_v34 = vpack.c.bf16 %v2974_v30, %v2973_v29  ;;  %v1395_v35 = vpop.f32.mrf.mxu0  ;;  %9311 = vmatprep.mubr.msk.bf16.mxu1 %vm9690_vm2, %v11771_v0  ;;  %v2370_v40 = vadd.f32 %v10203_v16, %v2369_v33 }
 0x1c6   : > { %v1396_v37 = vadd.f32 %v9927_v47, %v1395_v35  ;;  %v9213_v39 = vpop.f32.mrf.mxu1 }
 0x1c7   : > { %11908 = vst [vmem:[#allocation5_spill] sm:$0xff] %v10256_v34  ;;  %v8990_v41 = vpop.f32.mrf.mxu0  ;;  %v2975_v50 = vmax.f32 %v2370_v40, 0.0 }
 0x1c8   : > { %v1849_v43 = vmax.f32 %v1396_v37, 0.0  ;;  %v2372_v44 = vpop.f32.mrf.mxu1 }
 0x1c9   : > { %v2373_v45 = vadd.f32 %v10203_v16, %v2372_v44  ;;  %v1400_v46 = vpop.f32.mrf.mxu0  ;;  %9088 = vmatmul.mubr.msk.bf16.gmra.mxu0 %vm881_vm3, %v9616_v36  ;;  %v9619_v36 = vld [vmem:[%s9784_s22 + $0x1c8] sm:$0xff]  }
 0x1ca   : > { %v1976_v48 = vpack.c.bf16 %v1849_v43, %v1848_v42  ;;  %v9214_v49 = vpop.f32.mrf.mxu1  ;;  %9091 = vmatprep.mubr.msk.bf16.mxu0 %vm9690_vm2, %v11771_v0  ;;  %v1401_v53 = vadd.f32 %v10270_v52, %v1400_v46 }
 0x1cb   : > { %v2976_v47 = vmax.f32 %v2373_v45, 0.0  ;;  %v8993_v51 = vpop.f32.mrf.mxu0 }
 0x1cc   : > { %v2377_v54 = vpop.f32.mrf.mxu1  ;;  %9312 = vmatmul.mubr.msk.bf16.gmra.mxu1 %vm2065_vm4, %v1976_v48  ;;  %v1850_v63 = vmax.f32 %v1401_v53, 0.0 }
 0x1cd   : > { %v10274_v55 = vpack.c.bf16 %v2976_v47, %v2975_v50  ;;  %v1403_v56 = vpop.f32.mrf.mxu0  ;;  %9315 = vmatprep.mubr.msk.bf16.mxu1 %vm9690_vm2, %v11771_v0  ;;  %v2378_v61 = vadd.f32 %v10203_v16, %v2377_v54 }
 0x1ce   : > { %v1404_v59 = vadd.f32 %v10270_v52, %v1403_v56  ;;  %v9217_v60 = vpop.f32.mrf.mxu1 }
 0x1cf   : > { %11909 = vst [vmem:[#allocation6_spill] sm:$0xff] %v10274_v55  ;;  %v8994_v62 = vpop.f32.mrf.mxu0  ;;  %v2977_v7 = vmax.f32 %v2378_v61, 0.0 }
 0x1d0   : > { %v1851_v1 = vmax.f32 %v1404_v59, 0.0  ;;  %v2380_v2 = vpop.f32.mrf.mxu1  ;;  %v9620_v59 = vld [vmem:[%s9784_s22 + $0x1d0] sm:$0xff]  }
 0x1d1   : > { %v2381_v3 = vadd.f32 %v10203_v16, %v2380_v2  ;;  %v1408_v4 = vpop.f32.mrf.mxu0  ;;  %9092 = vmatmul.mubr.msk.bf16.gmra.mxu0 %vm881_vm3, %v9617_v57 }
 0x1d2   : > { %v1977_v5 = vpack.c.bf16 %v1851_v1, %v1850_v63  ;;  %v9218_v6 = vpop.f32.mrf.mxu1  ;;  %9095 = vmatprep.mubr.msk.bf16.mxu0 %vm9690_vm2, %v11771_v0  ;;  %v1409_v10 = vadd.f32 %v10270_v52, %v1408_v4 }
 0x1d3   : > { %v2978_v8 = vmax.f32 %v2381_v3, 0.0  ;;  %v8997_v9 = vpop.f32.mrf.mxu0 }
 0x1d4   : > { %v2385_v11 = vpop.f32.mrf.mxu1  ;;  %9316 = vmatmul.mubr.msk.bf16.gmra.mxu1 %vm2065_vm4, %v1977_v5  ;;  %v1852_v21 = vmax.f32 %v1409_v10, 0.0 }
 0x1d5   : > { %v10287_v12 = vpack.c.bf16 %v2978_v8, %v2977_v7  ;;  %v1411_v13 = vpop.f32.mrf.mxu0  ;;  %9319 = vmatprep.mubr.msk.bf16.mxu1 %vm9690_vm2, %v11771_v0  ;;  %v2386_v19 = vadd.f32 %v10203_v16, %v2385_v11 }
 0x1d6   : > { %v1412_v17 = vadd.f32 %v10270_v52, %v1411_v13  ;;  %v9221_v18 = vpop.f32.mrf.mxu1 }
 0x1d7   : > { %11910 = vst [vmem:[#allocation7_spill] sm:$0xff] %v10287_v12  ;;  %v8998_v20 = vpop.f32.mrf.mxu0  ;;  %v2979_v28 = vmax.f32 %v2386_v19, 0.0  ;;  %v9621_v18 = vld [vmem:[%s9784_s22 + $0x1d8] sm:$0xff]  }
 0x1d8   : > { %v1853_v22 = vmax.f32 %v1412_v17, 0.0  ;;  %v2388_v23 = vpop.f32.mrf.mxu1 }
 0x1d9   : > { %v2389_v24 = vadd.f32 %v10203_v16, %v2388_v23  ;;  %v1416_v25 = vpop.f32.mrf.mxu0  ;;  %9096 = vmatmul.mubr.msk.bf16.gmra.mxu0 %vm881_vm3, %v9618_v15 }
 0x1da   : > { %v1978_v26 = vpack.c.bf16 %v1853_v22, %v1852_v21  ;;  %v9222_v27 = vpop.f32.mrf.mxu1  ;;  %9099 = vmatprep.mubr.msk.bf16.mxu0 %vm9690_vm2, %v11771_v0  ;;  %v1417_v31 = vadd.f32 %v10270_v52, %v1416_v25 }
 0x1db   : > { %v2980_v29 = vmax.f32 %v2389_v24, 0.0  ;;  %v9001_v30 = vpop.f32.mrf.mxu0 }
 0x1dc   : > { %v2393_v32 = vpop.f32.mrf.mxu1  ;;  %9320 = vmatmul.mubr.msk.bf16.gmra.mxu1 %vm2065_vm4, %v1978_v26  ;;  %v1854_v42 = vmax.f32 %v1417_v31, 0.0  ;;  %v3219_v30 = vld [vmem:[%s11768_s5 + $0x80] sm:$0xff] }
 0x1dd   : > { %v10300_v33 = vpack.c.bf16 %v2980_v29, %v2979_v28  ;;  %v1419_v35 = vpop.f32.mrf.mxu0  ;;  %9323 = vmatprep.mubr.msk.bf16.mxu1 %vm9690_vm2, %v11771_v0  ;;  %v2394_v40 = vadd.f32 %v10203_v16, %v2393_v32  ;;  %v3223_v31 = vld [vmem:[%s11768_s5 + $0xa0] sm:$0xff]  ;;  %v3220_v32 = vld [vmem:[%s11768_s5 + $0x88] sm:$0xff] }
 0x1de   : > { %v1420_v37 = vadd.f32 %v10270_v52, %v1419_v35  ;;  %v9225_v39 = vpop.f32.mrf.mxu1 }
 0x1df   : > { %11911 = vst [vmem:[#allocation8_spill] sm:$0xff] %v10300_v33  ;;  %v9002_v41 = vpop.f32.mrf.mxu0  ;;  %v2981_v50 = vmax.f32 %v2394_v40, 0.0  ;;  %v8653_v39 = vcombine.low %v3219_v30, %v3223_v31  ;;  %v8654_v40 = vcombine.high %v3219_v30, %v3223_v31  ;;  %v9624_v31 = vld [vmem:[%s9784_s22 + $0x1f0] sm:$0xff]  }
 0x1e0   : > { %v1855_v43 = vmax.f32 %v1420_v37, 0.0  ;;  %v2396_v44 = vpop.f32.mrf.mxu1  ;;  %v3224_v41 = vld [vmem:[%s11768_s5 + $0xa8] sm:$0xff] }
 0x1e1   : > { %v2397_v45 = vadd.f32 %v10203_v16, %v2396_v44  ;;  %v1424_v46 = vpop.f32.mrf.mxu0  ;;  %9100 = vmatmul.mubr.msk.bf16.gmra.mxu0 %vm881_vm3, %v9619_v36  ;;  %v8655_v44 = vcombine.low %v3220_v32, %v3224_v41  ;;  %3597 = vmatprep.subr.bf16.mxu0 %v8654_v40 }
 0x1e2   : > { %v1979_v48 = vpack.c.bf16 %v1855_v43, %v1854_v42  ;;  %v9226_v49 = vpop.f32.mrf.mxu1  ;;  %9103 = vmatprep.mubr.msk.bf16.mxu0 %vm9690_vm2, %v11771_v0  ;;  %v1425_v53 = vadd.f32 %v10270_v52, %v1424_v46  ;;  %3598 = vmatpush1.bf16.msra.mxu0 %v8653_v39 }
 0x1e3   : > { %v2982_v47 = vmax.f32 %v2397_v45, 0.0  ;;  %v9005_v51 = vpop.f32.mrf.mxu0  ;;  %v8656_v45 = vcombine.high %v3220_v32, %v3224_v41  ;;  %v9622_v49 = vld [vmem:[%s9784_s22 + $0x1e0] sm:$0xff]  }
 0x1e4   : > { %v2401_v54 = vpop.f32.mrf.mxu1  ;;  %9324 = vmatmul.mubr.msk.bf16.gmra.mxu1 %vm2065_vm4, %v1979_v48  ;;  %v1856_v1 = vmax.f32 %v1425_v53, 0.0 }
 0x1e5   : > { %v10313_v56 = vpack.c.bf16 %v2982_v47, %v2981_v50  ;;  %v1427_v57 = vpop.f32.mrf.mxu0  ;;  %9327 = vmatprep.mubr.msk.bf16.mxu1 %vm9690_vm2, %v11771_v0  ;;  %v2402_v62 = vadd.f32 %v10203_v16, %v2401_v54  ;;  %4418 = vmatprep.subr.bf16.mxu1 %v8656_v45 }
 0x1e6   : > { %v1428_v60 = vadd.f32 %v10270_v52, %v1427_v57  ;;  %v9229_v61 = vpop.f32.mrf.mxu1  ;;  %4419 = vmatpush1.bf16.msra.mxu1 %v8655_v44 }
 0x1e7   : > { %11912 = vst [vmem:[#allocation9_spill] sm:$0xff] %v10313_v56  ;;  %v9006_v63 = vpop.f32.mrf.mxu0  ;;  %v2983_v8 = vmax.f32 %v2402_v62, 0.0 }
 0x1e8   : > { %v1857_v2 = vmax.f32 %v1428_v60, 0.0  ;;  %v2404_v3 = vpop.f32.mrf.mxu1 }
 0x1e9   : > { %v2405_v4 = vadd.f32 %v10203_v16, %v2404_v3  ;;  %v1432_v5 = vpop.f32.mrf.mxu0  ;;  %9104 = vmatmul.mubr.msk.bf16.gmra.mxu0 %vm881_vm3, %v9620_v59 }
 0x1ea   : > { %v1980_v6 = vpack.c.bf16 %v1857_v2, %v1856_v1  ;;  %v9230_v7 = vpop.f32.mrf.mxu1  ;;  %9107 = vmatprep.mubr.msk.bf16.mxu0 %vm9690_vm2, %v11771_v0  ;;  %v1433_v11 = vadd.f32 %v10270_v52, %v1432_v5 }
 0x1eb   : > { %v2984_v9 = vmax.f32 %v2405_v4, 0.0  ;;  %v9009_v10 = vpop.f32.mrf.mxu0 }
 0x1ec   : > { %v2409_v13 = vpop.f32.mrf.mxu1  ;;  %9328 = vmatmul.mubr.msk.bf16.gmra.mxu1 %vm2065_vm4, %v1980_v6  ;;  %v1858_v23 = vmax.f32 %v1433_v11, 0.0 }
 0x1ed   : > { %v10326_v15 = vpack.c.bf16 %v2984_v9, %v2983_v8  ;;  %v1435_v17 = vpop.f32.mrf.mxu0  ;;  %9331 = vmatprep.mubr.msk.bf16.mxu1 %vm9690_vm2, %v11771_v0  ;;  %v2410_v21 = vadd.f32 %v10203_v16, %v2409_v13  ;;  %v9623_v8 = vld [vmem:[%s9784_s22 + $0x1e8] sm:$0xff]  }
 0x1ee   : > { %v1436_v19 = vadd.f32 %v10270_v52, %v1435_v17  ;;  %v9233_v20 = vpop.f32.mrf.mxu1 }
 0x1ef   : > { %11913 = vst [vmem:[#allocation10_spill] sm:$0xff] %v10326_v15  ;;  %v9010_v22 = vpop.f32.mrf.mxu0  ;;  %v2985_v35 = vmax.f32 %v2410_v21, 0.0 }
 0x1f0   : > { %v1859_v24 = vmax.f32 %v1436_v19, 0.0  ;;  %v2412_v25 = vpop.f32.mrf.mxu1 }
 0x1f1   : > { %v2413_v26 = vadd.f32 %v10203_v16, %v2412_v25  ;;  %v1440_v27 = vpop.f32.mrf.mxu0  ;;  %9108 = vmatmul.mubr.msk.bf16.gmra.mxu0 %vm881_vm3, %v9621_v18 }
 0x1f2   : > { %v1981_v28 = vpack.c.bf16 %v1859_v24, %v1858_v23  ;;  %v9234_v29 = vpop.f32.mrf.mxu1  ;;  %9111 = vmatprep.mubr.msk.bf16.mxu0 %vm9690_vm2, %v11771_v0  ;;  %v1441_v42 = vadd.f32 %v10270_v52, %v1440_v27 }
 0x1f3   : > { %v2986_v36 = vmax.f32 %v2413_v26, 0.0  ;;  %v9013_v37 = vpop.f32.mrf.mxu0 }
 0x1f4   : > { %v2417_v43 = vpop.f32.mrf.mxu1  ;;  %9332 = vmatmul.mubr.msk.bf16.gmra.mxu1 %vm2065_vm4, %v1981_v28  ;;  %v1860_v54 = vmax.f32 %v1441_v42, 0.0  ;;  %v3215_v37 = vld [vmem:[%s11768_s5 + $0x60] sm:$0xff] }
 0x1f5   : > { %v10351_v46 = vpack.c.bf16 %v2986_v36, %v2985_v35  ;;  %v1443_v48 = vpop.f32.mrf.mxu0  ;;  %9335 = vmatprep.mubr.msk.bf16.mxu1 %vm9690_vm2, %v11771_v0  ;;  %v2418_v51 = vadd.f32 %v10203_v16, %v2417_v43  ;;  %v3211_v36 = vld [vmem:[%s11768_s5 + $0x40] sm:$0xff] }
 0x1f6   : > { %v1444_v50 = vadd.f32 %v10270_v52, %v1443_v48  ;;  %v9237_v47 = vpop.f32.mrf.mxu1  ;;  %v8646_v41 = vcombine.high %v3211_v36, %v3215_v37  ;;  %v8645_v45 = vcombine.low %v3211_v36, %v3215_v37 }
 0x1f7   : > { %11914 = vst [vmem:[#allocation11_spill] sm:$0xff] %v10351_v46  ;;  %v9014_v53 = vpop.f32.mrf.mxu0  ;;  %v2987_v1 = vmax.f32 %v2418_v51, 0.0  ;;  %v3203_v51 = vld [vmem:[%s11768_s5] sm:$0xff] }
 0x1f8   : > { %v1861_v57 = vmax.f32 %v1444_v50, 0.0  ;;  %v2420_v59 = vpop.f32.mrf.mxu1  ;;  %3599 = vmatprep.subr.bf16.mxu0 %v8646_v41  ;;  %v3207_v53 = vld [vmem:[%s11768_s5 + $0x20] sm:$0xff] }
 0x1f9   : > { %v2421_v60 = vadd.f32 %v10203_v16, %v2420_v59  ;;  %v1448_v61 = vpop.f32.mrf.mxu0  ;;  %9112 = vmatmul.mubr.msk.bf16.gmra.mxu0 %vm881_vm3, %v9622_v49 }
 0x1fa   : > { %v1982_v62 = vpack.c.bf16 %v1861_v57, %v1860_v54  ;;  %v9238_v63 = vpop.f32.mrf.mxu1  ;;  %9115 = vmatprep.mubr.msk.bf16.mxu0 %vm9690_vm2, %v11771_v0  ;;  %v1449_v4 = vadd.f32 %v10270_v52, %v1448_v61  ;;  %3600 = vmatpush1.bf16.msra.mxu0 %v8645_v45 }
 0x1fb   : > { %v2988_v2 = vmax.f32 %v2421_v60, 0.0  ;;  %v9017_v3 = vpop.f32.mrf.mxu0  ;;  %v8638_v60 = vcombine.high %v3203_v51, %v3207_v53  ;;  %v8637_v63 = vcombine.low %v3203_v51, %v3207_v53  ;;  %v9627_v51 = vld [vmem:[%s9784_s22 + $0x208] sm:$0xff]  }
 0x1fc   : > { %v2425_v5 = vpop.f32.mrf.mxu1  ;;  %9336 = vmatmul.mubr.msk.bf16.gmra.mxu1 %vm2065_vm4, %v1982_v62  ;;  %v1862_v17 = vmax.f32 %v1449_v4, 0.0  ;;  %v9625_v3 = vld [vmem:[%s9784_s22 + $0x1f8] sm:$0xff]  }
 0x1fd   : > { %v10364_v6 = vpack.c.bf16 %v2988_v2, %v2987_v1  ;;  %v1451_v7 = vpop.f32.mrf.mxu0  ;;  %9339 = vmatprep.mubr.msk.bf16.mxu1 %vm9690_vm2, %v11771_v0  ;;  %v2426_v11 = vadd.f32 %v10203_v16, %v2425_v5  ;;  %3601 = vmatprep.subr.bf16.mxu0 %v8638_v60 }
 0x1fe   : > { %v1452_v9 = vadd.f32 %v10270_v52, %v1451_v7  ;;  %v9241_v10 = vpop.f32.mrf.mxu1  ;;  %3602 = vmatpush1.bf16.msra.mxu0 %v8637_v63 }
 0x1ff   : > { %11915 = vst [vmem:[#allocation12_spill] sm:$0xff] %v10364_v6  ;;  %v9018_v13 = vpop.f32.mrf.mxu0  ;;  %v2989_v24 = vmax.f32 %v2426_v11, 0.0 }
 0x200   : > { %v1863_v18 = vmax.f32 %v1452_v9, 0.0  ;;  %v2428_v19 = vpop.f32.mrf.mxu1 }
 0x201   : > { %v2429_v20 = vadd.f32 %v10203_v16, %v2428_v19  ;;  %v1456_v21 = vpop.f32.mrf.mxu0  ;;  %9116 = vmatmul.mubr.msk.bf16.gmra.mxu0 %vm881_vm3, %v9623_v8 }
 0x202   : > { %v1983_v22 = vpack.c.bf16 %v1863_v18, %v1862_v17  ;;  %v9242_v23 = vpop.f32.mrf.mxu1  ;;  %9119 = vmatprep.mubr.msk.bf16.mxu0 %vm9690_vm2, %v11771_v0  ;;  %v1457_v27 = vadd.f32 %v10270_v52, %v1456_v21 }
 0x203   : > { %v2990_v25 = vmax.f32 %v2429_v20, 0.0  ;;  %v9021_v26 = vpop.f32.mrf.mxu0 }
 0x204   : > { %v2433_v28 = vpop.f32.mrf.mxu1  ;;  %9340 = vmatmul.mubr.msk.bf16.gmra.mxu1 %vm2065_vm4, %v1983_v22  ;;  %v1864_v42 = vmax.f32 %v1457_v27, 0.0  ;;  %v9626_v27 = vld [vmem:[%s9784_s22 + $0x200] sm:$0xff]  }
 0x205   : > { %v10377_v29 = vpack.c.bf16 %v2990_v25, %v2989_v24  ;;  %v1459_v30 = vpop.f32.mrf.mxu0  ;;  %9343 = vmatprep.mubr.msk.bf16.mxu1 %vm9690_vm2, %v11771_v0  ;;  %v2434_v39 = vadd.f32 %v10203_v16, %v2433_v28 }
 0x206   : > { %v1460_v32 = vadd.f32 %v10270_v52, %v1459_v30  ;;  %v9245_v35 = vpop.f32.mrf.mxu1 }
 0x207   : > { %11916 = vst [vmem:[#allocation13_spill] sm:$0xff] %v10377_v29  ;;  %v9022_v40 = vpop.f32.mrf.mxu0  ;;  %v2991_v54 = vmax.f32 %v2434_v39, 0.0 }
 0x208   : > { %v1865_v43 = vmax.f32 %v1460_v32, 0.0  ;;  %v2436_v44 = vpop.f32.mrf.mxu1 }
 0x209   : > { %v2437_v48 = vadd.f32 %v10203_v16, %v2436_v44  ;;  %v1464_v49 = vpop.f32.mrf.mxu0  ;;  %9120 = vmatmul.mubr.msk.bf16.gmra.mxu0 %vm881_vm3, %v9624_v31 }
 0x20a   : > { %v1984_v50 = vpack.c.bf16 %v1865_v43, %v1864_v42  ;;  %v9246_v47 = vpop.f32.mrf.mxu1  ;;  %9123 = vmatprep.mubr.msk.bf16.mxu0 %vm9690_vm2, %v11771_v0  ;;  %v1465_v61 = vadd.f32 %v10270_v52, %v1464_v49 }
 0x20b   : > { %v2992_v57 = vmax.f32 %v2437_v48, 0.0  ;;  %v9025_v59 = vpop.f32.mrf.mxu0 }
 0x20c   : > { %v2441_v62 = vpop.f32.mrf.mxu1  ;;  %9344 = vmatmul.mubr.msk.bf16.gmra.mxu1 %vm2065_vm4, %v1984_v50  ;;  %v1866_v9 = vmax.f32 %v1465_v61, 0.0 }
 0x20d   : > { %v10402_v1 = vpack.c.bf16 %v2992_v57, %v2991_v54  ;;  %v1467_v2 = vpop.f32.mrf.mxu0  ;;  %9347 = vmatprep.mubr.msk.bf16.mxu1 %vm9690_vm2, %v11771_v0  ;;  %v2442_v7 = vadd.f32 %v10203_v16, %v2441_v62 }
 0x20e   : > { %v1468_v4 = vadd.f32 %v10270_v52, %v1467_v2  ;;  %v9249_v5 = vpop.f32.mrf.mxu1 }
 0x20f   : > { %11917 = vst [vmem:[#allocation14_spill] sm:$0xff] %v10402_v1  ;;  %v9026_v8 = vpop.f32.mrf.mxu0  ;;  %v2993_v20 = vmax.f32 %v2442_v7, 0.0 }
 0x210   : > { %v1867_v10 = vmax.f32 %v1468_v4, 0.0  ;;  %v2444_v11 = vpop.f32.mrf.mxu1 }
 0x211   : > { %v2445_v13 = vadd.f32 %v10203_v16, %v2444_v11  ;;  %v1472_v17 = vpop.f32.mrf.mxu0  ;;  %9124 = vmatmul.mubr.msk.bf16.gmra.mxu0 %vm881_vm3, %v9625_v3 }
 0x212   : > { %v1985_v18 = vpack.c.bf16 %v1867_v10, %v1866_v9  ;;  %v9250_v19 = vpop.f32.mrf.mxu1  ;;  %9127 = vmatprep.mubr.msk.bf16.mxu0 %vm9690_vm2, %v11771_v0  ;;  %v1473_v23 = vadd.f32 %v10270_v52, %v1472_v17  ;;  %v9628_v17 = vld [vmem:[%s9784_s22 + $0x210] sm:$0xff]  }
 0x213   : > { %v2994_v21 = vmax.f32 %v2445_v13, 0.0  ;;  %v9029_v22 = vpop.f32.mrf.mxu0 }
 0x214   : > { %v2449_v24 = vpop.f32.mrf.mxu1  ;;  %9348 = vmatmul.mubr.msk.bf16.gmra.mxu1 %vm2065_vm4, %v1985_v18  ;;  %v1868_v35 = vmax.f32 %v1473_v23, 0.0 }
 0x215   : > { %v10415_v25 = vpack.c.bf16 %v2994_v21, %v2993_v20  ;;  %v1475_v26 = vpop.f32.mrf.mxu0  ;;  %9351 = vmatprep.mubr.msk.bf16.mxu1 %vm9690_vm2, %v11771_v0  ;;  %v2450_v31 = vadd.f32 %v10203_v16, %v2449_v24 }
 0x216   : > { %v1476_v28 = vadd.f32 %v10270_v52, %v1475_v26  ;;  %v9253_v30 = vpop.f32.mrf.mxu1 }
 0x217   : > { %11918 = vst [vmem:[#allocation15_spill] sm:$0xff] %v10415_v25  ;;  %v9030_v32 = vpop.f32.mrf.mxu0  ;;  %v2995_v43 = vmax.f32 %v2450_v31, 0.0 }
 0x218   : > { %v1869_v36 = vmax.f32 %v1476_v28, 0.0  ;;  %v2452_v37 = vpop.f32.mrf.mxu1 }
 0x219   : > { %v2453_v39 = vadd.f32 %v10203_v16, %v2452_v37  ;;  %v1480_v40 = vpop.f32.mrf.mxu0  ;;  %9128 = vmatmul.mubr.msk.bf16.gmra.mxu0 %vm881_vm3, %v9626_v27 }
 0x21a   : > { %v1986_v41 = vpack.c.bf16 %v1869_v36, %v1868_v35  ;;  %v9254_v42 = vpop.f32.mrf.mxu1  ;;  %9131 = vmatprep.mubr.msk.bf16.mxu0 %vm9690_vm2, %v11771_v0  ;;  %v1481_v48 = vadd.f32 %v10270_v52, %v1480_v40 }
 0x21b   : > { %v2996_v44 = vmax.f32 %v2453_v39, 0.0  ;;  %v9033_v45 = vpop.f32.mrf.mxu0 }
 0x21c   : > { %v2457_v49 = vpop.f32.mrf.mxu1  ;;  %9352 = vmatmul.mubr.msk.bf16.gmra.mxu1 %vm2065_vm4, %v1986_v41  ;;  %v1870_v60 = vmax.f32 %v1481_v48, 0.0  ;;  %v9629_v41 = vld [vmem:[%s9784_s22 + $0x218] sm:$0xff]  }
 0x21d   : > { %v10428_v50 = vpack.c.bf16 %v2996_v44, %v2995_v43  ;;  %v1483_v47 = vpop.f32.mrf.mxu0  ;;  %9355 = vmatprep.mubr.msk.bf16.mxu1 %vm9690_vm2, %v11771_v0  ;;  %v2458_v57 = vadd.f32 %v10203_v16, %v2457_v49 }
 0x21e   : > { %v1484_v53 = vadd.f32 %v10270_v52, %v1483_v47  ;;  %v9257_v54 = vpop.f32.mrf.mxu1 }
 0x21f   : > { %11919 = vst [vmem:[#allocation16_spill] sm:$0xff] %v10428_v50  ;;  %v9034_v59 = vpop.f32.mrf.mxu0  ;;  %v2997_v5 = vmax.f32 %v2458_v57, 0.0 }
 0x220   : > { %v1871_v61 = vmax.f32 %v1484_v53, 0.0  ;;  %v2460_v62 = vpop.f32.mrf.mxu1 }
 0x221   : > { %v2461_v63 = vadd.f32 %v10203_v16, %v2460_v62  ;;  %v1488_v2 = vpop.f32.mrf.mxu0  ;;  %9132 = vmatmul.mubr.msk.bf16.gmra.mxu0 %vm881_vm3, %v9627_v51 }
 0x222   : > { %v1987_v3 = vpack.c.bf16 %v1871_v61, %v1870_v60  ;;  %v9258_v4 = vpop.f32.mrf.mxu1  ;;  %9135 = vmatprep.mubr.msk.bf16.mxu0 %vm9690_vm2, %v11771_v0  ;;  %v1489_v9 = vadd.f32 %v10270_v52, %v1488_v2 }
 0x223   : > { %v2998_v7 = vmax.f32 %v2461_v63, 0.0  ;;  %v9037_v8 = vpop.f32.mrf.mxu0  ;;  %v9630_v4 = vld [vmem:[%s9784_s22 + $0x220] sm:$0xff]  }
 0x224   : > { %v2465_v10 = vpop.f32.mrf.mxu1  ;;  %9356 = vmatmul.mubr.msk.bf16.gmra.mxu1 %vm2065_vm4, %v1987_v3  ;;  %v1872_v22 = vmax.f32 %v1489_v9, 0.0 }
 0x225   : > { %v10441_v11 = vpack.c.bf16 %v2998_v7, %v2997_v5  ;;  %v1491_v13 = vpop.f32.mrf.mxu0  ;;  %9359 = vmatprep.mubr.msk.bf16.mxu1 %vm9690_vm2, %v11771_v0  ;;  %v2466_v20 = vadd.f32 %v10203_v16, %v2465_v10 }
 0x226   : > { %v1492_v18 = vadd.f32 %v10270_v52, %v1491_v13  ;;  %v9261_v19 = vpop.f32.mrf.mxu1 }
 0x227   : > { %11920 = vst [vmem:[#allocation17_spill] sm:$0xff] %v10441_v11  ;;  %v9038_v21 = vpop.f32.mrf.mxu0  ;;  %v2999_v31 = vmax.f32 %v2466_v20, 0.0 }
 0x228   : > { %v1873_v23 = vmax.f32 %v1492_v18, 0.0  ;;  %v2468_v24 = vpop.f32.mrf.mxu1 }
 0x229   : > { %v2469_v26 = vadd.f32 %v10203_v16, %v2468_v24  ;;  %v1496_v27 = vpop.f32.mrf.mxu0  ;;  %9136 = vmatmul.mubr.msk.bf16.gmra.mxu0 %vm881_vm3, %v9628_v17 }
 0x22a   : > { %v1988_v28 = vpack.c.bf16 %v1873_v23, %v1872_v22  ;;  %v9262_v30 = vpop.f32.mrf.mxu1  ;;  %9139 = vmatprep.mubr.msk.bf16.mxu0 %vm9690_vm2, %v11771_v0  ;;  %v1497_v36 = vadd.f32 %v10270_v52, %v1496_v27 }
 0x22b   : > { %v3000_v32 = vmax.f32 %v2469_v26, 0.0  ;;  %v9041_v35 = vpop.f32.mrf.mxu0 }
 0x22c   : > { %v2473_v37 = vpop.f32.mrf.mxu1  ;;  %9360 = vmatmul.mubr.msk.bf16.gmra.mxu1 %vm2065_vm4, %v1988_v28  ;;  %v1874_v48 = vmax.f32 %v1497_v36, 0.0 }
 0x22d   : > { %v10454_v39 = vpack.c.bf16 %v3000_v32, %v2999_v31  ;;  %v1499_v40 = vpop.f32.mrf.mxu0  ;;  %9363 = vmatprep.mubr.msk.bf16.mxu1 %vm9690_vm2, %v11771_v0  ;;  %v2474_v44 = vadd.f32 %v10203_v16, %v2473_v37  ;;  %v9631_v31 = vld [vmem:[%s9784_s22 + $0x228] sm:$0xff]  }
 0x22e   : > { %v1500_v42 = vadd.f32 %v10270_v52, %v1499_v40  ;;  %v9265_v43 = vpop.f32.mrf.mxu1 }
 0x22f   : > { %11921 = vst [vmem:[#allocation18_spill] sm:$0xff] %v10454_v39  ;;  %v9042_v45 = vpop.f32.mrf.mxu0  ;;  %v3001_v59 = vmax.f32 %v2474_v44, 0.0 }
 0x230   : > { %v1875_v49 = vmax.f32 %v1500_v42, 0.0  ;;  %v2476_v47 = vpop.f32.mrf.mxu1 }
 0x231   : > { %v2477_v51 = vadd.f32 %v10203_v16, %v2476_v47  ;;  %v1504_v53 = vpop.f32.mrf.mxu0  ;;  %9140 = vmatmul.mubr.msk.bf16.gmra.mxu0 %vm881_vm3, %v9629_v41  ;;  %v3216_v47 = vld [vmem:[%s11768_s5 + $0x68] sm:$0xff] }
 0x232   : > { %v1989_v54 = vpack.c.bf16 %v1875_v49, %v1874_v48  ;;  %v9266_v57 = vpop.f32.mrf.mxu1  ;;  %9143 = vmatprep.mubr.msk.bf16.mxu0 %vm9690_vm2, %v11771_v0  ;;  %v1505_v62 = vadd.f32 %v10270_v52, %v1504_v53  ;;  %v3212_v49 = vld [vmem:[%s11768_s5 + $0x48] sm:$0xff] }
 0x233   : > { %v3002_v60 = vmax.f32 %v2477_v51, 0.0  ;;  %v9045_v61 = vpop.f32.mrf.mxu0  ;;  %v8647_v57 = vcombine.low %v3212_v49, %v3216_v47 }
 0x234   : > { %v2481_v63 = vpop.f32.mrf.mxu1  ;;  %9364 = vmatmul.mubr.msk.bf16.gmra.mxu1 %vm2065_vm4, %v1989_v54  ;;  %v1876_v10 = vmax.f32 %v1505_v62, 0.0 }
 0x235   : > { %v10467_v2 = vpack.c.bf16 %v3002_v60, %v3001_v59  ;;  %v1507_v3 = vpop.f32.mrf.mxu0  ;;  %9367 = vmatprep.mubr.msk.bf16.mxu1 %vm9690_vm2, %v11771_v0  ;;  %v2482_v8 = vadd.f32 %v10203_v16, %v2481_v63  ;;  %v8648_v59 = vcombine.high %v3212_v49, %v3216_v47 }
 0x236   : > { %v1508_v5 = vadd.f32 %v10270_v52, %v1507_v3  ;;  %v9269_v7 = vpop.f32.mrf.mxu1  ;;  %v9632_v3 = vld [vmem:[%s9784_s22 + $0x230] sm:$0xff]  }
 0x237   : > { %11922 = vst [vmem:[#allocation19_spill] sm:$0xff] %v10467_v2  ;;  %v9046_v9 = vpop.f32.mrf.mxu0  ;;  %v3003_v22 = vmax.f32 %v2482_v8, 0.0  ;;  %4420 = vmatprep.subr.bf16.mxu1 %v8648_v59 }
 0x238   : > { %v1877_v13 = vmax.f32 %v1508_v5, 0.0  ;;  %v2484_v17 = vpop.f32.mrf.mxu1  ;;  %4421 = vmatpush1.bf16.msra.mxu1 %v8647_v57 }
 0x239   : > { %v2485_v18 = vadd.f32 %v10203_v16, %v2484_v17  ;;  %v1512_v19 = vpop.f32.mrf.mxu0  ;;  %9144 = vmatmul.mubr.msk.bf16.gmra.mxu0 %vm881_vm3, %v9630_v4 }
 0x23a   : > { %v1990_v20 = vpack.c.bf16 %v1877_v13, %v1876_v10  ;;  %v9270_v21 = vpop.f32.mrf.mxu1  ;;  %9147 = vmatprep.mubr.msk.bf16.mxu0 %vm9690_vm2, %v11771_v0  ;;  %v1513_v26 = vadd.f32 %v10270_v52, %v1512_v19 }
 0x23b   : > { %v3004_v23 = vmax.f32 %v2485_v18, 0.0  ;;  %v9049_v24 = vpop.f32.mrf.mxu0 }
 0x23c   : > { %v2489_v27 = vpop.f32.mrf.mxu1  ;;  %9368 = vmatmul.mubr.msk.bf16.gmra.mxu1 %vm2065_vm4, %v1990_v20  ;;  %v1878_v40 = vmax.f32 %v1513_v26, 0.0 }
 0x23d   : > { %v10480_v28 = vpack.c.bf16 %v3004_v23, %v3003_v22  ;;  %v1515_v30 = vpop.f32.mrf.mxu0  ;;  %9371 = vmatprep.mubr.msk.bf16.mxu1 %vm9690_vm2, %v11771_v0  ;;  %v2490_v36 = vadd.f32 %v10203_v16, %v2489_v27 }
 0x23e   : > { %v1516_v32 = vadd.f32 %v10270_v52, %v1515_v30  ;;  %v9273_v35 = vpop.f32.mrf.mxu1 }
 0x23f   : > { %11923 = vst [vmem:[#allocation20_spill] sm:$0xff] %v10480_v28  ;;  %v9050_v37 = vpop.f32.mrf.mxu0  ;;  %v3005_v51 = vmax.f32 %v2490_v36, 0.0  ;;  %v10521_v35 = vld [vmem:[%s11767_s4] ss:$0 sm:$0xff] }
 0x240   : > { %v1879_v41 = vmax.f32 %v1516_v32, 0.0  ;;  %v2492_v42 = vpop.f32.mrf.mxu1 }
 0x241   : > { %v2493_v43 = vadd.f32 %v10203_v16, %v2492_v42  ;;  %v1520_v44 = vpop.f32.mrf.mxu0  ;;  %9148 = vmatmul.mubr.msk.bf16.gmra.mxu0 %vm881_vm3, %v9631_v31 }
 0x242   : > { %v1991_v45 = vpack.c.bf16 %v1879_v41, %v1878_v40  ;;  %v9274_v48 = vpop.f32.mrf.mxu1  ;;  %9151 = vmatprep.mubr.msk.bf16.mxu0 %vm9690_vm2, %v11771_v0  ;;  %v1521_v60 = vadd.f32 %v10270_v52, %v1520_v44 }
 0x243   : > { %v3006_v53 = vmax.f32 %v2493_v43, 0.0  ;;  %v9053_v54 = vpop.f32.mrf.mxu0 }
 0x244   : > { %v2497_v61 = vpop.f32.mrf.mxu1  ;;  %9372 = vmatmul.mubr.msk.bf16.gmra.mxu1 %vm2065_vm4, %v1991_v45  ;;  %v1880_v9 = vmax.f32 %v1521_v60, 0.0  ;;  %v9634_v60 = vld [vmem:[%s9784_s22 + $0x240] sm:$0xff]  }
 0x245   : > { %v10499_v62 = vpack.c.bf16 %v3006_v53, %v3005_v51  ;;  %v1523_v63 = vpop.f32.mrf.mxu0  ;;  %9375 = vmatprep.mubr.msk.bf16.mxu1 %vm9690_vm2, %v11771_v0  ;;  %v2498_v7 = vadd.f32 %v10203_v16, %v2497_v61 }
 0x246   : > { %v1524_v4 = vadd.f32 %v10270_v52, %v1523_v63  ;;  %v9277_v5 = vpop.f32.mrf.mxu1 }
 0x247   : > { %11924 = vst [vmem:[#allocation21_spill] sm:$0xff] %v10499_v62  ;;  %v9054_v8 = vpop.f32.mrf.mxu0  ;;  %v3007_v21 = vmax.f32 %v2498_v7, 0.0 }
 0x248   : > { %v1881_v10 = vmax.f32 %v1524_v4, 0.0  ;;  %v2500_v13 = vpop.f32.mrf.mxu1 }
 0x249   : > { %v2501_v17 = vadd.f32 %v10203_v16, %v2500_v13  ;;  %v1528_v18 = vpop.f32.mrf.mxu0  ;;  %9152 = vmatmul.mubr.msk.bf16.gmra.mxu0 %vm881_vm3, %v9632_v3  ;;  %v9633_v16 = vld [vmem:[%s9784_s22 + $0x238] sm:$0xff]  }
 0x24a   : > { %v1992_v19 = vpack.c.bf16 %v1881_v10, %v1880_v9  ;;  %v9278_v20 = vpop.f32.mrf.mxu1  ;;  %9155 = vmatprep.mubr.msk.bf16.mxu0 %vm9690_vm2, %v11771_v0  ;;  %v1529_v24 = vadd.f32 %v10270_v52, %v1528_v18 }
 0x24b   : > { %v3008_v22 = vmax.f32 %v2501_v17, 0.0  ;;  %v9057_v23 = vpop.f32.mrf.mxu0 }
 0x24c   : > { %v2505_v26 = vpop.f32.mrf.mxu1  ;;  %9376 = vmatmul.mubr.msk.bf16.gmra.mxu1 %vm2065_vm4, %v1992_v19  ;;  %v1882_v40 = vmax.f32 %v1529_v24, 0.0 }
 0x24d   : > { %v10512_v27 = vpack.c.bf16 %v3008_v22, %v3007_v21  ;;  %v1531_v30 = vpop.f32.mrf.mxu0  ;;  %9379 = vmatprep.mubr.msk.bf16.mxu1 %vm9690_vm2, %v11771_v0  ;;  %v2506_v36 = vadd.f32 %v10521_v35, %v2505_v26  ;;  %v9635_v26 = vld [vmem:[%s9784_s22 + $0x248] sm:$0xff]  }
 0x24e   : > { %v1532_v31 = vadd.f32 %v10270_v52, %v1531_v30  ;;  %v9281_v32 = vpop.f32.mrf.mxu1 }
 0x24f   : > { %11925 = vst [vmem:[#allocation22_spill] sm:$0xff] %v10512_v27  ;;  %v9058_v37 = vpop.f32.mrf.mxu0  ;;  %v3009_v49 = vmax.f32 %v2506_v36, 0.0 }
 0x250   : > { %v1883_v41 = vmax.f32 %v1532_v31, 0.0  ;;  %v2508_v42 = vpop.f32.mrf.mxu1 }
 0x251   : > { %v2509_v43 = vadd.f32 %v10521_v35, %v2508_v42  ;;  %v1536_v44 = vpop.f32.mrf.mxu0  ;;  %9156 = vmatmul.mubr.msk.bf16.gmra.mxu0 %vm881_vm3, %v9633_v16 }
 0x252   : > { %v1993_v45 = vpack.c.bf16 %v1883_v41, %v1882_v40  ;;  %v9282_v48 = vpop.f32.mrf.mxu1  ;;  %9159 = vmatprep.mubr.msk.bf16.mxu0 %vm9690_vm2, %v11771_v0  ;;  %v1537_v53 = vadd.f32 %v10270_v52, %v1536_v44 }
 0x253   : > { %v3010_v47 = vmax.f32 %v2509_v43, 0.0  ;;  %v9061_v51 = vpop.f32.mrf.mxu0 }
 0x254   : > { %v2513_v54 = vpop.f32.mrf.mxu1  ;;  %9380 = vmatmul.mubr.msk.bf16.gmra.mxu1 %vm2065_vm4, %v1993_v45  ;;  %v1884_v5 = vmax.f32 %v1537_v53, 0.0 }
 0x255   : > { %v10530_v57 = vpack.c.bf16 %v3010_v47, %v3009_v49  ;;  %v1539_v59 = vpop.f32.mrf.mxu0  ;;  %9383 = vmatprep.mubr.msk.bf16.mxu1 %vm9690_vm2, %v11771_v0  ;;  %v2514_v3 = vadd.f32 %v10521_v35, %v2513_v54 }
 0x256   : > { %v1540_v61 = vadd.f32 %v10270_v52, %v1539_v59  ;;  %v9285_v63 = vpop.f32.mrf.mxu1  ;;  %v9636_v59 = vld [vmem:[%s9784_s22 + $0x250] sm:$0xff]  }
 0x257   : > { %11926 = vst [vmem:[#allocation23_spill] sm:$0xff] %v10530_v57  ;;  %v9062_v4 = vpop.f32.mrf.mxu0  ;;  %v3011_v18 = vmax.f32 %v2514_v3, 0.0 }
 0x258   : > { %v1885_v7 = vmax.f32 %v1540_v61, 0.0  ;;  %v2516_v8 = vpop.f32.mrf.mxu1 }
 0x259   : > { %v2517_v9 = vadd.f32 %v10521_v35, %v2516_v8  ;;  %v1544_v10 = vpop.f32.mrf.mxu0  ;;  %9160 = vmatmul.mubr.msk.bf16.gmra.mxu0 %vm881_vm3, %v9634_v60 }
 0x25a   : > { %v1994_v13 = vpack.c.bf16 %v1885_v7, %v1884_v5  ;;  %v9286_v17 = vpop.f32.mrf.mxu1  ;;  %9163 = vmatprep.mubr.msk.bf16.mxu0 %vm9690_vm2, %v11771_v0  ;;  %v1545_v21 = vadd.f32 %v10270_v52, %v1544_v10 }
 0x25b   : > { %v3012_v19 = vmax.f32 %v2517_v9, 0.0  ;;  %v9065_v20 = vpop.f32.mrf.mxu0 }
 0x25c   : > { %v2521_v22 = vpop.f32.mrf.mxu1  ;;  %9384 = vmatmul.mubr.msk.bf16.gmra.mxu1 %vm2065_vm4, %v1994_v13  ;;  %v1886_v36 = vmax.f32 %v1545_v21, 0.0 }
 0x25d   : > { %v10543_v23 = vpack.c.bf16 %v3012_v19, %v3011_v18  ;;  %v1547_v24 = vpop.f32.mrf.mxu0  ;;  %9387 = vmatprep.mubr.msk.bf16.mxu1 %vm9690_vm2, %v11771_v0  ;;  %v2522_v31 = vadd.f32 %v10521_v35, %v2521_v22 }
 0x25e   : > { %v1548_v30 = vadd.f32 %v10270_v52, %v1547_v24  ;;  %v9289_v16 = vpop.f32.mrf.mxu1 }
 0x25f   : > { %11927 = vst [vmem:[#allocation24_spill] sm:$0xff] %v10543_v23  ;;  %v9066_v32 = vpop.f32.mrf.mxu0  ;;  %v3013_v45 = vmax.f32 %v2522_v31, 0.0 }
 0x260   : > { %v1887_v37 = vmax.f32 %v1548_v30, 0.0  ;;  %v2524_v40 = vpop.f32.mrf.mxu1 }
 0x261   : > { %v2525_v41 = vadd.f32 %v10521_v35, %v2524_v40  ;;  %v1552_v42 = vpop.f32.mrf.mxu0  ;;  %9164 = vmatmul.mubr.msk.bf16.gmra.mxu0 %vm881_vm3, %v9635_v26  ;;  %v9637_v26 = vld [vmem:[%s9784_s22 + $0x258] sm:$0xff]  }
 0x262   : > { %v1995_v43 = vpack.c.bf16 %v1887_v37, %v1886_v36  ;;  %v9290_v44 = vpop.f32.mrf.mxu1  ;;  %9167 = vmatprep.mubr.msk.bf16.mxu0 %vm9690_vm2, %v11771_v0  ;;  %v1553_v47 = vadd.f32 %v10270_v52, %v1552_v42 }
 0x263   : > { %v3014_v48 = vmax.f32 %v2525_v41, 0.0  ;;  %v9069_v49 = vpop.f32.mrf.mxu0 }
 0x264   : > { %v2529_v51 = vpop.f32.mrf.mxu1  ;;  %9388 = vmatmul.mubr.msk.bf16.gmra.mxu1 %vm2065_vm4, %v1995_v43  ;;  %v1888_v4 = vmax.f32 %v1553_v47, 0.0  ;;  %v10583_v49 = vld [vmem:[%s11765_s2] ss:$0 sm:$0xff] }
 0x265   : > { %v10556_v53 = vpack.c.bf16 %v3014_v48, %v3013_v45  ;;  %v1555_v54 = vpop.f32.mrf.mxu0  ;;  %9391 = vmatprep.mubr.msk.bf16.mxu1 %vm9690_vm2, %v11771_v0  ;;  %v2530_v63 = vadd.f32 %v10521_v35, %v2529_v51 }
 0x266   : > { %v1556_v60 = vadd.f32 %v10270_v52, %v1555_v54  ;;  %v9293_v61 = vpop.f32.mrf.mxu1 }
 0x267   : > { %11928 = vst [vmem:[#allocation25_spill] sm:$0xff] %v10556_v53  ;;  %v9070_v3 = vpop.f32.mrf.mxu0  ;;  %v3015_v17 = vmax.f32 %v2530_v63, 0.0 }
 0x268   : > { %v1889_v5 = vmax.f32 %v1556_v60, 0.0  ;;  %v2532_v7 = vpop.f32.mrf.mxu1  ;;  %v9638_v60 = vld [vmem:[%s9784_s22 + $0x260] sm:$0xff]  }
 0x269   : > { %v2533_v8 = vadd.f32 %v10521_v35, %v2532_v7  ;;  %v1560_v9 = vpop.f32.mrf.mxu0  ;;  %9168 = vmatmul.mubr.msk.bf16.gmra.mxu0 %vm881_vm3, %v9636_v59 }
 0x26a   : > { %v1996_v10 = vpack.c.bf16 %v1889_v5, %v1888_v4  ;;  %v9294_v13 = vpop.f32.mrf.mxu1  ;;  %9171 = vmatprep.mubr.msk.bf16.mxu0 %vm9690_vm2, %v11771_v0  ;;  %v1561_v20 = vadd.f32 %v10270_v52, %v1560_v9 }
 0x26b   : > { %v3016_v18 = vmax.f32 %v2533_v8, 0.0  ;;  %v9073_v19 = vpop.f32.mrf.mxu0 }
 0x26c   : > { %v2537_v21 = vpop.f32.mrf.mxu1  ;;  %9392 = vmatmul.mubr.msk.bf16.gmra.mxu1 %vm2065_vm4, %v1996_v10  ;;  %v1890_v36 = vmax.f32 %v1561_v20, 0.0 }
 0x26d   : > { %v10569_v22 = vpack.c.bf16 %v3016_v18, %v3015_v17  ;;  %v1563_v24 = vpop.f32.mrf.mxu0  ;;  %9395 = vmatprep.mubr.msk.bf16.mxu1 %vm9690_vm2, %v11771_v0  ;;  %v2538_v31 = vadd.f32 %v10521_v35, %v2537_v21 }
 0x26e   : > { %v1564_v30 = vadd.f32 %v10270_v52, %v1563_v24  ;;  %v9297_v16 = vpop.f32.mrf.mxu1 }
 0x26f   : > { %11929 = vst [vmem:[#allocation26_spill] sm:$0xff] %v10569_v22  ;;  %v9074_v32 = vpop.f32.mrf.mxu0  ;;  %v3017_v45 = vmax.f32 %v2538_v31, 0.0  ;;  %v9639_v16 = vld [vmem:[%s9784_s22 + $0x268] sm:$0xff]  }
 0x270   : > { %v1891_v37 = vmax.f32 %v1564_v30, 0.0  ;;  %v2540_v40 = vpop.f32.mrf.mxu1 }
 0x271   : > { %v2541_v41 = vadd.f32 %v10521_v35, %v2540_v40  ;;  %v1568_v42 = vpop.f32.mrf.mxu0  ;;  %9172 = vmatmul.mubr.msk.bf16.gmra.mxu0 %vm881_vm3, %v9637_v26 }
 0x272   : > { %v1997_v43 = vpack.c.bf16 %v1891_v37, %v1890_v36  ;;  %v9298_v44 = vpop.f32.mrf.mxu1  ;;  %9175 = vmatprep.mubr.msk.bf16.mxu0 %vm9690_vm2, %v11771_v0  ;;  %v1569_v47 = vadd.f32 %v10583_v49, %v1568_v42 }
 0x273   : > { %v3018_v52 = vmax.f32 %v2541_v41, 0.0  ;;  %v9077_v48 = vpop.f32.mrf.mxu0 }
 0x274   : > { %v2545_v51 = vpop.f32.mrf.mxu1  ;;  %9396 = vmatmul.mubr.msk.bf16.gmra.mxu1 %vm2065_vm4, %v1997_v43  ;;  %v1892_v5 = vmax.f32 %v1569_v47, 0.0 }
 0x275   : > { %v10587_v54 = vpack.c.bf16 %v3018_v52, %v3017_v45  ;;  %v1571_v59 = vpop.f32.mrf.mxu0  ;;  %9399 = vmatprep.mubr.msk.bf16.mxu1 %vm9690_vm2, %v11771_v0  ;;  %v2546_v3 = vadd.f32 %v10521_v35, %v2545_v51 }
 0x276   : > { %v1572_v61 = vadd.f32 %v10583_v49, %v1571_v59  ;;  %v9301_v63 = vpop.f32.mrf.mxu1 }
 0x277   : > { %11930 = vst [vmem:[#allocation27_spill] sm:$0xff] %v10587_v54  ;;  %v9078_v4 = vpop.f32.mrf.mxu0  ;;  %v3019_v18 = vmax.f32 %v2546_v3, 0.0  ;;  %v9640_v3 = vld [vmem:[%s9784_s22 + $0x270] ss:$0 sps:$4 sm:$0xff]  }
 0x278   : > { %v1893_v7 = vmax.f32 %v1572_v61, 0.0  ;;  %v2548_v8 = vpop.f32.mrf.mxu1 }
 0x279   : > { %v2549_v9 = vadd.f32 %v10521_v35, %v2548_v8  ;;  %v1576_v10 = vpop.f32.mrf.mxu0  ;;  %9176 = vmatmul.mubr.msk.bf16.gmra.mxu0 %vm881_vm3, %v9638_v60 }
 0x27a   : > { %v1998_v13 = vpack.c.bf16 %v1893_v7, %v1892_v5  ;;  %v9302_v17 = vpop.f32.mrf.mxu1  ;;  %9179 = vmatprep.mubr.msk.bf16.mxu0 %vm9690_vm2, %v11771_v0  ;;  %v1577_v21 = vadd.f32 %v10583_v49, %v1576_v10 }
 0x27b   : > { %v3020_v19 = vmax.f32 %v2549_v9, 0.0  ;;  %v9081_v20 = vpop.f32.mrf.mxu0 }
 0x27c   : > { %v2553_v24 = vpop.f32.mrf.mxu1  ;;  %9400 = vmatmul.mubr.msk.bf16.gmra.mxu1 %vm2065_vm4, %v1998_v13  ;;  %v1894_v40 = vmax.f32 %v1577_v21, 0.0  ;;  %v11773_v21 = vmov 0  }
 0x27d   : > { %v10600_v26 = vpack.c.bf16 %v3020_v19, %v3019_v18  ;;  %v1579_v30 = vpop.f32.mrf.mxu0  ;;  %9403 = vmatprep.mubr.msk.bf16.mxu1 %vm9690_vm2, %v11771_v0  ;;  %v2554_v36 = vadd.f32 %v10521_v35, %v2553_v24 }
 0x27e   : > { %v1580_v31 = vadd.f32 %v10583_v49, %v1579_v30  ;;  %v9305_v32 = vpop.f32.mrf.mxu1 }
 0x27f   : > { %11931 = vst [vmem:[#allocation28_spill] sm:$0xff] %v10600_v26  ;;  %v9082_v37 = vpop.f32.mrf.mxu0  ;;  %v3021_v48 = vmax.f32 %v2554_v36, 0.0 }
 0x280   : > { %v1895_v41 = vmax.f32 %v1580_v31, 0.0  ;;  %v2556_v42 = vpop.f32.mrf.mxu1 }
 0x281   : > { %v2557_v43 = vadd.f32 %v10521_v35, %v2556_v42  ;;  %v1584_v44 = vpop.f32.mrf.mxu0  ;;  %9180 = vmatmul.mubr.msk.bf16.gmra.mxu0 %vm881_vm3, %v9639_v16 }
 0x282   : > { %v1999_v45 = vpack.c.bf16 %v1895_v41, %v1894_v40  ;;  %v9306_v52 = vpop.f32.mrf.mxu1  ;;  %9183 = vmatprep.mubr.msk.bf16.mxu0 %vm9690_vm2, %v11771_v0  ;;  %v1585_v59 = vadd.f32 %v10583_v49, %v1584_v44  ;;  %v3204_v44 = vld [vmem:[%s11768_s5 + $0x8] sm:$0xff] }
 0x283   : > { %v3022_v47 = vmax.f32 %v2557_v43, 0.0  ;;  %v9085_v51 = vpop.f32.mrf.mxu0 }
 0x284   : > { %v2561_v60 = vpop.f32.mrf.mxu1  ;;  %9404 = vmatmul.mubr.msk.bf16.gmra.mxu1 %vm2065_vm4, %v1999_v45  ;;  %v1896_v9 = vmax.f32 %v1585_v59, 0.0  ;;  %v3208_v45 = vld [vmem:[%s11768_s5 + $0x28] sm:$0xff] }
 0x285   : > { %v10613_v61 = vpack.c.bf16 %v3022_v47, %v3021_v48  ;;  %v1587_v63 = vpop.f32.mrf.mxu0  ;;  %9407 = vmatprep.mubr.msk.bf16.mxu1 %vm9690_vm2, %v11771_v0  ;;  %v2562_v7 = vadd.f32 %v10521_v35, %v2561_v60  ;;  %v8639_v51 = vcombine.low %v3204_v44, %v3208_v45  ;;  %v8640_v59 = vcombine.high %v3204_v44, %v3208_v45 }
 0x286   : > { %v1588_v4 = vadd.f32 %v10583_v49, %v1587_v63  ;;  %v9309_v5 = vpop.f32.mrf.mxu1 }
 0x287   : > { %v9086_v8 = vpop.f32.mrf.mxu0  ;;  %v3023_v24 = vmax.f32 %v2562_v7, 0.0  ;;  %4422 = vmatprep.subr.bf16.mxu1 %v8640_v59 }
 0x288   : > { %v1897_v10 = vmax.f32 %v1588_v4, 0.0  ;;  %v2564_v13 = vpop.f32.mrf.mxu1  ;;  %4423 = vmatpush1.bf16.msra.mxu1 %v8639_v51 }
 0x289   : > { %v2565_v17 = vadd.f32 %v10521_v35, %v2564_v13  ;;  %v1592_v18 = vpop.f32.mrf.mxu0  ;;  %9184 = vmatmul.mubr.msk.bf16.gmra.mxu0 %vm881_vm3, %v9640_v3 }
 0x28a   : > { %v2000_v19 = vpack.c.bf16 %v1897_v10, %v1896_v9  ;;  %v9310_v20 = vpop.f32.mrf.mxu1  ;;  %3619 = vmatprep.mubr.bf16.mxu0 %v11773_v21  ;;  %v1593_v31 = vadd.f32 %v10583_v49, %v1592_v18 }
 0x28b   : > { %v3024_v30 = vmax.f32 %v2565_v17, 0.0  ;;  %v9089_v16 = vpop.f32.mrf.mxu0 }
 0x28c   : > { %v2569_v32 = vpop.f32.mrf.mxu1  ;;  %9408 = vmatmul.mubr.msk.bf16.gmra.mxu1 %vm2065_vm4, %v2000_v19  ;;  %v1898_v52 = vmax.f32 %v1593_v31, 0.0 }
 0x28d   : > { %v10625_v36 = vpack.c.bf16 %v3024_v30, %v3023_v24  ;;  %v1595_v37 = vpop.f32.mrf.mxu0  ;;  %9411 = vmatprep.mubr.msk.bf16.mxu1 %vm9690_vm2, %v11771_v0  ;;  %v2570_v42 = vadd.f32 %v10521_v35, %v2569_v32 }
 0x28e   : > { %v1596_v40 = vadd.f32 %v10583_v49, %v1595_v37  ;;  %v9313_v41 = vpop.f32.mrf.mxu1 }
 0x28f   : > { %v9090_v43 = vpop.f32.mrf.mxu0  ;;  %v3025_v5 = vmax.f32 %v2570_v42, 0.0 }
 0x290   : > { %v1899_v48 = vmax.f32 %v1596_v40, 0.0  ;;  %v2572_v47 = vpop.f32.mrf.mxu1 }
 0x291   : > { %v2573_v60 = vadd.f32 %v10521_v35, %v2572_v47  ;;  %v1600_v63 = vpop.f32.mrf.mxu0  ;;  %3620 = vmatmul.mubr.bf16.vlgmr.msra.gmra.mxu0 %v10217_v38 }
 0x292   : > { %v2001_v3 = vpack.c.bf16 %v1899_v48, %v1898_v52  ;;  %v9314_v4 = vpop.f32.mrf.mxu1  ;;  %3629 = vmatprep.mubr.bf16.mxu0 %v11773_v21  ;;  %v1601_v9 = vadd.f32 %v10583_v49, %v1600_v63 }
 0x293   : > { %v3026_v7 = vmax.f32 %v2573_v60, 0.0  ;;  %v9093_v8 = vpop.f32.mrf.mxu0 }
 0x294   : > { %v2577_v10 = vpop.f32.mrf.mxu1  ;;  %9412 = vmatmul.mubr.msk.bf16.gmra.mxu1 %vm2065_vm4, %v2001_v3  ;;  %v1900_v30 = vmax.f32 %v1601_v9, 0.0 }
 0x295   : > { %v10642_v13 = vpack.c.bf16 %v3026_v7, %v3025_v5  ;;  %v1603_v17 = vpop.f32.mrf.mxu0  ;;  %9415 = vmatprep.mubr.msk.bf16.mxu1 %vm9690_vm2, %v11771_v0  ;;  %v2578_v20 = vadd.f32 %v10521_v35, %v2577_v10 }
 0x296   : > { %v1604_v18 = vadd.f32 %v10583_v49, %v1603_v17  ;;  %v9317_v19 = vpop.f32.mrf.mxu1 }
 0x297   : > { %v9094_v24 = vpop.f32.mrf.mxu0  ;;  %v3027_v42 = vmax.f32 %v2578_v20, 0.0 }
 0x298   : > { %v1901_v16 = vmax.f32 %v1604_v18, 0.0  ;;  %v2580_v31 = vpop.f32.mrf.mxu1 }
 0x299   : > { %v2581_v32 = vadd.f32 %v10521_v35, %v2580_v31  ;;  %v1608_v37 = vpop.f32.mrf.mxu0  ;;  %3630 = vmatmul.mubr.bf16.gmra.mxu0 %v10230_v58 }
 0x29a   : > { %v2002_v40 = vpack.c.bf16 %v1901_v16, %v1900_v30  ;;  %v9318_v41 = vpop.f32.mrf.mxu1  ;;  %3639 = vmatprep.mubr.bf16.mxu0 %v11773_v21  ;;  %v1609_v45 = vadd.f32 %v10583_v49, %v1608_v37 }
 0x29b   : > { %v3028_v43 = vmax.f32 %v2581_v32, 0.0  ;;  %v9097_v44 = vpop.f32.mrf.mxu0 }
 0x29c   : > { %v2585_v52 = vpop.f32.mrf.mxu1  ;;  %9416 = vmatmul.mubr.msk.bf16.gmra.mxu1 %vm2065_vm4, %v2002_v40  ;;  %v1902_v3 = vmax.f32 %v1609_v45, 0.0 }
 0x29d   : > { %v10653_v48 = vpack.c.bf16 %v3028_v43, %v3027_v42  ;;  %v1611_v47 = vpop.f32.mrf.mxu0  ;;  %9419 = vmatprep.mubr.msk.bf16.mxu1 %vm9690_vm2, %v11771_v0  ;;  %v2586_v60 = vadd.f32 %v10521_v35, %v2585_v52 }
 0x29e   : > { %v1612_v51 = vadd.f32 %v10583_v49, %v1611_v47  ;;  %v9321_v59 = vpop.f32.mrf.mxu1 }
 0x29f   : > { %v9098_v63 = vpop.f32.mrf.mxu0  ;;  %v3029_v17 = vmax.f32 %v2586_v60, 0.0 }
 0x2a0   : > { %v1903_v4 = vmax.f32 %v1612_v51, 0.0  ;;  %v2588_v5 = vpop.f32.mrf.mxu1 }
 0x2a1   : > { %v2589_v7 = vadd.f32 %v10521_v35, %v2588_v5  ;;  %v1616_v8 = vpop.f32.mrf.mxu0  ;;  %3640 = vmatmul.mubr.bf16.gmra.mxu0 %v10243_v14 }
 0x2a2   : > { %v2003_v9 = vpack.c.bf16 %v1903_v4, %v1902_v3  ;;  %v9322_v10 = vpop.f32.mrf.mxu1  ;;  %3649 = vmatprep.mubr.bf16.mxu0 %v11773_v21  ;;  %v1617_v20 = vadd.f32 %v10583_v49, %v1616_v8 }
 0x2a3   : > { %v3030_v18 = vmax.f32 %v2589_v7, 0.0  ;;  %v9101_v19 = vpop.f32.mrf.mxu0 }
 0x2a4   : > { %v2593_v24 = vpop.f32.mrf.mxu1  ;;  %9420 = vmatmul.mubr.msk.bf16.gmra.mxu1 %vm2065_vm4, %v2003_v9  ;;  %v1904_v41 = vmax.f32 %v1617_v20, 0.0 }
 0x2a5   : > { %v10664_v30 = vpack.c.bf16 %v3030_v18, %v3029_v17  ;;  %v1619_v16 = vpop.f32.mrf.mxu0  ;;  %9423 = vmatprep.mubr.msk.bf16.mxu1 %vm9690_vm2, %v11771_v0  ;;  %v2594_v37 = vadd.f32 %v10521_v35, %v2593_v24 }
 0x2a6   : > { %v1620_v31 = vadd.f32 %v10583_v49, %v1619_v16  ;;  %v9325_v32 = vpop.f32.mrf.mxu1 }
 0x2a7   : > { %v9102_v40 = vpop.f32.mrf.mxu0  ;;  %v3031_v51 = vmax.f32 %v2594_v37, 0.0 }
 0x2a8   : > { %v1905_v42 = vmax.f32 %v1620_v31, 0.0  ;;  %v2596_v43 = vpop.f32.mrf.mxu1 }
 0x2a9   : > { %v2597_v44 = vadd.f32 %v10521_v35, %v2596_v43  ;;  %v1624_v45 = vpop.f32.mrf.mxu0  ;;  %3650 = vmatmul.mubr.bf16.gmra.mxu0 %v10256_v34 }
 0x2aa   : > { %v2004_v52 = vpack.c.bf16 %v1905_v42, %v1904_v41  ;;  %v9326_v47 = vpop.f32.mrf.mxu1  ;;  %3659 = vmatprep.mubr.bf16.mxu0 %v11773_v21  ;;  %v1625_v63 = vadd.f32 %v10583_v49, %v1624_v45 }
 0x2ab   : > { %v3032_v59 = vmax.f32 %v2597_v44, 0.0  ;;  %v9105_v60 = vpop.f32.mrf.mxu0 }
 0x2ac   : > { %v2601_v3 = vpop.f32.mrf.mxu1  ;;  %9424 = vmatmul.mubr.msk.bf16.gmra.mxu1 %vm2065_vm4, %v2004_v52  ;;  %v1906_v17 = vmax.f32 %v1625_v63, 0.0 }
 0x2ad   : > { %v10675_v4 = vpack.c.bf16 %v3032_v59, %v3031_v51  ;;  %v1627_v5 = vpop.f32.mrf.mxu0  ;;  %9427 = vmatprep.mubr.msk.bf16.mxu1 %vm9690_vm2, %v11771_v0  ;;  %v2602_v9 = vadd.f32 %v10521_v35, %v2601_v3 }
 0x2ae   : > { %v1628_v7 = vadd.f32 %v10583_v49, %v1627_v5  ;;  %v9329_v8 = vpop.f32.mrf.mxu1 }
 0x2af   : > { %11932 = vst [vmem:[#allocation29_spill] sm:$0xff] %v10675_v4  ;;  %v9106_v10 = vpop.f32.mrf.mxu0  ;;  %v3033_v32 = vmax.f32 %v2602_v9, 0.0 }
 0x2b0   : > { %v1907_v18 = vmax.f32 %v1628_v7, 0.0  ;;  %v2604_v19 = vpop.f32.mrf.mxu1 }
 0x2b1   : > { %v2605_v20 = vadd.f32 %v10521_v35, %v2604_v19  ;;  %v1632_v24 = vpop.f32.mrf.mxu0  ;;  %3660 = vmatmul.mubr.bf16.gmra.mxu0 %v10274_v55 }
 0x2b2   : > { %v2005_v16 = vpack.c.bf16 %v1907_v18, %v1906_v17  ;;  %v9330_v31 = vpop.f32.mrf.mxu1  ;;  %3669 = vmatprep.mubr.bf16.mxu0 %v11773_v21  ;;  %v1633_v41 = vadd.f32 %v10583_v49, %v1632_v24 }
 0x2b3   : > { %v3034_v37 = vmax.f32 %v2605_v20, 0.0  ;;  %v9109_v40 = vpop.f32.mrf.mxu0 }
 0x2b4   : > { %v2609_v42 = vpop.f32.mrf.mxu1  ;;  %9428 = vmatmul.mubr.msk.bf16.gmra.mxu1 %vm2065_vm4, %v2005_v16  ;;  %v1908_v59 = vmax.f32 %v1633_v41, 0.0 }
 0x2b5   : > { %v10686_v43 = vpack.c.bf16 %v3034_v37, %v3033_v32  ;;  %v1635_v44 = vpop.f32.mrf.mxu0  ;;  %9431 = vmatprep.mubr.msk.bf16.mxu1 %vm9690_vm2, %v11771_v0  ;;  %v2610_v47 = vadd.f32 %v10521_v35, %v2609_v42 }
 0x2b6   : > { %v1636_v45 = vadd.f32 %v10583_v49, %v1635_v44  ;;  %v9333_v52 = vpop.f32.mrf.mxu1 }
 0x2b7   : > { %11933 = vst [vmem:[#allocation30_spill] sm:$0xff] %v10686_v43  ;;  %v9110_v51 = vpop.f32.mrf.mxu0  ;;  %v3035_v9 = vmax.f32 %v2610_v47, 0.0 }
 0x2b8   : > { %v1909_v60 = vmax.f32 %v1636_v45, 0.0  ;;  %v2612_v63 = vpop.f32.mrf.mxu1 }
 0x2b9   : > { %v2613_v3 = vadd.f32 %v10521_v35, %v2612_v63  ;;  %v1640_v5 = vpop.f32.mrf.mxu0  ;;  %3670 = vmatmul.mubr.bf16.gmra.mxu0 %v10287_v12 }
 0x2ba   : > { %v2006_v7 = vpack.c.bf16 %v1909_v60, %v1908_v59  ;;  %v9334_v8 = vpop.f32.mrf.mxu1  ;;  %3679 = vmatprep.mubr.bf16.mxu0 %v11773_v21  ;;  %v1641_v18 = vadd.f32 %v10583_v49, %v1640_v5 }
 0x2bb   : > { %v3036_v10 = vmax.f32 %v2613_v3, 0.0  ;;  %v9113_v17 = vpop.f32.mrf.mxu0 }
 0x2bc   : > { %v2617_v19 = vpop.f32.mrf.mxu1  ;;  %9432 = vmatmul.mubr.msk.bf16.gmra.mxu1 %vm2065_vm4, %v2006_v7  ;;  %v1910_v40 = vmax.f32 %v1641_v18, 0.0 }
 0x2bd   : > { %v10697_v20 = vpack.c.bf16 %v3036_v10, %v3035_v9  ;;  %v1643_v24 = vpop.f32.mrf.mxu0  ;;  %9435 = vmatprep.mubr.msk.bf16.mxu1 %vm9690_vm2, %v11771_v0  ;;  %v2618_v32 = vadd.f32 %v10521_v35, %v2617_v19 }
 0x2be   : > { %v1644_v16 = vadd.f32 %v10583_v49, %v1643_v24  ;;  %v9337_v31 = vpop.f32.mrf.mxu1 }
 0x2bf   : > { %v9114_v37 = vpop.f32.mrf.mxu0  ;;  %v3037_v51 = vmax.f32 %v2618_v32, 0.0 }
 0x2c0   : > { %v1911_v41 = vmax.f32 %v1644_v16, 0.0  ;;  %v2620_v42 = vpop.f32.mrf.mxu1 }
 0x2c1   : > { %v2621_v44 = vadd.f32 %v10521_v35, %v2620_v42  ;;  %v1648_v45 = vpop.f32.mrf.mxu0  ;;  %3680 = vmatmul.mubr.bf16.gmra.mxu0 %v10300_v33 }
 0x2c2   : > { %v2007_v52 = vpack.c.bf16 %v1911_v41, %v1910_v40  ;;  %v9338_v47 = vpop.f32.mrf.mxu1  ;;  %3689 = vmatprep.mubr.bf16.mxu0 %v11773_v21  ;;  %v1649_v63 = vadd.f32 %v10583_v49, %v1648_v45 }
 0x2c3   : > { %v3038_v59 = vmax.f32 %v2621_v44, 0.0  ;;  %v9117_v60 = vpop.f32.mrf.mxu0 }
 0x2c4   : > { %v2625_v3 = vpop.f32.mrf.mxu1  ;;  %9436 = vmatmul.mubr.msk.bf16.gmra.mxu1 %vm2065_vm4, %v2007_v52  ;;  %v1912_v18 = vmax.f32 %v1649_v63, 0.0 }
 0x2c5   : > { %v10708_v5 = vpack.c.bf16 %v3038_v59, %v3037_v51  ;;  %v1651_v7 = vpop.f32.mrf.mxu0  ;;  %9439 = vmatprep.mubr.msk.bf16.mxu1 %vm9690_vm2, %v11771_v0  ;;  %v2626_v10 = vadd.f32 %v10521_v35, %v2625_v3 }
 0x2c6   : > { %v1652_v8 = vadd.f32 %v10583_v49, %v1651_v7  ;;  %v9341_v9 = vpop.f32.mrf.mxu1 }
 0x2c7   : > { %v9118_v17 = vpop.f32.mrf.mxu0  ;;  %v3039_v40 = vmax.f32 %v2626_v10, 0.0 }
 0x2c8   : > { %v1913_v19 = vmax.f32 %v1652_v8, 0.0  ;;  %v2628_v24 = vpop.f32.mrf.mxu1 }
 0x2c9   : > { %v2629_v16 = vadd.f32 %v10521_v35, %v2628_v24  ;;  %v1656_v31 = vpop.f32.mrf.mxu0  ;;  %3690 = vmatmul.mubr.bf16.gmra.mxu0 %v10313_v56 }
 0x2ca   : > { %v2008_v32 = vpack.c.bf16 %v1913_v19, %v1912_v18  ;;  %v9342_v37 = vpop.f32.mrf.mxu1  ;;  %3699 = vmatprep.mubr.bf16.mxu0 %v11773_v21  ;;  %v1657_v44 = vadd.f32 %v10583_v49, %v1656_v31 }
 0x2cb   : > { %v3040_v41 = vmax.f32 %v2629_v16, 0.0  ;;  %v9121_v42 = vpop.f32.mrf.mxu0 }
 0x2cc   : > { %v2633_v45 = vpop.f32.mrf.mxu1  ;;  %9440 = vmatmul.mubr.msk.bf16.gmra.mxu1 %vm2065_vm4, %v2008_v32  ;;  %v1914_v3 = vmax.f32 %v1657_v44, 0.0 }
 0x2cd   : > { %v10719_v52 = vpack.c.bf16 %v3040_v41, %v3039_v40  ;;  %v1659_v47 = vpop.f32.mrf.mxu0  ;;  %9443 = vmatprep.mubr.msk.bf16.mxu1 %vm9690_vm2, %v11771_v0  ;;  %v2634_v60 = vadd.f32 %v10521_v35, %v2633_v45 }
 0x2ce   : > { %v1660_v51 = vadd.f32 %v10583_v49, %v1659_v47  ;;  %v9345_v59 = vpop.f32.mrf.mxu1 }
 0x2cf   : > { %v9122_v63 = vpop.f32.mrf.mxu0  ;;  %v3041_v19 = vmax.f32 %v2634_v60, 0.0 }
 0x2d0   : > { %v1915_v7 = vmax.f32 %v1660_v51, 0.0  ;;  %v2636_v8 = vpop.f32.mrf.mxu1 }
 0x2d1   : > { %v2637_v9 = vadd.f32 %v10521_v35, %v2636_v8  ;;  %v1664_v10 = vpop.f32.mrf.mxu0  ;;  %3700 = vmatmul.mubr.bf16.gmra.mxu0 %v10326_v15 }
 0x2d2   : > { %v2009_v17 = vpack.c.bf16 %v1915_v7, %v1914_v3  ;;  %v9346_v18 = vpop.f32.mrf.mxu1  ;;  %3709 = vmatprep.mubr.bf16.mxu0 %v11773_v21  ;;  %v1665_v31 = vadd.f32 %v10583_v49, %v1664_v10 }
 0x2d3   : > { %v3042_v24 = vmax.f32 %v2637_v9, 0.0  ;;  %v9125_v16 = vpop.f32.mrf.mxu0 }
 0x2d4   : > { %v2641_v32 = vpop.f32.mrf.mxu1  ;;  %9444 = vmatmul.mubr.msk.bf16.gmra.mxu1 %vm2065_vm4, %v2009_v17  ;;  %v1916_v47 = vmax.f32 %v1665_v31, 0.0  ;;  %v3261_v16 = vld [vmem:[%s11768_s5 + $0x1d0] sm:$0xff] }
 0x2d5   : > { %v10730_v37 = vpack.c.bf16 %v3042_v24, %v3041_v19  ;;  %v1667_v40 = vpop.f32.mrf.mxu0  ;;  %9447 = vmatprep.mubr.msk.bf16.mxu1 %vm9690_vm2, %v11771_v0  ;;  %v2642_v44 = vadd.f32 %v10521_v35, %v2641_v32  ;;  %v3265_v31 = vld [vmem:[%s11768_s5 + $0x1f0] sm:$0xff]  ;;  %v10754_v32 = vld [vmem:[%s11768_s5 + $0x1d8] sm:$0xff] }
 0x2d6   : > { %v1668_v41 = vadd.f32 %v10583_v49, %v1667_v40  ;;  %v9349_v42 = vpop.f32.mrf.mxu1 }
 0x2d7   : > { %v9126_v45 = vpop.f32.mrf.mxu0  ;;  %v3043_v8 = vmax.f32 %v2642_v44, 0.0  ;;  %v8697_v42 = vcombine.low %v3261_v16, %v3265_v31  ;;  %v8698_v44 = vcombine.high %v3261_v16, %v3265_v31 }
 0x2d8   : > { %v1917_v51 = vmax.f32 %v1668_v41, 0.0  ;;  %v2644_v59 = vpop.f32.mrf.mxu1  ;;  %v10760_v45 = vld [vmem:[%s11768_s5 + $0x1f8] sm:$0xff] }
 0x2d9   : > { %v2645_v60 = vadd.f32 %v10521_v35, %v2644_v59  ;;  %v1672_v63 = vpop.f32.mrf.mxu0  ;;  %3710 = vmatmul.mubr.bf16.gmra.mxu0 %v10351_v46  ;;  %5229 = vmatprep.subr.bf16.mxu0 %v8698_v44 }
 0x2da   : > { %v2010_v3 = vpack.c.bf16 %v1917_v51, %v1916_v47  ;;  %v9350_v7 = vpop.f32.mrf.mxu1  ;;  %3719 = vmatprep.mubr.bf16.mxu0 %v11773_v21  ;;  %v1673_v17 = vadd.f32 %v10583_v49, %v1672_v63  ;;  %5230 = vmatpush1.bf16.msra.mxu0 %v8697_v42 }
 0x2db   : > { %v3044_v9 = vmax.f32 %v2645_v60, 0.0  ;;  %v9129_v10 = vpop.f32.mrf.mxu0  ;;  %v8700_v60 = vcombine.high %v10754_v32, %v10760_v45 }
 0x2dc   : > { %v2649_v18 = vpop.f32.mrf.mxu1  ;;  %9448 = vmatmul.mubr.msk.bf16.gmra.mxu1 %vm2065_vm4, %v2010_v3  ;;  %v1918_v63 = vmax.f32 %v1673_v17, 0.0 }
 0x2dd   : > { %v10741_v19 = vpack.c.bf16 %v3044_v9, %v3043_v8  ;;  %v1675_v24 = vpop.f32.mrf.mxu0  ;;  %9451 = vmatprep.mubr.msk.bf16.mxu1 %vm9690_vm2, %v11771_v0  ;;  %v2650_v47 = vadd.f32 %v10521_v35, %v2649_v18  ;;  %6050 = vmatprep.subr.bf16.mxu1 %v8700_v60 }
 0x2de   : > { %v1676_v40 = vadd.f32 %v10583_v49, %v1675_v24  ;;  %v9353_v41 = vpop.f32.mrf.mxu1 }
 0x2df   : > { %v9130_v51 = vpop.f32.mrf.mxu0  ;;  %v3045_v18 = vmax.f32 %v2650_v47, 0.0 }
 0x2e0   : > { %v1919_v3 = vmax.f32 %v1676_v40, 0.0  ;;  %v2652_v7 = vpop.f32.mrf.mxu1 }
 0x2e1   : > { %v2653_v8 = vadd.f32 %v10521_v35, %v2652_v7  ;;  %v1680_v9 = vpop.f32.mrf.mxu0  ;;  %3720 = vmatmul.mubr.bf16.gmra.mxu0 %v10364_v6 }
 0x2e2   : > { %v2011_v10 = vpack.c.bf16 %v1919_v3, %v1918_v63  ;;  %v9354_v24 = vpop.f32.mrf.mxu1  ;;  %3729 = vmatprep.mubr.bf16.mxu0 %v11773_v21  ;;  %v1681_v41 = vadd.f32 %v10583_v49, %v1680_v9 }
 0x2e3   : > { %v3046_v16 = vmax.f32 %v2653_v8, 0.0  ;;  %v9133_v31 = vpop.f32.mrf.mxu0 }
 0x2e4   : > { %v2657_v17 = vpop.f32.mrf.mxu1  ;;  %9452 = vmatmul.mubr.msk.bf16.gmra.mxu1 %vm2065_vm4, %v2011_v10  ;;  %v1920_v47 = vmax.f32 %v1681_v41, 0.0 }
 0x2e5   : > { %v10772_v40 = vpack.c.bf16 %v3046_v16, %v3045_v18  ;;  %v1683_v44 = vpop.f32.mrf.mxu0  ;;  %9455 = vmatprep.mubr.msk.bf16.mxu1 %vm9690_vm2, %v11771_v0  ;;  %v2658_v63 = vadd.f32 %v10521_v35, %v2657_v17 }
 0x2e6   : > { %v1684_v51 = vadd.f32 %v10583_v49, %v1683_v44  ;;  %v9357_v60 = vpop.f32.mrf.mxu1 }
 0x2e7   : > { %v9134_v42 = vpop.f32.mrf.mxu0  ;;  %v3047_v18 = vmax.f32 %v2658_v63, 0.0 }
 0x2e8   : > { %v1921_v3 = vmax.f32 %v1684_v51, 0.0  ;;  %v2660_v7 = vpop.f32.mrf.mxu1 }
 0x2e9   : > { %v2661_v8 = vadd.f32 %v10521_v35, %v2660_v7  ;;  %v1688_v9 = vpop.f32.mrf.mxu0  ;;  %3730 = vmatmul.mubr.bf16.gmra.mxu0 %v10377_v29 }
 0x2ea   : > { %v2012_v10 = vpack.c.bf16 %v1921_v3, %v1920_v47  ;;  %v9358_v24 = vpop.f32.mrf.mxu1  ;;  %3739 = vmatprep.mubr.bf16.mxu0 %v11773_v21  ;;  %v1689_v44 = vadd.f32 %v10583_v49, %v1688_v9 }
 0x2eb   : > { %v3048_v16 = vmax.f32 %v2661_v8, 0.0  ;;  %v9137_v31 = vpop.f32.mrf.mxu0 }
 0x2ec   : > { %v2665_v60 = vpop.f32.mrf.mxu1  ;;  %9456 = vmatmul.mubr.msk.bf16.gmra.mxu1 %vm2065_vm4, %v2012_v10  ;;  %v1922_v63 = vmax.f32 %v1689_v44, 0.0 }
 0x2ed   : > { %v10783_v41 = vpack.c.bf16 %v3048_v16, %v3047_v18  ;;  %v1691_v17 = vpop.f32.mrf.mxu0  ;;  %9459 = vmatprep.mubr.msk.bf16.mxu1 %vm9690_vm2, %v11771_v0  ;;  %v2666_v47 = vadd.f32 %v10521_v35, %v2665_v60 }
 0x2ee   : > { %v1692_v51 = vadd.f32 %v10583_v49, %v1691_v17  ;;  %v9361_v42 = vpop.f32.mrf.mxu1 }
 0x2ef   : > { %v9138_v3 = vpop.f32.mrf.mxu0  ;;  %v3049_v16 = vmax.f32 %v2666_v47, 0.0 }
 0x2f0   : > { %v1923_v7 = vmax.f32 %v1692_v51, 0.0  ;;  %v2668_v8 = vpop.f32.mrf.mxu1 }
 0x2f1   : > { %v2669_v9 = vadd.f32 %v10521_v35, %v2668_v8  ;;  %v1696_v24 = vpop.f32.mrf.mxu0  ;;  %3740 = vmatmul.mubr.bf16.gmra.mxu0 %v10402_v1 }
 0x2f2   : > { %v2013_v10 = vpack.c.bf16 %v1923_v7, %v1922_v63  ;;  %v9362_v18 = vpop.f32.mrf.mxu1  ;;  %3749 = vmatprep.mubr.bf16.mxu0 %v11773_v21  ;;  %v1697_v17 = vadd.f32 %v10583_v49, %v1696_v24 }
 0x2f3   : > { %v3050_v31 = vmax.f32 %v2669_v9, 0.0  ;;  %v9141_v59 = vpop.f32.mrf.mxu0 }
 0x2f4   : > { %v2673_v42 = vpop.f32.mrf.mxu1  ;;  %9460 = vmatmul.mubr.msk.bf16.gmra.mxu1 %vm2065_vm4, %v2013_v10  ;;  %v1924_v47 = vmax.f32 %v1697_v17, 0.0 }
 0x2f5   : > { %v10794_v44 = vpack.c.bf16 %v3050_v31, %v3049_v16  ;;  %v1699_v60 = vpop.f32.mrf.mxu0  ;;  %9463 = vmatprep.mubr.msk.bf16.mxu1 %vm9690_vm2, %v11771_v0  ;;  %v2674_v63 = vadd.f32 %v10521_v35, %v2673_v42 }
 0x2f6   : > { %v1700_v51 = vadd.f32 %v10583_v49, %v1699_v60  ;;  %v9365_v3 = vpop.f32.mrf.mxu1 }
 0x2f7   : > { %11934 = vst [vmem:[#allocation31_spill] sm:$0xff] %v10794_v44  ;;  %v9142_v7 = vpop.f32.mrf.mxu0  ;;  %v3051_v16 = vmax.f32 %v2674_v63, 0.0 }
 0x2f8   : > { %v1925_v8 = vmax.f32 %v1700_v51, 0.0  ;;  %v2676_v59 = vpop.f32.mrf.mxu1  ;;  %v11936_v51 = vmov 0.0  }
 0x2f9   : > { %v2677_v9 = vadd.f32 %v10521_v35, %v2676_v59  ;;  %v1704_v24 = vpop.f32.mrf.mxu0  ;;  %3750 = vmatmul.mubr.bf16.gmra.mxu0 %v10415_v25 }
 0x2fa   : > { %v2014_v10 = vpack.c.bf16 %v1925_v8, %v1924_v47  ;;  %v9366_v18 = vpop.f32.mrf.mxu1  ;;  %3759 = vmatprep.mubr.bf16.mxu0 %v11773_v21  ;;  %v1705_v60 = vadd.f32 %v10583_v49, %v1704_v24  ;;  %v10814_v24 = vld [vmem:[%s11767_s4] ss:$0 sm:$0xff] }
 0x2fb   : > { %v3052_v31 = vmax.f32 %v2677_v9, 0.0  ;;  %v9145_v0 = vpop.f32.mrf.mxu0 }
 0x2fc   : > { %v2681_v3 = vpop.f32.mrf.mxu1  ;;  %9464 = vmatmul.mubr.msk.bf16.gmra.mxu1 %vm2065_vm4, %v2014_v10  ;;  %v1926_v63 = vmax.f32 %v1705_v60, 0.0 }
 0x2fd   : > { %v10805_v17 = vpack.c.bf16 %v3052_v31, %v3051_v16  ;;  %v1707_v42 = vpop.f32.mrf.mxu0  ;;  %9467 = vmatprep.mubr.msk.bf16.mxu1 %vm9690_vm2, %v11936_v51  ;;  %v2682_v8 = vadd.f32 %v10521_v35, %v2681_v3 }
 0x2fe   : > { %v1708_v7 = vadd.f32 %v10583_v49, %v1707_v42  ;;  %v9369_v47 = vpop.f32.mrf.mxu1 }
 0x2ff   : > { %11935 = vst [vmem:[#allocation32_spill] sm:$0xff] %v10805_v17  ;;  %v9146_v59 = vpop.f32.mrf.mxu0  ;;  %v3053_v42 = vmax.f32 %v2682_v8, 0.0 }
 0x300   : > { %v1927_v9 = vmax.f32 %v1708_v7, 0.0  ;;  %v2684_v0 = vpop.f32.mrf.mxu1 }
 0x301   : > { %v2685_v10 = vadd.f32 %v10814_v24, %v2684_v0  ;;  %v1712_v18 = vpop.f32.mrf.mxu0  ;;  %3760 = vmatmul.mubr.bf16.gmra.mxu0 %v10428_v50 }
 0x302   : > { %v2015_v16 = vpack.c.bf16 %v1927_v9, %v1926_v63  ;;  %v9370_v31 = vpop.f32.mrf.mxu1  ;;  %3769 = vmatprep.mubr.bf16.mxu0 %v11773_v21  ;;  %v1713_v60 = vadd.f32 %v10583_v49, %v1712_v18 }
 0x303   : > { %v3054_v35 = vmax.f32 %v2685_v10, 0.0  ;;  %v9149_v3 = vpop.f32.mrf.mxu0 }
 0x304   : > { %v2689_v7 = vpop.f32.mrf.mxu1  ;;  %9468 = vmatmul.mubr.msk.bf16.gmra.mxu1 %vm2065_vm4, %v2015_v16  ;;  %v1928_v8 = vmax.f32 %v1713_v60, 0.0 }
 0x305   : > { %v10821_v47 = vpack.c.bf16 %v3054_v35, %v3053_v42  ;;  %v1715_v59 = vpop.f32.mrf.mxu0  ;;  %9471 = vmatprep.mubr.msk.bf16.mxu1 %vm9690_vm2, %v11936_v51  ;;  %v2690_v9 = vadd.f32 %v10814_v24, %v2689_v7  ;;  %v11938_v35 = vmov 0  }
 0x306   : > { %v1716_v0 = vadd.f32 %v10583_v49, %v1715_v59  ;;  %v9373_v63 = vpop.f32.mrf.mxu1 }
 0x307   : > { %11937 = vst [vmem:[#allocation33_spill] sm:$0xff] %v10821_v47  ;;  %v9150_v31 = vpop.f32.mrf.mxu0  ;;  %v3055_v47 = vmax.f32 %v2690_v9, 0.0 }
 0x308   : > { %v1929_v10 = vmax.f32 %v1716_v0, 0.0  ;;  %v2692_v3 = vpop.f32.mrf.mxu1 }
 0x309   : > { %v2693_v18 = vadd.f32 %v10814_v24, %v2692_v3  ;;  %v1720_v21 = vpop.f32.mrf.mxu0  ;;  %3770 = vmatmul.mubr.bf16.gmra.mxu0 %v10441_v11 }
 0x30a   : > { %v2016_v16 = vpack.c.bf16 %v1929_v10, %v1928_v8  ;;  %v9374_v42 = vpop.f32.mrf.mxu1  ;;  %3779 = vmatprep.mubr.bf16.mxu0 %v11938_v35  ;;  %v1721_v59 = vadd.f32 %v10583_v49, %v1720_v21 }
 0x30b   : > { %v3056_v17 = vmax.f32 %v2693_v18, 0.0  ;;  %v9153_v44 = vpop.f32.mrf.mxu0 }
 0x30c   : > { %v2697_v63 = vpop.f32.mrf.mxu1  ;;  %9472 = vmatmul.mubr.msk.bf16.gmra.mxu1 %vm2065_vm4, %v2016_v16  ;;  %v1930_v9 = vmax.f32 %v1721_v59, 0.0 }
 0x30d   : > { %v10832_v60 = vpack.c.bf16 %v3056_v17, %v3055_v47  ;;  %v1723_v7 = vpop.f32.mrf.mxu0  ;;  %9475 = vmatprep.mubr.msk.bf16.mxu1 %vm9690_vm2, %v11936_v51  ;;  %v2698_v8 = vadd.f32 %v10814_v24, %v2697_v63 }
 0x30e   : > { %v1724_v0 = vadd.f32 %v10583_v49, %v1723_v7  ;;  %v9377_v31 = vpop.f32.mrf.mxu1 }
 0x30f   : > { %11939 = vst [vmem:[#allocation34_spill] sm:$0xff] %v10832_v60  ;;  %v9154_v10 = vpop.f32.mrf.mxu0  ;;  %v3057_v16 = vmax.f32 %v2698_v8, 0.0 }
 0x310   : > { %v1931_v3 = vmax.f32 %v1724_v0, 0.0  ;;  %v2700_v44 = vpop.f32.mrf.mxu1 }
 0x311   : > { %v2701_v21 = vadd.f32 %v10814_v24, %v2700_v44  ;;  %v1728_v18 = vpop.f32.mrf.mxu0  ;;  %3780 = vmatmul.mubr.bf16.gmra.mxu0 %v10454_v39 }
 0x312   : > { %v2017_v17 = vpack.c.bf16 %v1931_v3, %v1930_v9  ;;  %v9378_v47 = vpop.f32.mrf.mxu1  ;;  %3789 = vmatprep.mubr.bf16.mxu0 %v11938_v35  ;;  %v1729_v7 = vadd.f32 %v10583_v49, %v1728_v18 }
 0x313   : > { %v3058_v42 = vmax.f32 %v2701_v21, 0.0  ;;  %v9157_v60 = vpop.f32.mrf.mxu0 }
 0x314   : > { %v2705_v31 = vpop.f32.mrf.mxu1  ;;  %9476 = vmatmul.mubr.msk.bf16.gmra.mxu1 %vm2065_vm4, %v2017_v17  ;;  %v1932_v8 = vmax.f32 %v1729_v7, 0.0 }
 0x315   : > { %v10843_v59 = vpack.c.bf16 %v3058_v42, %v3057_v16  ;;  %v1731_v63 = vpop.f32.mrf.mxu0  ;;  %9479 = vmatprep.mubr.msk.bf16.mxu1 %vm9690_vm2, %v11936_v51  ;;  %v2706_v9 = vadd.f32 %v10814_v24, %v2705_v31 }
 0x316   : > { %v1732_v0 = vadd.f32 %v10583_v49, %v1731_v63  ;;  %v9381_v10 = vpop.f32.mrf.mxu1 }
 0x317   : > { %11940 = vst [vmem:[#allocation35_spill] sm:$0xff] %v10843_v59  ;;  %v9158_v3 = vpop.f32.mrf.mxu0  ;;  %v3059_v16 = vmax.f32 %v2706_v9, 0.0 }
 0x318   : > { %v1933_v44 = vmax.f32 %v1732_v0, 0.0  ;;  %v2708_v60 = vpop.f32.mrf.mxu1 }
 0x319   : > { %v2709_v21 = vadd.f32 %v10814_v24, %v2708_v60  ;;  %v1736_v18 = vpop.f32.mrf.mxu0  ;;  %3790 = vmatmul.mubr.bf16.gmra.mxu0 %v10467_v2 }
 0x31a   : > { %v2018_v17 = vpack.c.bf16 %v1933_v44, %v1932_v8  ;;  %v9382_v47 = vpop.f32.mrf.mxu1  ;;  %3799 = vmatprep.mubr.bf16.mxu0 %v11938_v35  ;;  %v1737_v63 = vadd.f32 %v10583_v49, %v1736_v18 }
 0x31b   : > { %v3060_v42 = vmax.f32 %v2709_v21, 0.0  ;;  %v9161_v59 = vpop.f32.mrf.mxu0 }
 0x31c   : > { %v2713_v10 = vpop.f32.mrf.mxu1  ;;  %9480 = vmatmul.mubr.msk.bf16.gmra.mxu1 %vm2065_vm4, %v2018_v17  ;;  %v1934_v9 = vmax.f32 %v1737_v63, 0.0 }
 0x31d   : > { %v10854_v7 = vpack.c.bf16 %v3060_v42, %v3059_v16  ;;  %v1739_v31 = vpop.f32.mrf.mxu0  ;;  %9483 = vmatprep.mubr.msk.bf16.mxu1 %vm9690_vm2, %v11936_v51  ;;  %v2714_v8 = vadd.f32 %v10814_v24, %v2713_v10 }
 0x31e   : > { %v1740_v0 = vadd.f32 %v10583_v49, %v1739_v31  ;;  %v9385_v3 = vpop.f32.mrf.mxu1 }
 0x31f   : > { %11941 = vst [vmem:[#allocation36_spill] sm:$0xff] %v10854_v7  ;;  %v9162_v44 = vpop.f32.mrf.mxu0  ;;  %v3061_v16 = vmax.f32 %v2714_v8, 0.0 }
 0x320   : > { %v1935_v60 = vmax.f32 %v1740_v0, 0.0  ;;  %v2716_v59 = vpop.f32.mrf.mxu1 }
 0x321   : > { %v2717_v21 = vadd.f32 %v10814_v24, %v2716_v59  ;;  %v1744_v18 = vpop.f32.mrf.mxu0  ;;  %3800 = vmatmul.mubr.bf16.gmra.mxu0 %v10480_v28 }
 0x322   : > { %v2019_v17 = vpack.c.bf16 %v1935_v60, %v1934_v9  ;;  %v9386_v47 = vpop.f32.mrf.mxu1  ;;  %3809 = vmatprep.mubr.bf16.mxu0 %v11938_v35  ;;  %v1745_v31 = vadd.f32 %v10583_v49, %v1744_v18 }
 0x323   : > { %v3062_v42 = vmax.f32 %v2717_v21, 0.0  ;;  %v9165_v7 = vpop.f32.mrf.mxu0 }
 0x324   : > { %v2721_v3 = vpop.f32.mrf.mxu1  ;;  %9484 = vmatmul.mubr.msk.bf16.gmra.mxu1 %vm2065_vm4, %v2019_v17  ;;  %v1936_v8 = vmax.f32 %v1745_v31, 0.0 }
 0x325   : > { %v10865_v63 = vpack.c.bf16 %v3062_v42, %v3061_v16  ;;  %v1747_v10 = vpop.f32.mrf.mxu0  ;;  %9487 = vmatprep.mubr.msk.bf16.mxu1 %vm9690_vm2, %v11936_v51  ;;  %v2722_v9 = vadd.f32 %v10814_v24, %v2721_v3 }
 0x326   : > { %v1748_v0 = vadd.f32 %v10583_v49, %v1747_v10  ;;  %v9389_v44 = vpop.f32.mrf.mxu1  ;;  %v10877_v49 = vld [vmem:[%s11765_s2] ss:$0 sm:$0xff] }
 0x327   : > { %11942 = vst [vmem:[#allocation37_spill] sm:$0xff] %v10865_v63  ;;  %v9166_v60 = vpop.f32.mrf.mxu0  ;;  %v3063_v16 = vmax.f32 %v2722_v9, 0.0  ;;  %v3257_v44 = vld [vmem:[%s11768_s5 + $0x1b0] sm:$0xff] }
 0x328   : > { %v1937_v59 = vmax.f32 %v1748_v0, 0.0  ;;  %v2724_v7 = vpop.f32.mrf.mxu1 }
 0x329   : > { %v2725_v21 = vadd.f32 %v10814_v24, %v2724_v7  ;;  %v1752_v18 = vpop.f32.mrf.mxu0  ;;  %3810 = vmatmul.mubr.bf16.gmra.mxu0 %v10499_v62 }
 0x32a   : > { %v2020_v17 = vpack.c.bf16 %v1937_v59, %v1936_v8  ;;  %v9390_v47 = vpop.f32.mrf.mxu1  ;;  %3819 = vmatprep.mubr.bf16.mxu0 %v11938_v35  ;;  %v1753_v31 = vadd.f32 %v10877_v49, %v1752_v18 }
 0x32b   : > { %v3064_v42 = vmax.f32 %v2725_v21, 0.0  ;;  %v9169_v63 = vpop.f32.mrf.mxu0 }
 0x32c   : > { %v2729_v3 = vpop.f32.mrf.mxu1  ;;  %9488 = vmatmul.mubr.msk.bf16.gmra.mxu1 %vm2065_vm4, %v2020_v17  ;;  %v3253_v63 = vld [vmem:[%s11768_s5 + $0x190] sm:$0xff]  ;;  %v1938_v18 = vmax.f32 %v1753_v31, 0.0 }
 0x32d   : > { %v10881_v10 = vpack.c.bf16 %v3064_v42, %v3063_v16  ;;  %v1755_v0 = vpop.f32.mrf.mxu0  ;;  %9491 = vmatprep.mubr.msk.bf16.mxu1 %vm9690_vm2, %v11936_v51  ;;  %v8689_v8 = vcombine.low %v3253_v63, %v3257_v44  ;;  %v8690_v59 = vcombine.high %v3253_v63, %v3257_v44  ;;  %v2730_v7 = vadd.f32 %v10814_v24, %v2729_v3 }
 0x32e   : > { %v1756_v9 = vadd.f32 %v10877_v49, %v1755_v0  ;;  %v9393_v60 = vpop.f32.mrf.mxu1 }
 0x32f   : > { %11943 = vst [vmem:[#allocation38_spill] sm:$0xff] %v10881_v10  ;;  %v9170_v21 = vpop.f32.mrf.mxu0  ;;  %5231 = vmatprep.subr.bf16.mxu0 %v8690_v59  ;;  %v3065_v0 = vmax.f32 %v2730_v7, 0.0 }
 0x330   : > { %v1939_v17 = vmax.f32 %v1756_v9, 0.0  ;;  %v2732_v47 = vpop.f32.mrf.mxu1  ;;  %5232 = vmatpush1.bf16.msra.mxu0 %v8689_v8 }
 0x331   : > { %v2733_v16 = vadd.f32 %v10814_v24, %v2732_v47  ;;  %v1760_v42 = vpop.f32.mrf.mxu0  ;;  %3820 = vmatmul.mubr.bf16.gmra.mxu0 %v10512_v27 }
 0x332   : > { %v2021_v10 = vpack.c.bf16 %v1939_v17, %v1938_v18  ;;  %v9394_v62 = vpop.f32.mrf.mxu1  ;;  %3829 = vmatprep.mubr.bf16.mxu0 %v11938_v35  ;;  %v1761_v3 = vadd.f32 %v10877_v49, %v1760_v42 }
 0x333   : > { %v3066_v60 = vmax.f32 %v2733_v16, 0.0  ;;  %v9173_v63 = vpop.f32.mrf.mxu0 }
 0x334   : > { %v2737_v44 = vpop.f32.mrf.mxu1  ;;  %9492 = vmatmul.mubr.msk.bf16.gmra.mxu1 %vm2065_vm4, %v2021_v10  ;;  %v1940_v7 = vmax.f32 %v1761_v3, 0.0 }
 0x335   : > { %v10898_v31 = vpack.c.bf16 %v3066_v60, %v3065_v0  ;;  %v1763_v9 = vpop.f32.mrf.mxu0  ;;  %9495 = vmatprep.mubr.msk.bf16.mxu1 %vm9690_vm2, %v11936_v51  ;;  %v2738_v21 = vadd.f32 %v10814_v24, %v2737_v44 }
 0x336   : > { %v1764_v59 = vadd.f32 %v10877_v49, %v1763_v9  ;;  %v9397_v62 = vpop.f32.mrf.mxu1 }
 0x337   : > { %11944 = vst [vmem:[#allocation39_spill] sm:$0xff] %v10898_v31  ;;  %v9174_v8 = vpop.f32.mrf.mxu0  ;;  %v3067_v0 = vmax.f32 %v2738_v21, 0.0 }
 0x338   : > { %v1941_v18 = vmax.f32 %v1764_v59, 0.0  ;;  %v2740_v17 = vpop.f32.mrf.mxu1 }
 0x339   : > { %v2741_v47 = vadd.f32 %v10814_v24, %v2740_v17  ;;  %v1768_v16 = vpop.f32.mrf.mxu0  ;;  %3830 = vmatmul.mubr.bf16.gmra.mxu0 %v10530_v57 }
 0x33a   : > { %v2022_v10 = vpack.c.bf16 %v1941_v18, %v1940_v7  ;;  %v9398_v42 = vpop.f32.mrf.mxu1  ;;  %3839 = vmatprep.mubr.bf16.mxu0 %v11938_v35  ;;  %v1769_v9 = vadd.f32 %v10877_v49, %v1768_v16 }
 0x33b   : > { %v3068_v60 = vmax.f32 %v2741_v47, 0.0  ;;  %v9177_v63 = vpop.f32.mrf.mxu0 }
 0x33c   : > { %v2745_v62 = vpop.f32.mrf.mxu1  ;;  %9496 = vmatmul.mubr.msk.bf16.gmra.mxu1 %vm2065_vm4, %v2022_v10  ;;  %v1942_v21 = vmax.f32 %v1769_v9, 0.0 }
 0x33d   : > { %v10909_v3 = vpack.c.bf16 %v3068_v60, %v3067_v0  ;;  %v1771_v44 = vpop.f32.mrf.mxu0  ;;  %9499 = vmatprep.mubr.msk.bf16.mxu1 %vm9690_vm2, %v11936_v51  ;;  %v2746_v7 = vadd.f32 %v10814_v24, %v2745_v62 }
 0x33e   : > { %v1772_v59 = vadd.f32 %v10877_v49, %v1771_v44  ;;  %v9401_v8 = vpop.f32.mrf.mxu1 }
 0x33f   : > { %11945 = vst [vmem:[#allocation40_spill] sm:$0xff] %v10909_v3  ;;  %v9178_v18 = vpop.f32.mrf.mxu0  ;;  %v3069_v60 = vmax.f32 %v2746_v7, 0.0 }
 0x340   : > { %v1943_v17 = vmax.f32 %v1772_v59, 0.0  ;;  %v2748_v47 = vpop.f32.mrf.mxu1 }
 0x341   : > { %v2749_v16 = vadd.f32 %v10814_v24, %v2748_v47  ;;  %v1776_v42 = vpop.f32.mrf.mxu0  ;;  %3840 = vmatmul.mubr.bf16.gmra.mxu0 %v10543_v23 }
 0x342   : > { %v2023_v10 = vpack.c.bf16 %v1943_v17, %v1942_v21  ;;  %v9402_v0 = vpop.f32.mrf.mxu1  ;;  %3849 = vmatprep.mubr.bf16.mxu0 %v11938_v35  ;;  %v1777_v44 = vadd.f32 %v10877_v49, %v1776_v42 }
 0x343   : > { %v3070_v63 = vmax.f32 %v2749_v16, 0.0  ;;  %v9181_v3 = vpop.f32.mrf.mxu0 }
 0x344   : > { %v2753_v8 = vpop.f32.mrf.mxu1  ;;  %9500 = vmatmul.mubr.msk.bf16.gmra.mxu1 %vm2065_vm4, %v2023_v10  ;;  %v1944_v7 = vmax.f32 %v1777_v44, 0.0 }
 0x345   : > { %v10920_v9 = vpack.c.bf16 %v3070_v63, %v3069_v60  ;;  %v1779_v62 = vpop.f32.mrf.mxu0  ;;  %9503 = vmatprep.mubr.msk.bf16.mxu1 %vm9690_vm2, %v11936_v51  ;;  %v2754_v21 = vadd.f32 %v10814_v24, %v2753_v8 }
 0x346   : > { %v1780_v59 = vadd.f32 %v10877_v49, %v1779_v62  ;;  %v9405_v18 = vpop.f32.mrf.mxu1 }
 0x347   : > { %11946 = vst [vmem:[#allocation41_spill] sm:$0xff] %v10920_v9  ;;  %v9182_v17 = vpop.f32.mrf.mxu0  ;;  %v3071_v63 = vmax.f32 %v2754_v21, 0.0 }
 0x348   : > { %v1945_v47 = vmax.f32 %v1780_v59, 0.0  ;;  %v2756_v3 = vpop.f32.mrf.mxu1 }
 0x349   : > { %v2757_v16 = vadd.f32 %v10814_v24, %v2756_v3  ;;  %v1784_v42 = vpop.f32.mrf.mxu0  ;;  %3850 = vmatmul.mubr.bf16.gmra.mxu0 %v10556_v53 }
 0x34a   : > { %v2024_v10 = vpack.c.bf16 %v1945_v47, %v1944_v7  ;;  %v1785_v0 = vadd.f32 %v10877_v49, %v1784_v42  ;;  %v9406_v60 = vpop.f32.mrf.mxu1  ;;  %3859 = vmatprep.mubr.bf16.mxu0 %v11938_v35 }
 0x34b   : > { %v3072_v62 = vmax.f32 %v2757_v16, 0.0  ;;  %v9185_v18 = vpop.f32.mrf.mxu0 }
 0x34c   : > { %v1946_v9 = vmax.f32 %v1785_v0, 0.0  ;;  %v2761_v8 = vpop.f32.mrf.mxu1  ;;  %9504 = vmatmul.mubr.msk.bf16.gmra.mxu1 %vm2065_vm4, %v2024_v10 }
 0x34d   : > { %v10931_v44 = vpack.c.bf16 %v3072_v62, %v3071_v63  ;;  %v1787_v59 = vpop.f32.mrf.mxu0  ;;  %9507 = vmatprep.mubr.msk.bf16.mxu1 %vm9690_vm2, %v11936_v51  ;;  %v2762_v7 = vadd.f32 %v10814_v24, %v2761_v8 }
 0x34e   : > { %v9409_v17 = vpop.f32.mrf.mxu1  ;;  %v2025_v47 = vpack.c.bf16 %v1946_v9, %v1946_v9 }
 0x34f   : > { %11947 = vst [vmem:[#allocation42_spill] sm:$0xff] %v10931_v44  ;;  %v9186_v49 = vpop.f32.mrf.mxu0  ;;  %v3073_v10 = vmax.f32 %v2762_v7, 0.0  ;;  %v3254_v17 = vld [vmem:[%s11768_s5 + $0x198] sm:$0xff] }
 0x350   : > { %v2764_v3 = vpop.f32.mrf.mxu1  ;;  %v3258_v7 = vld [vmem:[%s11768_s5 + $0x1b8] sm:$0xff] }
 0x351   : > { %v2765_v21 = vadd.f32 %v10814_v24, %v2764_v3  ;;  %v3621_v16 = vpop.f32.mrf.mxu0  ;;  %3860 = vmatmul.mubr.bf16.gmra.mxu0 %v10569_v22 }
 0x352   : > { %v9410_v42 = vpop.f32.mrf.mxu1  ;;  %3869 = vmatprep.mubr.bf16.mxu0 %v11938_v35 }
 0x353   : > { %v3074_v0 = vmax.f32 %v2765_v21, 0.0  ;;  %v3623_v60 = vpop.f32.mrf.mxu0 }
 0x354   : > { %v2769_v63 = vpop.f32.mrf.mxu1  ;;  %9508 = vmatmul.mubr.msk.bf16.gmra.mxu1 %vm2065_vm4, %v2025_v47 }
 0x355   : > { %v10940_v51 = vpack.c.bf16 %v3074_v0, %v3073_v10  ;;  %v3625_v62 = vpop.f32.mrf.mxu0  ;;  %4440 = vmatprep.mubr.bf16.mxu1 %v11938_v35  ;;  %v2770_v8 = vadd.f32 %v10814_v24, %v2769_v63  ;;  %v8692_v10 = vcombine.high %v3254_v17, %v3258_v7 }
 0x356   : > { %v6871_v9 = vmax.f32 %v3621_v16, %v3625_v62  ;;  %v9413_v18 = vpop.f32.mrf.mxu1 }
 0x357   : > { %11948 = vst [vmem:[#allocation43_spill] sm:$0xff] %v10940_v51  ;;  %v3627_v59 = vpop.f32.mrf.mxu0  ;;  %v3075_v0 = vmax.f32 %v2770_v8, 0.0 }
 0x358   : > { %v7033_v49 = vmax.f32 %v3623_v60, %v3627_v59  ;;  %v2772_v47 = vpop.f32.mrf.mxu1  ;;  %v11950_v60 = vcombine.low %v10754_v32, %v10760_v45 }
 0x359   : > { %v2773_v3 = vadd.f32 %v10814_v24, %v2772_v47  ;;  %v3631_v21 = vpop.f32.mrf.mxu0  ;;  %3870 = vmatmul.mubr.bf16.gmra.mxu0 %v10587_v54 }
 0x35a   : > { %v6872_v16 = vmax.f32 %v6871_v9, %v3631_v21  ;;  %v9414_v42 = vpop.f32.mrf.mxu1  ;;  %3879 = vmatprep.mubr.bf16.mxu0 %v11938_v35  ;;  %v8691_v9 = vcombine.low %v3254_v17, %v3258_v7 }
 0x35b   : > { %v3076_v63 = vmax.f32 %v2773_v3, 0.0  ;;  %v3633_v62 = vpop.f32.mrf.mxu0 }
 0x35c   : > { %v7034_v18 = vmax.f32 %v7033_v49, %v3633_v62  ;;  %v2777_v51 = vpop.f32.mrf.mxu1  ;;  %4441 = vmatmul.mubr.bf16.vlgmr.msra.gmra.mxu1 %v10217_v38 }
 0x35d   : > { %v10954_v44 = vpack.c.bf16 %v3076_v63, %v3075_v0  ;;  %6051 = vmatpush1.bf16.msra.mxu1 %v11950_v60  ;;  %v3635_v59 = vpop.f32.mrf.mxu0  ;;  %4450 = vmatprep.mubr.bf16.mxu1 %v11938_v35  ;;  %v2778_v8 = vadd.f32 %v10814_v24, %v2777_v51 }
 0x35e   : > { %v6873_v47 = vmax.f32 %v6872_v16, %v3635_v59  ;;  %v9417_v21 = vpop.f32.mrf.mxu1  ;;  %6052 = vmatprep.subr.bf16.mxu1 %v8692_v10 }
 0x35f   : > { %11949 = vst [vmem:[#allocation44_spill] sm:$0xff] %v10954_v44  ;;  %v3637_v3 = vpop.f32.mrf.mxu0  ;;  %v3077_v63 = vmax.f32 %v2778_v8, 0.0 }
 0x360   : > { %v7035_v49 = vmax.f32 %v7034_v18, %v3637_v3  ;;  %v2780_v42 = vpop.f32.mrf.mxu1 }
 0x361   : > { %v2781_v62 = vadd.f32 %v10814_v24, %v2780_v42  ;;  %v3641_v0 = vpop.f32.mrf.mxu0  ;;  %3880 = vmatmul.mubr.bf16.gmra.mxu0 %v10600_v26  ;;  %6053 = vmatpush1.bf16.msra.mxu1 %v8691_v9 }
 0x362   : > { %v6874_v32 = vmax.f32 %v6873_v47, %v3641_v0  ;;  %v9418_v45 = vpop.f32.mrf.mxu1  ;;  %3889 = vmatprep.mubr.bf16.mxu0 %v11938_v35 }
 0x363   : > { %v3078_v17 = vmax.f32 %v2781_v62, 0.0  ;;  %v3643_v7 = vpop.f32.mrf.mxu0 }
 0x364   : > { %v7036_v16 = vmax.f32 %v7035_v49, %v3643_v7  ;;  %v2785_v10 = vpop.f32.mrf.mxu1  ;;  %4451 = vmatmul.mubr.bf16.gmra.mxu1 %v10230_v58 }
 0x365   : > { %v10965_v51 = vpack.c.bf16 %v3078_v17, %v3077_v63  ;;  %v3645_v18 = vpop.f32.mrf.mxu0  ;;  %4460 = vmatprep.mubr.bf16.mxu1 %v11938_v35  ;;  %v2786_v9 = vadd.f32 %v10814_v24, %v2785_v10 }
 0x366   : > { %v6875_v60 = vmax.f32 %v6874_v32, %v3645_v18  ;;  %v9421_v59 = vpop.f32.mrf.mxu1 }
 0x367   : > { %11951 = vst [vmem:[#allocation45_spill] sm:$0xff] %v10965_v51  ;;  %v3647_v47 = vpop.f32.mrf.mxu0  ;;  %v3079_v0 = vmax.f32 %v2786_v9, 0.0 }
 0x368   : > { %v7037_v21 = vmax.f32 %v7036_v16, %v3647_v47  ;;  %v2788_v3 = vpop.f32.mrf.mxu1 }
 0x369   : > { %v2789_v8 = vadd.f32 %v10814_v24, %v2788_v3  ;;  %v3651_v42 = vpop.f32.mrf.mxu0  ;;  %3890 = vmatmul.mubr.bf16.gmra.mxu0 %v10613_v61 }
 0x36a   : > { %v6876_v49 = vmax.f32 %v6875_v60, %v3651_v42  ;;  %v9422_v62 = vpop.f32.mrf.mxu1  ;;  %3899 = vmatprep.mubr.bf16.mxu0 %v11938_v35 }
 0x36b   : > { %v3080_v45 = vmax.f32 %v2789_v8, 0.0  ;;  %v3653_v63 = vpop.f32.mrf.mxu0 }
 0x36c   : > { %v7038_v17 = vmax.f32 %v7037_v21, %v3653_v63  ;;  %v2793_v32 = vpop.f32.mrf.mxu1  ;;  %4461 = vmatmul.mubr.bf16.gmra.mxu1 %v10243_v14 }
 0x36d   : > { %v10973_v7 = vpack.c.bf16 %v3080_v45, %v3079_v0  ;;  %v3655_v16 = vpop.f32.mrf.mxu0  ;;  %4470 = vmatprep.mubr.bf16.mxu1 %v11938_v35  ;;  %v2794_v59 = vadd.f32 %v10814_v24, %v2793_v32 }
 0x36e   : > { %v6877_v10 = vmax.f32 %v6876_v49, %v3655_v16  ;;  %v9425_v18 = vpop.f32.mrf.mxu1 }
 0x36f   : > { %11952 = vst [vmem:[#allocation46_spill] sm:$0xff] %v10973_v7  ;;  %v3657_v60 = vpop.f32.mrf.mxu0  ;;  %v3081_v62 = vmax.f32 %v2794_v59, 0.0 }
 0x370   : > { %v7039_v47 = vmax.f32 %v7038_v17, %v3657_v60  ;;  %v2796_v3 = vpop.f32.mrf.mxu1 }
 0x371   : > { %v2797_v9 = vadd.f32 %v10814_v24, %v2796_v3  ;;  %v3661_v8 = vpop.f32.mrf.mxu0  ;;  %3900 = vmatmul.mubr.bf16.gmra.mxu0 %v10625_v36 }
 0x372   : > { %v6878_v21 = vmax.f32 %v6877_v10, %v3661_v8  ;;  %v9426_v42 = vpop.f32.mrf.mxu1  ;;  %3909 = vmatprep.mubr.bf16.mxu0 %v11938_v35 }
 0x373   : > { %v3082_v0 = vmax.f32 %v2797_v9, 0.0  ;;  %v3663_v45 = vpop.f32.mrf.mxu0 }
 0x374   : > { %v7040_v63 = vmax.f32 %v7039_v47, %v3663_v45  ;;  %v2801_v49 = vpop.f32.mrf.mxu1  ;;  %4471 = vmatmul.mubr.bf16.gmra.mxu1 %v10256_v34 }
 0x375   : > { %v10981_v32 = vpack.c.bf16 %v3082_v0, %v3081_v62  ;;  %v3665_v17 = vpop.f32.mrf.mxu0  ;;  %4480 = vmatprep.mubr.bf16.mxu1 %v11938_v35  ;;  %v2802_v60 = vadd.f32 %v10814_v24, %v2801_v49 }
 0x376   : > { %v6879_v16 = vmax.f32 %v6878_v21, %v3665_v17  ;;  %v9429_v18 = vpop.f32.mrf.mxu1  ;;  %v3245_v17 = vld [vmem:[%s11768_s5 + $0x150] sm:$0xff] }
 0x377   : > { %11953 = vst [vmem:[#allocation47_spill] sm:$0xff] %v10981_v32  ;;  %v3667_v10 = vpop.f32.mrf.mxu0  ;;  %v3083_v62 = vmax.f32 %v2802_v60, 0.0  ;;  %v3246_v18 = vld [vmem:[%s11768_s5 + $0x158] sm:$0xff] }
 0x378   : > { %v7041_v3 = vmax.f32 %v7040_v63, %v3667_v10  ;;  %v2804_v8 = vpop.f32.mrf.mxu1 }
 0x379   : > { %v2805_v59 = vadd.f32 %v10814_v24, %v2804_v8  ;;  %v3671_v9 = vpop.f32.mrf.mxu0  ;;  %3910 = vmatmul.mubr.bf16.gmra.mxu0 %v10642_v13 }
 0x37a   : > { %v6880_v47 = vmax.f32 %v6879_v16, %v3671_v9  ;;  %v9430_v42 = vpop.f32.mrf.mxu1  ;;  %3919 = vmatprep.mubr.bf16.mxu0 %v11938_v35  ;;  %v3249_v16 = vld [vmem:[%s11768_s5 + $0x170] sm:$0xff] }
 0x37b   : > { %v3084_v0 = vmax.f32 %v2805_v59, 0.0  ;;  %v3673_v45 = vpop.f32.mrf.mxu0  ;;  %v8682_v8 = vcombine.high %v3245_v17, %v3249_v16  ;;  %v3250_v59 = vld [vmem:[%s11768_s5 + $0x178] sm:$0xff] }
 0x37c   : > { %v7042_v34 = vmax.f32 %v7041_v3, %v3673_v45  ;;  %v2809_v21 = vpop.f32.mrf.mxu1  ;;  %4481 = vmatmul.mubr.bf16.gmra.mxu1 %v10274_v55  ;;  %v8681_v3 = vcombine.low %v3245_v17, %v3249_v16 }
 0x37d   : > { %v10989_v49 = vpack.c.bf16 %v3084_v0, %v3083_v62  ;;  %v3675_v63 = vpop.f32.mrf.mxu0  ;;  %4490 = vmatprep.mubr.bf16.mxu1 %v11938_v35  ;;  %v2810_v9 = vadd.f32 %v10814_v24, %v2809_v21  ;;  %v8683_v62 = vcombine.low %v3246_v18, %v3250_v59  ;;  %v8684_v0 = vcombine.high %v3246_v18, %v3250_v59 }
 0x37e   : > { %v6881_v60 = vmax.f32 %v6880_v47, %v3675_v63  ;;  %v9433_v10 = vpop.f32.mrf.mxu1  ;;  %5233 = vmatprep.subr.bf16.mxu0 %v8682_v8 }
 0x37f   : > { %11954 = vst [vmem:[#allocation48_spill] sm:$0xff] %v10989_v49  ;;  %v3677_v42 = vpop.f32.mrf.mxu0  ;;  %6054 = vmatprep.subr.bf16.mxu1 %v8684_v0  ;;  %5234 = vmatpush1.bf16.msra.mxu0 %v8681_v3  ;;  %v3085_v17 = vmax.f32 %v2810_v9, 0.0 }
 0x380   : > { %v7043_v45 = vmax.f32 %v7042_v34, %v3677_v42  ;;  %v2812_v55 = vpop.f32.mrf.mxu1  ;;  %6055 = vmatpush1.bf16.msra.mxu1 %v8683_v62 }
 0x381   : > { %v2813_v14 = vadd.f32 %v10814_v24, %v2812_v55  ;;  %v3681_v58 = vpop.f32.mrf.mxu0  ;;  %3920 = vmatmul.mubr.bf16.gmra.mxu0 %v10653_v48 }
 0x382   : > { %v6882_v47 = vmax.f32 %v6881_v60, %v3681_v58  ;;  %v9434_v63 = vpop.f32.mrf.mxu1  ;;  %3929 = vmatprep.mubr.bf16.mxu0 %v11938_v35 }
 0x383   : > { %v3086_v16 = vmax.f32 %v2813_v14, 0.0  ;;  %v3683_v21 = vpop.f32.mrf.mxu0 }
 0x384   : > { %v7044_v10 = vmax.f32 %v7043_v45, %v3683_v21  ;;  %v2817_v18 = vpop.f32.mrf.mxu1  ;;  %4491 = vmatmul.mubr.bf16.gmra.mxu1 %v10287_v12 }
 0x385   : > { %v11009_v34 = vpack.c.bf16 %v3086_v16, %v3085_v17  ;;  %v3685_v55 = vpop.f32.mrf.mxu0  ;;  %4500 = vmatprep.mubr.bf16.mxu1 %v11938_v35  ;;  %v2818_v58 = vadd.f32 %v10814_v24, %v2817_v18 }
 0x386   : > { %v6883_v8 = vmax.f32 %v6882_v47, %v3685_v55  ;;  %v9437_v59 = vpop.f32.mrf.mxu1 }
 0x387   : > { %11955 = vst [vmem:[#allocation49_spill] sm:$0xff] %v11009_v34  ;;  %v3687_v60 = vpop.f32.mrf.mxu0  ;;  %v3087_v45 = vmax.f32 %v2818_v58, 0.0 }
 0x388   : > { %v7045_v42 = vmax.f32 %v7044_v10, %v3687_v60  ;;  %v2820_v3 = vpop.f32.mrf.mxu1 }
 0x389   : > { %v2821_v14 = vadd.f32 %v10814_v24, %v2820_v3  ;;  %v3691_v9 = vpop.f32.mrf.mxu0  ;;  %3930 = vmatmul.mubr.bf16.gmra.mxu0 %v10664_v30 }
 0x38a   : > { %v6884_v62 = vmax.f32 %v6883_v8, %v3691_v9  ;;  %v9438_v0 = vpop.f32.mrf.mxu1  ;;  %3939 = vmatprep.mubr.bf16.mxu0 %v11938_v35 }
 0x38b   : > { %v3088_v63 = vmax.f32 %v2821_v14, 0.0  ;;  %v3693_v17 = vpop.f32.mrf.mxu0 }
 0x38c   : > { %v7046_v16 = vmax.f32 %v7045_v42, %v3693_v17  ;;  %v2825_v47 = vpop.f32.mrf.mxu1  ;;  %4501 = vmatmul.mubr.bf16.gmra.mxu1 %v10300_v33 }
 0x38d   : > { %v11017_v21 = vpack.c.bf16 %v3088_v63, %v3087_v45  ;;  %v3695_v10 = vpop.f32.mrf.mxu0  ;;  %4510 = vmatprep.mubr.bf16.mxu1 %v11938_v35  ;;  %v2826_v59 = vadd.f32 %v10814_v24, %v2825_v47 }
 0x38e   : > { %v6885_v18 = vmax.f32 %v6884_v62, %v3695_v10  ;;  %v9441_v55 = vpop.f32.mrf.mxu1 }
 0x38f   : > { %11956 = vst [vmem:[#allocation50_spill] sm:$0xff] %v11017_v21  ;;  %v3697_v8 = vpop.f32.mrf.mxu0  ;;  %v3089_v0 = vmax.f32 %v2826_v59, 0.0 }
 0x390   : > { %v7047_v60 = vmax.f32 %v7046_v16, %v3697_v8  ;;  %v2828_v3 = vpop.f32.mrf.mxu1 }
 0x391   : > { %v2829_v58 = vadd.f32 %v10814_v24, %v2828_v3  ;;  %v3701_v14 = vpop.f32.mrf.mxu0  ;;  %3940 = vmatmul.mubr.bf16.gmra.mxu0 %v10675_v4 }
 0x392   : > { %v6886_v42 = vmax.f32 %v6885_v18, %v3701_v14  ;;  %v9442_v9 = vpop.f32.mrf.mxu1  ;;  %3949 = vmatprep.mubr.bf16.mxu0 %v11938_v35 }
 0x393   : > { %v3090_v45 = vmax.f32 %v2829_v58, 0.0  ;;  %v3703_v63 = vpop.f32.mrf.mxu0 }
 0x394   : > { %v7048_v17 = vmax.f32 %v7047_v60, %v3703_v63  ;;  %v2833_v62 = vpop.f32.mrf.mxu1  ;;  %4511 = vmatmul.mubr.bf16.gmra.mxu1 %v10313_v56 }
 0x395   : > { %v11025_v47 = vpack.c.bf16 %v3090_v45, %v3089_v0  ;;  %v3705_v16 = vpop.f32.mrf.mxu0  ;;  %4520 = vmatprep.mubr.bf16.mxu1 %v11938_v35  ;;  %v2834_v8 = vadd.f32 %v10814_v24, %v2833_v62 }
 0x396   : > { %v6887_v10 = vmax.f32 %v6886_v42, %v3705_v16  ;;  %v9445_v55 = vpop.f32.mrf.mxu1 }
 0x397   : > { %11957 = vst [vmem:[#allocation51_spill] sm:$0xff] %v11025_v47  ;;  %v3707_v18 = vpop.f32.mrf.mxu0  ;;  %v3091_v0 = vmax.f32 %v2834_v8, 0.0 }
 0x398   : > { %v7049_v3 = vmax.f32 %v7048_v17, %v3707_v18  ;;  %v2836_v14 = vpop.f32.mrf.mxu1 }
 0x399   : > { %v2837_v59 = vadd.f32 %v10814_v24, %v2836_v14  ;;  %v3711_v58 = vpop.f32.mrf.mxu0  ;;  %3950 = vmatmul.mubr.bf16.gmra.mxu0 %v10686_v43 }
 0x39a   : > { %v6888_v60 = vmax.f32 %v6887_v10, %v3711_v58  ;;  %v9446_v9 = vpop.f32.mrf.mxu1  ;;  %3959 = vmatprep.mubr.bf16.mxu0 %v11938_v35 }
 0x39b   : > { %v3092_v45 = vmax.f32 %v2837_v59, 0.0  ;;  %v3713_v63 = vpop.f32.mrf.mxu0 }
 0x39c   : > { %v7050_v56 = vmax.f32 %v7049_v3, %v3713_v63  ;;  %v2841_v42 = vpop.f32.mrf.mxu1  ;;  %4521 = vmatmul.mubr.bf16.gmra.mxu1 %v10326_v15 }
 0x39d   : > { %v11033_v62 = vpack.c.bf16 %v3092_v45, %v3091_v0  ;;  %v3715_v17 = vpop.f32.mrf.mxu0  ;;  %4530 = vmatprep.mubr.bf16.mxu1 %v11938_v35  ;;  %v2842_v18 = vadd.f32 %v10814_v24, %v2841_v42 }
 0x39e   : > { %v6889_v16 = vmax.f32 %v6888_v60, %v3715_v17  ;;  %v9449_v55 = vpop.f32.mrf.mxu1 }
 0x39f   : > { %11958 = vst [vmem:[#allocation52_spill] sm:$0xff] %v11033_v62  ;;  %v3717_v10 = vpop.f32.mrf.mxu0  ;;  %v3093_v0 = vmax.f32 %v2842_v18, 0.0 }
 0x3a0   : > { %v7051_v14 = vmax.f32 %v7050_v56, %v3717_v10  ;;  %v2844_v58 = vpop.f32.mrf.mxu1 }
 0x3a1   : > { %v2845_v8 = vadd.f32 %v10814_v24, %v2844_v58  ;;  %v3721_v59 = vpop.f32.mrf.mxu0  ;;  %3960 = vmatmul.mubr.bf16.gmra.mxu0 %v10697_v20 }
 0x3a2   : > { %v6890_v3 = vmax.f32 %v6889_v16, %v3721_v59  ;;  %v9450_v9 = vpop.f32.mrf.mxu1  ;;  %3969 = vmatprep.mubr.bf16.mxu0 %v11938_v35 }
 0x3a3   : > { %v3094_v45 = vmax.f32 %v2845_v8, 0.0  ;;  %v3723_v63 = vpop.f32.mrf.mxu0 }
 0x3a4   : > { %v7052_v15 = vmax.f32 %v7051_v14, %v3723_v63  ;;  %v2849_v60 = vpop.f32.mrf.mxu1  ;;  %4531 = vmatmul.mubr.bf16.gmra.mxu1 %v10351_v46 }
 0x3a5   : > { %v11041_v42 = vpack.c.bf16 %v3094_v45, %v3093_v0  ;;  %v3725_v56 = vpop.f32.mrf.mxu0  ;;  %4540 = vmatprep.mubr.bf16.mxu1 %v11938_v35  ;;  %v2850_v10 = vadd.f32 %v10814_v24, %v2849_v60 }
 0x3a6   : > { %v6891_v17 = vmax.f32 %v6890_v3, %v3725_v56  ;;  %v9453_v55 = vpop.f32.mrf.mxu1 }
 0x3a7   : > { %11959 = vst [vmem:[#allocation53_spill] sm:$0xff] %v11041_v42  ;;  %v3727_v16 = vpop.f32.mrf.mxu0  ;;  %v3095_v0 = vmax.f32 %v2850_v10, 0.0 }
 0x3a8   : > { %v7053_v58 = vmax.f32 %v7052_v15, %v3727_v16  ;;  %v2852_v59 = vpop.f32.mrf.mxu1 }
 0x3a9   : > { %v2853_v18 = vadd.f32 %v10814_v24, %v2852_v59  ;;  %v3731_v8 = vpop.f32.mrf.mxu0  ;;  %3970 = vmatmul.mubr.bf16.gmra.mxu0 %v10708_v5 }
 0x3aa   : > { %v6892_v14 = vmax.f32 %v6891_v17, %v3731_v8  ;;  %v9454_v9 = vpop.f32.mrf.mxu1  ;;  %3979 = vmatprep.mubr.bf16.mxu0 %v11938_v35 }
 0x3ab   : > { %v3096_v45 = vmax.f32 %v2853_v18, 0.0  ;;  %v3733_v63 = vpop.f32.mrf.mxu0 }
 0x3ac   : > { %v7054_v46 = vmax.f32 %v7053_v58, %v3733_v63  ;;  %v2857_v3 = vpop.f32.mrf.mxu1  ;;  %4541 = vmatmul.mubr.bf16.gmra.mxu1 %v10364_v6 }
 0x3ad   : > { %v11049_v60 = vpack.c.bf16 %v3096_v45, %v3095_v0  ;;  %v3735_v15 = vpop.f32.mrf.mxu0  ;;  %4550 = vmatprep.mubr.bf16.mxu1 %v11938_v35  ;;  %v2858_v16 = vadd.f32 %v10814_v24, %v2857_v3 }
 0x3ae   : > { %v6893_v56 = vmax.f32 %v6892_v14, %v3735_v15  ;;  %v9457_v55 = vpop.f32.mrf.mxu1 }
 0x3af   : > { %11960 = vst [vmem:[#allocation54_spill] sm:$0xff] %v11049_v60  ;;  %v3737_v17 = vpop.f32.mrf.mxu0  ;;  %v3097_v0 = vmax.f32 %v2858_v16, 0.0  ;;  %v11064_v16 = vld [vmem:[%s11767_s4] ss:$0 sm:$0xff] }
 0x3b0   : > { %v7055_v59 = vmax.f32 %v7054_v46, %v3737_v17  ;;  %v2860_v8 = vpop.f32.mrf.mxu1 }
 0x3b1   : > { %v2861_v10 = vadd.f32 %v10814_v24, %v2860_v8  ;;  %v3741_v18 = vpop.f32.mrf.mxu0  ;;  %3980 = vmatmul.mubr.bf16.gmra.mxu0 %v10719_v52 }
 0x3b2   : > { %v6894_v58 = vmax.f32 %v6893_v56, %v3741_v18  ;;  %v9458_v9 = vpop.f32.mrf.mxu1  ;;  %3989 = vmatprep.mubr.bf16.mxu0 %v11938_v35 }
 0x3b3   : > { %v3098_v45 = vmax.f32 %v2861_v10, 0.0  ;;  %v3743_v63 = vpop.f32.mrf.mxu0 }
 0x3b4   : > { %v7056_v6 = vmax.f32 %v7055_v59, %v3743_v63  ;;  %v2865_v14 = vpop.f32.mrf.mxu1  ;;  %4551 = vmatmul.mubr.bf16.gmra.mxu1 %v10377_v29 }
 0x3b5   : > { %v11057_v3 = vpack.c.bf16 %v3098_v45, %v3097_v0  ;;  %v3745_v46 = vpop.f32.mrf.mxu0  ;;  %4560 = vmatprep.mubr.bf16.mxu1 %v11938_v35  ;;  %v2866_v17 = vadd.f32 %v10814_v24, %v2865_v14 }
 0x3b6   : > { %v6895_v15 = vmax.f32 %v6894_v58, %v3745_v46  ;;  %v9461_v55 = vpop.f32.mrf.mxu1 }
 0x3b7   : > { %11961 = vst [vmem:[#allocation55_spill] sm:$0xff] %v11057_v3  ;;  %v3747_v56 = vpop.f32.mrf.mxu0  ;;  %v3099_v58 = vmax.f32 %v2866_v17, 0.0 }
 0x3b8   : > { %v7057_v8 = vmax.f32 %v7056_v6, %v3747_v56  ;;  %v2868_v18 = vpop.f32.mrf.mxu1 }
 0x3b9   : > { %v2869_v59 = vadd.f32 %v11064_v16, %v2868_v18  ;;  %v3751_v10 = vpop.f32.mrf.mxu0  ;;  %3990 = vmatmul.mubr.bf16.gmra.mxu0 %v10730_v37 }
 0x3ba   : > { %v6896_v9 = vmax.f32 %v6895_v15, %v3751_v10  ;;  %v9462_v0 = vpop.f32.mrf.mxu1  ;;  %3999 = vmatprep.mubr.bf16.mxu0 %v11938_v35 }
 0x3bb   : > { %v3100_v45 = vmax.f32 %v2869_v59, 0.0  ;;  %v3753_v24 = vpop.f32.mrf.mxu0 }
 0x3bc   : > { %v7058_v63 = vmax.f32 %v7057_v8, %v3753_v24  ;;  %v2873_v6 = vpop.f32.mrf.mxu1  ;;  %4561 = vmatmul.mubr.bf16.gmra.mxu1 %v10402_v1 }
 0x3bd   : > { %v11070_v14 = vpack.c.bf16 %v3100_v45, %v3099_v58  ;;  %v3755_v46 = vpop.f32.mrf.mxu0  ;;  %4570 = vmatprep.mubr.bf16.mxu1 %v11938_v35  ;;  %v2874_v18 = vadd.f32 %v11064_v16, %v2873_v6 }
 0x3be   : > { %v6897_v55 = vmax.f32 %v6896_v9, %v3755_v46  ;;  %v9465_v56 = vpop.f32.mrf.mxu1 }
 0x3bf   : > { %11962 = vst [vmem:[#allocation56_spill] sm:$0xff] %v11070_v14  ;;  %v3757_v15 = vpop.f32.mrf.mxu0  ;;  %v3101_v58 = vmax.f32 %v2874_v18, 0.0 }
 0x3c0   : > { %v7059_v10 = vmax.f32 %v7058_v63, %v3757_v15  ;;  %v2876_v0 = vpop.f32.mrf.mxu1 }
 0x3c1   : > { %v2877_v17 = vadd.f32 %v11064_v16, %v2876_v0  ;;  %v3761_v59 = vpop.f32.mrf.mxu0  ;;  %4000 = vmatmul.mubr.bf16.gmra.mxu0 %v10741_v19 }
 0x3c2   : > { %v6898_v8 = vmax.f32 %v6897_v55, %v3761_v59  ;;  %v9466_v24 = vpop.f32.mrf.mxu1  ;;  %4009 = vmatprep.mubr.bf16.mxu0 %v11938_v35 }
 0x3c3   : > { %v3102_v45 = vmax.f32 %v2877_v17, 0.0  ;;  %v3763_v1 = vpop.f32.mrf.mxu0 }
 0x3c4   : > { %v7060_v29 = vmax.f32 %v7059_v10, %v3763_v1  ;;  %v2881_v9 = vpop.f32.mrf.mxu1  ;;  %4571 = vmatmul.mubr.bf16.gmra.mxu1 %v10415_v25  ;;  %v3237_v1 = vld [vmem:[%s11768_s5 + $0x110] sm:$0xff] }
 0x3c5   : > { %v11078_v6 = vpack.c.bf16 %v3102_v45, %v3101_v58  ;;  %v3765_v63 = vpop.f32.mrf.mxu0  ;;  %4580 = vmatprep.mubr.bf16.mxu1 %v11938_v35  ;;  %v2882_v15 = vadd.f32 %v11064_v16, %v2881_v9  ;;  %v3241_v10 = vld [vmem:[%s11768_s5 + $0x130] sm:$0xff]  ;;  %v3242_v9 = vld [vmem:[%s11768_s5 + $0x138] sm:$0xff] }
 0x3c6   : > { %v6899_v46 = vmax.f32 %v6898_v8, %v3765_v63  ;;  %v9469_v56 = vpop.f32.mrf.mxu1  ;;  %v3238_v8 = vld [vmem:[%s11768_s5 + $0x118] sm:$0xff]  ;;  %v8673_v58 = vcombine.low %v3237_v1, %v3241_v10  ;;  %v8674_v45 = vcombine.high %v3237_v1, %v3241_v10 }
 0x3c7   : > { %11963 = vst [vmem:[#allocation57_spill] sm:$0xff] %v11078_v6  ;;  %v3767_v55 = vpop.f32.mrf.mxu0  ;;  %v3103_v63 = vmax.f32 %v2882_v15, 0.0  ;;  %v8676_v25 = vcombine.high %v3238_v8, %v3242_v9 }
 0x3c8   : > { %v7061_v0 = vmax.f32 %v7060_v29, %v3767_v55  ;;  %v2884_v59 = vpop.f32.mrf.mxu1  ;;  %5235 = vmatprep.subr.bf16.mxu0 %v8674_v45 }
 0x3c9   : > { %v2885_v18 = vadd.f32 %v11064_v16, %v2884_v59  ;;  %v3771_v17 = vpop.f32.mrf.mxu0  ;;  %4010 = vmatmul.mubr.bf16.gmra.mxu0 %v10772_v40  ;;  %v8675_v59 = vcombine.low %v3238_v8, %v3242_v9  ;;  %6056 = vmatprep.subr.bf16.mxu1 %v8676_v25 }
 0x3ca   : > { %v6900_v24 = vmax.f32 %v6899_v46, %v3771_v17  ;;  %v9470_v29 = vpop.f32.mrf.mxu1  ;;  %4019 = vmatprep.mubr.bf16.mxu0 %v11938_v35  ;;  %5236 = vmatpush1.bf16.msra.mxu0 %v8673_v58 }
 0x3cb   : > { %v3104_v56 = vmax.f32 %v2885_v18, 0.0  ;;  %v3773_v55 = vpop.f32.mrf.mxu0  ;;  %6057 = vmatpush1.bf16.msra.mxu1 %v8675_v59 }
 0x3cc   : > { %v7062_v33 = vmax.f32 %v7061_v0, %v3773_v55  ;;  %v2889_v12 = vpop.f32.mrf.mxu1  ;;  %4581 = vmatmul.mubr.bf16.gmra.mxu1 %v10428_v50 }
 0x3cd   : > { %v11098_v46 = vpack.c.bf16 %v3104_v56, %v3103_v63  ;;  %v3775_v17 = vpop.f32.mrf.mxu0  ;;  %4590 = vmatprep.mubr.bf16.mxu1 %v11938_v35  ;;  %v2890_v15 = vadd.f32 %v11064_v16, %v2889_v12 }
 0x3ce   : > { %v6901_v1 = vmax.f32 %v6900_v24, %v3775_v17  ;;  %v9473_v10 = vpop.f32.mrf.mxu1 }
 0x3cf   : > { %11964 = vst [vmem:[#allocation58_spill] sm:$0xff] %v11098_v46  ;;  %v3777_v18 = vpop.f32.mrf.mxu0  ;;  %v3105_v56 = vmax.f32 %v2890_v15, 0.0 }
 0x3d0   : > { %v7063_v29 = vmax.f32 %v7062_v33, %v3777_v18  ;;  %v2892_v8 = vpop.f32.mrf.mxu1 }
 0x3d1   : > { %v2893_v0 = vadd.f32 %v11064_v16, %v2892_v8  ;;  %v3781_v9 = vpop.f32.mrf.mxu0  ;;  %4020 = vmatmul.mubr.bf16.gmra.mxu0 %v10783_v41 }
 0x3d2   : > { %v6902_v45 = vmax.f32 %v6901_v1, %v3781_v9  ;;  %v9474_v63 = vpop.f32.mrf.mxu1  ;;  %4029 = vmatprep.mubr.bf16.mxu0 %v11938_v35  ;;  %v11966_v9 = vld [vmem:[#allocation31_spill] sm:$0xff] }
 0x3d3   : > { %v3106_v25 = vmax.f32 %v2893_v0, 0.0  ;;  %v3783_v24 = vpop.f32.mrf.mxu0 }
 0x3d4   : > { %v7064_v55 = vmax.f32 %v7063_v29, %v3783_v24  ;;  %v2897_v58 = vpop.f32.mrf.mxu1  ;;  %4591 = vmatmul.mubr.bf16.gmra.mxu1 %v10441_v11 }
 0x3d5   : > { %v11106_v12 = vpack.c.bf16 %v3106_v25, %v3105_v56  ;;  %v3785_v33 = vpop.f32.mrf.mxu0  ;;  %4600 = vmatprep.mubr.bf16.mxu1 %v11938_v35  ;;  %v2898_v10 = vadd.f32 %v11064_v16, %v2897_v58 }
 0x3d6   : > { %v6903_v59 = vmax.f32 %v6902_v45, %v3785_v33  ;;  %v9477_v17 = vpop.f32.mrf.mxu1 }
 0x3d7   : > { %11965 = vst [vmem:[#allocation59_spill] sm:$0xff] %v11106_v12  ;;  %v3787_v1 = vpop.f32.mrf.mxu0  ;;  %v3107_v56 = vmax.f32 %v2898_v10, 0.0 }
 0x3d8   : > { %v7065_v18 = vmax.f32 %v7064_v55, %v3787_v1  ;;  %v2900_v8 = vpop.f32.mrf.mxu1 }
 0x3d9   : > { %v2901_v15 = vadd.f32 %v11064_v16, %v2900_v8  ;;  %v3791_v0 = vpop.f32.mrf.mxu0  ;;  %4030 = vmatmul.mubr.bf16.gmra.mxu0 %v11966_v9 }
 0x3da   : > { %v6904_v29 = vmax.f32 %v6903_v59, %v3791_v0  ;;  %v9478_v63 = vpop.f32.mrf.mxu1  ;;  %4039 = vmatprep.mubr.bf16.mxu0 %v11938_v35 }
 0x3db   : > { %v3108_v25 = vmax.f32 %v2901_v15, 0.0  ;;  %v3793_v24 = vpop.f32.mrf.mxu0  ;;  %v11968_v63 = vld [vmem:[#allocation32_spill] sm:$0xff] }
 0x3dc   : > { %v7066_v11 = vmax.f32 %v7065_v18, %v3793_v24  ;;  %v2905_v45 = vpop.f32.mrf.mxu1  ;;  %4601 = vmatmul.mubr.bf16.gmra.mxu1 %v10454_v39 }
 0x3dd   : > { %v11114_v58 = vpack.c.bf16 %v3108_v25, %v3107_v56  ;;  %v3795_v55 = vpop.f32.mrf.mxu0  ;;  %4610 = vmatprep.mubr.bf16.mxu1 %v11938_v35  ;;  %v2906_v1 = vadd.f32 %v11064_v16, %v2905_v45 }
 0x3de   : > { %v6905_v33 = vmax.f32 %v6904_v29, %v3795_v55  ;;  %v9481_v17 = vpop.f32.mrf.mxu1 }
 0x3df   : > { %11967 = vst [vmem:[#allocation31_spill] sm:$0xff] %v11114_v58  ;;  %v3797_v59 = vpop.f32.mrf.mxu0  ;;  %v3109_v56 = vmax.f32 %v2906_v1, 0.0 }
 0x3e0   : > { %v7067_v8 = vmax.f32 %v7066_v11, %v3797_v59  ;;  %v2908_v0 = vpop.f32.mrf.mxu1 }
 0x3e1   : > { %v2909_v10 = vadd.f32 %v11064_v16, %v2908_v0  ;;  %v3801_v15 = vpop.f32.mrf.mxu0  ;;  %4040 = vmatmul.mubr.bf16.gmra.mxu0 %v11968_v63 }
 0x3e2   : > { %v6906_v18 = vmax.f32 %v6905_v33, %v3801_v15  ;;  %v9482_v24 = vpop.f32.mrf.mxu1  ;;  %4049 = vmatprep.mubr.bf16.mxu0 %v11938_v35 }
 0x3e3   : > { %v3110_v25 = vmax.f32 %v2909_v10, 0.0  ;;  %v3803_v39 = vpop.f32.mrf.mxu0  ;;  %v11970_v24 = vld [vmem:[#allocation33_spill] sm:$0xff] }
 0x3e4   : > { %v7068_v50 = vmax.f32 %v7067_v8, %v3803_v39  ;;  %v2913_v29 = vpop.f32.mrf.mxu1  ;;  %4611 = vmatmul.mubr.bf16.gmra.mxu1 %v10467_v2 }
 0x3e5   : > { %v11122_v45 = vpack.c.bf16 %v3110_v25, %v3109_v56  ;;  %v3805_v11 = vpop.f32.mrf.mxu0  ;;  %4620 = vmatprep.mubr.bf16.mxu1 %v11938_v35  ;;  %v2914_v59 = vadd.f32 %v11064_v16, %v2913_v29 }
 0x3e6   : > { %v6907_v55 = vmax.f32 %v6906_v18, %v3805_v11  ;;  %v9485_v17 = vpop.f32.mrf.mxu1 }
 0x3e7   : > { %11969 = vst [vmem:[#allocation32_spill] sm:$0xff] %v11122_v45  ;;  %v3807_v33 = vpop.f32.mrf.mxu0  ;;  %v3111_v56 = vmax.f32 %v2914_v59, 0.0  ;;  %v11975_v45 = vld [vmem:[#allocation35_spill] sm:$0xff] }
 0x3e8   : > { %v7069_v0 = vmax.f32 %v7068_v50, %v3807_v33  ;;  %v2916_v15 = vpop.f32.mrf.mxu1 }
 0x3e9   : > { %v2917_v1 = vadd.f32 %v11064_v16, %v2916_v15  ;;  %v3811_v10 = vpop.f32.mrf.mxu0  ;;  %4050 = vmatmul.mubr.bf16.gmra.mxu0 %v11970_v24 }
 0x3ea   : > { %v6908_v39 = vmax.f32 %v6907_v55, %v3811_v10  ;;  %v9486_v8 = vpop.f32.mrf.mxu1  ;;  %4059 = vmatprep.mubr.bf16.mxu0 %v11938_v35 }
 0x3eb   : > { %v3112_v25 = vmax.f32 %v2917_v1, 0.0  ;;  %v3813_v2 = vpop.f32.mrf.mxu0  ;;  %v11972_v8 = vld [vmem:[#allocation34_spill] sm:$0xff] }
 0x3ec   : > { %v7070_v38 = vmax.f32 %v7069_v0, %v3813_v2  ;;  %v2921_v18 = vpop.f32.mrf.mxu1  ;;  %4621 = vmatmul.mubr.bf16.gmra.mxu1 %v10480_v28 }
 0x3ed   : > { %v11130_v29 = vpack.c.bf16 %v3112_v25, %v3111_v56  ;;  %v3815_v50 = vpop.f32.mrf.mxu0  ;;  %4630 = vmatprep.mubr.bf16.mxu1 %v11938_v35  ;;  %v2922_v33 = vadd.f32 %v11064_v16, %v2921_v18 }
 0x3ee   : > { %v6909_v11 = vmax.f32 %v6908_v39, %v3815_v50  ;;  %v9489_v17 = vpop.f32.mrf.mxu1  ;;  %v11973_v50 = vld [vmem:[#allocation21_spill] sm:$0xff] }
 0x3ef   : > { %11971 = vst [vmem:[#allocation33_spill] sm:$0xff] %v11130_v29  ;;  %v3817_v55 = vpop.f32.mrf.mxu0  ;;  %v3113_v56 = vmax.f32 %v2922_v33, 0.0 }
 0x3f0   : > { %v7071_v15 = vmax.f32 %v7070_v38, %v3817_v55  ;;  %v2924_v10 = vpop.f32.mrf.mxu1 }
 0x3f1   : > { %v2925_v59 = vadd.f32 %v11064_v16, %v2924_v10  ;;  %v3821_v1 = vpop.f32.mrf.mxu0  ;;  %4060 = vmatmul.mubr.bf16.gmra.mxu0 %v11972_v8 }
 0x3f2   : > { %v6910_v2 = vmax.f32 %v6909_v11, %v3821_v1  ;;  %v9490_v0 = vpop.f32.mrf.mxu1  ;;  %4069 = vmatprep.mubr.bf16.mxu0 %v11938_v35 }
 0x3f3   : > { %v3114_v25 = vmax.f32 %v2925_v59, 0.0  ;;  %v3823_v28 = vpop.f32.mrf.mxu0 }
 0x3f4   : > { %v7072_v29 = vmax.f32 %v7071_v15, %v3823_v28  ;;  %v2929_v39 = vpop.f32.mrf.mxu1  ;;  %4631 = vmatmul.mubr.bf16.gmra.mxu1 %v11973_v50 }
 0x3f5   : > { %v11138_v18 = vpack.c.bf16 %v3114_v25, %v3113_v56  ;;  %v3825_v38 = vpop.f32.mrf.mxu0  ;;  %4640 = vmatprep.mubr.bf16.mxu1 %v11938_v35  ;;  %v2930_v10 = vadd.f32 %v11064_v16, %v2929_v39 }
 0x3f6   : > { %v6911_v17 = vmax.f32 %v6910_v2, %v3825_v38  ;;  %v9493_v55 = vpop.f32.mrf.mxu1 }
 0x3f7   : > { %11974 = vst [vmem:[#allocation34_spill] sm:$0xff] %v11138_v18  ;;  %v3827_v11 = vpop.f32.mrf.mxu0  ;;  %v3115_v56 = vmax.f32 %v2930_v10, 0.0 }
 0x3f8   : > { %v7073_v1 = vmax.f32 %v7072_v29, %v3827_v11  ;;  %v2932_v0 = vpop.f32.mrf.mxu1 }
 0x3f9   : > { %v2933_v33 = vadd.f32 %v11064_v16, %v2932_v0  ;;  %v3831_v59 = vpop.f32.mrf.mxu0  ;;  %4070 = vmatmul.mubr.bf16.gmra.mxu0 %v11975_v45 }
 0x3fa   : > { %v6912_v28 = vmax.f32 %v6911_v17, %v3831_v59  ;;  %v9494_v15 = vpop.f32.mrf.mxu1  ;;  %4079 = vmatprep.mubr.bf16.mxu0 %v11938_v35 }
 0x3fb   : > { %v3116_v25 = vmax.f32 %v2933_v33, 0.0  ;;  %v3833_v50 = vpop.f32.mrf.mxu0  ;;  %v11977_v15 = vld [vmem:[#allocation36_spill] sm:$0xff] }
 0x3fc   : > { %v7074_v18 = vmax.f32 %v7073_v1, %v3833_v50  ;;  %v2937_v2 = vpop.f32.mrf.mxu1  ;;  %4641 = vmatmul.mubr.bf16.gmra.mxu1 %v10512_v27 }
 0x3fd   : > { %v11146_v39 = vpack.c.bf16 %v3116_v25, %v3115_v56  ;;  %v3835_v29 = vpop.f32.mrf.mxu0  ;;  %4650 = vmatprep.mubr.bf16.mxu1 %v11938_v35  ;;  %v2938_v11 = vadd.f32 %v11064_v16, %v2937_v2 }
 0x3fe   : > { %v6913_v38 = vmax.f32 %v6912_v28, %v3835_v29  ;;  %v9497_v55 = vpop.f32.mrf.mxu1 }
 0x3ff   : > { %11976 = vst [vmem:[#allocation60_spill] sm:$0xff] %v11146_v39  ;;  %v3837_v17 = vpop.f32.mrf.mxu0  ;;  %v3117_v56 = vmax.f32 %v2938_v11, 0.0 }
 0x400   : > { %v7075_v0 = vmax.f32 %v7074_v18, %v3837_v17  ;;  %v2940_v59 = vpop.f32.mrf.mxu1 }
 0x401   : > { %v2941_v10 = vadd.f32 %v11064_v16, %v2940_v59  ;;  %v3841_v33 = vpop.f32.mrf.mxu0  ;;  %4080 = vmatmul.mubr.bf16.gmra.mxu0 %v11977_v15 }
 0x402   : > { %v6914_v50 = vmax.f32 %v6913_v38, %v3841_v33  ;;  %v9498_v1 = vpop.f32.mrf.mxu1  ;;  %4089 = vmatprep.mubr.bf16.mxu0 %v11938_v35 }
 0x403   : > { %v3118_v25 = vmax.f32 %v2941_v10, 0.0  ;;  %v3843_v27 = vpop.f32.mrf.mxu0  ;;  %v11979_v1 = vld [vmem:[#allocation37_spill] sm:$0xff] }
 0x404   : > { %v7076_v39 = vmax.f32 %v7075_v0, %v3843_v27  ;;  %v2945_v28 = vpop.f32.mrf.mxu1  ;;  %4651 = vmatmul.mubr.bf16.gmra.mxu1 %v10530_v57 }
 0x405   : > { %v11154_v2 = vpack.c.bf16 %v3118_v25, %v3117_v56  ;;  %v3845_v18 = vpop.f32.mrf.mxu0  ;;  %4660 = vmatprep.mubr.bf16.mxu1 %v11938_v35  ;;  %v2946_v17 = vadd.f32 %v11064_v16, %v2945_v28 }
 0x406   : > { %v6915_v29 = vmax.f32 %v6914_v50, %v3845_v18  ;;  %v9501_v55 = vpop.f32.mrf.mxu1 }
 0x407   : > { %11978 = vst [vmem:[#allocation61_spill] sm:$0xff] %v11154_v2  ;;  %v3847_v38 = vpop.f32.mrf.mxu0  ;;  %v3119_v56 = vmax.f32 %v2946_v17, 0.0 }
 0x408   : > { %v7077_v59 = vmax.f32 %v7076_v39, %v3847_v38  ;;  %v2948_v33 = vpop.f32.mrf.mxu1 }
 0x409   : > { %v2949_v11 = vadd.f32 %v11064_v16, %v2948_v33  ;;  %v3851_v10 = vpop.f32.mrf.mxu0  ;;  %4090 = vmatmul.mubr.bf16.gmra.mxu0 %v11979_v1 }
 0x40a   : > { %v6916_v27 = vmax.f32 %v6915_v29, %v3851_v10  ;;  %v9502_v0 = vpop.f32.mrf.mxu1  ;;  %4099 = vmatprep.mubr.bf16.mxu0 %v11938_v35 }
 0x40b   : > { %v3120_v25 = vmax.f32 %v2949_v11, 0.0  ;;  %v3853_v57 = vpop.f32.mrf.mxu0  ;;  %v11981_v0 = vld [vmem:[#allocation38_spill] sm:$0xff] }
 0x40c   : > { %v7078_v2 = vmax.f32 %v7077_v59, %v3853_v57  ;;  %v2953_v50 = vpop.f32.mrf.mxu1  ;;  %4661 = vmatmul.mubr.bf16.gmra.mxu1 %v10543_v23 }
 0x40d   : > { %v11162_v28 = vpack.c.bf16 %v3120_v25, %v3119_v56  ;;  %v3855_v39 = vpop.f32.mrf.mxu0  ;;  %4670 = vmatprep.mubr.bf16.mxu1 %v11938_v35  ;;  %v2954_v38 = vadd.f32 %v11064_v16, %v2953_v50 }
 0x40e   : > { %v6917_v18 = vmax.f32 %v6916_v27, %v3855_v39  ;;  %v9505_v55 = vpop.f32.mrf.mxu1 }
 0x40f   : > { %11980 = vst [vmem:[#allocation62_spill] sm:$0xff] %v11162_v28  ;;  %v3857_v29 = vpop.f32.mrf.mxu0  ;;  %v3121_v56 = vmax.f32 %v2954_v38, 0.0  ;;  %v3229_v38 = vld [vmem:[%s11768_s5 + $0xd0] sm:$0xff] }
 0x410   : > { %v7079_v33 = vmax.f32 %v7078_v2, %v3857_v29  ;;  %v2956_v10 = vpop.f32.mrf.mxu1 }
 0x411   : > { %v2957_v17 = vadd.f32 %v11064_v16, %v2956_v10  ;;  %v3861_v11 = vpop.f32.mrf.mxu0  ;;  %4100 = vmatmul.mubr.bf16.gmra.mxu0 %v11981_v0 }
 0x412   : > { %v6918_v57 = vmax.f32 %v6917_v18, %v3861_v11  ;;  %v9506_v59 = vpop.f32.mrf.mxu1  ;;  %4109 = vmatprep.mubr.bf16.mxu0 %v11938_v35 }
 0x413   : > { %v3122_v25 = vmax.f32 %v2957_v17, 0.0  ;;  %v3863_v23 = vpop.f32.mrf.mxu0 }
 0x414   : > { %v7080_v28 = vmax.f32 %v7079_v33, %v3863_v23  ;;  %v11169_v27 = vpop.f32.mrf.mxu1  ;;  %4671 = vmatmul.mubr.bf16.gmra.mxu1 %v10556_v53  ;;  %v3233_v23 = vld [vmem:[%s11768_s5 + $0xf0] sm:$0xff]  ;;  %v3230_v33 = vld [vmem:[%s11768_s5 + $0xd8] sm:$0xff] }
 0x415   : > { %11982 = vst [vmem:[#allocation63_spill] sm:$0xff] %v11169_v27  ;;  %v11172_v50 = vpack.c.bf16 %v3122_v25, %v3121_v56  ;;  %v3865_v2 = vpop.f32.mrf.mxu0  ;;  %4680 = vmatprep.mubr.bf16.mxu1 %v11938_v35  ;;  %v8665_v17 = vcombine.low %v3229_v38, %v3233_v23  ;;  %v8666_v11 = vcombine.high %v3229_v38, %v3233_v23  ;;  %v11985_v27 = vld [vmem:[#allocation41_spill] sm:$0xff] }
 0x416   : > { %v6919_v16 = vmax.f32 %v6918_v57, %v3865_v2  ;;  %v9509_v39 = vpop.f32.mrf.mxu1 }
 0x417   : > { %11983 = vst [vmem:[#allocation64_spill] sm:$0xff] %v11172_v50  ;;  %v3867_v55 = vpop.f32.mrf.mxu0  ;;  %5237 = vmatprep.subr.bf16.mxu0 %v8666_v11 }
 0x418   : > { %v7081_v18 = vmax.f32 %v7080_v28, %v3867_v55  ;;  %v2964_v29 = vpop.f32.mrf.mxu1  ;;  %v3234_v28 = vld [vmem:[%s11768_s5 + $0xf8] sm:$0xff]  ;;  %5238 = vmatpush1.bf16.msra.mxu0 %v8665_v17 }
 0x419   : > { %v3871_v10 = vpop.f32.mrf.mxu0  ;;  %4110 = vmatmul.mubr.bf16.gmra.mxu0 %v10898_v31  ;;  %v8667_v56 = vcombine.low %v3230_v33, %v3234_v28  ;;  %v8668_v25 = vcombine.high %v3230_v33, %v3234_v28  ;;  %v11984_v33 = vld [vmem:[#allocation40_spill] sm:$0xff] }
 0x41a   : > { %v6920_v57 = vmax.f32 %v6919_v16, %v3871_v10  ;;  %v9510_v59 = vpop.f32.mrf.mxu1  ;;  %4119 = vmatprep.mubr.bf16.mxu0 %v11938_v35 }
 0x41b   : > { %v3873_v2 = vpop.f32.mrf.mxu0  ;;  %6058 = vmatprep.subr.bf16.mxu1 %v8668_v25 }
 0x41c   : > { %v7082_v39 = vmax.f32 %v7081_v18, %v3873_v2  ;;  %v4442_v55 = vpop.f32.mrf.mxu1  ;;  %4681 = vmatmul.mubr.bf16.gmra.mxu1 %v10569_v22 }
 0x41d   : > { %v3875_v29 = vpop.f32.mrf.mxu0  ;;  %4690 = vmatprep.mubr.bf16.mxu1 %v11938_v35  ;;  %6059 = vmatpush1.bf16.msra.mxu1 %v8667_v56 }
 0x41e   : > { %v6921_v38 = vmax.f32 %v6920_v57, %v3875_v29  ;;  %v4444_v23 = vpop.f32.mrf.mxu1 }
 0x41f   : > { %v3877_v16 = vpop.f32.mrf.mxu0 }
 0x420   : > { %v7083_v10 = vmax.f32 %v7082_v39, %v3877_v16  ;;  %v4446_v59 = vpop.f32.mrf.mxu1 }
 0x421   : > { %v7195_v53 = vmax.f32 %v4442_v55, %v4446_v59  ;;  %v3881_v50 = vpop.f32.mrf.mxu0  ;;  %4120 = vmatmul.mubr.bf16.gmra.mxu0 %v11984_v33 }
 0x422   : > { %v6922_v11 = vmax.f32 %v6921_v38, %v3881_v50  ;;  %v4448_v18 = vpop.f32.mrf.mxu1  ;;  %4129 = vmatprep.mubr.bf16.mxu0 %v11938_v35 }
 0x423   : > { %v7357_v28 = vmax.f32 %v4444_v23, %v4448_v18  ;;  %v3883_v25 = vpop.f32.mrf.mxu0 }
 0x424   : > { %v7084_v2 = vmax.f32 %v7083_v10, %v3883_v25  ;;  %v4452_v22 = vpop.f32.mrf.mxu1  ;;  %4691 = vmatmul.mubr.bf16.gmra.mxu1 %v10587_v54  ;;  %v11986_v54 = vld [vmem:[#allocation42_spill] sm:$0xff] }
 0x425   : > { %v7196_v17 = vmax.f32 %v7195_v53, %v4452_v22  ;;  %v3885_v57 = vpop.f32.mrf.mxu0  ;;  %4700 = vmatprep.mubr.bf16.mxu1 %v11938_v35 }
 0x426   : > { %v6923_v56 = vmax.f32 %v6922_v11, %v3885_v57  ;;  %v4454_v39 = vpop.f32.mrf.mxu1 }
 0x427   : > { %v7358_v55 = vmax.f32 %v7357_v28, %v4454_v39  ;;  %v3887_v29 = vpop.f32.mrf.mxu0 }
 0x428   : > { %v7085_v16 = vmax.f32 %v7084_v2, %v3887_v29  ;;  %v4456_v59 = vpop.f32.mrf.mxu1 }
 0x429   : > { %v7197_v50 = vmax.f32 %v7196_v17, %v4456_v59  ;;  %v3891_v38 = vpop.f32.mrf.mxu0  ;;  %4130 = vmatmul.mubr.bf16.gmra.mxu0 %v11985_v27 }
 0x42a   : > { %v6924_v23 = vmax.f32 %v6923_v56, %v3891_v38  ;;  %v4458_v18 = vpop.f32.mrf.mxu1  ;;  %4139 = vmatprep.mubr.bf16.mxu0 %v11938_v35 }
 0x42b   : > { %v7359_v10 = vmax.f32 %v7358_v55, %v4458_v18  ;;  %v3893_v25 = vpop.f32.mrf.mxu0 }
 0x42c   : > { %v7086_v53 = vmax.f32 %v7085_v16, %v3893_v25  ;;  %v4462_v22 = vpop.f32.mrf.mxu1  ;;  %4701 = vmatmul.mubr.bf16.gmra.mxu1 %v10600_v26  ;;  %v11987_v26 = vld [vmem:[#allocation43_spill] sm:$0xff] }
 0x42d   : > { %v7198_v11 = vmax.f32 %v7197_v50, %v4462_v22  ;;  %v3895_v57 = vpop.f32.mrf.mxu0  ;;  %4710 = vmatprep.mubr.bf16.mxu1 %v11938_v35 }
 0x42e   : > { %v6925_v28 = vmax.f32 %v6924_v23, %v3895_v57  ;;  %v4464_v2 = vpop.f32.mrf.mxu1 }
 0x42f   : > { %v7360_v17 = vmax.f32 %v7359_v10, %v4464_v2  ;;  %v3897_v39 = vpop.f32.mrf.mxu0 }
 0x430   : > { %v7087_v29 = vmax.f32 %v7086_v53, %v3897_v39  ;;  %v4466_v59 = vpop.f32.mrf.mxu1 }
 0x431   : > { %v7199_v56 = vmax.f32 %v7198_v11, %v4466_v59  ;;  %v3901_v38 = vpop.f32.mrf.mxu0  ;;  %4140 = vmatmul.mubr.bf16.gmra.mxu0 %v11986_v54 }
 0x432   : > { %v6926_v55 = vmax.f32 %v6925_v28, %v3901_v38  ;;  %v4468_v18 = vpop.f32.mrf.mxu1  ;;  %4149 = vmatprep.mubr.bf16.mxu0 %v11938_v35 }
 0x433   : > { %v7361_v16 = vmax.f32 %v7360_v17, %v4468_v18  ;;  %v3903_v25 = vpop.f32.mrf.mxu0 }
 0x434   : > { %v7088_v50 = vmax.f32 %v7087_v29, %v3903_v25  ;;  %v4472_v22 = vpop.f32.mrf.mxu1  ;;  %4711 = vmatmul.mubr.bf16.gmra.mxu1 %v10613_v61 }
 0x435   : > { %v7200_v23 = vmax.f32 %v7199_v56, %v4472_v22  ;;  %v3905_v57 = vpop.f32.mrf.mxu0  ;;  %4720 = vmatprep.mubr.bf16.mxu1 %v11938_v35 }
 0x436   : > { %v6927_v10 = vmax.f32 %v6926_v55, %v3905_v57  ;;  %v4474_v53 = vpop.f32.mrf.mxu1 }
 0x437   : > { %v7362_v11 = vmax.f32 %v7361_v16, %v4474_v53  ;;  %v3907_v2 = vpop.f32.mrf.mxu0 }
 0x438   : > { %v7089_v39 = vmax.f32 %v7088_v50, %v3907_v2  ;;  %v4476_v59 = vpop.f32.mrf.mxu1 }
 0x439   : > { %v7201_v28 = vmax.f32 %v7200_v23, %v4476_v59  ;;  %v3911_v38 = vpop.f32.mrf.mxu0  ;;  %4150 = vmatmul.mubr.bf16.gmra.mxu0 %v11987_v26 }
 0x43a   : > { %v6928_v17 = vmax.f32 %v6927_v10, %v3911_v38  ;;  %v4478_v18 = vpop.f32.mrf.mxu1  ;;  %4159 = vmatprep.mubr.bf16.mxu0 %v11938_v35 }
 0x43b   : > { %v7363_v29 = vmax.f32 %v7362_v11, %v4478_v18  ;;  %v3913_v25 = vpop.f32.mrf.mxu0 }
 0x43c   : > { %v7090_v56 = vmax.f32 %v7089_v39, %v3913_v25  ;;  %v4482_v22 = vpop.f32.mrf.mxu1  ;;  %4721 = vmatmul.mubr.bf16.gmra.mxu1 %v10625_v36 }
 0x43d   : > { %v7202_v55 = vmax.f32 %v7201_v28, %v4482_v22  ;;  %v3915_v57 = vpop.f32.mrf.mxu0  ;;  %4730 = vmatprep.mubr.bf16.mxu1 %v11938_v35 }
 0x43e   : > { %v6929_v16 = vmax.f32 %v6928_v17, %v3915_v57  ;;  %v4484_v50 = vpop.f32.mrf.mxu1 }
 0x43f   : > { %v7364_v23 = vmax.f32 %v7363_v29, %v4484_v50  ;;  %v3917_v53 = vpop.f32.mrf.mxu0 }
 0x440   : > { %v7091_v2 = vmax.f32 %v7090_v56, %v3917_v53  ;;  %v4486_v59 = vpop.f32.mrf.mxu1 }
 0x441   : > { %v7203_v10 = vmax.f32 %v7202_v55, %v4486_v59  ;;  %v3921_v38 = vpop.f32.mrf.mxu0  ;;  %4160 = vmatmul.mubr.bf16.gmra.mxu0 %v10954_v44 }
 0x442   : > { %v6930_v11 = vmax.f32 %v6929_v16, %v3921_v38  ;;  %v4488_v18 = vpop.f32.mrf.mxu1  ;;  %4169 = vmatprep.mubr.bf16.mxu0 %v11938_v35 }
 0x443   : > { %v7365_v39 = vmax.f32 %v7364_v23, %v4488_v18  ;;  %v3923_v25 = vpop.f32.mrf.mxu0 }
 0x444   : > { %v7092_v28 = vmax.f32 %v7091_v2, %v3923_v25  ;;  %v4492_v22 = vpop.f32.mrf.mxu1  ;;  %4731 = vmatmul.mubr.bf16.gmra.mxu1 %v10642_v13 }
 0x445   : > { %v7204_v17 = vmax.f32 %v7203_v10, %v4492_v22  ;;  %v3925_v57 = vpop.f32.mrf.mxu0  ;;  %4740 = vmatprep.mubr.bf16.mxu1 %v11938_v35 }
 0x446   : > { %v6931_v29 = vmax.f32 %v6930_v11, %v3925_v57  ;;  %v4494_v56 = vpop.f32.mrf.mxu1 }
 0x447   : > { %v7366_v55 = vmax.f32 %v7365_v39, %v4494_v56  ;;  %v3927_v50 = vpop.f32.mrf.mxu0 }
 0x448   : > { %v7093_v53 = vmax.f32 %v7092_v28, %v3927_v50  ;;  %v4496_v59 = vpop.f32.mrf.mxu1 }
 0x449   : > { %v7205_v16 = vmax.f32 %v7204_v17, %v4496_v59  ;;  %v3931_v38 = vpop.f32.mrf.mxu0  ;;  %4170 = vmatmul.mubr.bf16.gmra.mxu0 %v10965_v51 }
 0x44a   : > { %v6932_v23 = vmax.f32 %v6931_v29, %v3931_v38  ;;  %v4498_v18 = vpop.f32.mrf.mxu1  ;;  %4179 = vmatprep.mubr.bf16.mxu0 %v11938_v35 }
 0x44b   : > { %v7367_v2 = vmax.f32 %v7366_v55, %v4498_v18  ;;  %v3933_v25 = vpop.f32.mrf.mxu0 }
 0x44c   : > { %v7094_v10 = vmax.f32 %v7093_v53, %v3933_v25  ;;  %v4502_v22 = vpop.f32.mrf.mxu1  ;;  %4741 = vmatmul.mubr.bf16.gmra.mxu1 %v10653_v48 }
 0x44d   : > { %v7206_v11 = vmax.f32 %v7205_v16, %v4502_v22  ;;  %v3935_v57 = vpop.f32.mrf.mxu0  ;;  %4750 = vmatprep.mubr.bf16.mxu1 %v11938_v35 }
 0x44e   : > { %v6933_v39 = vmax.f32 %v6932_v23, %v3935_v57  ;;  %v4504_v28 = vpop.f32.mrf.mxu1 }
 0x44f   : > { %v7368_v17 = vmax.f32 %v7367_v2, %v4504_v28  ;;  %v3937_v56 = vpop.f32.mrf.mxu0 }
 0x450   : > { %v7095_v50 = vmax.f32 %v7094_v10, %v3937_v56  ;;  %v4506_v59 = vpop.f32.mrf.mxu1 }
 0x451   : > { %v7207_v29 = vmax.f32 %v7206_v11, %v4506_v59  ;;  %v3941_v38 = vpop.f32.mrf.mxu0  ;;  %4180 = vmatmul.mubr.bf16.gmra.mxu0 %v10973_v7 }
 0x452   : > { %v6934_v55 = vmax.f32 %v6933_v39, %v3941_v38  ;;  %v4508_v18 = vpop.f32.mrf.mxu1  ;;  %4189 = vmatprep.mubr.bf16.mxu0 %v11938_v35 }
 0x453   : > { %v7369_v53 = vmax.f32 %v7368_v17, %v4508_v18  ;;  %v3943_v25 = vpop.f32.mrf.mxu0 }
 0x454   : > { %v7096_v16 = vmax.f32 %v7095_v50, %v3943_v25  ;;  %v4512_v22 = vpop.f32.mrf.mxu1  ;;  %4751 = vmatmul.mubr.bf16.gmra.mxu1 %v10664_v30 }
 0x455   : > { %v7208_v23 = vmax.f32 %v7207_v29, %v4512_v22  ;;  %v3945_v57 = vpop.f32.mrf.mxu0  ;;  %4760 = vmatprep.mubr.bf16.mxu1 %v11938_v35 }
 0x456   : > { %v6935_v2 = vmax.f32 %v6934_v55, %v3945_v57  ;;  %v4514_v10 = vpop.f32.mrf.mxu1 }
 0x457   : > { %v7370_v11 = vmax.f32 %v7369_v53, %v4514_v10  ;;  %v3947_v28 = vpop.f32.mrf.mxu0 }
 0x458   : > { %v7097_v56 = vmax.f32 %v7096_v16, %v3947_v28  ;;  %v4516_v59 = vpop.f32.mrf.mxu1 }
 0x459   : > { %v7209_v39 = vmax.f32 %v7208_v23, %v4516_v59  ;;  %v3951_v38 = vpop.f32.mrf.mxu0  ;;  %4190 = vmatmul.mubr.bf16.gmra.mxu0 %v10981_v32 }
 0x45a   : > { %v6936_v17 = vmax.f32 %v6935_v2, %v3951_v38  ;;  %v4518_v18 = vpop.f32.mrf.mxu1  ;;  %4199 = vmatprep.mubr.bf16.mxu0 %v11938_v35 }
 0x45b   : > { %v7371_v50 = vmax.f32 %v7370_v11, %v4518_v18  ;;  %v3953_v25 = vpop.f32.mrf.mxu0 }
 0x45c   : > { %v7098_v29 = vmax.f32 %v7097_v56, %v3953_v25  ;;  %v4522_v22 = vpop.f32.mrf.mxu1  ;;  %4761 = vmatmul.mubr.bf16.gmra.mxu1 %v10675_v4 }
 0x45d   : > { %v7210_v55 = vmax.f32 %v7209_v39, %v4522_v22  ;;  %v3955_v57 = vpop.f32.mrf.mxu0  ;;  %4770 = vmatprep.mubr.bf16.mxu1 %v11938_v35 }
 0x45e   : > { %v6937_v53 = vmax.f32 %v6936_v17, %v3955_v57  ;;  %v4524_v16 = vpop.f32.mrf.mxu1 }
 0x45f   : > { %v7372_v23 = vmax.f32 %v7371_v50, %v4524_v16  ;;  %v3957_v10 = vpop.f32.mrf.mxu0 }
 0x460   : > { %v7099_v28 = vmax.f32 %v7098_v29, %v3957_v10  ;;  %v4526_v59 = vpop.f32.mrf.mxu1  ;;  %v3222_v10 = vld [vmem:[%s11768_s5 + $0x98] sm:$0xff] }
 0x461   : > { %v7211_v2 = vmax.f32 %v7210_v55, %v4526_v59  ;;  %v3961_v38 = vpop.f32.mrf.mxu0  ;;  %4200 = vmatmul.mubr.bf16.gmra.mxu0 %v10989_v49 }
 0x462   : > { %v6938_v11 = vmax.f32 %v6937_v53, %v3961_v38  ;;  %v4528_v18 = vpop.f32.mrf.mxu1  ;;  %4209 = vmatprep.mubr.bf16.mxu0 %v11938_v35  ;;  %v3221_v53 = vld [vmem:[%s11768_s5 + $0x90] sm:$0xff] }
 0x463   : > { %v7373_v56 = vmax.f32 %v7372_v23, %v4528_v18  ;;  %v3963_v25 = vpop.f32.mrf.mxu0  ;;  %v3225_v23 = vld [vmem:[%s11768_s5 + $0xb0] sm:$0xff] }
 0x464   : > { %v7100_v39 = vmax.f32 %v7099_v28, %v3963_v25  ;;  %v4532_v22 = vpop.f32.mrf.mxu1  ;;  %4771 = vmatmul.mubr.bf16.gmra.mxu1 %v10686_v43  ;;  %v8658_v38 = vcombine.high %v3221_v53, %v3225_v23 }
 0x465   : > { %v7212_v17 = vmax.f32 %v7211_v2, %v4532_v22  ;;  %v3965_v57 = vpop.f32.mrf.mxu0  ;;  %4780 = vmatprep.mubr.bf16.mxu1 %v11938_v35  ;;  %v8657_v2 = vcombine.low %v3221_v53, %v3225_v23 }
 0x466   : > { %v6939_v50 = vmax.f32 %v6938_v11, %v3965_v57  ;;  %v4534_v29 = vpop.f32.mrf.mxu1  ;;  %v3226_v11 = vld [vmem:[%s11768_s5 + $0xb8] sm:$0xff]  ;;  %5239 = vmatprep.subr.bf16.mxu0 %v8658_v38 }
 0x467   : > { %v7374_v55 = vmax.f32 %v7373_v56, %v4534_v29  ;;  %v3967_v16 = vpop.f32.mrf.mxu0  ;;  %v8659_v25 = vcombine.low %v3222_v10, %v3226_v11  ;;  %v8660_v22 = vcombine.high %v3222_v10, %v3226_v11  ;;  %5240 = vmatpush1.bf16.msra.mxu0 %v8657_v2 }
 0x468   : > { %v7101_v28 = vmax.f32 %v7100_v39, %v3967_v16  ;;  %v4536_v59 = vpop.f32.mrf.mxu1 }
 0x469   : > { %v7213_v18 = vmax.f32 %v7212_v17, %v4536_v59  ;;  %v3971_v56 = vpop.f32.mrf.mxu0  ;;  %4210 = vmatmul.mubr.bf16.gmra.mxu0 %v11009_v34  ;;  %6060 = vmatprep.subr.bf16.mxu1 %v8660_v22 }
 0x46a   : > { %v6940_v57 = vmax.f32 %v6939_v50, %v3971_v56  ;;  %v4538_v29 = vpop.f32.mrf.mxu1  ;;  %4219 = vmatprep.mubr.bf16.mxu0 %v11938_v35  ;;  %6061 = vmatpush1.bf16.msra.mxu1 %v8659_v25 }
 0x46b   : > { %v7375_v43 = vmax.f32 %v7374_v55, %v4538_v29  ;;  %v3973_v39 = vpop.f32.mrf.mxu0 }
 0x46c   : > { %v7102_v16 = vmax.f32 %v7101_v28, %v3973_v39  ;;  %v4542_v53 = vpop.f32.mrf.mxu1  ;;  %4781 = vmatmul.mubr.bf16.gmra.mxu1 %v10697_v20 }
 0x46d   : > { %v7214_v23 = vmax.f32 %v7213_v18, %v4542_v53  ;;  %v3975_v17 = vpop.f32.mrf.mxu0  ;;  %4790 = vmatprep.mubr.bf16.mxu1 %v11938_v35 }
 0x46e   : > { %v6941_v59 = vmax.f32 %v6940_v57, %v3975_v17  ;;  %v4544_v10 = vpop.f32.mrf.mxu1 }
 0x46f   : > { %v7376_v50 = vmax.f32 %v7375_v43, %v4544_v10  ;;  %v3977_v11 = vpop.f32.mrf.mxu0 }
 0x470   : > { %v7103_v56 = vmax.f32 %v7102_v16, %v3977_v11  ;;  %v4546_v4 = vpop.f32.mrf.mxu1 }
 0x471   : > { %v7215_v38 = vmax.f32 %v7214_v23, %v4546_v4  ;;  %v3981_v55 = vpop.f32.mrf.mxu0  ;;  %4220 = vmatmul.mubr.bf16.gmra.mxu0 %v11017_v21 }
 0x472   : > { %v6942_v2 = vmax.f32 %v6941_v59, %v3981_v55  ;;  %v4548_v28 = vpop.f32.mrf.mxu1  ;;  %4229 = vmatprep.mubr.bf16.mxu0 %v11938_v35 }
 0x473   : > { %v7377_v22 = vmax.f32 %v7376_v50, %v4548_v28  ;;  %v3983_v18 = vpop.f32.mrf.mxu0 }
 0x474   : > { %v7104_v29 = vmax.f32 %v7103_v56, %v3983_v18  ;;  %v4552_v39 = vpop.f32.mrf.mxu1  ;;  %4791 = vmatmul.mubr.bf16.gmra.mxu1 %v10708_v5 }
 0x475   : > { %v7216_v25 = vmax.f32 %v7215_v38, %v4552_v39  ;;  %v3985_v57 = vpop.f32.mrf.mxu0  ;;  %4800 = vmatprep.mubr.bf16.mxu1 %v11938_v35  ;;  %v3213_v39 = vld [vmem:[%s11768_s5 + $0x50] sm:$0xff] }
 0x476   : > { %v6943_v43 = vmax.f32 %v6942_v2, %v3985_v57  ;;  %v4554_v16 = vpop.f32.mrf.mxu1 }
 0x477   : > { %v7378_v4 = vmax.f32 %v7377_v22, %v4554_v16  ;;  %v3987_v53 = vpop.f32.mrf.mxu0 }
 0x478   : > { %v7105_v23 = vmax.f32 %v7104_v29, %v3987_v53  ;;  %v4556_v17 = vpop.f32.mrf.mxu1 }
 0x479   : > { %v7217_v59 = vmax.f32 %v7216_v25, %v4556_v17  ;;  %v3991_v10 = vpop.f32.mrf.mxu0  ;;  %4230 = vmatmul.mubr.bf16.gmra.mxu0 %v11025_v47  ;;  %v3217_v25 = vld [vmem:[%s11768_s5 + $0x70] sm:$0xff] }
 0x47a   : > { %v6944_v50 = vmax.f32 %v6943_v43, %v3991_v10  ;;  %v4558_v11 = vpop.f32.mrf.mxu1  ;;  %4239 = vmatprep.mubr.bf16.mxu0 %v11938_v35  ;;  %v8650_v16 = vcombine.high %v3213_v39, %v3217_v25 }
 0x47b   : > { %v7379_v56 = vmax.f32 %v7378_v4, %v4558_v11  ;;  %v3993_v55 = vpop.f32.mrf.mxu0  ;;  %v3205_v11 = vld [vmem:[%s11768_s5 + $0x10] sm:$0xff] }
 0x47c   : > { %v7106_v38 = vmax.f32 %v7105_v23, %v3993_v55  ;;  %v4562_v28 = vpop.f32.mrf.mxu1  ;;  %4801 = vmatmul.mubr.bf16.gmra.mxu1 %v10719_v52  ;;  %v8649_v23 = vcombine.low %v3213_v39, %v3217_v25  ;;  %5241 = vmatprep.subr.bf16.mxu0 %v8650_v16 }
 0x47d   : > { %v7218_v2 = vmax.f32 %v7217_v59, %v4562_v28  ;;  %v3995_v18 = vpop.f32.mrf.mxu0  ;;  %4810 = vmatprep.mubr.bf16.mxu1 %v11938_v35 }
 0x47e   : > { %v6945_v22 = vmax.f32 %v6944_v50, %v3995_v18  ;;  %v4564_v29 = vpop.f32.mrf.mxu1  ;;  %5242 = vmatpush1.bf16.msra.mxu0 %v8649_v23 }
 0x47f   : > { %v7380_v57 = vmax.f32 %v7379_v56, %v4564_v29  ;;  %v3997_v43 = vpop.f32.mrf.mxu0  ;;  %v3209_v56 = vld [vmem:[%s11768_s5 + $0x30] sm:$0xff] }
 0x480   : > { %v7107_v4 = vmax.f32 %v7106_v38, %v3997_v43  ;;  %v4566_v53 = vpop.f32.mrf.mxu1  ;;  %v8642_v28 = vcombine.high %v3205_v11, %v3209_v56 }
 0x481   : > { %v7219_v17 = vmax.f32 %v7218_v2, %v4566_v53  ;;  %v4001_v59 = vpop.f32.mrf.mxu0  ;;  %4240 = vmatmul.mubr.bf16.gmra.mxu0 %v11033_v62 }
 0x482   : > { %v6946_v10 = vmax.f32 %v6945_v22, %v4001_v59  ;;  %v4568_v50 = vpop.f32.mrf.mxu1  ;;  %4249 = vmatprep.mubr.bf16.mxu0 %v11938_v35  ;;  %v8641_v22 = vcombine.low %v3205_v11, %v3209_v56  ;;  %5243 = vmatprep.subr.bf16.mxu0 %v8642_v28 }
 0x483   : > { %v7381_v55 = vmax.f32 %v7380_v57, %v4568_v50  ;;  %v4003_v38 = vpop.f32.mrf.mxu0 }
 0x484   : > { %v7108_v2 = vmax.f32 %v7107_v4, %v4003_v38  ;;  %v4572_v18 = vpop.f32.mrf.mxu1  ;;  %4811 = vmatmul.mubr.bf16.gmra.mxu1 %v10730_v37  ;;  %5244 = vmatpush1.bf16.msra.mxu0 %v8641_v22 }
 0x485   : > { %v7220_v29 = vmax.f32 %v7219_v17, %v4572_v18  ;;  %v4005_v39 = vpop.f32.mrf.mxu0  ;;  %4820 = vmatprep.mubr.bf16.mxu1 %v11938_v35 }
 0x486   : > { %v6947_v25 = vmax.f32 %v6946_v10, %v4005_v39  ;;  %v4574_v43 = vpop.f32.mrf.mxu1 }
 0x487   : > { %v7382_v16 = vmax.f32 %v7381_v55, %v4574_v43  ;;  %v4007_v53 = vpop.f32.mrf.mxu0 }
 0x488   : > { %v7109_v23 = vmax.f32 %v7108_v2, %v4007_v53  ;;  %v4576_v59 = vpop.f32.mrf.mxu1 }
 0x489   : > { %v7221_v57 = vmax.f32 %v7220_v29, %v4576_v59  ;;  %v4011_v50 = vpop.f32.mrf.mxu0  ;;  %4250 = vmatmul.mubr.bf16.gmra.mxu0 %v11041_v42 }
 0x48a   : > { %v6948_v4 = vmax.f32 %v6947_v25, %v4011_v50  ;;  %v4578_v38 = vpop.f32.mrf.mxu1  ;;  %4259 = vmatprep.mubr.bf16.mxu0 %v11938_v35 }
 0x48b   : > { %v7383_v17 = vmax.f32 %v7382_v16, %v4578_v38  ;;  %v4013_v11 = vpop.f32.mrf.mxu0 }
 0x48c   : > { %v7110_v56 = vmax.f32 %v7109_v23, %v4013_v11  ;;  %v4582_v18 = vpop.f32.mrf.mxu1  ;;  %4821 = vmatmul.mubr.bf16.gmra.mxu1 %v10741_v19 }
 0x48d   : > { %v7222_v10 = vmax.f32 %v7221_v57, %v4582_v18  ;;  %v4015_v28 = vpop.f32.mrf.mxu0  ;;  %4830 = vmatprep.mubr.bf16.mxu1 %v11938_v35 }
 0x48e   : > { %v6949_v55 = vmax.f32 %v6948_v4, %v4015_v28  ;;  %v4584_v2 = vpop.f32.mrf.mxu1 }
 0x48f   : > { %v7384_v22 = vmax.f32 %v7383_v17, %v4584_v2  ;;  %v4017_v29 = vpop.f32.mrf.mxu0 }
 0x490   : > { %v7111_v39 = vmax.f32 %v7110_v56, %v4017_v29  ;;  %v4586_v43 = vpop.f32.mrf.mxu1 }
 0x491   : > { %v7223_v25 = vmax.f32 %v7222_v10, %v4586_v43  ;;  %v4021_v53 = vpop.f32.mrf.mxu0  ;;  %4260 = vmatmul.mubr.bf16.gmra.mxu0 %v11049_v60 }
 0x492   : > { %v6950_v16 = vmax.f32 %v6949_v55, %v4021_v53  ;;  %v4588_v59 = vpop.f32.mrf.mxu1  ;;  %4269 = vmatprep.mubr.bf16.mxu0 %v11938_v35 }
 0x493   : > { %v7385_v23 = vmax.f32 %v7384_v22, %v4588_v59  ;;  %v4023_v50 = vpop.f32.mrf.mxu0 }
 0x494   : > { %v7112_v57 = vmax.f32 %v7111_v39, %v4023_v50  ;;  %v4592_v38 = vpop.f32.mrf.mxu1  ;;  %4831 = vmatmul.mubr.bf16.gmra.mxu1 %v10772_v40 }
 0x495   : > { %v7224_v4 = vmax.f32 %v7223_v25, %v4592_v38  ;;  %v4025_v11 = vpop.f32.mrf.mxu0  ;;  %4840 = vmatprep.mubr.bf16.mxu1 %v11938_v35 }
 0x496   : > { %v6951_v17 = vmax.f32 %v6950_v16, %v4025_v11  ;;  %v4594_v56 = vpop.f32.mrf.mxu1 }
 0x497   : > { %v7386_v18 = vmax.f32 %v7385_v23, %v4594_v56  ;;  %v4027_v10 = vpop.f32.mrf.mxu0 }
 0x498   : > { %v7113_v28 = vmax.f32 %v7112_v57, %v4027_v10  ;;  %v4596_v2 = vpop.f32.mrf.mxu1 }
 0x499   : > { %v7225_v55 = vmax.f32 %v7224_v4, %v4596_v2  ;;  %v4031_v29 = vpop.f32.mrf.mxu0  ;;  %4270 = vmatmul.mubr.bf16.gmra.mxu0 %v11057_v3 }
 0x49a   : > { %v6952_v22 = vmax.f32 %v6951_v17, %v4031_v29  ;;  %v4598_v43 = vpop.f32.mrf.mxu1  ;;  %4279 = vmatprep.mubr.bf16.mxu0 %v11938_v35 }
 0x49b   : > { %v7387_v39 = vmax.f32 %v7386_v18, %v4598_v43  ;;  %v4033_v53 = vpop.f32.mrf.mxu0 }
 0x49c   : > { %v7114_v25 = vmax.f32 %v7113_v28, %v4033_v53  ;;  %v4602_v59 = vpop.f32.mrf.mxu1  ;;  %4841 = vmatmul.mubr.bf16.gmra.mxu1 %v10783_v41 }
 0x49d   : > { %v7226_v16 = vmax.f32 %v7225_v55, %v4602_v59  ;;  %v4035_v50 = vpop.f32.mrf.mxu0  ;;  %4850 = vmatprep.mubr.bf16.mxu1 %v11938_v35 }
 0x49e   : > { %v6953_v23 = vmax.f32 %v6952_v22, %v4035_v50  ;;  %v4604_v57 = vpop.f32.mrf.mxu1 }
 0x49f   : > { %v7388_v38 = vmax.f32 %v7387_v39, %v4604_v57  ;;  %v4037_v4 = vpop.f32.mrf.mxu0 }
 0x4a0   : > { %v7115_v11 = vmax.f32 %v7114_v25, %v4037_v4  ;;  %v4606_v56 = vpop.f32.mrf.mxu1 }
 0x4a1   : > { %v7227_v17 = vmax.f32 %v7226_v16, %v4606_v56  ;;  %v4041_v10 = vpop.f32.mrf.mxu0  ;;  %4280 = vmatmul.mubr.bf16.gmra.mxu0 %v11070_v14 }
 0x4a2   : > { %v6954_v18 = vmax.f32 %v6953_v23, %v4041_v10  ;;  %v4608_v2 = vpop.f32.mrf.mxu1  ;;  %4289 = vmatprep.mubr.bf16.mxu0 %v11938_v35 }
 0x4a3   : > { %v7389_v28 = vmax.f32 %v7388_v38, %v4608_v2  ;;  %v4043_v29 = vpop.f32.mrf.mxu0 }
 0x4a4   : > { %v7116_v55 = vmax.f32 %v7115_v11, %v4043_v29  ;;  %v4612_v43 = vpop.f32.mrf.mxu1  ;;  %4851 = vmatmul.mubr.bf16.gmra.mxu1 %v11966_v9 }
 0x4a5   : > { %v7228_v22 = vmax.f32 %v7227_v17, %v4612_v43  ;;  %v4045_v53 = vpop.f32.mrf.mxu0  ;;  %4860 = vmatprep.mubr.bf16.mxu1 %v11938_v35 }
 0x4a6   : > { %v6955_v39 = vmax.f32 %v6954_v18, %v4045_v53  ;;  %v4614_v25 = vpop.f32.mrf.mxu1 }
 0x4a7   : > { %v7390_v59 = vmax.f32 %v7389_v28, %v4614_v25  ;;  %v4047_v16 = vpop.f32.mrf.mxu0 }
 0x4a8   : > { %v7117_v50 = vmax.f32 %v7116_v55, %v4047_v16  ;;  %v4616_v57 = vpop.f32.mrf.mxu1 }
 0x4a9   : > { %v7229_v23 = vmax.f32 %v7228_v22, %v4616_v57  ;;  %v4051_v4 = vpop.f32.mrf.mxu0  ;;  %4290 = vmatmul.mubr.bf16.gmra.mxu0 %v11078_v6 }
 0x4aa   : > { %v6956_v38 = vmax.f32 %v6955_v39, %v4051_v4  ;;  %v4618_v56 = vpop.f32.mrf.mxu1  ;;  %4299 = vmatprep.mubr.bf16.mxu0 %v11938_v35 }
 0x4ab   : > { %v7391_v11 = vmax.f32 %v7390_v59, %v4618_v56  ;;  %v4053_v10 = vpop.f32.mrf.mxu0 }
 0x4ac   : > { %v7118_v17 = vmax.f32 %v7117_v50, %v4053_v10  ;;  %v4622_v2 = vpop.f32.mrf.mxu1  ;;  %4861 = vmatmul.mubr.bf16.gmra.mxu1 %v11968_v63 }
 0x4ad   : > { %v7230_v18 = vmax.f32 %v7229_v23, %v4622_v2  ;;  %v4055_v29 = vpop.f32.mrf.mxu0  ;;  %4870 = vmatprep.mubr.bf16.mxu1 %v11938_v35  ;;  %v3214_v2 = vld [vmem:[%s11768_s5 + $0x58] sm:$0xff] }
 0x4ae   : > { %v6957_v28 = vmax.f32 %v6956_v38, %v4055_v29  ;;  %v4624_v55 = vpop.f32.mrf.mxu1 }
 0x4af   : > { %v7392_v43 = vmax.f32 %v7391_v11, %v4624_v55  ;;  %v4057_v22 = vpop.f32.mrf.mxu0 }
 0x4b0   : > { %v7119_v53 = vmax.f32 %v7118_v17, %v4057_v22  ;;  %v4626_v25 = vpop.f32.mrf.mxu1 }
 0x4b1   : > { %v7231_v39 = vmax.f32 %v7230_v18, %v4626_v25  ;;  %v4061_v16 = vpop.f32.mrf.mxu0  ;;  %4300 = vmatmul.mubr.bf16.gmra.mxu0 %v11098_v46  ;;  %v3218_v18 = vld [vmem:[%s11768_s5 + $0x78] sm:$0xff] }
 0x4b2   : > { %v6958_v59 = vmax.f32 %v6957_v28, %v4061_v16  ;;  %v4628_v57 = vpop.f32.mrf.mxu1  ;;  %4309 = vmatprep.mubr.bf16.mxu0 %v11938_v35  ;;  %v8651_v55 = vcombine.low %v3214_v2, %v3218_v18 }
 0x4b3   : > { %v7393_v50 = vmax.f32 %v7392_v43, %v4628_v57  ;;  %v4063_v4 = vpop.f32.mrf.mxu0  ;;  %v8652_v43 = vcombine.high %v3214_v2, %v3218_v18 }
 0x4b4   : > { %v7120_v23 = vmax.f32 %v7119_v53, %v4063_v4  ;;  %v4632_v56 = vpop.f32.mrf.mxu1  ;;  %4871 = vmatmul.mubr.bf16.gmra.mxu1 %v11970_v24 }
 0x4b5   : > { %v7232_v38 = vmax.f32 %v7231_v39, %v4632_v56  ;;  %v4065_v10 = vpop.f32.mrf.mxu0  ;;  %4880 = vmatprep.mubr.bf16.mxu1 %v11938_v35  ;;  %6062 = vmatprep.subr.bf16.mxu1 %v8652_v43 }
 0x4b6   : > { %v6959_v11 = vmax.f32 %v6958_v59, %v4065_v10  ;;  %v4634_v17 = vpop.f32.mrf.mxu1  ;;  %6063 = vmatpush1.bf16.msra.mxu1 %v8651_v55 }
 0x4b7   : > { %v7394_v29 = vmax.f32 %v7393_v50, %v4634_v17  ;;  %v4067_v28 = vpop.f32.mrf.mxu0 }
 0x4b8   : > { %v7121_v22 = vmax.f32 %v7120_v23, %v4067_v28  ;;  %v4636_v53 = vpop.f32.mrf.mxu1 }
 0x4b9   : > { %v7233_v25 = vmax.f32 %v7232_v38, %v4636_v53  ;;  %v4071_v39 = vpop.f32.mrf.mxu0  ;;  %4310 = vmatmul.mubr.bf16.gmra.mxu0 %v11106_v12 }
 0x4ba   : > { %v6960_v16 = vmax.f32 %v6959_v11, %v4071_v39  ;;  %v4638_v59 = vpop.f32.mrf.mxu1  ;;  %4319 = vmatprep.mubr.bf16.mxu0 %v11938_v35 }
 0x4bb   : > { %v7395_v57 = vmax.f32 %v7394_v29, %v4638_v59  ;;  %v4073_v4 = vpop.f32.mrf.mxu0 }
 0x4bc   : > { %v7122_v56 = vmax.f32 %v7121_v22, %v4073_v4  ;;  %v4642_v10 = vpop.f32.mrf.mxu1  ;;  %4881 = vmatmul.mubr.bf16.gmra.mxu1 %v11972_v8 }
 0x4bd   : > { %v7234_v50 = vmax.f32 %v7233_v25, %v4642_v10  ;;  %v4075_v17 = vpop.f32.mrf.mxu0  ;;  %4890 = vmatprep.mubr.bf16.mxu1 %v11938_v35 }
 0x4be   : > { %v6961_v23 = vmax.f32 %v6960_v16, %v4075_v17  ;;  %v4644_v38 = vpop.f32.mrf.mxu1 }
 0x4bf   : > { %v7396_v2 = vmax.f32 %v7395_v57, %v4644_v38  ;;  %v4077_v18 = vpop.f32.mrf.mxu0 }
 0x4c0   : > { %v7123_v28 = vmax.f32 %v7122_v56, %v4077_v18  ;;  %v4646_v11 = vpop.f32.mrf.mxu1 }
 0x4c1   : > { %v7235_v43 = vmax.f32 %v7234_v50, %v4646_v11  ;;  %v4081_v53 = vpop.f32.mrf.mxu0  ;;  %4320 = vmatmul.mubr.bf16.gmra.mxu0 %v11114_v58  ;;  %v11988_v11 = vld [vmem:[#allocation32_spill] sm:$0xff] }
 0x4c2   : > { %v6962_v29 = vmax.f32 %v6961_v23, %v4081_v53  ;;  %v4648_v55 = vpop.f32.mrf.mxu1  ;;  %4329 = vmatprep.mubr.bf16.mxu0 %v11938_v35 }
 0x4c3   : > { %v7397_v22 = vmax.f32 %v7396_v2, %v4648_v55  ;;  %v4083_v39 = vpop.f32.mrf.mxu0 }
 0x4c4   : > { %v7124_v25 = vmax.f32 %v7123_v28, %v4083_v39  ;;  %v4652_v59 = vpop.f32.mrf.mxu1  ;;  %4891 = vmatmul.mubr.bf16.gmra.mxu1 %v11975_v45 }
 0x4c5   : > { %v7236_v16 = vmax.f32 %v7235_v43, %v4652_v59  ;;  %v4085_v4 = vpop.f32.mrf.mxu0  ;;  %4900 = vmatprep.mubr.bf16.mxu1 %v11938_v35 }
 0x4c6   : > { %v6963_v57 = vmax.f32 %v6962_v29, %v4085_v4  ;;  %v4654_v56 = vpop.f32.mrf.mxu1 }
 0x4c7   : > { %v7398_v10 = vmax.f32 %v7397_v22, %v4654_v56  ;;  %v4087_v50 = vpop.f32.mrf.mxu0 }
 0x4c8   : > { %v7125_v17 = vmax.f32 %v7124_v25, %v4087_v50  ;;  %v4656_v38 = vpop.f32.mrf.mxu1 }
 0x4c9   : > { %v7237_v23 = vmax.f32 %v7236_v16, %v4656_v38  ;;  %v4091_v18 = vpop.f32.mrf.mxu0  ;;  %4330 = vmatmul.mubr.bf16.gmra.mxu0 %v11988_v11 }
 0x4ca   : > { %v6964_v2 = vmax.f32 %v6963_v57, %v4091_v18  ;;  %v4658_v53 = vpop.f32.mrf.mxu1  ;;  %4339 = vmatprep.mubr.bf16.mxu0 %v11938_v35  ;;  %v11989_v18 = vld [vmem:[#allocation33_spill] sm:$0xff] }
 0x4cb   : > { %v7399_v28 = vmax.f32 %v7398_v10, %v4658_v53  ;;  %v4093_v55 = vpop.f32.mrf.mxu0 }
 0x4cc   : > { %v7126_v43 = vmax.f32 %v7125_v17, %v4093_v55  ;;  %v4662_v39 = vpop.f32.mrf.mxu1  ;;  %4901 = vmatmul.mubr.bf16.gmra.mxu1 %v11977_v15  ;;  %v11990_v15 = vld [vmem:[#allocation34_spill] sm:$0xff] }
 0x4cd   : > { %v7238_v29 = vmax.f32 %v7237_v23, %v4662_v39  ;;  %v4095_v59 = vpop.f32.mrf.mxu0  ;;  %4910 = vmatprep.mubr.bf16.mxu1 %v11938_v35 }
 0x4ce   : > { %v6965_v22 = vmax.f32 %v6964_v2, %v4095_v59  ;;  %v4664_v25 = vpop.f32.mrf.mxu1 }
 0x4cf   : > { %v7400_v16 = vmax.f32 %v7399_v28, %v4664_v25  ;;  %v4097_v4 = vpop.f32.mrf.mxu0 }
 0x4d0   : > { %v7127_v56 = vmax.f32 %v7126_v43, %v4097_v4  ;;  %v4666_v50 = vpop.f32.mrf.mxu1 }
 0x4d1   : > { %v7239_v57 = vmax.f32 %v7238_v29, %v4666_v50  ;;  %v4101_v38 = vpop.f32.mrf.mxu0  ;;  %4340 = vmatmul.mubr.bf16.gmra.mxu0 %v11989_v18 }
 0x4d2   : > { %v6966_v10 = vmax.f32 %v6965_v22, %v4101_v38  ;;  %v4668_v53 = vpop.f32.mrf.mxu1  ;;  %4349 = vmatprep.mubr.bf16.mxu0 %v11938_v35 }
 0x4d3   : > { %v7401_v17 = vmax.f32 %v7400_v16, %v4668_v53  ;;  %v4103_v55 = vpop.f32.mrf.mxu0 }
 0x4d4   : > { %v7128_v23 = vmax.f32 %v7127_v56, %v4103_v55  ;;  %v4672_v39 = vpop.f32.mrf.mxu1  ;;  %4911 = vmatmul.mubr.bf16.gmra.mxu1 %v11979_v1  ;;  %v11991_v1 = vld [vmem:[#allocation60_spill] sm:$0xff] }
 0x4d5   : > { %v7240_v2 = vmax.f32 %v7239_v57, %v4672_v39  ;;  %v4105_v59 = vpop.f32.mrf.mxu0  ;;  %4920 = vmatprep.mubr.bf16.mxu1 %v11938_v35 }
 0x4d6   : > { %v6967_v28 = vmax.f32 %v6966_v10, %v4105_v59  ;;  %v4674_v43 = vpop.f32.mrf.mxu1 }
 0x4d7   : > { %v7402_v29 = vmax.f32 %v7401_v17, %v4674_v43  ;;  %v4107_v25 = vpop.f32.mrf.mxu0 }
 0x4d8   : > { %v7129_v4 = vmax.f32 %v7128_v23, %v4107_v25  ;;  %v4676_v50 = vpop.f32.mrf.mxu1 }
 0x4d9   : > { %v7241_v22 = vmax.f32 %v7240_v2, %v4676_v50  ;;  %v4111_v38 = vpop.f32.mrf.mxu0  ;;  %4350 = vmatmul.mubr.bf16.gmra.mxu0 %v11990_v15 }
 0x4da   : > { %v6968_v16 = vmax.f32 %v6967_v28, %v4111_v38  ;;  %v4678_v53 = vpop.f32.mrf.mxu1  ;;  %4359 = vmatprep.mubr.bf16.mxu0 %v11938_v35 }
 0x4db   : > { %v7403_v56 = vmax.f32 %v7402_v29, %v4678_v53  ;;  %v4113_v55 = vpop.f32.mrf.mxu0 }
 0x4dc   : > { %v7130_v57 = vmax.f32 %v7129_v4, %v4113_v55  ;;  %v4682_v39 = vpop.f32.mrf.mxu1  ;;  %4921 = vmatmul.mubr.bf16.gmra.mxu1 %v11981_v0  ;;  %v11992_v0 = vld [vmem:[#allocation61_spill] sm:$0xff] }
 0x4dd   : > { %v7242_v10 = vmax.f32 %v7241_v22, %v4682_v39  ;;  %v4115_v59 = vpop.f32.mrf.mxu0  ;;  %4930 = vmatprep.mubr.bf16.mxu1 %v11938_v35 }
 0x4de   : > { %v6969_v17 = vmax.f32 %v6968_v16, %v4115_v59  ;;  %v4684_v23 = vpop.f32.mrf.mxu1 }
 0x4df   : > { %v7404_v2 = vmax.f32 %v7403_v56, %v4684_v23  ;;  %v4117_v43 = vpop.f32.mrf.mxu0 }
 0x4e0   : > { %v7131_v25 = vmax.f32 %v7130_v57, %v4117_v43  ;;  %v4686_v50 = vpop.f32.mrf.mxu1 }
 0x4e1   : > { %v7243_v28 = vmax.f32 %v7242_v10, %v4686_v50  ;;  %v4121_v38 = vpop.f32.mrf.mxu0  ;;  %4360 = vmatmul.mubr.bf16.gmra.mxu0 %v11991_v1 }
 0x4e2   : > { %v6970_v29 = vmax.f32 %v6969_v17, %v4121_v38  ;;  %v4688_v53 = vpop.f32.mrf.mxu1  ;;  %4369 = vmatprep.mubr.bf16.mxu0 %v11938_v35 }
 0x4e3   : > { %v7405_v4 = vmax.f32 %v7404_v2, %v4688_v53  ;;  %v4123_v55 = vpop.f32.mrf.mxu0 }
 0x4e4   : > { %v7132_v22 = vmax.f32 %v7131_v25, %v4123_v55  ;;  %v4692_v39 = vpop.f32.mrf.mxu1  ;;  %4931 = vmatmul.mubr.bf16.gmra.mxu1 %v10898_v31  ;;  %v11993_v31 = vld [vmem:[#allocation62_spill] sm:$0xff] }
 0x4e5   : > { %v7244_v16 = vmax.f32 %v7243_v28, %v4692_v39  ;;  %v4125_v59 = vpop.f32.mrf.mxu0  ;;  %4940 = vmatprep.mubr.bf16.mxu1 %v11938_v35 }
 0x4e6   : > { %v6971_v56 = vmax.f32 %v6970_v29, %v4125_v59  ;;  %v4694_v57 = vpop.f32.mrf.mxu1 }
 0x4e7   : > { %v7406_v10 = vmax.f32 %v7405_v4, %v4694_v57  ;;  %v4127_v23 = vpop.f32.mrf.mxu0 }
 0x4e8   : > { %v7133_v43 = vmax.f32 %v7132_v22, %v4127_v23  ;;  %v4696_v50 = vpop.f32.mrf.mxu1 }
 0x4e9   : > { %v7245_v17 = vmax.f32 %v7244_v16, %v4696_v50  ;;  %v4131_v38 = vpop.f32.mrf.mxu0  ;;  %4370 = vmatmul.mubr.bf16.gmra.mxu0 %v11992_v0 }
 0x4ea   : > { %v6972_v2 = vmax.f32 %v6971_v56, %v4131_v38  ;;  %v4698_v53 = vpop.f32.mrf.mxu1  ;;  %4379 = vmatprep.mubr.bf16.mxu0 %v11938_v35 }
 0x4eb   : > { %v7407_v25 = vmax.f32 %v7406_v10, %v4698_v53  ;;  %v4133_v55 = vpop.f32.mrf.mxu0 }
 0x4ec   : > { %v7134_v28 = vmax.f32 %v7133_v43, %v4133_v55  ;;  %v4702_v39 = vpop.f32.mrf.mxu1  ;;  %4941 = vmatmul.mubr.bf16.gmra.mxu1 %v11984_v33 }
 0x4ed   : > { %v7246_v29 = vmax.f32 %v7245_v17, %v4702_v39  ;;  %v4135_v59 = vpop.f32.mrf.mxu0  ;;  %4950 = vmatprep.mubr.bf16.mxu1 %v11938_v35 }
 0x4ee   : > { %v6973_v4 = vmax.f32 %v6972_v2, %v4135_v59  ;;  %v4704_v22 = vpop.f32.mrf.mxu1 }
 0x4ef   : > { %v7408_v16 = vmax.f32 %v7407_v25, %v4704_v22  ;;  %v4137_v57 = vpop.f32.mrf.mxu0 }
 0x4f0   : > { %v7135_v23 = vmax.f32 %v7134_v28, %v4137_v57  ;;  %v4706_v50 = vpop.f32.mrf.mxu1 }
 0x4f1   : > { %v7247_v56 = vmax.f32 %v7246_v29, %v4706_v50  ;;  %v4141_v38 = vpop.f32.mrf.mxu0  ;;  %4380 = vmatmul.mubr.bf16.gmra.mxu0 %v11993_v31  ;;  %v9647_v29 = vld [vmem:[%s11767_s4] ss:$0 sm:$0xff] }
 0x4f2   : > { %v6974_v10 = vmax.f32 %v6973_v4, %v4141_v38  ;;  %v4708_v53 = vpop.f32.mrf.mxu1  ;;  %4389 = vmatprep.mubr.bf16.mxu0 %v11938_v35  ;;  %v11994_v4 = vld [vmem:[#allocation63_spill] sm:$0xff] }
 0x4f3   : > { %v7409_v43 = vmax.f32 %v7408_v16, %v4708_v53  ;;  %v4143_v55 = vpop.f32.mrf.mxu0  ;;  %v2962_v22 = vadd.f32 %v9647_v29, %v11994_v4 }
 0x4f4   : > { %v7136_v17 = vmax.f32 %v7135_v23, %v4143_v55  ;;  %v4712_v39 = vpop.f32.mrf.mxu1  ;;  %4951 = vmatmul.mubr.bf16.gmra.mxu1 %v11985_v27  ;;  %v11995_v55 = vld [vmem:[#allocation64_spill] sm:$0xff] }
 0x4f5   : > { %v7248_v2 = vmax.f32 %v7247_v56, %v4712_v39  ;;  %v4145_v59 = vpop.f32.mrf.mxu0  ;;  %4960 = vmatprep.mubr.bf16.mxu1 %v11938_v35 }
 0x4f6   : > { %v6975_v25 = vmax.f32 %v6974_v10, %v4145_v59  ;;  %v4714_v28 = vpop.f32.mrf.mxu1  ;;  %v3123_v10 = vmax.f32 %v2962_v22, 0.0 }
 0x4f7   : > { %v7410_v57 = vmax.f32 %v7409_v43, %v4714_v28  ;;  %v4147_v50 = vpop.f32.mrf.mxu0 }
 0x4f8   : > { %v7137_v16 = vmax.f32 %v7136_v17, %v4147_v50  ;;  %v4716_v38 = vpop.f32.mrf.mxu1  ;;  %v11337_v28 = vpack.c.bf16 %v3123_v10, %v3123_v10 }
 0x4f9   : > { %v7249_v23 = vmax.f32 %v7248_v2, %v4716_v38  ;;  %v4151_v53 = vpop.f32.mrf.mxu0  ;;  %4390 = vmatmul.mubr.bf16.gmra.mxu0 %v11995_v55 }
 0x4fa   : > { %v6976_v56 = vmax.f32 %v6975_v25, %v4151_v53  ;;  %v4718_v39 = vpop.f32.mrf.mxu1  ;;  %4399 = vmatprep.mubr.bf16.mxu0 %v11938_v35  ;;  %11996 = vst [vmem:[#allocation63_spill] sm:$0xff] %v11337_v28 }
 0x4fb   : > { %v7411_v59 = vmax.f32 %v7410_v57, %v4718_v39  ;;  %v4153_v27 = vpop.f32.mrf.mxu0 }
 0x4fc   : > { %v7138_v33 = vmax.f32 %v7137_v16, %v4153_v27  ;;  %v4722_v45 = vpop.f32.mrf.mxu1  ;;  %4961 = vmatmul.mubr.bf16.gmra.mxu1 %v11986_v54 }
 0x4fd   : > { %v7250_v29 = vmax.f32 %v7249_v23, %v4722_v45  ;;  %v4155_v43 = vpop.f32.mrf.mxu0  ;;  %4970 = vmatprep.mubr.bf16.mxu1 %v11938_v35 }
 0x4fe   : > { %v6977_v17 = vmax.f32 %v6976_v56, %v4155_v43  ;;  %v4724_v2 = vpop.f32.mrf.mxu1 }
 0x4ff   : > { %v7412_v4 = vmax.f32 %v7411_v59, %v4724_v2  ;;  %v4157_v25 = vpop.f32.mrf.mxu0  ;;  %v3210_v59 = vld [vmem:[%s11768_s5 + $0x38] sm:$0xff] }
 0x500   : > { %v7139_v50 = vmax.f32 %v7138_v33, %v4157_v25  ;;  %v4726_v38 = vpop.f32.mrf.mxu1  ;;  %v3206_v33 = vld [vmem:[%s11768_s5 + $0x18] sm:$0xff] }
 0x501   : > { %v7251_v53 = vmax.f32 %v7250_v29, %v4726_v38  ;;  %v4161_v22 = vpop.f32.mrf.mxu0  ;;  %4400 = vmatmul.mubr.bf16.gmra.mxu0 %v11337_v28  ;;  %v8644_v2 = vcombine.high %v3206_v33, %v3210_v59 }
 0x502   : > { %v6978_v27 = vmax.f32 %v6977_v17, %v4161_v22  ;;  %v4728_v57 = vpop.f32.mrf.mxu1  ;;  %5261 = vmatprep.mubr.bf16.mxu0 %v11938_v35  ;;  %v8643_v17 = vcombine.low %v3206_v33, %v3210_v59 }
 0x503   : > { %v7413_v45 = vmax.f32 %v7412_v4, %v4728_v57  ;;  %v4163_v16 = vpop.f32.mrf.mxu0  ;;  %6064 = vmatprep.subr.bf16.mxu1 %v8644_v2  ;;  %v11997_v57 = vld [vmem:[#allocation2_spill] sm:$0xff] }
 0x504   : > { %v7140_v23 = vmax.f32 %v7139_v50, %v4163_v16  ;;  %v4732_v39 = vpop.f32.mrf.mxu1  ;;  %4971 = vmatmul.mubr.bf16.gmra.mxu1 %v11987_v26 }
 0x505   : > { %v7252_v56 = vmax.f32 %v7251_v53, %v4732_v39  ;;  %v4165_v10 = vpop.f32.mrf.mxu0  ;;  %4980 = vmatprep.mubr.bf16.mxu1 %v11938_v35  ;;  %6065 = vmatpush1.bf16.msra.mxu1 %v8643_v17 }
 0x506   : > { %v6979_v29 = vmax.f32 %v6978_v27, %v4165_v10  ;;  %v4734_v43 = vpop.f32.mrf.mxu1 }
 0x507   : > { %v7414_v4 = vmax.f32 %v7413_v45, %v4734_v43  ;;  %v4167_v25 = vpop.f32.mrf.mxu0 }
 0x508   : > { %v7141_v50 = vmax.f32 %v7140_v23, %v4167_v25  ;;  %v4736_v38 = vpop.f32.mrf.mxu1 }
 0x509   : > { %v7253_v53 = vmax.f32 %v7252_v56, %v4736_v38  ;;  %v4171_v22 = vpop.f32.mrf.mxu0  ;;  %5262 = vmatmul.mubr.bf16.vlgmr.msra.gmra.mxu0 %v11997_v57  ;;  %v11998_v38 = vld [vmem:[#allocation3_spill] sm:$0xff] }
 0x50a   : > { %v6980_v16 = vmax.f32 %v6979_v29, %v4171_v22  ;;  %v4738_v39 = vpop.f32.mrf.mxu1  ;;  %5271 = vmatprep.mubr.bf16.mxu0 %v11938_v35 }
 0x50b   : > { %v7415_v26 = vmax.f32 %v7414_v4, %v4738_v39  ;;  %v4173_v54 = vpop.f32.mrf.mxu0 }
 0x50c   : > { %v7142_v27 = vmax.f32 %v7141_v50, %v4173_v54  ;;  %v4742_v10 = vpop.f32.mrf.mxu1  ;;  %4981 = vmatmul.mubr.bf16.gmra.mxu1 %v10954_v44 }
 0x50d   : > { %v7254_v45 = vmax.f32 %v7253_v53, %v4742_v10  ;;  %v4175_v33 = vpop.f32.mrf.mxu0  ;;  %4990 = vmatprep.mubr.bf16.mxu1 %v11938_v35 }
 0x50e   : > { %v6981_v23 = vmax.f32 %v6980_v16, %v4175_v33  ;;  %v4744_v56 = vpop.f32.mrf.mxu1 }
 0x50f   : > { %v7416_v59 = vmax.f32 %v7415_v26, %v4744_v56  ;;  %v4177_v43 = vpop.f32.mrf.mxu0 }
 0x510   : > { %v7143_v2 = vmax.f32 %v7142_v27, %v4177_v43  ;;  %v4746_v17 = vpop.f32.mrf.mxu1 }
 0x511   : > { %v7255_v29 = vmax.f32 %v7254_v45, %v4746_v17  ;;  %v4181_v25 = vpop.f32.mrf.mxu0  ;;  %5272 = vmatmul.mubr.bf16.gmra.mxu0 %v11998_v38 }
 0x512   : > { %v6982_v4 = vmax.f32 %v6981_v23, %v4181_v25  ;;  %v4748_v22 = vpop.f32.mrf.mxu1  ;;  %5281 = vmatprep.mubr.bf16.mxu0 %v11938_v35  ;;  %v11999_v25 = vld [vmem:[#allocation4_spill] sm:$0xff] }
 0x513   : > { %v7417_v54 = vmax.f32 %v7416_v59, %v4748_v22  ;;  %v4183_v50 = vpop.f32.mrf.mxu0 }
 0x514   : > { %v7144_v53 = vmax.f32 %v7143_v2, %v4183_v50  ;;  %v4752_v39 = vpop.f32.mrf.mxu1  ;;  %4991 = vmatmul.mubr.bf16.gmra.mxu1 %v10965_v51  ;;  %v12000_v51 = vld [vmem:[#allocation5_spill] sm:$0xff] }
 0x515   : > { %v7256_v16 = vmax.f32 %v7255_v29, %v4752_v39  ;;  %v4185_v10 = vpop.f32.mrf.mxu0  ;;  %5000 = vmatprep.mubr.bf16.mxu1 %v11938_v35 }
 0x516   : > { %v6983_v26 = vmax.f32 %v6982_v4, %v4185_v10  ;;  %v4754_v27 = vpop.f32.mrf.mxu1 }
 0x517   : > { %v7418_v45 = vmax.f32 %v7417_v54, %v4754_v27  ;;  %v4187_v33 = vpop.f32.mrf.mxu0 }
 0x518   : > { %v7145_v56 = vmax.f32 %v7144_v53, %v4187_v33  ;;  %v4756_v43 = vpop.f32.mrf.mxu1 }
 0x519   : > { %v7257_v23 = vmax.f32 %v7256_v16, %v4756_v43  ;;  %v4191_v17 = vpop.f32.mrf.mxu0  ;;  %5282 = vmatmul.mubr.bf16.gmra.mxu0 %v11999_v25 }
 0x51a   : > { %v6984_v59 = vmax.f32 %v6983_v26, %v4191_v17  ;;  %v4758_v22 = vpop.f32.mrf.mxu1  ;;  %5291 = vmatprep.mubr.bf16.mxu0 %v11938_v35 }
 0x51b   : > { %v7419_v2 = vmax.f32 %v7418_v45, %v4758_v22  ;;  %v4193_v50 = vpop.f32.mrf.mxu0 }
 0x51c   : > { %v7146_v29 = vmax.f32 %v7145_v56, %v4193_v50  ;;  %v4762_v39 = vpop.f32.mrf.mxu1  ;;  %5001 = vmatmul.mubr.bf16.gmra.mxu1 %v10973_v7  ;;  %v12001_v7 = vld [vmem:[#allocation6_spill] sm:$0xff] }
 0x51d   : > { %v7258_v4 = vmax.f32 %v7257_v23, %v4762_v39  ;;  %v4195_v10 = vpop.f32.mrf.mxu0  ;;  %5010 = vmatprep.mubr.bf16.mxu1 %v11938_v35 }
 0x51e   : > { %v6985_v54 = vmax.f32 %v6984_v59, %v4195_v10  ;;  %v4764_v53 = vpop.f32.mrf.mxu1 }
 0x51f   : > { %v7420_v16 = vmax.f32 %v7419_v2, %v4764_v53  ;;  %v4197_v27 = vpop.f32.mrf.mxu0 }
 0x520   : > { %v7147_v33 = vmax.f32 %v7146_v29, %v4197_v27  ;;  %v4766_v43 = vpop.f32.mrf.mxu1 }
 0x521   : > { %v7259_v26 = vmax.f32 %v7258_v4, %v4766_v43  ;;  %v4201_v17 = vpop.f32.mrf.mxu0  ;;  %5292 = vmatmul.mubr.bf16.gmra.mxu0 %v12000_v51 }
 0x522   : > { %v6986_v45 = vmax.f32 %v6985_v54, %v4201_v17  ;;  %v4768_v22 = vpop.f32.mrf.mxu1  ;;  %5301 = vmatprep.mubr.bf16.mxu0 %v11938_v35 }
 0x523   : > { %v7421_v56 = vmax.f32 %v7420_v16, %v4768_v22  ;;  %v4203_v50 = vpop.f32.mrf.mxu0 }
 0x524   : > { %v7148_v23 = vmax.f32 %v7147_v33, %v4203_v50  ;;  %v4772_v39 = vpop.f32.mrf.mxu1  ;;  %5011 = vmatmul.mubr.bf16.gmra.mxu1 %v10981_v32  ;;  %v12002_v32 = vld [vmem:[#allocation7_spill] sm:$0xff] }
 0x525   : > { %v7260_v59 = vmax.f32 %v7259_v26, %v4772_v39  ;;  %v4205_v10 = vpop.f32.mrf.mxu0  ;;  %5020 = vmatprep.mubr.bf16.mxu1 %v11938_v35 }
 0x526   : > { %v6987_v2 = vmax.f32 %v6986_v45, %v4205_v10  ;;  %v4774_v29 = vpop.f32.mrf.mxu1 }
 0x527   : > { %v7422_v4 = vmax.f32 %v7421_v56, %v4774_v29  ;;  %v4207_v53 = vpop.f32.mrf.mxu0 }
 0x528   : > { %v7149_v27 = vmax.f32 %v7148_v23, %v4207_v53  ;;  %v4776_v43 = vpop.f32.mrf.mxu1 }
 0x529   : > { %v7261_v54 = vmax.f32 %v7260_v59, %v4776_v43  ;;  %v4211_v17 = vpop.f32.mrf.mxu0  ;;  %5302 = vmatmul.mubr.bf16.gmra.mxu0 %v12001_v7 }
 0x52a   : > { %v6988_v16 = vmax.f32 %v6987_v2, %v4211_v17  ;;  %v4778_v22 = vpop.f32.mrf.mxu1  ;;  %5311 = vmatprep.mubr.bf16.mxu0 %v11938_v35 }
 0x52b   : > { %v7423_v33 = vmax.f32 %v7422_v4, %v4778_v22  ;;  %v4213_v50 = vpop.f32.mrf.mxu0 }
 0x52c   : > { %v7150_v26 = vmax.f32 %v7149_v27, %v4213_v50  ;;  %v4782_v39 = vpop.f32.mrf.mxu1  ;;  %5021 = vmatmul.mubr.bf16.gmra.mxu1 %v10989_v49  ;;  %v12003_v49 = vld [vmem:[#allocation8_spill] sm:$0xff] }
 0x52d   : > { %v7262_v45 = vmax.f32 %v7261_v54, %v4782_v39  ;;  %v4215_v10 = vpop.f32.mrf.mxu0  ;;  %5030 = vmatprep.mubr.bf16.mxu1 %v11938_v35 }
 0x52e   : > { %v6989_v56 = vmax.f32 %v6988_v16, %v4215_v10  ;;  %v4784_v23 = vpop.f32.mrf.mxu1 }
 0x52f   : > { %v7424_v59 = vmax.f32 %v7423_v33, %v4784_v23  ;;  %v4217_v29 = vpop.f32.mrf.mxu0 }
 0x530   : > { %v7151_v53 = vmax.f32 %v7150_v26, %v4217_v29  ;;  %v4786_v43 = vpop.f32.mrf.mxu1 }
 0x531   : > { %v7263_v2 = vmax.f32 %v7262_v45, %v4786_v43  ;;  %v4221_v17 = vpop.f32.mrf.mxu0  ;;  %5312 = vmatmul.mubr.bf16.gmra.mxu0 %v12002_v32 }
 0x532   : > { %v6990_v4 = vmax.f32 %v6989_v56, %v4221_v17  ;;  %v4788_v22 = vpop.f32.mrf.mxu1  ;;  %5321 = vmatprep.mubr.bf16.mxu0 %v11938_v35 }
 0x533   : > { %v7425_v27 = vmax.f32 %v7424_v59, %v4788_v22  ;;  %v4223_v50 = vpop.f32.mrf.mxu0 }
 0x534   : > { %v7152_v54 = vmax.f32 %v7151_v53, %v4223_v50  ;;  %v4792_v39 = vpop.f32.mrf.mxu1  ;;  %5031 = vmatmul.mubr.bf16.gmra.mxu1 %v11009_v34  ;;  %v12004_v34 = vld [vmem:[#allocation9_spill] sm:$0xff] }
 0x535   : > { %v7264_v16 = vmax.f32 %v7263_v2, %v4792_v39  ;;  %v4225_v10 = vpop.f32.mrf.mxu0  ;;  %5040 = vmatprep.mubr.bf16.mxu1 %v11938_v35 }
 0x536   : > { %v6991_v33 = vmax.f32 %v6990_v4, %v4225_v10  ;;  %v4794_v26 = vpop.f32.mrf.mxu1 }
 0x537   : > { %v7426_v45 = vmax.f32 %v7425_v27, %v4794_v26  ;;  %v4227_v23 = vpop.f32.mrf.mxu0 }
 0x538   : > { %v7153_v29 = vmax.f32 %v7152_v54, %v4227_v23  ;;  %v4796_v43 = vpop.f32.mrf.mxu1 }
 0x539   : > { %v7265_v56 = vmax.f32 %v7264_v16, %v4796_v43  ;;  %v4231_v17 = vpop.f32.mrf.mxu0  ;;  %5322 = vmatmul.mubr.bf16.gmra.mxu0 %v12003_v49 }
 0x53a   : > { %v6992_v59 = vmax.f32 %v6991_v33, %v4231_v17  ;;  %v4798_v22 = vpop.f32.mrf.mxu1  ;;  %5331 = vmatprep.mubr.bf16.mxu0 %v11938_v35 }
 0x53b   : > { %v7427_v53 = vmax.f32 %v7426_v45, %v4798_v22  ;;  %v4233_v50 = vpop.f32.mrf.mxu0 }
 0x53c   : > { %v7154_v2 = vmax.f32 %v7153_v29, %v4233_v50  ;;  %v4802_v39 = vpop.f32.mrf.mxu1  ;;  %5041 = vmatmul.mubr.bf16.gmra.mxu1 %v11017_v21  ;;  %v12005_v21 = vld [vmem:[#allocation10_spill] sm:$0xff] }
 0x53d   : > { %v7266_v4 = vmax.f32 %v7265_v56, %v4802_v39  ;;  %v4235_v10 = vpop.f32.mrf.mxu0  ;;  %5050 = vmatprep.mubr.bf16.mxu1 %v11938_v35 }
 0x53e   : > { %v6993_v27 = vmax.f32 %v6992_v59, %v4235_v10  ;;  %v4804_v54 = vpop.f32.mrf.mxu1 }
 0x53f   : > { %v7428_v16 = vmax.f32 %v7427_v53, %v4804_v54  ;;  %v4237_v26 = vpop.f32.mrf.mxu0 }
 0x540   : > { %v7155_v23 = vmax.f32 %v7154_v2, %v4237_v26  ;;  %v4806_v43 = vpop.f32.mrf.mxu1 }
 0x541   : > { %v7267_v33 = vmax.f32 %v7266_v4, %v4806_v43  ;;  %v4241_v17 = vpop.f32.mrf.mxu0  ;;  %5332 = vmatmul.mubr.bf16.gmra.mxu0 %v12004_v34 }
 0x542   : > { %v6994_v45 = vmax.f32 %v6993_v27, %v4241_v17  ;;  %v4808_v22 = vpop.f32.mrf.mxu1  ;;  %5341 = vmatprep.mubr.bf16.mxu0 %v11938_v35 }
 0x543   : > { %v7429_v29 = vmax.f32 %v7428_v16, %v4808_v22  ;;  %v4243_v50 = vpop.f32.mrf.mxu0 }
 0x544   : > { %v7156_v56 = vmax.f32 %v7155_v23, %v4243_v50  ;;  %v4812_v39 = vpop.f32.mrf.mxu1  ;;  %5051 = vmatmul.mubr.bf16.gmra.mxu1 %v11025_v47  ;;  %v12006_v47 = vld [vmem:[#allocation11_spill] sm:$0xff] }
 0x545   : > { %v7268_v59 = vmax.f32 %v7267_v33, %v4812_v39  ;;  %v4245_v10 = vpop.f32.mrf.mxu0  ;;  %5060 = vmatprep.mubr.bf16.mxu1 %v11938_v35 }
 0x546   : > { %v6995_v53 = vmax.f32 %v6994_v45, %v4245_v10  ;;  %v4814_v2 = vpop.f32.mrf.mxu1 }
 0x547   : > { %v7430_v4 = vmax.f32 %v7429_v29, %v4814_v2  ;;  %v4247_v54 = vpop.f32.mrf.mxu0 }
 0x548   : > { %v7157_v26 = vmax.f32 %v7156_v56, %v4247_v54  ;;  %v4816_v43 = vpop.f32.mrf.mxu1 }
 0x549   : > { %v7269_v27 = vmax.f32 %v7268_v59, %v4816_v43  ;;  %v4251_v17 = vpop.f32.mrf.mxu0  ;;  %5342 = vmatmul.mubr.bf16.gmra.mxu0 %v12005_v21 }
 0x54a   : > { %v6996_v16 = vmax.f32 %v6995_v53, %v4251_v17  ;;  %v4818_v22 = vpop.f32.mrf.mxu1  ;;  %5351 = vmatprep.mubr.bf16.mxu0 %v11938_v35 }
 0x54b   : > { %v7431_v23 = vmax.f32 %v7430_v4, %v4818_v22  ;;  %v4253_v50 = vpop.f32.mrf.mxu0 }
 0x54c   : > { %v7158_v33 = vmax.f32 %v7157_v26, %v4253_v50  ;;  %v4822_v39 = vpop.f32.mrf.mxu1  ;;  %5061 = vmatmul.mubr.bf16.gmra.mxu1 %v11033_v62  ;;  %v12007_v62 = vld [vmem:[#allocation12_spill] sm:$0xff] }
 0x54d   : > { %v7270_v45 = vmax.f32 %v7269_v27, %v4822_v39  ;;  %v4255_v10 = vpop.f32.mrf.mxu0  ;;  %5070 = vmatprep.mubr.bf16.mxu1 %v11938_v35 }
 0x54e   : > { %v6997_v29 = vmax.f32 %v6996_v16, %v4255_v10  ;;  %v4824_v56 = vpop.f32.mrf.mxu1 }
 0x54f   : > { %v7432_v59 = vmax.f32 %v7431_v23, %v4824_v56  ;;  %v4257_v2 = vpop.f32.mrf.mxu0 }
 0x550   : > { %v7159_v54 = vmax.f32 %v7158_v33, %v4257_v2  ;;  %v4826_v43 = vpop.f32.mrf.mxu1 }
 0x551   : > { %v7271_v53 = vmax.f32 %v7270_v45, %v4826_v43  ;;  %v4261_v17 = vpop.f32.mrf.mxu0  ;;  %5352 = vmatmul.mubr.bf16.gmra.mxu0 %v12006_v47 }
 0x552   : > { %v6998_v4 = vmax.f32 %v6997_v29, %v4261_v17  ;;  %v4828_v22 = vpop.f32.mrf.mxu1  ;;  %5361 = vmatprep.mubr.bf16.mxu0 %v11938_v35 }
 0x553   : > { %v7433_v26 = vmax.f32 %v7432_v59, %v4828_v22  ;;  %v4263_v50 = vpop.f32.mrf.mxu0 }
 0x554   : > { %v7160_v27 = vmax.f32 %v7159_v54, %v4263_v50  ;;  %v4832_v39 = vpop.f32.mrf.mxu1  ;;  %5071 = vmatmul.mubr.bf16.gmra.mxu1 %v11041_v42  ;;  %v12008_v42 = vld [vmem:[#allocation13_spill] sm:$0xff] }
 0x555   : > { %v7272_v16 = vmax.f32 %v7271_v53, %v4832_v39  ;;  %v4265_v10 = vpop.f32.mrf.mxu0  ;;  %5080 = vmatprep.mubr.bf16.mxu1 %v11938_v35 }
 0x556   : > { %v6999_v23 = vmax.f32 %v6998_v4, %v4265_v10  ;;  %v4834_v33 = vpop.f32.mrf.mxu1 }
 0x557   : > { %v7434_v45 = vmax.f32 %v7433_v26, %v4834_v33  ;;  %v4267_v56 = vpop.f32.mrf.mxu0 }
 0x558   : > { %v7161_v2 = vmax.f32 %v7160_v27, %v4267_v56  ;;  %v4836_v43 = vpop.f32.mrf.mxu1 }
 0x559   : > { %v7273_v29 = vmax.f32 %v7272_v16, %v4836_v43  ;;  %v4271_v17 = vpop.f32.mrf.mxu0  ;;  %5362 = vmatmul.mubr.bf16.gmra.mxu0 %v12007_v62 }
 0x55a   : > { %v7000_v59 = vmax.f32 %v6999_v23, %v4271_v17  ;;  %v4838_v22 = vpop.f32.mrf.mxu1  ;;  %5371 = vmatprep.mubr.bf16.mxu0 %v11938_v35 }
 0x55b   : > { %v7435_v54 = vmax.f32 %v7434_v45, %v4838_v22  ;;  %v4273_v50 = vpop.f32.mrf.mxu0 }
 0x55c   : > { %v7162_v53 = vmax.f32 %v7161_v2, %v4273_v50  ;;  %v4842_v39 = vpop.f32.mrf.mxu1  ;;  %5081 = vmatmul.mubr.bf16.gmra.mxu1 %v11049_v60  ;;  %v12009_v60 = vld [vmem:[#allocation14_spill] sm:$0xff] }
 0x55d   : > { %v7274_v4 = vmax.f32 %v7273_v29, %v4842_v39  ;;  %v4275_v10 = vpop.f32.mrf.mxu0  ;;  %5090 = vmatprep.mubr.bf16.mxu1 %v11938_v35 }
 0x55e   : > { %v7001_v26 = vmax.f32 %v7000_v59, %v4275_v10  ;;  %v4844_v27 = vpop.f32.mrf.mxu1 }
 0x55f   : > { %v7436_v16 = vmax.f32 %v7435_v54, %v4844_v27  ;;  %v4277_v33 = vpop.f32.mrf.mxu0 }
 0x560   : > { %v7163_v56 = vmax.f32 %v7162_v53, %v4277_v33  ;;  %v4846_v43 = vpop.f32.mrf.mxu1 }
 0x561   : > { %v7275_v23 = vmax.f32 %v7274_v4, %v4846_v43  ;;  %v4281_v17 = vpop.f32.mrf.mxu0  ;;  %5372 = vmatmul.mubr.bf16.gmra.mxu0 %v12008_v42 }
 0x562   : > { %v7002_v45 = vmax.f32 %v7001_v26, %v4281_v17  ;;  %v4848_v22 = vpop.f32.mrf.mxu1  ;;  %5381 = vmatprep.mubr.bf16.mxu0 %v11938_v35 }
 0x563   : > { %v7437_v2 = vmax.f32 %v7436_v16, %v4848_v22  ;;  %v4283_v50 = vpop.f32.mrf.mxu0 }
 0x564   : > { %v7164_v29 = vmax.f32 %v7163_v56, %v4283_v50  ;;  %v4852_v39 = vpop.f32.mrf.mxu1  ;;  %5091 = vmatmul.mubr.bf16.gmra.mxu1 %v11057_v3  ;;  %v12010_v3 = vld [vmem:[#allocation15_spill] sm:$0xff] }
 0x565   : > { %v7276_v59 = vmax.f32 %v7275_v23, %v4852_v39  ;;  %v4285_v10 = vpop.f32.mrf.mxu0  ;;  %5100 = vmatprep.mubr.bf16.mxu1 %v11938_v35 }
 0x566   : > { %v7003_v54 = vmax.f32 %v7002_v45, %v4285_v10  ;;  %v4854_v53 = vpop.f32.mrf.mxu1 }
 0x567   : > { %v7438_v4 = vmax.f32 %v7437_v2, %v4854_v53  ;;  %v4287_v27 = vpop.f32.mrf.mxu0 }
 0x568   : > { %v7165_v33 = vmax.f32 %v7164_v29, %v4287_v27  ;;  %v4856_v43 = vpop.f32.mrf.mxu1 }
 0x569   : > { %v7277_v26 = vmax.f32 %v7276_v59, %v4856_v43  ;;  %v4291_v17 = vpop.f32.mrf.mxu0  ;;  %5382 = vmatmul.mubr.bf16.gmra.mxu0 %v12009_v60 }
 0x56a   : > { %v7004_v16 = vmax.f32 %v7003_v54, %v4291_v17  ;;  %v4858_v22 = vpop.f32.mrf.mxu1  ;;  %5391 = vmatprep.mubr.bf16.mxu0 %v11938_v35 }
 0x56b   : > { %v7439_v56 = vmax.f32 %v7438_v4, %v4858_v22  ;;  %v4293_v50 = vpop.f32.mrf.mxu0 }
 0x56c   : > { %v7166_v23 = vmax.f32 %v7165_v33, %v4293_v50  ;;  %v4862_v39 = vpop.f32.mrf.mxu1  ;;  %5101 = vmatmul.mubr.bf16.gmra.mxu1 %v11070_v14  ;;  %v12011_v14 = vld [vmem:[#allocation16_spill] sm:$0xff] }
 0x56d   : > { %v7278_v45 = vmax.f32 %v7277_v26, %v4862_v39  ;;  %v4295_v10 = vpop.f32.mrf.mxu0  ;;  %5110 = vmatprep.mubr.bf16.mxu1 %v11938_v35 }
 0x56e   : > { %v7005_v2 = vmax.f32 %v7004_v16, %v4295_v10  ;;  %v4864_v29 = vpop.f32.mrf.mxu1 }
 0x56f   : > { %v7440_v59 = vmax.f32 %v7439_v56, %v4864_v29  ;;  %v4297_v53 = vpop.f32.mrf.mxu0 }
 0x570   : > { %v7167_v27 = vmax.f32 %v7166_v23, %v4297_v53  ;;  %v4866_v43 = vpop.f32.mrf.mxu1 }
 0x571   : > { %v7279_v54 = vmax.f32 %v7278_v45, %v4866_v43  ;;  %v4301_v17 = vpop.f32.mrf.mxu0  ;;  %5392 = vmatmul.mubr.bf16.gmra.mxu0 %v12010_v3 }
 0x572   : > { %v7006_v4 = vmax.f32 %v7005_v2, %v4301_v17  ;;  %v4868_v22 = vpop.f32.mrf.mxu1  ;;  %5401 = vmatprep.mubr.bf16.mxu0 %v11938_v35 }
 0x573   : > { %v7441_v33 = vmax.f32 %v7440_v59, %v4868_v22  ;;  %v4303_v50 = vpop.f32.mrf.mxu0 }
 0x574   : > { %v7168_v26 = vmax.f32 %v7167_v27, %v4303_v50  ;;  %v4872_v39 = vpop.f32.mrf.mxu1  ;;  %5111 = vmatmul.mubr.bf16.gmra.mxu1 %v11078_v6  ;;  %v12012_v6 = vld [vmem:[#allocation17_spill] sm:$0xff] }
 0x575   : > { %v7280_v16 = vmax.f32 %v7279_v54, %v4872_v39  ;;  %v4305_v10 = vpop.f32.mrf.mxu0  ;;  %5120 = vmatprep.mubr.bf16.mxu1 %v11938_v35 }
 0x576   : > { %v7007_v56 = vmax.f32 %v7006_v4, %v4305_v10  ;;  %v4874_v23 = vpop.f32.mrf.mxu1 }
 0x577   : > { %v7442_v45 = vmax.f32 %v7441_v33, %v4874_v23  ;;  %v4307_v29 = vpop.f32.mrf.mxu0 }
 0x578   : > { %v7169_v53 = vmax.f32 %v7168_v26, %v4307_v29  ;;  %v4876_v43 = vpop.f32.mrf.mxu1 }
 0x579   : > { %v7281_v2 = vmax.f32 %v7280_v16, %v4876_v43  ;;  %v4311_v17 = vpop.f32.mrf.mxu0  ;;  %5402 = vmatmul.mubr.bf16.gmra.mxu0 %v12011_v14 }
 0x57a   : > { %v7008_v59 = vmax.f32 %v7007_v56, %v4311_v17  ;;  %v4878_v22 = vpop.f32.mrf.mxu1  ;;  %5411 = vmatprep.mubr.bf16.mxu0 %v11938_v35 }
 0x57b   : > { %v7443_v27 = vmax.f32 %v7442_v45, %v4878_v22  ;;  %v4313_v50 = vpop.f32.mrf.mxu0 }
 0x57c   : > { %v7170_v54 = vmax.f32 %v7169_v53, %v4313_v50  ;;  %v4882_v39 = vpop.f32.mrf.mxu1  ;;  %5121 = vmatmul.mubr.bf16.gmra.mxu1 %v11098_v46  ;;  %v12013_v46 = vld [vmem:[#allocation18_spill] sm:$0xff] }
 0x57d   : > { %v7282_v4 = vmax.f32 %v7281_v2, %v4882_v39  ;;  %v4315_v10 = vpop.f32.mrf.mxu0  ;;  %5130 = vmatprep.mubr.bf16.mxu1 %v11938_v35 }
 0x57e   : > { %v7009_v33 = vmax.f32 %v7008_v59, %v4315_v10  ;;  %v4884_v26 = vpop.f32.mrf.mxu1 }
 0x57f   : > { %v7444_v16 = vmax.f32 %v7443_v27, %v4884_v26  ;;  %v4317_v23 = vpop.f32.mrf.mxu0 }
 0x580   : > { %v7171_v29 = vmax.f32 %v7170_v54, %v4317_v23  ;;  %v4886_v43 = vpop.f32.mrf.mxu1 }
 0x581   : > { %v7283_v56 = vmax.f32 %v7282_v4, %v4886_v43  ;;  %v4321_v17 = vpop.f32.mrf.mxu0  ;;  %5412 = vmatmul.mubr.bf16.gmra.mxu0 %v12012_v6 }
 0x582   : > { %v7010_v45 = vmax.f32 %v7009_v33, %v4321_v17  ;;  %v4888_v22 = vpop.f32.mrf.mxu1  ;;  %5421 = vmatprep.mubr.bf16.mxu0 %v11938_v35 }
 0x583   : > { %v7445_v53 = vmax.f32 %v7444_v16, %v4888_v22  ;;  %v4323_v50 = vpop.f32.mrf.mxu0 }
 0x584   : > { %v7172_v2 = vmax.f32 %v7171_v29, %v4323_v50  ;;  %v4892_v39 = vpop.f32.mrf.mxu1  ;;  %5131 = vmatmul.mubr.bf16.gmra.mxu1 %v11106_v12  ;;  %v12014_v12 = vld [vmem:[#allocation19_spill] sm:$0xff] }
 0x585   : > { %v7284_v59 = vmax.f32 %v7283_v56, %v4892_v39  ;;  %v4325_v10 = vpop.f32.mrf.mxu0  ;;  %5140 = vmatprep.mubr.bf16.mxu1 %v11938_v35 }
 0x586   : > { %v7011_v27 = vmax.f32 %v7010_v45, %v4325_v10  ;;  %v4894_v54 = vpop.f32.mrf.mxu1 }
 0x587   : > { %v7446_v4 = vmax.f32 %v7445_v53, %v4894_v54  ;;  %v4327_v26 = vpop.f32.mrf.mxu0 }
 0x588   : > { %v7173_v23 = vmax.f32 %v7172_v2, %v4327_v26  ;;  %v4896_v43 = vpop.f32.mrf.mxu1 }
 0x589   : > { %v7285_v33 = vmax.f32 %v7284_v59, %v4896_v43  ;;  %v4331_v17 = vpop.f32.mrf.mxu0  ;;  %5422 = vmatmul.mubr.bf16.gmra.mxu0 %v12013_v46 }
 0x58a   : > { %v7012_v16 = vmax.f32 %v7011_v27, %v4331_v17  ;;  %v4898_v22 = vpop.f32.mrf.mxu1  ;;  %5431 = vmatprep.mubr.bf16.mxu0 %v11938_v35 }
 0x58b   : > { %v7447_v29 = vmax.f32 %v7446_v4, %v4898_v22  ;;  %v4333_v50 = vpop.f32.mrf.mxu0 }
 0x58c   : > { %v7174_v56 = vmax.f32 %v7173_v23, %v4333_v50  ;;  %v4902_v39 = vpop.f32.mrf.mxu1  ;;  %5141 = vmatmul.mubr.bf16.gmra.mxu1 %v11114_v58  ;;  %v12015_v58 = vld [vmem:[#allocation20_spill] sm:$0xff] }
 0x58d   : > { %v7286_v45 = vmax.f32 %v7285_v33, %v4902_v39  ;;  %v4335_v10 = vpop.f32.mrf.mxu0  ;;  %5150 = vmatprep.mubr.bf16.mxu1 %v11938_v35 }
 0x58e   : > { %v7013_v53 = vmax.f32 %v7012_v16, %v4335_v10  ;;  %v4904_v2 = vpop.f32.mrf.mxu1 }
 0x58f   : > { %v7448_v59 = vmax.f32 %v7447_v29, %v4904_v2  ;;  %v4337_v54 = vpop.f32.mrf.mxu0 }
 0x590   : > { %v7175_v26 = vmax.f32 %v7174_v56, %v4337_v54  ;;  %v4906_v43 = vpop.f32.mrf.mxu1 }
 0x591   : > { %v7287_v27 = vmax.f32 %v7286_v45, %v4906_v43  ;;  %v4341_v17 = vpop.f32.mrf.mxu0  ;;  %5432 = vmatmul.mubr.bf16.gmra.mxu0 %v12014_v12 }
 0x592   : > { %v7014_v4 = vmax.f32 %v7013_v53, %v4341_v17  ;;  %v4908_v22 = vpop.f32.mrf.mxu1  ;;  %5441 = vmatprep.mubr.bf16.mxu0 %v11938_v35 }
 0x593   : > { %v7449_v23 = vmax.f32 %v7448_v59, %v4908_v22  ;;  %v4343_v50 = vpop.f32.mrf.mxu0 }
 0x594   : > { %v7176_v33 = vmax.f32 %v7175_v26, %v4343_v50  ;;  %v4912_v39 = vpop.f32.mrf.mxu1  ;;  %5151 = vmatmul.mubr.bf16.gmra.mxu1 %v11988_v11  ;;  %v12016_v11 = vld [vmem:[#allocation21_spill] sm:$0xff] }
 0x595   : > { %v7288_v16 = vmax.f32 %v7287_v27, %v4912_v39  ;;  %v4345_v10 = vpop.f32.mrf.mxu0  ;;  %5160 = vmatprep.mubr.bf16.mxu1 %v11938_v35 }
 0x596   : > { %v7015_v29 = vmax.f32 %v7014_v4, %v4345_v10  ;;  %v4914_v56 = vpop.f32.mrf.mxu1 }
 0x597   : > { %v7450_v45 = vmax.f32 %v7449_v23, %v4914_v56  ;;  %v4347_v2 = vpop.f32.mrf.mxu0 }
 0x598   : > { %v7177_v54 = vmax.f32 %v7176_v33, %v4347_v2  ;;  %v4916_v43 = vpop.f32.mrf.mxu1 }
 0x599   : > { %v7289_v53 = vmax.f32 %v7288_v16, %v4916_v43  ;;  %v4351_v17 = vpop.f32.mrf.mxu0  ;;  %5442 = vmatmul.mubr.bf16.gmra.mxu0 %v12015_v58 }
 0x59a   : > { %v7016_v59 = vmax.f32 %v7015_v29, %v4351_v17  ;;  %v4918_v22 = vpop.f32.mrf.mxu1  ;;  %5451 = vmatprep.mubr.bf16.mxu0 %v11938_v35 }
 0x59b   : > { %v7451_v26 = vmax.f32 %v7450_v45, %v4918_v22  ;;  %v4353_v50 = vpop.f32.mrf.mxu0 }
 0x59c   : > { %v7178_v27 = vmax.f32 %v7177_v54, %v4353_v50  ;;  %v4922_v39 = vpop.f32.mrf.mxu1  ;;  %5161 = vmatmul.mubr.bf16.gmra.mxu1 %v11989_v18  ;;  %v12017_v18 = vld [vmem:[#allocation22_spill] sm:$0xff] }
 0x59d   : > { %v7290_v4 = vmax.f32 %v7289_v53, %v4922_v39  ;;  %v4355_v10 = vpop.f32.mrf.mxu0  ;;  %5170 = vmatprep.mubr.bf16.mxu1 %v11938_v35 }
 0x59e   : > { %v7017_v23 = vmax.f32 %v7016_v59, %v4355_v10  ;;  %v4924_v33 = vpop.f32.mrf.mxu1 }
 0x59f   : > { %v7452_v16 = vmax.f32 %v7451_v26, %v4924_v33  ;;  %v4357_v56 = vpop.f32.mrf.mxu0 }
 0x5a0   : > { %v7179_v2 = vmax.f32 %v7178_v27, %v4357_v56  ;;  %v4926_v43 = vpop.f32.mrf.mxu1 }
 0x5a1   : > { %v7291_v29 = vmax.f32 %v7290_v4, %v4926_v43  ;;  %v4361_v17 = vpop.f32.mrf.mxu0  ;;  %5452 = vmatmul.mubr.bf16.gmra.mxu0 %v12016_v11 }
 0x5a2   : > { %v7018_v45 = vmax.f32 %v7017_v23, %v4361_v17  ;;  %v4928_v22 = vpop.f32.mrf.mxu1  ;;  %5461 = vmatprep.mubr.bf16.mxu0 %v11938_v35 }
 0x5a3   : > { %v7453_v54 = vmax.f32 %v7452_v16, %v4928_v22  ;;  %v4363_v50 = vpop.f32.mrf.mxu0 }
 0x5a4   : > { %v7180_v53 = vmax.f32 %v7179_v2, %v4363_v50  ;;  %v4932_v39 = vpop.f32.mrf.mxu1  ;;  %5171 = vmatmul.mubr.bf16.gmra.mxu1 %v11990_v15  ;;  %v12018_v15 = vld [vmem:[#allocation23_spill] sm:$0xff] }
 0x5a5   : > { %v7292_v59 = vmax.f32 %v7291_v29, %v4932_v39  ;;  %v4365_v10 = vpop.f32.mrf.mxu0  ;;  %5180 = vmatprep.mubr.bf16.mxu1 %v11938_v35 }
 0x5a6   : > { %v7019_v26 = vmax.f32 %v7018_v45, %v4365_v10  ;;  %v4934_v27 = vpop.f32.mrf.mxu1 }
 0x5a7   : > { %v7454_v4 = vmax.f32 %v7453_v54, %v4934_v27  ;;  %v4367_v33 = vpop.f32.mrf.mxu0 }
 0x5a8   : > { %v7181_v56 = vmax.f32 %v7180_v53, %v4367_v33  ;;  %v4936_v43 = vpop.f32.mrf.mxu1 }
 0x5a9   : > { %v7293_v23 = vmax.f32 %v7292_v59, %v4936_v43  ;;  %v4371_v17 = vpop.f32.mrf.mxu0  ;;  %5462 = vmatmul.mubr.bf16.gmra.mxu0 %v12017_v18 }
 0x5aa   : > { %v7020_v16 = vmax.f32 %v7019_v26, %v4371_v17  ;;  %v4938_v22 = vpop.f32.mrf.mxu1  ;;  %5471 = vmatprep.mubr.bf16.mxu0 %v11938_v35 }
 0x5ab   : > { %v7455_v2 = vmax.f32 %v7454_v4, %v4938_v22  ;;  %v4373_v50 = vpop.f32.mrf.mxu0 }
 0x5ac   : > { %v7182_v29 = vmax.f32 %v7181_v56, %v4373_v50  ;;  %v4942_v39 = vpop.f32.mrf.mxu1  ;;  %5181 = vmatmul.mubr.bf16.gmra.mxu1 %v11991_v1  ;;  %v12019_v1 = vld [vmem:[#allocation24_spill] sm:$0xff] }
 0x5ad   : > { %v7294_v45 = vmax.f32 %v7293_v23, %v4942_v39  ;;  %v4375_v10 = vpop.f32.mrf.mxu0  ;;  %5190 = vmatprep.mubr.bf16.mxu1 %v11938_v35 }
 0x5ae   : > { %v7021_v54 = vmax.f32 %v7020_v16, %v4375_v10  ;;  %v4944_v53 = vpop.f32.mrf.mxu1 }
 0x5af   : > { %v7456_v59 = vmax.f32 %v7455_v2, %v4944_v53  ;;  %v4377_v27 = vpop.f32.mrf.mxu0 }
 0x5b0   : > { %v7183_v33 = vmax.f32 %v7182_v29, %v4377_v27  ;;  %v4946_v43 = vpop.f32.mrf.mxu1 }
 0x5b1   : > { %v7295_v26 = vmax.f32 %v7294_v45, %v4946_v43  ;;  %v4381_v17 = vpop.f32.mrf.mxu0  ;;  %5472 = vmatmul.mubr.bf16.gmra.mxu0 %v12018_v15 }
 0x5b2   : > { %v7022_v4 = vmax.f32 %v7021_v54, %v4381_v17  ;;  %v4948_v22 = vpop.f32.mrf.mxu1  ;;  %5481 = vmatprep.mubr.bf16.mxu0 %v11938_v35 }
 0x5b3   : > { %v7457_v56 = vmax.f32 %v7456_v59, %v4948_v22  ;;  %v4383_v50 = vpop.f32.mrf.mxu0 }
 0x5b4   : > { %v7184_v23 = vmax.f32 %v7183_v33, %v4383_v50  ;;  %v4952_v39 = vpop.f32.mrf.mxu1  ;;  %5191 = vmatmul.mubr.bf16.gmra.mxu1 %v11992_v0  ;;  %v12020_v0 = vld [vmem:[#allocation25_spill] sm:$0xff] }
 0x5b5   : > { %v7296_v16 = vmax.f32 %v7295_v26, %v4952_v39  ;;  %v4385_v10 = vpop.f32.mrf.mxu0  ;;  %5200 = vmatprep.mubr.bf16.mxu1 %v11938_v35 }
 0x5b6   : > { %v7023_v2 = vmax.f32 %v7022_v4, %v4385_v10  ;;  %v4954_v29 = vpop.f32.mrf.mxu1 }
 0x5b7   : > { %v7458_v45 = vmax.f32 %v7457_v56, %v4954_v29  ;;  %v4387_v53 = vpop.f32.mrf.mxu0 }
 0x5b8   : > { %v7185_v27 = vmax.f32 %v7184_v23, %v4387_v53  ;;  %v4956_v43 = vpop.f32.mrf.mxu1 }
 0x5b9   : > { %v7297_v54 = vmax.f32 %v7296_v16, %v4956_v43  ;;  %v4391_v17 = vpop.f32.mrf.mxu0  ;;  %5482 = vmatmul.mubr.bf16.gmra.mxu0 %v12019_v1 }
 0x5ba   : > { %v7024_v59 = vmax.f32 %v7023_v2, %v4391_v17  ;;  %v4958_v22 = vpop.f32.mrf.mxu1  ;;  %5491 = vmatprep.mubr.bf16.mxu0 %v11938_v35 }
 0x5bb   : > { %v7459_v33 = vmax.f32 %v7458_v45, %v4958_v22  ;;  %v4393_v50 = vpop.f32.mrf.mxu0 }
 0x5bc   : > { %v7186_v26 = vmax.f32 %v7185_v27, %v4393_v50  ;;  %v4962_v39 = vpop.f32.mrf.mxu1  ;;  %5201 = vmatmul.mubr.bf16.gmra.mxu1 %v11993_v31 }
 0x5bd   : > { %v7298_v4 = vmax.f32 %v7297_v54, %v4962_v39  ;;  %v4395_v10 = vpop.f32.mrf.mxu0  ;;  %5210 = vmatprep.mubr.bf16.mxu1 %v11938_v35 }
 0x5be   : > { %v7025_v56 = vmax.f32 %v7024_v59, %v4395_v10  ;;  %v4964_v23 = vpop.f32.mrf.mxu1 }
 0x5bf   : > { %v7460_v16 = vmax.f32 %v7459_v33, %v4964_v23  ;;  %v4397_v29 = vpop.f32.mrf.mxu0 }
 0x5c0   : > { %v7187_v53 = vmax.f32 %v7186_v26, %v4397_v29  ;;  %v4966_v43 = vpop.f32.mrf.mxu1 }
 0x5c1   : > { %v7299_v2 = vmax.f32 %v7298_v4, %v4966_v43  ;;  %v4401_v17 = vpop.f32.mrf.mxu0  ;;  %5492 = vmatmul.mubr.bf16.gmra.mxu0 %v12020_v0 }
 0x5c2   : > { %v7026_v45 = vmax.f32 %v7025_v56, %v4401_v17  ;;  %v4968_v22 = vpop.f32.mrf.mxu1  ;;  %5501 = vmatprep.mubr.bf16.mxu0 %v11938_v35 }
 0x5c3   : > { %v7461_v27 = vmax.f32 %v7460_v16, %v4968_v22  ;;  %v4403_v50 = vpop.f32.mrf.mxu0  ;;  %v12021_v22 = vld [vmem:[#allocation26_spill] sm:$0xff] }
 0x5c4   : > { %v7027_v54 = vrot.slane %v7026_v45, 4  ;;  %v7188_v39 = vmax.f32 %v7187_v53, %v4403_v50  ;;  %v4972_v31 = vpop.f32.mrf.mxu1  ;;  %5211 = vmatmul.mubr.bf16.gmra.mxu1 %v11995_v55 }
 0x5c5   : > { %v7300_v59 = vmax.f32 %v7299_v2, %v4972_v31  ;;  %v4405_v33 = vpop.f32.mrf.mxu0  ;;  %5220 = vmatprep.mubr.bf16.mxu1 %v11938_v35 }
 0x5c6   : > { %v7028_v26 = vmax.f32 %v7026_v45, %v7027_v54  ;;  %v7189_v4 = vrot.slane %v7188_v39, 4  ;;  %v4974_v10 = vpop.f32.mrf.mxu1 }
 0x5c7   : > { %v7462_v23 = vmax.f32 %v7461_v27, %v4974_v10  ;;  %v4406_v29 = vpop.f32.mrf.mxu0 }
 0x5c8   : > { %v7029_v56 = vrot.slane %v7028_v26, 2  ;;  %v7190_v43 = vmax.f32 %v7188_v39, %v7189_v4  ;;  %v4976_v17 = vpop.f32.mrf.mxu1 }
 0x5c9   : > { %v7301_v44 = vmax.f32 %v7300_v59, %v4976_v17  ;;  %v5263_v16 = vpop.f32.mrf.mxu0  ;;  %5502 = vmatmul.mubr.bf16.gmra.mxu0 %v12021_v22 }
 0x5ca   : > { %v7030_v53 = vmax.f32 %v7028_v26, %v7029_v56  ;;  %v7191_v50 = vrot.slane %v7190_v43, 2  ;;  %v4978_v0 = vpop.f32.mrf.mxu1  ;;  %5511 = vmatprep.mubr.bf16.mxu0 %v11938_v35 }
 0x5cb   : > { %v7463_v31 = vmax.f32 %v7462_v23, %v4978_v0  ;;  %v5265_v2 = vpop.f32.mrf.mxu0 }
 0x5cc   : > { %v7031_v33 = vrot.slane %v7030_v53, 1  ;;  %v7192_v45 = vmax.f32 %v7190_v43, %v7191_v50  ;;  %v4982_v54 = vpop.f32.mrf.mxu1  ;;  %5221 = vmatmul.mubr.bf16.gmra.mxu1 %v11337_v28  ;;  %v12023_v50 = vld [vmem:[#allocation27_spill] sm:$0xff] }
 0x5cd   : > { %v7302_v27 = vmax.f32 %v7301_v44, %v4982_v54  ;;  %v5267_v10 = vpop.f32.mrf.mxu0  ;;  %6082 = vmatprep.mubr.bf16.mxu1 %v11938_v35 }
 0x5ce   : > { %v11449_v39 = vmax.f32 %v7030_v53, %v7031_v33  ;;  %v7193_v59 = vrot.slane %v7192_v45, 1  ;;  %v7519_v4 = vmax.f32 %v5263_v16, %v5267_v10  ;;  %v4984_v26 = vpop.f32.mrf.mxu1 }
 0x5cf   : > { %v7464_v29 = vmax.f32 %v7463_v31, %v4984_v26  ;;  %v5269_v56 = vpop.f32.mrf.mxu0 }
 0x5d0   : > { %12022 = vst [vmem:[#allocation2_spill] sm:$0xff] %v11449_v39  ;;  %v11451_v17 = vmax.f32 %v7192_v45, %v7193_v59  ;;  %v7681_v0 = vmax.f32 %v5265_v2, %v5269_v56  ;;  %v4986_v23 = vpop.f32.mrf.mxu1 }
 0x5d1   : > { %v7303_v55 = vmax.f32 %v7302_v27, %v4986_v23  ;;  %v5273_v43 = vpop.f32.mrf.mxu0  ;;  %5512 = vmatmul.mubr.bf16.gmra.mxu0 %v12023_v50  ;;  %v12024_v23 = vld [vmem:[#allocation28_spill] sm:$0xff] }
 0x5d2   : > { %v7520_v28 = vmax.f32 %v7519_v4, %v5273_v43  ;;  %v4988_v44 = vpop.f32.mrf.mxu1  ;;  %5521 = vmatprep.mubr.bf16.mxu0 %v11938_v35 }
 0x5d3   : > { %v7465_v54 = vmax.f32 %v7464_v29, %v4988_v44  ;;  %v5275_v53 = vpop.f32.mrf.mxu0 }
 0x5d4   : > { %v7682_v33 = vmax.f32 %v7681_v0, %v5275_v53  ;;  %v4992_v39 = vpop.f32.mrf.mxu1  ;;  %6083 = vmatmul.mubr.bf16.vlgmr.msra.gmra.mxu1 %v11997_v57 }
 0x5d5   : > { %v7304_v16 = vmax.f32 %v7303_v55, %v4992_v39  ;;  %v5277_v31 = vpop.f32.mrf.mxu0  ;;  %6092 = vmatprep.mubr.bf16.mxu1 %v11938_v35 }
 0x5d6   : > { %v7521_v2 = vmax.f32 %v7520_v28, %v5277_v31  ;;  %v4994_v45 = vpop.f32.mrf.mxu1 }
 0x5d7   : > { %v7466_v27 = vmax.f32 %v7465_v54, %v4994_v45  ;;  %v5279_v10 = vpop.f32.mrf.mxu0 }
 0x5d8   : > { %v7683_v59 = vmax.f32 %v7682_v33, %v5279_v10  ;;  %v4996_v26 = vpop.f32.mrf.mxu1 }
 0x5d9   : > { %v7305_v4 = vmax.f32 %v7304_v16, %v4996_v26  ;;  %v5283_v56 = vpop.f32.mrf.mxu0  ;;  %5522 = vmatmul.mubr.bf16.gmra.mxu0 %v12024_v23 }
 0x5da   : > { %v7522_v29 = vmax.f32 %v7521_v2, %v5283_v56  ;;  %v4998_v43 = vpop.f32.mrf.mxu1  ;;  %5531 = vmatprep.mubr.bf16.mxu0 %v11938_v35 }
 0x5db   : > { %v7467_v0 = vmax.f32 %v7466_v27, %v4998_v43  ;;  %v5285_v57 = vpop.f32.mrf.mxu0 }
 0x5dc   : > { %v7684_v55 = vmax.f32 %v7683_v59, %v5285_v57  ;;  %v5002_v39 = vpop.f32.mrf.mxu1  ;;  %6093 = vmatmul.mubr.bf16.gmra.mxu1 %v11998_v38 }
 0x5dd   : > { %v7306_v28 = vmax.f32 %v7305_v4, %v5002_v39  ;;  %v5287_v44 = vpop.f32.mrf.mxu0  ;;  %6102 = vmatprep.mubr.bf16.mxu1 %v11938_v35 }
 0x5de   : > { %v7523_v54 = vmax.f32 %v7522_v29, %v5287_v44  ;;  %v5004_v53 = vpop.f32.mrf.mxu1 }
 0x5df   : > { %v7468_v33 = vmax.f32 %v7467_v0, %v5004_v53  ;;  %v5289_v16 = vpop.f32.mrf.mxu0 }
 0x5e0   : > { %v7685_v31 = vmax.f32 %v7684_v55, %v5289_v16  ;;  %v5006_v45 = vpop.f32.mrf.mxu1 }
 0x5e1   : > { %v7307_v2 = vmax.f32 %v7306_v28, %v5006_v45  ;;  %v5293_v10 = vpop.f32.mrf.mxu0  ;;  %5532 = vmatmul.mubr.bf16.gmra.mxu0 %v10613_v61 }
 0x5e2   : > { %v7524_v27 = vmax.f32 %v7523_v54, %v5293_v10  ;;  %v5008_v26 = vpop.f32.mrf.mxu1  ;;  %5541 = vmatprep.mubr.bf16.mxu0 %v11938_v35 }
 0x5e3   : > { %v7469_v59 = vmax.f32 %v7468_v33, %v5008_v26  ;;  %v5295_v38 = vpop.f32.mrf.mxu0 }
 0x5e4   : > { %v7686_v4 = vmax.f32 %v7685_v31, %v5295_v38  ;;  %v5012_v56 = vpop.f32.mrf.mxu1  ;;  %6103 = vmatmul.mubr.bf16.gmra.mxu1 %v11999_v25 }
 0x5e5   : > { %v7308_v29 = vmax.f32 %v7307_v2, %v5012_v56  ;;  %v5297_v43 = vpop.f32.mrf.mxu0  ;;  %6112 = vmatprep.mubr.bf16.mxu1 %v11938_v35 }
 0x5e6   : > { %v7525_v0 = vmax.f32 %v7524_v27, %v5297_v43  ;;  %v5014_v57 = vpop.f32.mrf.mxu1 }
 0x5e7   : > { %v7470_v55 = vmax.f32 %v7469_v59, %v5014_v57  ;;  %v5299_v39 = vpop.f32.mrf.mxu0 }
 0x5e8   : > { %v7687_v28 = vmax.f32 %v7686_v4, %v5299_v39  ;;  %v5016_v44 = vpop.f32.mrf.mxu1 }
 0x5e9   : > { %v7309_v54 = vmax.f32 %v7308_v29, %v5016_v44  ;;  %v5303_v53 = vpop.f32.mrf.mxu0  ;;  %5542 = vmatmul.mubr.bf16.gmra.mxu0 %v10625_v36 }
 0x5ea   : > { %v7526_v33 = vmax.f32 %v7525_v0, %v5303_v53  ;;  %v5018_v16 = vpop.f32.mrf.mxu1  ;;  %5551 = vmatprep.mubr.bf16.mxu0 %v11938_v35 }
 0x5eb   : > { %v7471_v31 = vmax.f32 %v7470_v55, %v5018_v16  ;;  %v5305_v25 = vpop.f32.mrf.mxu0 }
 0x5ec   : > { %v7688_v45 = vmax.f32 %v7687_v28, %v5305_v25  ;;  %v5022_v2 = vpop.f32.mrf.mxu1  ;;  %6113 = vmatmul.mubr.bf16.gmra.mxu1 %v12000_v51 }
 0x5ed   : > { %v7310_v10 = vmax.f32 %v7309_v54, %v5022_v2  ;;  %v5307_v27 = vpop.f32.mrf.mxu0  ;;  %6122 = vmatprep.mubr.bf16.mxu1 %v11938_v35 }
 0x5ee   : > { %v7527_v26 = vmax.f32 %v7526_v33, %v5307_v27  ;;  %v5024_v59 = vpop.f32.mrf.mxu1 }
 0x5ef   : > { %v7472_v38 = vmax.f32 %v7471_v31, %v5024_v59  ;;  %v5309_v4 = vpop.f32.mrf.mxu0 }
 0x5f0   : > { %v7689_v56 = vmax.f32 %v7688_v45, %v5309_v4  ;;  %v5026_v29 = vpop.f32.mrf.mxu1 }
 0x5f1   : > { %v7311_v43 = vmax.f32 %v7310_v10, %v5026_v29  ;;  %v5313_v0 = vpop.f32.mrf.mxu0  ;;  %5552 = vmatmul.mubr.bf16.gmra.mxu0 %v10642_v13 }
 0x5f2   : > { %v7528_v57 = vmax.f32 %v7527_v26, %v5313_v0  ;;  %v5028_v55 = vpop.f32.mrf.mxu1  ;;  %5561 = vmatprep.mubr.bf16.mxu0 %v11938_v35 }
 0x5f3   : > { %v7473_v39 = vmax.f32 %v7472_v38, %v5028_v55  ;;  %v5315_v51 = vpop.f32.mrf.mxu0 }
 0x5f4   : > { %v7690_v28 = vmax.f32 %v7689_v56, %v5315_v51  ;;  %v5032_v44 = vpop.f32.mrf.mxu1  ;;  %6123 = vmatmul.mubr.bf16.gmra.mxu1 %v12001_v7 }
 0x5f5   : > { %v7312_v54 = vmax.f32 %v7311_v43, %v5032_v44  ;;  %v5317_v53 = vpop.f32.mrf.mxu0  ;;  %6132 = vmatprep.mubr.bf16.mxu1 %v11938_v35 }
 0x5f6   : > { %v7529_v33 = vmax.f32 %v7528_v57, %v5317_v53  ;;  %v5034_v16 = vpop.f32.mrf.mxu1 }
 0x5f7   : > { %v7474_v31 = vmax.f32 %v7473_v39, %v5034_v16  ;;  %v5319_v25 = vpop.f32.mrf.mxu0 }
 0x5f8   : > { %v7691_v45 = vmax.f32 %v7690_v28, %v5319_v25  ;;  %v5036_v2 = vpop.f32.mrf.mxu1 }
 0x5f9   : > { %v7313_v10 = vmax.f32 %v7312_v54, %v5036_v2  ;;  %v5323_v27 = vpop.f32.mrf.mxu0  ;;  %5562 = vmatmul.mubr.bf16.gmra.mxu0 %v10653_v48 }
 0x5fa   : > { %v7530_v26 = vmax.f32 %v7529_v33, %v5323_v27  ;;  %v5038_v59 = vpop.f32.mrf.mxu1  ;;  %5571 = vmatprep.mubr.bf16.mxu0 %v11938_v35 }
 0x5fb   : > { %v7475_v38 = vmax.f32 %v7474_v31, %v5038_v59  ;;  %v5325_v7 = vpop.f32.mrf.mxu0 }
 0x5fc   : > { %v7692_v4 = vmax.f32 %v7691_v45, %v5325_v7  ;;  %v5042_v56 = vpop.f32.mrf.mxu1  ;;  %6133 = vmatmul.mubr.bf16.gmra.mxu1 %v12002_v32 }
 0x5fd   : > { %v7314_v29 = vmax.f32 %v7313_v10, %v5042_v56  ;;  %v5327_v43 = vpop.f32.mrf.mxu0  ;;  %6142 = vmatprep.mubr.bf16.mxu1 %v11938_v35 }
 0x5fe   : > { %v7531_v0 = vmax.f32 %v7530_v26, %v5327_v43  ;;  %v5044_v57 = vpop.f32.mrf.mxu1 }
 0x5ff   : > { %v7476_v55 = vmax.f32 %v7475_v38, %v5044_v57  ;;  %v5329_v39 = vpop.f32.mrf.mxu0 }
 0x600   : > { %v7693_v51 = vmax.f32 %v7692_v4, %v5329_v39  ;;  %v5046_v28 = vpop.f32.mrf.mxu1 }
 0x601   : > { %v7315_v44 = vmax.f32 %v7314_v29, %v5046_v28  ;;  %v5333_v54 = vpop.f32.mrf.mxu0  ;;  %5572 = vmatmul.mubr.bf16.gmra.mxu0 %v10664_v30  ;;  %v12025_v29 = vld [vmem:[#allocation29_spill] sm:$0xff] }
 0x602   : > { %v7532_v53 = vmax.f32 %v7531_v0, %v5333_v54  ;;  %v5048_v33 = vpop.f32.mrf.mxu1  ;;  %5581 = vmatprep.mubr.bf16.mxu0 %v11938_v35 }
 0x603   : > { %v7477_v16 = vmax.f32 %v7476_v55, %v5048_v33  ;;  %v5335_v32 = vpop.f32.mrf.mxu0 }
 0x604   : > { %v7694_v31 = vmax.f32 %v7693_v51, %v5335_v32  ;;  %v5052_v25 = vpop.f32.mrf.mxu1  ;;  %6143 = vmatmul.mubr.bf16.gmra.mxu1 %v12003_v49 }
 0x605   : > { %v7316_v45 = vmax.f32 %v7315_v44, %v5052_v25  ;;  %v5337_v2 = vpop.f32.mrf.mxu0  ;;  %6152 = vmatprep.mubr.bf16.mxu1 %v11938_v35 }
 0x606   : > { %v7533_v10 = vmax.f32 %v7532_v53, %v5337_v2  ;;  %v5054_v27 = vpop.f32.mrf.mxu1 }
 0x607   : > { %v7478_v26 = vmax.f32 %v7477_v16, %v5054_v27  ;;  %v5339_v59 = vpop.f32.mrf.mxu0 }
 0x608   : > { %v7695_v38 = vmax.f32 %v7694_v31, %v5339_v59  ;;  %v5056_v7 = vpop.f32.mrf.mxu1 }
 0x609   : > { %v7317_v4 = vmax.f32 %v7316_v45, %v5056_v7  ;;  %v5343_v56 = vpop.f32.mrf.mxu0  ;;  %5582 = vmatmul.mubr.bf16.gmra.mxu0 %v12025_v29  ;;  %v12026_v45 = vld [vmem:[#allocation30_spill] sm:$0xff] }
 0x60a   : > { %v7534_v43 = vmax.f32 %v7533_v10, %v5343_v56  ;;  %v5058_v0 = vpop.f32.mrf.mxu1  ;;  %5591 = vmatprep.mubr.bf16.mxu0 %v11938_v35 }
 0x60b   : > { %v7479_v57 = vmax.f32 %v7478_v26, %v5058_v0  ;;  %v5345_v49 = vpop.f32.mrf.mxu0 }
 0x60c   : > { %v7696_v55 = vmax.f32 %v7695_v38, %v5345_v49  ;;  %v5062_v39 = vpop.f32.mrf.mxu1  ;;  %6153 = vmatmul.mubr.bf16.gmra.mxu1 %v12004_v34 }
 0x60d   : > { %v7318_v51 = vmax.f32 %v7317_v4, %v5062_v39  ;;  %v5347_v28 = vpop.f32.mrf.mxu0  ;;  %6162 = vmatprep.mubr.bf16.mxu1 %v11938_v35 }
 0x60e   : > { %v7535_v44 = vmax.f32 %v7534_v43, %v5347_v28  ;;  %v5064_v54 = vpop.f32.mrf.mxu1 }
 0x60f   : > { %v7480_v53 = vmax.f32 %v7479_v57, %v5064_v54  ;;  %v5349_v33 = vpop.f32.mrf.mxu0 }
 0x610   : > { %v7697_v16 = vmax.f32 %v7696_v55, %v5349_v33  ;;  %v5066_v32 = vpop.f32.mrf.mxu1 }
 0x611   : > { %v7319_v31 = vmax.f32 %v7318_v51, %v5066_v32  ;;  %v5353_v25 = vpop.f32.mrf.mxu0  ;;  %5592 = vmatmul.mubr.bf16.gmra.mxu0 %v12026_v45 }
 0x612   : > { %v7536_v2 = vmax.f32 %v7535_v44, %v5353_v25  ;;  %v5068_v10 = vpop.f32.mrf.mxu1  ;;  %5601 = vmatprep.mubr.bf16.mxu0 %v11938_v35 }
 0x613   : > { %v7481_v27 = vmax.f32 %v7480_v53, %v5068_v10  ;;  %v5355_v34 = vpop.f32.mrf.mxu0 }
 0x614   : > { %v7698_v26 = vmax.f32 %v7697_v16, %v5355_v34  ;;  %v5072_v59 = vpop.f32.mrf.mxu1  ;;  %6163 = vmatmul.mubr.bf16.gmra.mxu1 %v12005_v21 }
 0x615   : > { %v7320_v38 = vmax.f32 %v7319_v31, %v5072_v59  ;;  %v5357_v7 = vpop.f32.mrf.mxu0  ;;  %6172 = vmatprep.mubr.bf16.mxu1 %v11938_v35 }
 0x616   : > { %v7537_v4 = vmax.f32 %v7536_v2, %v5357_v7  ;;  %v5074_v56 = vpop.f32.mrf.mxu1 }
 0x617   : > { %v7482_v43 = vmax.f32 %v7481_v27, %v5074_v56  ;;  %v5359_v0 = vpop.f32.mrf.mxu0 }
 0x618   : > { %v7699_v57 = vmax.f32 %v7698_v26, %v5359_v0  ;;  %v5076_v49 = vpop.f32.mrf.mxu1 }
 0x619   : > { %v7321_v55 = vmax.f32 %v7320_v38, %v5076_v49  ;;  %v5363_v39 = vpop.f32.mrf.mxu0  ;;  %5602 = vmatmul.mubr.bf16.gmra.mxu0 %v10697_v20 }
 0x61a   : > { %v7538_v51 = vmax.f32 %v7537_v4, %v5363_v39  ;;  %v5078_v28 = vpop.f32.mrf.mxu1  ;;  %5611 = vmatprep.mubr.bf16.mxu0 %v11938_v35 }
 0x61b   : > { %v7483_v44 = vmax.f32 %v7482_v43, %v5078_v28  ;;  %v5365_v21 = vpop.f32.mrf.mxu0 }
 0x61c   : > { %v7700_v54 = vmax.f32 %v7699_v57, %v5365_v21  ;;  %v5082_v53 = vpop.f32.mrf.mxu1  ;;  %6173 = vmatmul.mubr.bf16.gmra.mxu1 %v12006_v47 }
 0x61d   : > { %v7322_v33 = vmax.f32 %v7321_v55, %v5082_v53  ;;  %v5367_v16 = vpop.f32.mrf.mxu0  ;;  %6182 = vmatprep.mubr.bf16.mxu1 %v11938_v35 }
 0x61e   : > { %v7539_v32 = vmax.f32 %v7538_v51, %v5367_v16  ;;  %v5084_v31 = vpop.f32.mrf.mxu1 }
 0x61f   : > { %v7484_v25 = vmax.f32 %v7483_v44, %v5084_v31  ;;  %v5369_v2 = vpop.f32.mrf.mxu0 }
 0x620   : > { %v7701_v10 = vmax.f32 %v7700_v54, %v5369_v2  ;;  %v5086_v27 = vpop.f32.mrf.mxu1 }
 0x621   : > { %v7323_v34 = vmax.f32 %v7322_v33, %v5086_v27  ;;  %v5373_v26 = vpop.f32.mrf.mxu0  ;;  %5612 = vmatmul.mubr.bf16.gmra.mxu0 %v10708_v5 }
 0x622   : > { %v7540_v59 = vmax.f32 %v7539_v32, %v5373_v26  ;;  %v5088_v38 = vpop.f32.mrf.mxu1  ;;  %5621 = vmatprep.mubr.bf16.mxu0 %v11938_v35 }
 0x623   : > { %v7485_v7 = vmax.f32 %v7484_v25, %v5088_v38  ;;  %v5375_v47 = vpop.f32.mrf.mxu0 }
 0x624   : > { %v7702_v4 = vmax.f32 %v7701_v10, %v5375_v47  ;;  %v5092_v56 = vpop.f32.mrf.mxu1  ;;  %6183 = vmatmul.mubr.bf16.gmra.mxu1 %v12007_v62 }
 0x625   : > { %v7324_v43 = vmax.f32 %v7323_v34, %v5092_v56  ;;  %v5377_v0 = vpop.f32.mrf.mxu0  ;;  %6192 = vmatprep.mubr.bf16.mxu1 %v11938_v35 }
 0x626   : > { %v7541_v57 = vmax.f32 %v7540_v59, %v5377_v0  ;;  %v5094_v49 = vpop.f32.mrf.mxu1 }
 0x627   : > { %v7486_v55 = vmax.f32 %v7485_v7, %v5094_v49  ;;  %v5379_v39 = vpop.f32.mrf.mxu0 }
 0x628   : > { %v7703_v51 = vmax.f32 %v7702_v4, %v5379_v39  ;;  %v5096_v28 = vpop.f32.mrf.mxu1 }
 0x629   : > { %v7325_v44 = vmax.f32 %v7324_v43, %v5096_v28  ;;  %v5383_v21 = vpop.f32.mrf.mxu0  ;;  %5622 = vmatmul.mubr.bf16.gmra.mxu0 %v10719_v52 }
 0x62a   : > { %v7542_v54 = vmax.f32 %v7541_v57, %v5383_v21  ;;  %v5098_v53 = vpop.f32.mrf.mxu1  ;;  %5631 = vmatprep.mubr.bf16.mxu0 %v11938_v35 }
 0x62b   : > { %v7487_v33 = vmax.f32 %v7486_v55, %v5098_v53  ;;  %v5385_v62 = vpop.f32.mrf.mxu0 }
 0x62c   : > { %v7704_v16 = vmax.f32 %v7703_v51, %v5385_v62  ;;  %v5102_v32 = vpop.f32.mrf.mxu1  ;;  %6193 = vmatmul.mubr.bf16.gmra.mxu1 %v12008_v42 }
 0x62d   : > { %v7326_v31 = vmax.f32 %v7325_v44, %v5102_v32  ;;  %v5387_v25 = vpop.f32.mrf.mxu0  ;;  %6202 = vmatprep.mubr.bf16.mxu1 %v11938_v35 }
 0x62e   : > { %v7543_v2 = vmax.f32 %v7542_v54, %v5387_v25  ;;  %v5104_v10 = vpop.f32.mrf.mxu1 }
 0x62f   : > { %v7488_v27 = vmax.f32 %v7487_v33, %v5104_v10  ;;  %v5389_v34 = vpop.f32.mrf.mxu0 }
 0x630   : > { %v7705_v26 = vmax.f32 %v7704_v16, %v5389_v34  ;;  %v5106_v59 = vpop.f32.mrf.mxu1 }
 0x631   : > { %v7327_v38 = vmax.f32 %v7326_v31, %v5106_v59  ;;  %v5393_v7 = vpop.f32.mrf.mxu0  ;;  %5632 = vmatmul.mubr.bf16.gmra.mxu0 %v10730_v37 }
 0x632   : > { %v7544_v47 = vmax.f32 %v7543_v2, %v5393_v7  ;;  %v5108_v4 = vpop.f32.mrf.mxu1  ;;  %5641 = vmatprep.mubr.bf16.mxu0 %v11938_v35 }
 0x633   : > { %v7489_v56 = vmax.f32 %v7488_v27, %v5108_v4  ;;  %v5395_v42 = vpop.f32.mrf.mxu0 }
 0x634   : > { %v7706_v43 = vmax.f32 %v7705_v26, %v5395_v42  ;;  %v5112_v0 = vpop.f32.mrf.mxu1  ;;  %6203 = vmatmul.mubr.bf16.gmra.mxu1 %v12009_v60 }
 0x635   : > { %v7328_v57 = vmax.f32 %v7327_v38, %v5112_v0  ;;  %v5397_v49 = vpop.f32.mrf.mxu0  ;;  %6212 = vmatprep.mubr.bf16.mxu1 %v11938_v35 }
 0x636   : > { %v7545_v55 = vmax.f32 %v7544_v47, %v5397_v49  ;;  %v5114_v39 = vpop.f32.mrf.mxu1 }
 0x637   : > { %v7490_v51 = vmax.f32 %v7489_v56, %v5114_v39  ;;  %v5399_v28 = vpop.f32.mrf.mxu0 }
 0x638   : > { %v7707_v44 = vmax.f32 %v7706_v43, %v5399_v28  ;;  %v5116_v21 = vpop.f32.mrf.mxu1 }
 0x639   : > { %v7329_v54 = vmax.f32 %v7328_v57, %v5116_v21  ;;  %v5403_v53 = vpop.f32.mrf.mxu0  ;;  %5642 = vmatmul.mubr.bf16.gmra.mxu0 %v10741_v19 }
 0x63a   : > { %v7546_v33 = vmax.f32 %v7545_v55, %v5403_v53  ;;  %v5118_v62 = vpop.f32.mrf.mxu1  ;;  %5651 = vmatprep.mubr.bf16.mxu0 %v11938_v35 }
 0x63b   : > { %v7491_v16 = vmax.f32 %v7490_v51, %v5118_v62  ;;  %v5405_v60 = vpop.f32.mrf.mxu0 }
 0x63c   : > { %v7708_v32 = vmax.f32 %v7707_v44, %v5405_v60  ;;  %v5122_v31 = vpop.f32.mrf.mxu1  ;;  %6213 = vmatmul.mubr.bf16.gmra.mxu1 %v12010_v3 }
 0x63d   : > { %v7330_v25 = vmax.f32 %v7329_v54, %v5122_v31  ;;  %v5407_v2 = vpop.f32.mrf.mxu0  ;;  %6222 = vmatprep.mubr.bf16.mxu1 %v11938_v35 }
 0x63e   : > { %v7547_v10 = vmax.f32 %v7546_v33, %v5407_v2  ;;  %v5124_v27 = vpop.f32.mrf.mxu1 }
 0x63f   : > { %v7492_v34 = vmax.f32 %v7491_v16, %v5124_v27  ;;  %v5409_v26 = vpop.f32.mrf.mxu0 }
 0x640   : > { %v7709_v59 = vmax.f32 %v7708_v32, %v5409_v26  ;;  %v5126_v38 = vpop.f32.mrf.mxu1 }
 0x641   : > { %v7331_v7 = vmax.f32 %v7330_v25, %v5126_v38  ;;  %v5413_v47 = vpop.f32.mrf.mxu0  ;;  %5652 = vmatmul.mubr.bf16.gmra.mxu0 %v10772_v40 }
 0x642   : > { %v7548_v4 = vmax.f32 %v7547_v10, %v5413_v47  ;;  %v5128_v56 = vpop.f32.mrf.mxu1  ;;  %5661 = vmatprep.mubr.bf16.mxu0 %v11938_v35 }
 0x643   : > { %v7493_v42 = vmax.f32 %v7492_v34, %v5128_v56  ;;  %v5415_v3 = vpop.f32.mrf.mxu0 }
 0x644   : > { %v7710_v43 = vmax.f32 %v7709_v59, %v5415_v3  ;;  %v5132_v0 = vpop.f32.mrf.mxu1  ;;  %6223 = vmatmul.mubr.bf16.gmra.mxu1 %v12011_v14 }
 0x645   : > { %v7332_v57 = vmax.f32 %v7331_v7, %v5132_v0  ;;  %v5417_v49 = vpop.f32.mrf.mxu0  ;;  %6232 = vmatprep.mubr.bf16.mxu1 %v11938_v35 }
 0x646   : > { %v7549_v55 = vmax.f32 %v7548_v4, %v5417_v49  ;;  %v5134_v39 = vpop.f32.mrf.mxu1 }
 0x647   : > { %v7494_v51 = vmax.f32 %v7493_v42, %v5134_v39  ;;  %v5419_v28 = vpop.f32.mrf.mxu0 }
 0x648   : > { %v7711_v44 = vmax.f32 %v7710_v43, %v5419_v28  ;;  %v5136_v21 = vpop.f32.mrf.mxu1 }
 0x649   : > { %v7333_v54 = vmax.f32 %v7332_v57, %v5136_v21  ;;  %v5423_v53 = vpop.f32.mrf.mxu0  ;;  %5662 = vmatmul.mubr.bf16.gmra.mxu0 %v10783_v41 }
 0x64a   : > { %v7550_v33 = vmax.f32 %v7549_v55, %v5423_v53  ;;  %v5138_v62 = vpop.f32.mrf.mxu1  ;;  %5671 = vmatprep.mubr.bf16.mxu0 %v11938_v35 }
 0x64b   : > { %v7495_v16 = vmax.f32 %v7494_v51, %v5138_v62  ;;  %v5425_v14 = vpop.f32.mrf.mxu0 }
 0x64c   : > { %v7712_v60 = vmax.f32 %v7711_v44, %v5425_v14  ;;  %v5142_v32 = vpop.f32.mrf.mxu1  ;;  %6233 = vmatmul.mubr.bf16.gmra.mxu1 %v12012_v6 }
 0x64d   : > { %v7334_v31 = vmax.f32 %v7333_v54, %v5142_v32  ;;  %v5427_v25 = vpop.f32.mrf.mxu0  ;;  %6242 = vmatprep.mubr.bf16.mxu1 %v11938_v35 }
 0x64e   : > { %v7551_v2 = vmax.f32 %v7550_v33, %v5427_v25  ;;  %v5144_v10 = vpop.f32.mrf.mxu1 }
 0x64f   : > { %v7496_v27 = vmax.f32 %v7495_v16, %v5144_v10  ;;  %v5429_v34 = vpop.f32.mrf.mxu0 }
 0x650   : > { %v7713_v26 = vmax.f32 %v7712_v60, %v5429_v34  ;;  %v5146_v59 = vpop.f32.mrf.mxu1 }
 0x651   : > { %v7335_v38 = vmax.f32 %v7334_v31, %v5146_v59  ;;  %v5433_v7 = vpop.f32.mrf.mxu0  ;;  %5672 = vmatmul.mubr.bf16.gmra.mxu0 %v11966_v9 }
 0x652   : > { %v7552_v47 = vmax.f32 %v7551_v2, %v5433_v7  ;;  %v5148_v4 = vpop.f32.mrf.mxu1  ;;  %5681 = vmatprep.mubr.bf16.mxu0 %v11938_v35 }
 0x653   : > { %v7497_v56 = vmax.f32 %v7496_v27, %v5148_v4  ;;  %v5435_v6 = vpop.f32.mrf.mxu0 }
 0x654   : > { %v7714_v42 = vmax.f32 %v7713_v26, %v5435_v6  ;;  %v5152_v3 = vpop.f32.mrf.mxu1  ;;  %6243 = vmatmul.mubr.bf16.gmra.mxu1 %v12013_v46 }
 0x655   : > { %v7336_v43 = vmax.f32 %v7335_v38, %v5152_v3  ;;  %v5437_v0 = vpop.f32.mrf.mxu0  ;;  %6252 = vmatprep.mubr.bf16.mxu1 %v11938_v35 }
 0x656   : > { %v7553_v57 = vmax.f32 %v7552_v47, %v5437_v0  ;;  %v5154_v49 = vpop.f32.mrf.mxu1 }
 0x657   : > { %v7498_v55 = vmax.f32 %v7497_v56, %v5154_v49  ;;  %v5439_v39 = vpop.f32.mrf.mxu0 }
 0x658   : > { %v7715_v51 = vmax.f32 %v7714_v42, %v5439_v39  ;;  %v5156_v28 = vpop.f32.mrf.mxu1 }
 0x659   : > { %v7337_v44 = vmax.f32 %v7336_v43, %v5156_v28  ;;  %v5443_v21 = vpop.f32.mrf.mxu0  ;;  %5682 = vmatmul.mubr.bf16.gmra.mxu0 %v11968_v63 }
 0x65a   : > { %v7554_v54 = vmax.f32 %v7553_v57, %v5443_v21  ;;  %v5158_v53 = vpop.f32.mrf.mxu1  ;;  %5691 = vmatprep.mubr.bf16.mxu0 %v11938_v35 }
 0x65b   : > { %v7499_v33 = vmax.f32 %v7498_v55, %v5158_v53  ;;  %v5445_v46 = vpop.f32.mrf.mxu0 }
 0x65c   : > { %v7716_v62 = vmax.f32 %v7715_v51, %v5445_v46  ;;  %v5162_v16 = vpop.f32.mrf.mxu1  ;;  %6253 = vmatmul.mubr.bf16.gmra.mxu1 %v12014_v12 }
 0x65d   : > { %v7338_v14 = vmax.f32 %v7337_v44, %v5162_v16  ;;  %v5447_v60 = vpop.f32.mrf.mxu0  ;;  %6262 = vmatprep.mubr.bf16.mxu1 %v11938_v35 }
 0x65e   : > { %v7555_v32 = vmax.f32 %v7554_v54, %v5447_v60  ;;  %v5164_v31 = vpop.f32.mrf.mxu1 }
 0x65f   : > { %v7500_v25 = vmax.f32 %v7499_v33, %v5164_v31  ;;  %v5449_v2 = vpop.f32.mrf.mxu0 }
 0x660   : > { %v7717_v10 = vmax.f32 %v7716_v62, %v5449_v2  ;;  %v5166_v27 = vpop.f32.mrf.mxu1  ;;  %v12027_v2 = vld [vmem:[#allocation35_spill] sm:$0xff] }
 0x661   : > { %v7339_v34 = vmax.f32 %v7338_v14, %v5166_v27  ;;  %v5453_v26 = vpop.f32.mrf.mxu0  ;;  %5692 = vmatmul.mubr.bf16.gmra.mxu0 %v11970_v24 }
 0x662   : > { %v7556_v59 = vmax.f32 %v7555_v32, %v5453_v26  ;;  %v5168_v38 = vpop.f32.mrf.mxu1  ;;  %5701 = vmatprep.mubr.bf16.mxu0 %v11938_v35 }
 0x663   : > { %v7501_v7 = vmax.f32 %v7500_v25, %v5168_v38  ;;  %v5455_v12 = vpop.f32.mrf.mxu0 }
 0x664   : > { %v7718_v47 = vmax.f32 %v7717_v10, %v5455_v12  ;;  %v5172_v4 = vpop.f32.mrf.mxu1  ;;  %6263 = vmatmul.mubr.bf16.gmra.mxu1 %v12015_v58 }
 0x665   : > { %v7340_v56 = vmax.f32 %v7339_v34, %v5172_v4  ;;  %v5457_v6 = vpop.f32.mrf.mxu0  ;;  %6272 = vmatprep.mubr.bf16.mxu1 %v11938_v35 }
 0x666   : > { %v7557_v42 = vmax.f32 %v7556_v59, %v5457_v6  ;;  %v5174_v3 = vpop.f32.mrf.mxu1 }
 0x667   : > { %v7502_v43 = vmax.f32 %v7501_v7, %v5174_v3  ;;  %v5459_v0 = vpop.f32.mrf.mxu0 }
 0x668   : > { %v7719_v57 = vmax.f32 %v7718_v47, %v5459_v0  ;;  %v5176_v49 = vpop.f32.mrf.mxu1  ;;  %v12028_v0 = vld [vmem:[#allocation36_spill] sm:$0xff] }
 0x669   : > { %v7341_v55 = vmax.f32 %v7340_v56, %v5176_v49  ;;  %v5463_v39 = vpop.f32.mrf.mxu0  ;;  %5702 = vmatmul.mubr.bf16.gmra.mxu0 %v11972_v8 }
 0x66a   : > { %v7558_v51 = vmax.f32 %v7557_v42, %v5463_v39  ;;  %v5178_v28 = vpop.f32.mrf.mxu1  ;;  %5711 = vmatprep.mubr.bf16.mxu0 %v11938_v35 }
 0x66b   : > { %v7503_v44 = vmax.f32 %v7502_v43, %v5178_v28  ;;  %v5465_v58 = vpop.f32.mrf.mxu0 }
 0x66c   : > { %v7720_v21 = vmax.f32 %v7719_v57, %v5465_v58  ;;  %v5182_v54 = vpop.f32.mrf.mxu1  ;;  %6273 = vmatmul.mubr.bf16.gmra.mxu1 %v12016_v11 }
 0x66d   : > { %v7342_v53 = vmax.f32 %v7341_v55, %v5182_v54  ;;  %v5467_v33 = vpop.f32.mrf.mxu0  ;;  %6282 = vmatprep.mubr.bf16.mxu1 %v11938_v35 }
 0x66e   : > { %v7559_v46 = vmax.f32 %v7558_v51, %v5467_v33  ;;  %v5184_v62 = vpop.f32.mrf.mxu1 }
 0x66f   : > { %v7504_v16 = vmax.f32 %v7503_v44, %v5184_v62  ;;  %v5469_v14 = vpop.f32.mrf.mxu0 }
 0x670   : > { %v7721_v60 = vmax.f32 %v7720_v21, %v5469_v14  ;;  %v5186_v32 = vpop.f32.mrf.mxu1  ;;  %v12029_v14 = vld [vmem:[#allocation37_spill] sm:$0xff] }
 0x671   : > { %v7343_v31 = vmax.f32 %v7342_v53, %v5186_v32  ;;  %v5473_v25 = vpop.f32.mrf.mxu0  ;;  %5712 = vmatmul.mubr.bf16.gmra.mxu0 %v12027_v2 }
 0x672   : > { %v7560_v10 = vmax.f32 %v7559_v46, %v5473_v25  ;;  %v5188_v27 = vpop.f32.mrf.mxu1  ;;  %5721 = vmatprep.mubr.bf16.mxu0 %v11938_v35 }
 0x673   : > { %v7505_v34 = vmax.f32 %v7504_v16, %v5188_v27  ;;  %v5475_v11 = vpop.f32.mrf.mxu0 }
 0x674   : > { %v7722_v26 = vmax.f32 %v7721_v60, %v5475_v11  ;;  %v5192_v59 = vpop.f32.mrf.mxu1  ;;  %6283 = vmatmul.mubr.bf16.gmra.mxu1 %v12017_v18 }
 0x675   : > { %v7344_v38 = vmax.f32 %v7343_v31, %v5192_v59  ;;  %v5477_v7 = vpop.f32.mrf.mxu0  ;;  %6292 = vmatprep.mubr.bf16.mxu1 %v11938_v35 }
 0x676   : > { %v7561_v12 = vmax.f32 %v7560_v10, %v5477_v7  ;;  %v5194_v47 = vpop.f32.mrf.mxu1 }
 0x677   : > { %v7506_v4 = vmax.f32 %v7505_v34, %v5194_v47  ;;  %v5479_v56 = vpop.f32.mrf.mxu0 }
 0x678   : > { %v7723_v6 = vmax.f32 %v7722_v26, %v5479_v56  ;;  %v5196_v42 = vpop.f32.mrf.mxu1  ;;  %v12030_v56 = vld [vmem:[#allocation38_spill] sm:$0xff] }
 0x679   : > { %v7345_v3 = vmax.f32 %v7344_v38, %v5196_v42  ;;  %v5483_v43 = vpop.f32.mrf.mxu0  ;;  %5722 = vmatmul.mubr.bf16.gmra.mxu0 %v12028_v0 }
 0x67a   : > { %v7562_v57 = vmax.f32 %v7561_v12, %v5483_v43  ;;  %v5198_v49 = vpop.f32.mrf.mxu1  ;;  %5731 = vmatprep.mubr.bf16.mxu0 %v11938_v35 }
 0x67b   : > { %v7507_v55 = vmax.f32 %v7506_v4, %v5198_v49  ;;  %v5485_v18 = vpop.f32.mrf.mxu0  ;;  %v12031_v49 = vld [vmem:[#allocation25_spill] sm:$0xff] }
 0x67c   : > { %v7724_v39 = vmax.f32 %v7723_v6, %v5485_v18  ;;  %v5202_v51 = vpop.f32.mrf.mxu1  ;;  %6293 = vmatmul.mubr.bf16.gmra.mxu1 %v12018_v15 }
 0x67d   : > { %v7346_v28 = vmax.f32 %v7345_v3, %v5202_v51  ;;  %v5487_v44 = vpop.f32.mrf.mxu0  ;;  %6302 = vmatprep.mubr.bf16.mxu1 %v11938_v35 }
 0x67e   : > { %v7563_v58 = vmax.f32 %v7562_v57, %v5487_v44  ;;  %v5204_v21 = vpop.f32.mrf.mxu1 }
 0x67f   : > { %v7508_v54 = vmax.f32 %v7507_v55, %v5204_v21  ;;  %v5489_v53 = vpop.f32.mrf.mxu0 }
 0x680   : > { %v7725_v33 = vmax.f32 %v7724_v39, %v5489_v53  ;;  %v5206_v46 = vpop.f32.mrf.mxu1 }
 0x681   : > { %v7347_v62 = vmax.f32 %v7346_v28, %v5206_v46  ;;  %v5493_v16 = vpop.f32.mrf.mxu0  ;;  %5732 = vmatmul.mubr.bf16.gmra.mxu0 %v12029_v14 }
 0x682   : > { %v7564_v60 = vmax.f32 %v7563_v58, %v5493_v16  ;;  %v5208_v32 = vpop.f32.mrf.mxu1  ;;  %5741 = vmatprep.mubr.bf16.mxu0 %v11938_v35 }
 0x683   : > { %v7509_v31 = vmax.f32 %v7508_v54, %v5208_v32  ;;  %v5495_v15 = vpop.f32.mrf.mxu0 }
 0x684   : > { %v7726_v25 = vmax.f32 %v7725_v33, %v5495_v15  ;;  %v5212_v10 = vpop.f32.mrf.mxu1  ;;  %6303 = vmatmul.mubr.bf16.gmra.mxu1 %v12019_v1 }
 0x685   : > { %v7348_v27 = vmax.f32 %v7347_v62, %v5212_v10  ;;  %v5497_v34 = vpop.f32.mrf.mxu0  ;;  %6312 = vmatprep.mubr.bf16.mxu1 %v11938_v35  ;;  %v12032_v62 = vld [vmem:[#allocation39_spill] sm:$0xff] }
 0x686   : > { %v7565_v11 = vmax.f32 %v7564_v60, %v5497_v34  ;;  %v5214_v26 = vpop.f32.mrf.mxu1 }
 0x687   : > { %v7510_v59 = vmax.f32 %v7509_v31, %v5214_v26  ;;  %v5499_v38 = vpop.f32.mrf.mxu0 }
 0x688   : > { %v7727_v7 = vmax.f32 %v7726_v25, %v5499_v38  ;;  %v5216_v12 = vpop.f32.mrf.mxu1 }
 0x689   : > { %v7349_v47 = vmax.f32 %v7348_v27, %v5216_v12  ;;  %v5503_v4 = vpop.f32.mrf.mxu0  ;;  %5742 = vmatmul.mubr.bf16.gmra.mxu0 %v12030_v56 }
 0x68a   : > { %v7566_v6 = vmax.f32 %v7565_v11, %v5503_v4  ;;  %v5218_v42 = vpop.f32.mrf.mxu1  ;;  %5751 = vmatprep.mubr.bf16.mxu0 %v11938_v35 }
 0x68b   : > { %v7511_v3 = vmax.f32 %v7510_v59, %v5218_v42  ;;  %v5505_v1 = vpop.f32.mrf.mxu0 }
 0x68c   : > { %v7728_v43 = vmax.f32 %v7727_v7, %v5505_v1  ;;  %v5222_v57 = vpop.f32.mrf.mxu1  ;;  %6313 = vmatmul.mubr.bf16.gmra.mxu1 %v12031_v49 }
 0x68d   : > { %v7350_v55 = vmax.f32 %v7349_v47, %v5222_v57  ;;  %v5507_v18 = vpop.f32.mrf.mxu0  ;;  %6322 = vmatprep.mubr.bf16.mxu1 %v11938_v35 }
 0x68e   : > { %v7567_v39 = vmax.f32 %v7566_v6, %v5507_v18  ;;  %v5224_v51 = vpop.f32.mrf.mxu1 }
 0x68f   : > { %v7351_v28 = vrot.slane %v7350_v55, 4  ;;  %v7512_v44 = vmax.f32 %v7511_v3, %v5224_v51  ;;  %v5509_v58 = vpop.f32.mrf.mxu0 }
 0x690   : > { %v7729_v21 = vmax.f32 %v7728_v43, %v5509_v58  ;;  %v5226_v54 = vpop.f32.mrf.mxu1  ;;  %v12033_v43 = vld [vmem:[#allocation40_spill] sm:$0xff] }
 0x691   : > { %v7352_v53 = vmax.f32 %v7350_v55, %v7351_v28  ;;  %v7513_v33 = vrot.slane %v7512_v44, 4  ;;  %v5513_v46 = vpop.f32.mrf.mxu0  ;;  %5752 = vmatmul.mubr.bf16.gmra.mxu0 %v12032_v62 }
 0x692   : > { %v7568_v16 = vmax.f32 %v7567_v39, %v5513_v46  ;;  %v5227_v60 = vpop.f32.mrf.mxu1  ;;  %5761 = vmatprep.mubr.bf16.mxu0 %v11938_v35 }
 0x693   : > { %v7353_v32 = vrot.slane %v7352_v53, 2  ;;  %v7514_v31 = vmax.f32 %v7512_v44, %v7513_v33  ;;  %v5515_v15 = vpop.f32.mrf.mxu0 }
 0x694   : > { %v7730_v25 = vmax.f32 %v7729_v21, %v5515_v15  ;;  %v6084_v10 = vpop.f32.mrf.mxu1  ;;  %6323 = vmatmul.mubr.bf16.gmra.mxu1 %v12021_v22 }
 0x695   : > { %v7354_v27 = vmax.f32 %v7352_v53, %v7353_v32  ;;  %v7515_v34 = vrot.slane %v7514_v31, 2  ;;  %v5517_v11 = vpop.f32.mrf.mxu0  ;;  %6332 = vmatprep.mubr.bf16.mxu1 %v11938_v35  ;;  %v12034_v32 = vld [vmem:[#allocation41_spill] sm:$0xff] }
 0x696   : > { %v7569_v26 = vmax.f32 %v7568_v16, %v5517_v11  ;;  %v6086_v59 = vpop.f32.mrf.mxu1 }
 0x697   : > { %v7355_v38 = vrot.slane %v7354_v27, 1  ;;  %v7516_v7 = vmax.f32 %v7514_v31, %v7515_v34  ;;  %v5519_v12 = vpop.f32.mrf.mxu0 }
 0x698   : > { %v7731_v47 = vmax.f32 %v7730_v25, %v5519_v12  ;;  %v6088_v4 = vpop.f32.mrf.mxu1 }
 0x699   : > { %v11553_v6 = vmax.f32 %v7354_v27, %v7355_v38  ;;  %v7517_v42 = vrot.slane %v7516_v7, 1  ;;  %v7843_v3 = vmax.f32 %v6084_v10, %v6088_v4  ;;  %v5523_v1 = vpop.f32.mrf.mxu0  ;;  %5762 = vmatmul.mubr.bf16.gmra.mxu0 %v12033_v43 }
 0x69a   : > { %v7570_v22 = vmax.f32 %v7569_v26, %v5523_v1  ;;  %v6090_v57 = vpop.f32.mrf.mxu1  ;;  %5771 = vmatprep.mubr.bf16.mxu0 %v11938_v35 }
 0x69b   : > { %v11557_v49 = vmax.f32 %v7516_v7, %v7517_v42  ;;  %v8005_v55 = vmax.f32 %v6086_v59, %v6090_v57  ;;  %v5525_v18 = vpop.f32.mrf.mxu0 }
 0x69c   : > { %v7732_v39 = vmax.f32 %v7731_v47, %v5525_v18  ;;  %v6094_v51 = vpop.f32.mrf.mxu1  ;;  %6333 = vmatmul.mubr.bf16.gmra.mxu1 %v12023_v50 }
 0x69d   : > { %v7844_v28 = vmax.f32 %v7843_v3, %v6094_v51  ;;  %v5527_v44 = vpop.f32.mrf.mxu0  ;;  %6342 = vmatprep.mubr.bf16.mxu1 %v11938_v35  ;;  %v12035_v3 = vld [vmem:[#allocation42_spill] sm:$0xff] }
 0x69e   : > { %v7571_v58 = vmax.f32 %v7570_v22, %v5527_v44  ;;  %v6096_v21 = vpop.f32.mrf.mxu1 }
 0x69f   : > { %v8006_v54 = vmax.f32 %v8005_v55, %v6096_v21  ;;  %v5529_v53 = vpop.f32.mrf.mxu0 }
 0x6a0   : > { %v7733_v33 = vmax.f32 %v7732_v39, %v5529_v53  ;;  %v6098_v46 = vpop.f32.mrf.mxu1 }
 0x6a1   : > { %v7845_v16 = vmax.f32 %v7844_v28, %v6098_v46  ;;  %v5533_v60 = vpop.f32.mrf.mxu0  ;;  %5772 = vmatmul.mubr.bf16.gmra.mxu0 %v12034_v32 }
 0x6a2   : > { %v7572_v31 = vmax.f32 %v7571_v58, %v5533_v60  ;;  %v6100_v15 = vpop.f32.mrf.mxu1  ;;  %5781 = vmatprep.mubr.bf16.mxu0 %v11938_v35 }
 0x6a3   : > { %v8007_v25 = vmax.f32 %v8006_v54, %v6100_v15  ;;  %v5535_v50 = vpop.f32.mrf.mxu0 }
 0x6a4   : > { %v7734_v10 = vmax.f32 %v7733_v33, %v5535_v50  ;;  %v6104_v27 = vpop.f32.mrf.mxu1  ;;  %6343 = vmatmul.mubr.bf16.gmra.mxu1 %v12024_v23 }
 0x6a5   : > { %v7846_v34 = vmax.f32 %v7845_v16, %v6104_v27  ;;  %v5537_v11 = vpop.f32.mrf.mxu0  ;;  %6352 = vmatprep.mubr.bf16.mxu1 %v11938_v35  ;;  %v12036_v16 = vld [vmem:[#allocation43_spill] sm:$0xff] }
 0x6a6   : > { %v7573_v26 = vmax.f32 %v7572_v31, %v5537_v11  ;;  %v6106_v59 = vpop.f32.mrf.mxu1 }
 0x6a7   : > { %v8008_v38 = vmax.f32 %v8007_v25, %v6106_v59  ;;  %v5539_v7 = vpop.f32.mrf.mxu0 }
 0x6a8   : > { %v7735_v12 = vmax.f32 %v7734_v10, %v5539_v7  ;;  %v6108_v47 = vpop.f32.mrf.mxu1 }
 0x6a9   : > { %v7847_v4 = vmax.f32 %v7846_v34, %v6108_v47  ;;  %v5543_v42 = vpop.f32.mrf.mxu0  ;;  %5782 = vmatmul.mubr.bf16.gmra.mxu0 %v12035_v3 }
 0x6aa   : > { %v7574_v1 = vmax.f32 %v7573_v26, %v5543_v42  ;;  %v6110_v22 = vpop.f32.mrf.mxu1  ;;  %5791 = vmatprep.mubr.bf16.mxu0 %v11938_v35 }
 0x6ab   : > { %v8009_v57 = vmax.f32 %v8008_v38, %v6110_v22  ;;  %v5545_v23 = vpop.f32.mrf.mxu0 }
 0x6ac   : > { %v7736_v55 = vmax.f32 %v7735_v12, %v5545_v23  ;;  %v6114_v18 = vpop.f32.mrf.mxu1  ;;  %6353 = vmatmul.mubr.bf16.gmra.mxu1 %v10613_v61 }
 0x6ad   : > { %v7848_v39 = vmax.f32 %v7847_v4, %v6114_v18  ;;  %v5547_v51 = vpop.f32.mrf.mxu0  ;;  %6362 = vmatprep.mubr.bf16.mxu1 %v11938_v35  ;;  %v12037_v4 = vld [vmem:[#allocation44_spill] sm:$0xff] }
 0x6ae   : > { %v7575_v28 = vmax.f32 %v7574_v1, %v5547_v51  ;;  %v6116_v44 = vpop.f32.mrf.mxu1 }
 0x6af   : > { %v8010_v58 = vmax.f32 %v8009_v57, %v6116_v44  ;;  %v5549_v21 = vpop.f32.mrf.mxu0 }
 0x6b0   : > { %v7737_v54 = vmax.f32 %v7736_v55, %v5549_v21  ;;  %v6118_v53 = vpop.f32.mrf.mxu1 }
 0x6b1   : > { %v7849_v33 = vmax.f32 %v7848_v39, %v6118_v53  ;;  %v5553_v46 = vpop.f32.mrf.mxu0  ;;  %5792 = vmatmul.mubr.bf16.gmra.mxu0 %v12036_v16 }
 0x6b2   : > { %v7576_v60 = vmax.f32 %v7575_v28, %v5553_v46  ;;  %v6120_v31 = vpop.f32.mrf.mxu1  ;;  %5801 = vmatprep.mubr.bf16.mxu0 %v11938_v35 }
 0x6b3   : > { %v8011_v15 = vmax.f32 %v8010_v58, %v6120_v31  ;;  %v5555_v61 = vpop.f32.mrf.mxu0 }
 0x6b4   : > { %v7738_v25 = vmax.f32 %v7737_v54, %v5555_v61  ;;  %v6124_v50 = vpop.f32.mrf.mxu1  ;;  %6363 = vmatmul.mubr.bf16.gmra.mxu1 %v10625_v36 }
 0x6b5   : > { %v7850_v10 = vmax.f32 %v7849_v33, %v6124_v50  ;;  %v5557_v27 = vpop.f32.mrf.mxu0  ;;  %6372 = vmatprep.mubr.bf16.mxu1 %v11938_v35  ;;  %v12038_v33 = vld [vmem:[#allocation45_spill] sm:$0xff] }
 0x6b6   : > { %v7577_v34 = vmax.f32 %v7576_v60, %v5557_v27  ;;  %v6126_v11 = vpop.f32.mrf.mxu1 }
 0x6b7   : > { %v8012_v26 = vmax.f32 %v8011_v15, %v6126_v11  ;;  %v5559_v59 = vpop.f32.mrf.mxu0 }
 0x6b8   : > { %v7739_v38 = vmax.f32 %v7738_v25, %v5559_v59  ;;  %v6128_v7 = vpop.f32.mrf.mxu1 }
 0x6b9   : > { %v7851_v12 = vmax.f32 %v7850_v10, %v6128_v7  ;;  %v5563_v47 = vpop.f32.mrf.mxu0  ;;  %5802 = vmatmul.mubr.bf16.gmra.mxu0 %v12037_v4 }
 0x6ba   : > { %v7578_v42 = vmax.f32 %v7577_v34, %v5563_v47  ;;  %v6130_v1 = vpop.f32.mrf.mxu1  ;;  %5811 = vmatprep.mubr.bf16.mxu0 %v11938_v35 }
 0x6bb   : > { %v8013_v22 = vmax.f32 %v8012_v26, %v6130_v1  ;;  %v5565_v36 = vpop.f32.mrf.mxu0 }
 0x6bc   : > { %v7740_v57 = vmax.f32 %v7739_v38, %v5565_v36  ;;  %v6134_v23 = vpop.f32.mrf.mxu1  ;;  %6373 = vmatmul.mubr.bf16.gmra.mxu1 %v10642_v13 }
 0x6bd   : > { %v7852_v55 = vmax.f32 %v7851_v12, %v6134_v23  ;;  %v5567_v18 = vpop.f32.mrf.mxu0  ;;  %6382 = vmatprep.mubr.bf16.mxu1 %v11938_v35  ;;  %v12039_v12 = vld [vmem:[#allocation46_spill] sm:$0xff] }
 0x6be   : > { %v7579_v39 = vmax.f32 %v7578_v42, %v5567_v18  ;;  %v6136_v51 = vpop.f32.mrf.mxu1 }
 0x6bf   : > { %v8014_v28 = vmax.f32 %v8013_v22, %v6136_v51  ;;  %v5569_v44 = vpop.f32.mrf.mxu0 }
 0x6c0   : > { %v7741_v58 = vmax.f32 %v7740_v57, %v5569_v44  ;;  %v6138_v21 = vpop.f32.mrf.mxu1 }
 0x6c1   : > { %v7853_v54 = vmax.f32 %v7852_v55, %v6138_v21  ;;  %v5573_v53 = vpop.f32.mrf.mxu0  ;;  %5812 = vmatmul.mubr.bf16.gmra.mxu0 %v12038_v33 }
 0x6c2   : > { %v7580_v46 = vmax.f32 %v7579_v39, %v5573_v53  ;;  %v6140_v60 = vpop.f32.mrf.mxu1  ;;  %5821 = vmatprep.mubr.bf16.mxu0 %v11938_v35 }
 0x6c3   : > { %v8015_v31 = vmax.f32 %v8014_v28, %v6140_v60  ;;  %v5575_v13 = vpop.f32.mrf.mxu0 }
 0x6c4   : > { %v7742_v15 = vmax.f32 %v7741_v58, %v5575_v13  ;;  %v6144_v61 = vpop.f32.mrf.mxu1  ;;  %6383 = vmatmul.mubr.bf16.gmra.mxu1 %v10653_v48 }
 0x6c5   : > { %v7854_v25 = vmax.f32 %v7853_v54, %v6144_v61  ;;  %v5577_v50 = vpop.f32.mrf.mxu0  ;;  %6392 = vmatprep.mubr.bf16.mxu1 %v11938_v35  ;;  %v12040_v54 = vld [vmem:[#allocation47_spill] sm:$0xff] }
 0x6c6   : > { %v7581_v10 = vmax.f32 %v7580_v46, %v5577_v50  ;;  %v6146_v27 = vpop.f32.mrf.mxu1 }
 0x6c7   : > { %v8016_v34 = vmax.f32 %v8015_v31, %v6146_v27  ;;  %v5579_v11 = vpop.f32.mrf.mxu0 }
 0x6c8   : > { %v7743_v26 = vmax.f32 %v7742_v15, %v5579_v11  ;;  %v6148_v59 = vpop.f32.mrf.mxu1 }
 0x6c9   : > { %v7855_v38 = vmax.f32 %v7854_v25, %v6148_v59  ;;  %v5583_v7 = vpop.f32.mrf.mxu0  ;;  %5822 = vmatmul.mubr.bf16.gmra.mxu0 %v12039_v12 }
 0x6ca   : > { %v7582_v47 = vmax.f32 %v7581_v10, %v5583_v7  ;;  %v6150_v42 = vpop.f32.mrf.mxu1  ;;  %5831 = vmatprep.mubr.bf16.mxu0 %v11938_v35 }
 0x6cb   : > { %v8017_v1 = vmax.f32 %v8016_v34, %v6150_v42  ;;  %v5585_v48 = vpop.f32.mrf.mxu0 }
 0x6cc   : > { %v7744_v22 = vmax.f32 %v7743_v26, %v5585_v48  ;;  %v6154_v36 = vpop.f32.mrf.mxu1  ;;  %6393 = vmatmul.mubr.bf16.gmra.mxu1 %v10664_v30 }
 0x6cd   : > { %v7856_v57 = vmax.f32 %v7855_v38, %v6154_v36  ;;  %v5587_v23 = vpop.f32.mrf.mxu0  ;;  %6402 = vmatprep.mubr.bf16.mxu1 %v11938_v35  ;;  %v12041_v38 = vld [vmem:[#allocation48_spill] sm:$0xff] }
 0x6ce   : > { %v7583_v55 = vmax.f32 %v7582_v47, %v5587_v23  ;;  %v6156_v18 = vpop.f32.mrf.mxu1 }
 0x6cf   : > { %v8018_v39 = vmax.f32 %v8017_v1, %v6156_v18  ;;  %v5589_v51 = vpop.f32.mrf.mxu0 }
 0x6d0   : > { %v7745_v28 = vmax.f32 %v7744_v22, %v5589_v51  ;;  %v6158_v44 = vpop.f32.mrf.mxu1 }
 0x6d1   : > { %v7857_v58 = vmax.f32 %v7856_v57, %v6158_v44  ;;  %v5593_v21 = vpop.f32.mrf.mxu0  ;;  %5832 = vmatmul.mubr.bf16.gmra.mxu0 %v12040_v54 }
 0x6d2   : > { %v7584_v53 = vmax.f32 %v7583_v55, %v5593_v21  ;;  %v6160_v46 = vpop.f32.mrf.mxu1  ;;  %5841 = vmatprep.mubr.bf16.mxu0 %v11938_v35 }
 0x6d3   : > { %v8019_v60 = vmax.f32 %v8018_v39, %v6160_v46  ;;  %v5595_v30 = vpop.f32.mrf.mxu0 }
 0x6d4   : > { %v7746_v31 = vmax.f32 %v7745_v28, %v5595_v30  ;;  %v6164_v13 = vpop.f32.mrf.mxu1  ;;  %6403 = vmatmul.mubr.bf16.gmra.mxu1 %v12025_v29 }
 0x6d5   : > { %v7858_v15 = vmax.f32 %v7857_v58, %v6164_v13  ;;  %v5597_v61 = vpop.f32.mrf.mxu0  ;;  %6412 = vmatprep.mubr.bf16.mxu1 %v11938_v35  ;;  %v12042_v58 = vld [vmem:[#allocation49_spill] sm:$0xff] }
 0x6d6   : > { %v7585_v25 = vmax.f32 %v7584_v53, %v5597_v61  ;;  %v6166_v50 = vpop.f32.mrf.mxu1 }
 0x6d7   : > { %v8020_v10 = vmax.f32 %v8019_v60, %v6166_v50  ;;  %v5599_v27 = vpop.f32.mrf.mxu0 }
 0x6d8   : > { %v7747_v34 = vmax.f32 %v7746_v31, %v5599_v27  ;;  %v6168_v11 = vpop.f32.mrf.mxu1 }
 0x6d9   : > { %v7859_v26 = vmax.f32 %v7858_v15, %v6168_v11  ;;  %v5603_v59 = vpop.f32.mrf.mxu0  ;;  %5842 = vmatmul.mubr.bf16.gmra.mxu0 %v12041_v38 }
 0x6da   : > { %v7586_v7 = vmax.f32 %v7585_v25, %v5603_v59  ;;  %v6170_v47 = vpop.f32.mrf.mxu1  ;;  %5851 = vmatprep.mubr.bf16.mxu0 %v11938_v35 }
 0x6db   : > { %v8021_v42 = vmax.f32 %v8020_v10, %v6170_v47  ;;  %v5605_v29 = vpop.f32.mrf.mxu0 }
 0x6dc   : > { %v7748_v1 = vmax.f32 %v7747_v34, %v5605_v29  ;;  %v6174_v48 = vpop.f32.mrf.mxu1  ;;  %6413 = vmatmul.mubr.bf16.gmra.mxu1 %v12026_v45 }
 0x6dd   : > { %v7860_v22 = vmax.f32 %v7859_v26, %v6174_v48  ;;  %v5607_v36 = vpop.f32.mrf.mxu0  ;;  %6422 = vmatprep.mubr.bf16.mxu1 %v11938_v35  ;;  %v12043_v26 = vld [vmem:[#allocation50_spill] sm:$0xff] }
 0x6de   : > { %v7587_v57 = vmax.f32 %v7586_v7, %v5607_v36  ;;  %v6176_v23 = vpop.f32.mrf.mxu1 }
 0x6df   : > { %v8022_v55 = vmax.f32 %v8021_v42, %v6176_v23  ;;  %v5609_v18 = vpop.f32.mrf.mxu0 }
 0x6e0   : > { %v7749_v39 = vmax.f32 %v7748_v1, %v5609_v18  ;;  %v6178_v51 = vpop.f32.mrf.mxu1 }
 0x6e1   : > { %v7861_v28 = vmax.f32 %v7860_v22, %v6178_v51  ;;  %v5613_v44 = vpop.f32.mrf.mxu0  ;;  %5852 = vmatmul.mubr.bf16.gmra.mxu0 %v12042_v58 }
 0x6e2   : > { %v7588_v21 = vmax.f32 %v7587_v57, %v5613_v44  ;;  %v6180_v53 = vpop.f32.mrf.mxu1  ;;  %5861 = vmatprep.mubr.bf16.mxu0 %v11938_v35 }
 0x6e3   : > { %v8023_v46 = vmax.f32 %v8022_v55, %v6180_v53  ;;  %v5615_v45 = vpop.f32.mrf.mxu0 }
 0x6e4   : > { %v7750_v60 = vmax.f32 %v7749_v39, %v5615_v45  ;;  %v6184_v30 = vpop.f32.mrf.mxu1  ;;  %6423 = vmatmul.mubr.bf16.gmra.mxu1 %v10697_v20 }
 0x6e5   : > { %v7862_v31 = vmax.f32 %v7861_v28, %v6184_v30  ;;  %v5617_v13 = vpop.f32.mrf.mxu0  ;;  %6432 = vmatprep.mubr.bf16.mxu1 %v11938_v35  ;;  %v12044_v28 = vld [vmem:[#allocation51_spill] sm:$0xff] }
 0x6e6   : > { %v7589_v15 = vmax.f32 %v7588_v21, %v5617_v13  ;;  %v6186_v61 = vpop.f32.mrf.mxu1 }
 0x6e7   : > { %v8024_v25 = vmax.f32 %v8023_v46, %v6186_v61  ;;  %v5619_v50 = vpop.f32.mrf.mxu0 }
 0x6e8   : > { %v7751_v10 = vmax.f32 %v7750_v60, %v5619_v50  ;;  %v6188_v27 = vpop.f32.mrf.mxu1 }
 0x6e9   : > { %v7863_v34 = vmax.f32 %v7862_v31, %v6188_v27  ;;  %v5623_v11 = vpop.f32.mrf.mxu0  ;;  %5862 = vmatmul.mubr.bf16.gmra.mxu0 %v12043_v26 }
 0x6ea   : > { %v7590_v59 = vmax.f32 %v7589_v15, %v5623_v11  ;;  %v6190_v7 = vpop.f32.mrf.mxu1  ;;  %5871 = vmatprep.mubr.bf16.mxu0 %v11938_v35 }
 0x6eb   : > { %v8025_v47 = vmax.f32 %v8024_v25, %v6190_v7  ;;  %v5625_v20 = vpop.f32.mrf.mxu0 }
 0x6ec   : > { %v7752_v42 = vmax.f32 %v7751_v10, %v5625_v20  ;;  %v6194_v29 = vpop.f32.mrf.mxu1  ;;  %6433 = vmatmul.mubr.bf16.gmra.mxu1 %v10708_v5 }
 0x6ed   : > { %v7864_v1 = vmax.f32 %v7863_v34, %v6194_v29  ;;  %v5627_v48 = vpop.f32.mrf.mxu0  ;;  %6442 = vmatprep.mubr.bf16.mxu1 %v11938_v35  ;;  %v12045_v34 = vld [vmem:[#allocation52_spill] sm:$0xff] }
 0x6ee   : > { %v7591_v22 = vmax.f32 %v7590_v59, %v5627_v48  ;;  %v6196_v36 = vpop.f32.mrf.mxu1 }
 0x6ef   : > { %v8026_v57 = vmax.f32 %v8025_v47, %v6196_v36  ;;  %v5629_v23 = vpop.f32.mrf.mxu0 }
 0x6f0   : > { %v7753_v55 = vmax.f32 %v7752_v42, %v5629_v23  ;;  %v6198_v18 = vpop.f32.mrf.mxu1 }
 0x6f1   : > { %v7865_v39 = vmax.f32 %v7864_v1, %v6198_v18  ;;  %v5633_v51 = vpop.f32.mrf.mxu0  ;;  %5872 = vmatmul.mubr.bf16.gmra.mxu0 %v12044_v28 }
 0x6f2   : > { %v7592_v44 = vmax.f32 %v7591_v22, %v5633_v51  ;;  %v6200_v21 = vpop.f32.mrf.mxu1  ;;  %5881 = vmatprep.mubr.bf16.mxu0 %v11938_v35 }
 0x6f3   : > { %v8027_v53 = vmax.f32 %v8026_v57, %v6200_v21  ;;  %v5635_v5 = vpop.f32.mrf.mxu0 }
 0x6f4   : > { %v7754_v46 = vmax.f32 %v7753_v55, %v5635_v5  ;;  %v6204_v45 = vpop.f32.mrf.mxu1  ;;  %6443 = vmatmul.mubr.bf16.gmra.mxu1 %v10719_v52 }
 0x6f5   : > { %v7866_v60 = vmax.f32 %v7865_v39, %v6204_v45  ;;  %v5637_v30 = vpop.f32.mrf.mxu0  ;;  %6452 = vmatprep.mubr.bf16.mxu1 %v11938_v35  ;;  %v12046_v39 = vld [vmem:[#allocation53_spill] sm:$0xff] }
 0x6f6   : > { %v7593_v31 = vmax.f32 %v7592_v44, %v5637_v30  ;;  %v6206_v13 = vpop.f32.mrf.mxu1 }
 0x6f7   : > { %v8028_v15 = vmax.f32 %v8027_v53, %v6206_v13  ;;  %v5639_v61 = vpop.f32.mrf.mxu0 }
 0x6f8   : > { %v7755_v25 = vmax.f32 %v7754_v46, %v5639_v61  ;;  %v6208_v50 = vpop.f32.mrf.mxu1 }
 0x6f9   : > { %v7867_v10 = vmax.f32 %v7866_v60, %v6208_v50  ;;  %v5643_v27 = vpop.f32.mrf.mxu0  ;;  %5882 = vmatmul.mubr.bf16.gmra.mxu0 %v12045_v34 }
 0x6fa   : > { %v7594_v11 = vmax.f32 %v7593_v31, %v5643_v27  ;;  %v6210_v59 = vpop.f32.mrf.mxu1  ;;  %5891 = vmatprep.mubr.bf16.mxu0 %v11938_v35 }
 0x6fb   : > { %v8029_v7 = vmax.f32 %v8028_v15, %v6210_v59  ;;  %v5645_v52 = vpop.f32.mrf.mxu0 }
 0x6fc   : > { %v7756_v47 = vmax.f32 %v7755_v25, %v5645_v52  ;;  %v6214_v20 = vpop.f32.mrf.mxu1  ;;  %6453 = vmatmul.mubr.bf16.gmra.mxu1 %v10730_v37 }
 0x6fd   : > { %v7868_v42 = vmax.f32 %v7867_v10, %v6214_v20  ;;  %v5647_v29 = vpop.f32.mrf.mxu0  ;;  %6462 = vmatprep.mubr.bf16.mxu1 %v11938_v35  ;;  %v12047_v10 = vld [vmem:[#allocation54_spill] sm:$0xff] }
 0x6fe   : > { %v7595_v1 = vmax.f32 %v7594_v11, %v5647_v29  ;;  %v6216_v48 = vpop.f32.mrf.mxu1 }
 0x6ff   : > { %v8030_v22 = vmax.f32 %v8029_v7, %v6216_v48  ;;  %v5649_v36 = vpop.f32.mrf.mxu0 }
 0x700   : > { %v7757_v57 = vmax.f32 %v7756_v47, %v5649_v36  ;;  %v6218_v23 = vpop.f32.mrf.mxu1 }
 0x701   : > { %v7869_v55 = vmax.f32 %v7868_v42, %v6218_v23  ;;  %v5653_v18 = vpop.f32.mrf.mxu0  ;;  %5892 = vmatmul.mubr.bf16.gmra.mxu0 %v12046_v39 }
 0x702   : > { %v7596_v51 = vmax.f32 %v7595_v1, %v5653_v18  ;;  %v6220_v44 = vpop.f32.mrf.mxu1  ;;  %5901 = vmatprep.mubr.bf16.mxu0 %v11938_v35 }
 0x703   : > { %v8031_v21 = vmax.f32 %v8030_v22, %v6220_v44  ;;  %v5655_v37 = vpop.f32.mrf.mxu0 }
 0x704   : > { %v7758_v53 = vmax.f32 %v7757_v57, %v5655_v37  ;;  %v6224_v5 = vpop.f32.mrf.mxu1  ;;  %6463 = vmatmul.mubr.bf16.gmra.mxu1 %v10741_v19 }
 0x705   : > { %v7870_v46 = vmax.f32 %v7869_v55, %v6224_v5  ;;  %v5657_v45 = vpop.f32.mrf.mxu0  ;;  %6472 = vmatprep.mubr.bf16.mxu1 %v11938_v35  ;;  %v12048_v55 = vld [vmem:[#allocation55_spill] sm:$0xff] }
 0x706   : > { %v7597_v60 = vmax.f32 %v7596_v51, %v5657_v45  ;;  %v6226_v30 = vpop.f32.mrf.mxu1 }
 0x707   : > { %v8032_v31 = vmax.f32 %v8031_v21, %v6226_v30  ;;  %v5659_v13 = vpop.f32.mrf.mxu0 }
 0x708   : > { %v7759_v15 = vmax.f32 %v7758_v53, %v5659_v13  ;;  %v6228_v61 = vpop.f32.mrf.mxu1 }
 0x709   : > { %v7871_v25 = vmax.f32 %v7870_v46, %v6228_v61  ;;  %v5663_v50 = vpop.f32.mrf.mxu0  ;;  %5902 = vmatmul.mubr.bf16.gmra.mxu0 %v12047_v10 }
 0x70a   : > { %v7598_v27 = vmax.f32 %v7597_v60, %v5663_v50  ;;  %v6230_v11 = vpop.f32.mrf.mxu1  ;;  %5911 = vmatprep.mubr.bf16.mxu0 %v11938_v35 }
 0x70b   : > { %v8033_v59 = vmax.f32 %v8032_v31, %v6230_v11  ;;  %v5665_v19 = vpop.f32.mrf.mxu0 }
 0x70c   : > { %v7760_v7 = vmax.f32 %v7759_v15, %v5665_v19  ;;  %v6234_v52 = vpop.f32.mrf.mxu1  ;;  %6473 = vmatmul.mubr.bf16.gmra.mxu1 %v10772_v40 }
 0x70d   : > { %v7872_v47 = vmax.f32 %v7871_v25, %v6234_v52  ;;  %v5667_v20 = vpop.f32.mrf.mxu0  ;;  %6482 = vmatprep.mubr.bf16.mxu1 %v11938_v35  ;;  %v12049_v25 = vld [vmem:[#allocation56_spill] sm:$0xff] }
 0x70e   : > { %v7599_v42 = vmax.f32 %v7598_v27, %v5667_v20  ;;  %v6236_v29 = vpop.f32.mrf.mxu1 }
 0x70f   : > { %v8034_v1 = vmax.f32 %v8033_v59, %v6236_v29  ;;  %v5669_v48 = vpop.f32.mrf.mxu0 }
 0x710   : > { %v7761_v22 = vmax.f32 %v7760_v7, %v5669_v48  ;;  %v6238_v36 = vpop.f32.mrf.mxu1 }
 0x711   : > { %v7873_v57 = vmax.f32 %v7872_v47, %v6238_v36  ;;  %v5673_v23 = vpop.f32.mrf.mxu0  ;;  %5912 = vmatmul.mubr.bf16.gmra.mxu0 %v12048_v55 }
 0x712   : > { %v7600_v18 = vmax.f32 %v7599_v42, %v5673_v23  ;;  %v6240_v51 = vpop.f32.mrf.mxu1  ;;  %5921 = vmatprep.mubr.bf16.mxu0 %v11938_v35 }
 0x713   : > { %v8035_v44 = vmax.f32 %v8034_v1, %v6240_v51  ;;  %v5675_v40 = vpop.f32.mrf.mxu0 }
 0x714   : > { %v7762_v21 = vmax.f32 %v7761_v22, %v5675_v40  ;;  %v6244_v37 = vpop.f32.mrf.mxu1  ;;  %6483 = vmatmul.mubr.bf16.gmra.mxu1 %v10783_v41 }
 0x715   : > { %v7874_v53 = vmax.f32 %v7873_v57, %v6244_v37  ;;  %v5677_v5 = vpop.f32.mrf.mxu0  ;;  %6492 = vmatprep.mubr.bf16.mxu1 %v11938_v35  ;;  %v12050_v57 = vld [vmem:[#allocation57_spill] sm:$0xff] }
 0x716   : > { %v7601_v46 = vmax.f32 %v7600_v18, %v5677_v5  ;;  %v6246_v45 = vpop.f32.mrf.mxu1 }
 0x717   : > { %v8036_v60 = vmax.f32 %v8035_v44, %v6246_v45  ;;  %v5679_v30 = vpop.f32.mrf.mxu0 }
 0x718   : > { %v7763_v31 = vmax.f32 %v7762_v21, %v5679_v30  ;;  %v6248_v13 = vpop.f32.mrf.mxu1 }
 0x719   : > { %v7875_v15 = vmax.f32 %v7874_v53, %v6248_v13  ;;  %v5683_v61 = vpop.f32.mrf.mxu0  ;;  %5922 = vmatmul.mubr.bf16.gmra.mxu0 %v12049_v25 }
 0x71a   : > { %v7602_v50 = vmax.f32 %v7601_v46, %v5683_v61  ;;  %v6250_v27 = vpop.f32.mrf.mxu1  ;;  %5931 = vmatprep.mubr.bf16.mxu0 %v11938_v35 }
 0x71b   : > { %v8037_v11 = vmax.f32 %v8036_v60, %v6250_v27  ;;  %v5685_v41 = vpop.f32.mrf.mxu0 }
 0x71c   : > { %v7764_v59 = vmax.f32 %v7763_v31, %v5685_v41  ;;  %v6254_v19 = vpop.f32.mrf.mxu1  ;;  %6493 = vmatmul.mubr.bf16.gmra.mxu1 %v11966_v9 }
 0x71d   : > { %v7876_v7 = vmax.f32 %v7875_v15, %v6254_v19  ;;  %v5687_v52 = vpop.f32.mrf.mxu0  ;;  %6502 = vmatprep.mubr.bf16.mxu1 %v11938_v35  ;;  %v12051_v15 = vld [vmem:[#allocation58_spill] sm:$0xff] }
 0x71e   : > { %v7603_v47 = vmax.f32 %v7602_v50, %v5687_v52  ;;  %v6256_v20 = vpop.f32.mrf.mxu1 }
 0x71f   : > { %v8038_v42 = vmax.f32 %v8037_v11, %v6256_v20  ;;  %v5689_v29 = vpop.f32.mrf.mxu0 }
 0x720   : > { %v7765_v1 = vmax.f32 %v7764_v59, %v5689_v29  ;;  %v6258_v48 = vpop.f32.mrf.mxu1 }
 0x721   : > { %v7877_v22 = vmax.f32 %v7876_v7, %v6258_v48  ;;  %v5693_v36 = vpop.f32.mrf.mxu0  ;;  %5932 = vmatmul.mubr.bf16.gmra.mxu0 %v12050_v57 }
 0x722   : > { %v7604_v23 = vmax.f32 %v7603_v47, %v5693_v36  ;;  %v6260_v18 = vpop.f32.mrf.mxu1  ;;  %5941 = vmatprep.mubr.bf16.mxu0 %v11938_v35 }
 0x723   : > { %v8039_v51 = vmax.f32 %v8038_v42, %v6260_v18  ;;  %v5695_v9 = vpop.f32.mrf.mxu0 }
 0x724   : > { %v7766_v44 = vmax.f32 %v7765_v1, %v5695_v9  ;;  %v6264_v40 = vpop.f32.mrf.mxu1  ;;  %6503 = vmatmul.mubr.bf16.gmra.mxu1 %v11968_v63 }
 0x725   : > { %v7878_v21 = vmax.f32 %v7877_v22, %v6264_v40  ;;  %v5697_v37 = vpop.f32.mrf.mxu0  ;;  %6512 = vmatprep.mubr.bf16.mxu1 %v11938_v35  ;;  %v12052_v22 = vld [vmem:[#allocation59_spill] sm:$0xff] }
 0x726   : > { %v7605_v53 = vmax.f32 %v7604_v23, %v5697_v37  ;;  %v6266_v5 = vpop.f32.mrf.mxu1 }
 0x727   : > { %v8040_v46 = vmax.f32 %v8039_v51, %v6266_v5  ;;  %v5699_v45 = vpop.f32.mrf.mxu0 }
 0x728   : > { %v7767_v60 = vmax.f32 %v7766_v44, %v5699_v45  ;;  %v6268_v30 = vpop.f32.mrf.mxu1 }
 0x729   : > { %v7879_v31 = vmax.f32 %v7878_v21, %v6268_v30  ;;  %v5703_v13 = vpop.f32.mrf.mxu0  ;;  %5942 = vmatmul.mubr.bf16.gmra.mxu0 %v12051_v15 }
 0x72a   : > { %v7606_v61 = vmax.f32 %v7605_v53, %v5703_v13  ;;  %v6270_v50 = vpop.f32.mrf.mxu1  ;;  %5951 = vmatprep.mubr.bf16.mxu0 %v11938_v35 }
 0x72b   : > { %v8041_v27 = vmax.f32 %v8040_v46, %v6270_v50  ;;  %v5705_v63 = vpop.f32.mrf.mxu0 }
 0x72c   : > { %v7768_v11 = vmax.f32 %v7767_v60, %v5705_v63  ;;  %v6274_v41 = vpop.f32.mrf.mxu1  ;;  %6513 = vmatmul.mubr.bf16.gmra.mxu1 %v11970_v24 }
 0x72d   : > { %v7880_v59 = vmax.f32 %v7879_v31, %v6274_v41  ;;  %v5707_v19 = vpop.f32.mrf.mxu0  ;;  %6522 = vmatprep.mubr.bf16.mxu1 %v11938_v35  ;;  %v12053_v31 = vld [vmem:[#allocation31_spill] sm:$0xff] }
 0x72e   : > { %v7607_v7 = vmax.f32 %v7606_v61, %v5707_v19  ;;  %v6276_v52 = vpop.f32.mrf.mxu1 }
 0x72f   : > { %v8042_v47 = vmax.f32 %v8041_v27, %v6276_v52  ;;  %v5709_v20 = vpop.f32.mrf.mxu0 }
 0x730   : > { %v7769_v42 = vmax.f32 %v7768_v11, %v5709_v20  ;;  %v6278_v29 = vpop.f32.mrf.mxu1 }
 0x731   : > { %v7881_v1 = vmax.f32 %v7880_v59, %v6278_v29  ;;  %v5713_v48 = vpop.f32.mrf.mxu0  ;;  %5952 = vmatmul.mubr.bf16.gmra.mxu0 %v12052_v22 }
 0x732   : > { %v7608_v36 = vmax.f32 %v7607_v7, %v5713_v48  ;;  %v6280_v23 = vpop.f32.mrf.mxu1  ;;  %5961 = vmatprep.mubr.bf16.mxu0 %v11938_v35 }
 0x733   : > { %v8043_v18 = vmax.f32 %v8042_v47, %v6280_v23  ;;  %v5715_v24 = vpop.f32.mrf.mxu0 }
 0x734   : > { %v7770_v51 = vmax.f32 %v7769_v42, %v5715_v24  ;;  %v6284_v9 = vpop.f32.mrf.mxu1  ;;  %6523 = vmatmul.mubr.bf16.gmra.mxu1 %v11972_v8 }
 0x735   : > { %v7882_v44 = vmax.f32 %v7881_v1, %v6284_v9  ;;  %v5717_v40 = vpop.f32.mrf.mxu0  ;;  %6532 = vmatprep.mubr.bf16.mxu1 %v11938_v35  ;;  %v12054_v1 = vld [vmem:[#allocation32_spill] sm:$0xff] }
 0x736   : > { %v7609_v21 = vmax.f32 %v7608_v36, %v5717_v40  ;;  %v6286_v37 = vpop.f32.mrf.mxu1 }
 0x737   : > { %v8044_v53 = vmax.f32 %v8043_v18, %v6286_v37  ;;  %v5719_v5 = vpop.f32.mrf.mxu0 }
 0x738   : > { %v7771_v46 = vmax.f32 %v7770_v51, %v5719_v5  ;;  %v6288_v45 = vpop.f32.mrf.mxu1 }
 0x739   : > { %v7883_v60 = vmax.f32 %v7882_v44, %v6288_v45  ;;  %v5723_v30 = vpop.f32.mrf.mxu0  ;;  %5962 = vmatmul.mubr.bf16.gmra.mxu0 %v12053_v31 }
 0x73a   : > { %v7610_v13 = vmax.f32 %v7609_v21, %v5723_v30  ;;  %v6290_v61 = vpop.f32.mrf.mxu1  ;;  %5971 = vmatprep.mubr.bf16.mxu0 %v11938_v35 }
 0x73b   : > { %v8045_v50 = vmax.f32 %v8044_v53, %v6290_v61  ;;  %v5725_v8 = vpop.f32.mrf.mxu0 }
 0x73c   : > { %v7772_v27 = vmax.f32 %v7771_v46, %v5725_v8  ;;  %v6294_v63 = vpop.f32.mrf.mxu1  ;;  %6533 = vmatmul.mubr.bf16.gmra.mxu1 %v12027_v2 }
 0x73d   : > { %v7884_v11 = vmax.f32 %v7883_v60, %v6294_v63  ;;  %v5727_v41 = vpop.f32.mrf.mxu0  ;;  %6542 = vmatprep.mubr.bf16.mxu1 %v11938_v35  ;;  %v12055_v60 = vld [vmem:[#allocation33_spill] sm:$0xff] }
 0x73e   : > { %v7611_v59 = vmax.f32 %v7610_v13, %v5727_v41  ;;  %v6296_v19 = vpop.f32.mrf.mxu1 }
 0x73f   : > { %v8046_v7 = vmax.f32 %v8045_v50, %v6296_v19  ;;  %v5729_v52 = vpop.f32.mrf.mxu0 }
 0x740   : > { %v7773_v47 = vmax.f32 %v7772_v27, %v5729_v52  ;;  %v6298_v20 = vpop.f32.mrf.mxu1 }
 0x741   : > { %v7885_v42 = vmax.f32 %v7884_v11, %v6298_v20  ;;  %v5733_v29 = vpop.f32.mrf.mxu0  ;;  %5972 = vmatmul.mubr.bf16.gmra.mxu0 %v12054_v1 }
 0x742   : > { %v7612_v48 = vmax.f32 %v7611_v59, %v5733_v29  ;;  %v6300_v36 = vpop.f32.mrf.mxu1  ;;  %5981 = vmatprep.mubr.bf16.mxu0 %v11938_v35 }
 0x743   : > { %v8047_v23 = vmax.f32 %v8046_v7, %v6300_v36  ;;  %v5735_v2 = vpop.f32.mrf.mxu0 }
 0x744   : > { %v7774_v18 = vmax.f32 %v7773_v47, %v5735_v2  ;;  %v6304_v24 = vpop.f32.mrf.mxu1  ;;  %6543 = vmatmul.mubr.bf16.gmra.mxu1 %v12028_v0 }
 0x745   : > { %v7886_v51 = vmax.f32 %v7885_v42, %v6304_v24  ;;  %v5737_v9 = vpop.f32.mrf.mxu0  ;;  %6552 = vmatprep.mubr.bf16.mxu1 %v11938_v35  ;;  %v12056_v42 = vld [vmem:[#allocation34_spill] sm:$0xff] }
 0x746   : > { %v7613_v44 = vmax.f32 %v7612_v48, %v5737_v9  ;;  %v6306_v40 = vpop.f32.mrf.mxu1 }
 0x747   : > { %v8048_v21 = vmax.f32 %v8047_v23, %v6306_v40  ;;  %v5739_v37 = vpop.f32.mrf.mxu0 }
 0x748   : > { %v7775_v53 = vmax.f32 %v7774_v18, %v5739_v37  ;;  %v6308_v5 = vpop.f32.mrf.mxu1 }
 0x749   : > { %v7887_v46 = vmax.f32 %v7886_v51, %v6308_v5  ;;  %v5743_v45 = vpop.f32.mrf.mxu0  ;;  %5982 = vmatmul.mubr.bf16.gmra.mxu0 %v12055_v60 }
 0x74a   : > { %v7614_v30 = vmax.f32 %v7613_v44, %v5743_v45  ;;  %v6310_v13 = vpop.f32.mrf.mxu1  ;;  %5991 = vmatprep.mubr.bf16.mxu0 %v11938_v35 }
 0x74b   : > { %v8049_v61 = vmax.f32 %v8048_v21, %v6310_v13  ;;  %v5745_v0 = vpop.f32.mrf.mxu0 }
 0x74c   : > { %v7776_v50 = vmax.f32 %v7775_v53, %v5745_v0  ;;  %v6314_v8 = vpop.f32.mrf.mxu1  ;;  %6553 = vmatmul.mubr.bf16.gmra.mxu1 %v12029_v14 }
 0x74d   : > { %v7888_v27 = vmax.f32 %v7887_v46, %v6314_v8  ;;  %v5747_v63 = vpop.f32.mrf.mxu0  ;;  %6562 = vmatprep.mubr.bf16.mxu1 %v11938_v35  ;;  %v12057_v46 = vld [vmem:[#allocation60_spill] sm:$0xff] }
 0x74e   : > { %v7615_v11 = vmax.f32 %v7614_v30, %v5747_v63  ;;  %v6316_v41 = vpop.f32.mrf.mxu1 }
 0x74f   : > { %v8050_v59 = vmax.f32 %v8049_v61, %v6316_v41  ;;  %v5749_v19 = vpop.f32.mrf.mxu0 }
 0x750   : > { %v7777_v7 = vmax.f32 %v7776_v50, %v5749_v19  ;;  %v6318_v52 = vpop.f32.mrf.mxu1 }
 0x751   : > { %v7889_v47 = vmax.f32 %v7888_v27, %v6318_v52  ;;  %v5753_v20 = vpop.f32.mrf.mxu0  ;;  %5992 = vmatmul.mubr.bf16.gmra.mxu0 %v12056_v42 }
 0x752   : > { %v7616_v29 = vmax.f32 %v7615_v11, %v5753_v20  ;;  %v6320_v48 = vpop.f32.mrf.mxu1  ;;  %6001 = vmatprep.mubr.bf16.mxu0 %v11938_v35 }
 0x753   : > { %v8051_v36 = vmax.f32 %v8050_v59, %v6320_v48  ;;  %v5755_v14 = vpop.f32.mrf.mxu0 }
 0x754   : > { %v7778_v23 = vmax.f32 %v7777_v7, %v5755_v14  ;;  %v6324_v2 = vpop.f32.mrf.mxu1  ;;  %6563 = vmatmul.mubr.bf16.gmra.mxu1 %v12030_v56 }
 0x755   : > { %v7890_v18 = vmax.f32 %v7889_v47, %v6324_v2  ;;  %v5757_v24 = vpop.f32.mrf.mxu0  ;;  %6572 = vmatprep.mubr.bf16.mxu1 %v11938_v35  ;;  %v12058_v47 = vld [vmem:[#allocation61_spill] sm:$0xff] }
 0x756   : > { %v7617_v51 = vmax.f32 %v7616_v29, %v5757_v24  ;;  %v6326_v9 = vpop.f32.mrf.mxu1 }
 0x757   : > { %v8052_v44 = vmax.f32 %v8051_v36, %v6326_v9  ;;  %v5759_v40 = vpop.f32.mrf.mxu0 }
 0x758   : > { %v7779_v21 = vmax.f32 %v7778_v23, %v5759_v40  ;;  %v6328_v37 = vpop.f32.mrf.mxu1 }
 0x759   : > { %v7891_v53 = vmax.f32 %v7890_v18, %v6328_v37  ;;  %v5763_v5 = vpop.f32.mrf.mxu0  ;;  %6002 = vmatmul.mubr.bf16.gmra.mxu0 %v12057_v46 }
 0x75a   : > { %v7618_v45 = vmax.f32 %v7617_v51, %v5763_v5  ;;  %v6330_v30 = vpop.f32.mrf.mxu1  ;;  %6011 = vmatprep.mubr.bf16.mxu0 %v11938_v35 }
 0x75b   : > { %v8053_v13 = vmax.f32 %v8052_v44, %v6330_v30  ;;  %v5765_v56 = vpop.f32.mrf.mxu0 }
 0x75c   : > { %v7780_v61 = vmax.f32 %v7779_v21, %v5765_v56  ;;  %v6334_v0 = vpop.f32.mrf.mxu1  ;;  %6573 = vmatmul.mubr.bf16.gmra.mxu1 %v12032_v62 }
 0x75d   : > { %v7892_v50 = vmax.f32 %v7891_v53, %v6334_v0  ;;  %v5767_v8 = vpop.f32.mrf.mxu0  ;;  %6582 = vmatprep.mubr.bf16.mxu1 %v11938_v35  ;;  %v12059_v53 = vld [vmem:[#allocation62_spill] sm:$0xff] }
 0x75e   : > { %v7619_v27 = vmax.f32 %v7618_v45, %v5767_v8  ;;  %v6336_v63 = vpop.f32.mrf.mxu1 }
 0x75f   : > { %v8054_v11 = vmax.f32 %v8053_v13, %v6336_v63  ;;  %v5769_v41 = vpop.f32.mrf.mxu0 }
 0x760   : > { %v7781_v59 = vmax.f32 %v7780_v61, %v5769_v41  ;;  %v6338_v19 = vpop.f32.mrf.mxu1 }
 0x761   : > { %v7893_v7 = vmax.f32 %v7892_v50, %v6338_v19  ;;  %v5773_v52 = vpop.f32.mrf.mxu0  ;;  %6012 = vmatmul.mubr.bf16.gmra.mxu0 %v12058_v47 }
 0x762   : > { %v7620_v20 = vmax.f32 %v7619_v27, %v5773_v52  ;;  %v6340_v29 = vpop.f32.mrf.mxu1  ;;  %6021 = vmatprep.mubr.bf16.mxu0 %v11938_v35 }
 0x763   : > { %v8055_v48 = vmax.f32 %v8054_v11, %v6340_v29  ;;  %v5775_v62 = vpop.f32.mrf.mxu0 }
 0x764   : > { %v7782_v36 = vmax.f32 %v7781_v59, %v5775_v62  ;;  %v6344_v14 = vpop.f32.mrf.mxu1  ;;  %6583 = vmatmul.mubr.bf16.gmra.mxu1 %v12033_v43 }
 0x765   : > { %v7894_v23 = vmax.f32 %v7893_v7, %v6344_v14  ;;  %v5777_v2 = vpop.f32.mrf.mxu0  ;;  %6592 = vmatprep.mubr.bf16.mxu1 %v11938_v35  ;;  %v12060_v7 = vld [vmem:[#allocation64_spill] sm:$0xff] }
 0x766   : > { %v7621_v18 = vmax.f32 %v7620_v20, %v5777_v2  ;;  %v6346_v24 = vpop.f32.mrf.mxu1 }
 0x767   : > { %v8056_v51 = vmax.f32 %v8055_v48, %v6346_v24  ;;  %v5779_v9 = vpop.f32.mrf.mxu0 }
 0x768   : > { %v7783_v44 = vmax.f32 %v7782_v36, %v5779_v9  ;;  %v6348_v40 = vpop.f32.mrf.mxu1 }
 0x769   : > { %v7895_v21 = vmax.f32 %v7894_v23, %v6348_v40  ;;  %v5783_v37 = vpop.f32.mrf.mxu0  ;;  %6022 = vmatmul.mubr.bf16.gmra.mxu0 %v12059_v53 }
 0x76a   : > { %v7622_v5 = vmax.f32 %v7621_v18, %v5783_v37  ;;  %v6350_v45 = vpop.f32.mrf.mxu1  ;;  %6031 = vmatprep.mubr.bf16.mxu0 %v11938_v35 }
 0x76b   : > { %v8057_v30 = vmax.f32 %v8056_v51, %v6350_v45  ;;  %v5785_v43 = vpop.f32.mrf.mxu0 }
 0x76c   : > { %v7784_v13 = vmax.f32 %v7783_v44, %v5785_v43  ;;  %v6354_v56 = vpop.f32.mrf.mxu1  ;;  %6593 = vmatmul.mubr.bf16.gmra.mxu1 %v12034_v32 }
 0x76d   : > { %v7896_v61 = vmax.f32 %v7895_v21, %v6354_v56  ;;  %v5787_v0 = vpop.f32.mrf.mxu0  ;;  %6602 = vmatprep.mubr.bf16.mxu1 %v11938_v35  ;;  %v12061_v21 = vld [vmem:[#allocation63_spill] sm:$0xff] }
 0x76e   : > { %v7623_v50 = vmax.f32 %v7622_v5, %v5787_v0  ;;  %v6356_v8 = vpop.f32.mrf.mxu1 }
 0x76f   : > { %v8058_v27 = vmax.f32 %v8057_v30, %v6356_v8  ;;  %v5789_v63 = vpop.f32.mrf.mxu0 }
 0x770   : > { %v7785_v11 = vmax.f32 %v7784_v13, %v5789_v63  ;;  %v6358_v41 = vpop.f32.mrf.mxu1 }
 0x771   : > { %v7897_v59 = vmax.f32 %v7896_v61, %v6358_v41  ;;  %v5793_v19 = vpop.f32.mrf.mxu0  ;;  %6032 = vmatmul.mubr.bf16.gmra.mxu0 %v12060_v7 }
 0x772   : > { %v7624_v52 = vmax.f32 %v7623_v50, %v5793_v19  ;;  %v6360_v20 = vpop.f32.mrf.mxu1  ;;  %6041 = vmatprep.mubr.bf16.mxu0 %v11938_v35 }
 0x773   : > { %v8059_v29 = vmax.f32 %v8058_v27, %v6360_v20  ;;  %v5795_v32 = vpop.f32.mrf.mxu0 }
 0x774   : > { %v7786_v48 = vmax.f32 %v7785_v11, %v5795_v32  ;;  %v6364_v62 = vpop.f32.mrf.mxu1  ;;  %6603 = vmatmul.mubr.bf16.gmra.mxu1 %v12035_v3 }
 0x775   : > { %v7898_v36 = vmax.f32 %v7897_v59, %v6364_v62  ;;  %v5797_v14 = vpop.f32.mrf.mxu0  ;;  %6612 = vmatprep.mubr.bf16.mxu1 %v11938_v35 }
 0x776   : > { %v7625_v23 = vmax.f32 %v7624_v52, %v5797_v14  ;;  %v6366_v2 = vpop.f32.mrf.mxu1 }
 0x777   : > { %v8060_v18 = vmax.f32 %v8059_v29, %v6366_v2  ;;  %v5799_v24 = vpop.f32.mrf.mxu0 }
 0x778   : > { %v7787_v51 = vmax.f32 %v7786_v48, %v5799_v24  ;;  %v6368_v9 = vpop.f32.mrf.mxu1 }
 0x779   : > { %v7899_v44 = vmax.f32 %v7898_v36, %v6368_v9  ;;  %v5803_v40 = vpop.f32.mrf.mxu0  ;;  %6042 = vmatmul.mubr.bf16.gmra.mxu0 %v12061_v21 }
 0x77a   : > { %v7626_v37 = vmax.f32 %v7625_v23, %v5803_v40  ;;  %v6370_v5 = vpop.f32.mrf.mxu1 }
 0x77b   : > { %v8061_v45 = vmax.f32 %v8060_v18, %v6370_v5  ;;  %v5805_v30 = vpop.f32.mrf.mxu0 }
 0x77c   : > { %v7788_v43 = vmax.f32 %v7787_v51, %v5805_v30  ;;  %v6374_v3 = vpop.f32.mrf.mxu1  ;;  %6613 = vmatmul.mubr.bf16.gmra.mxu1 %v12036_v16 }
 0x77d   : > { %v7900_v13 = vmax.f32 %v7899_v44, %v6374_v3  ;;  %v5807_v56 = vpop.f32.mrf.mxu0  ;;  %6622 = vmatprep.mubr.bf16.mxu1 %v11938_v35 }
 0x77e   : > { %v7627_v61 = vmax.f32 %v7626_v37, %v5807_v56  ;;  %v6376_v0 = vpop.f32.mrf.mxu1 }
 0x77f   : > { %v8062_v50 = vmax.f32 %v8061_v45, %v6376_v0  ;;  %v5809_v8 = vpop.f32.mrf.mxu0 }
 0x780   : > { %v7789_v27 = vmax.f32 %v7788_v43, %v5809_v8  ;;  %v6378_v63 = vpop.f32.mrf.mxu1 }
 0x781   : > { %v7901_v11 = vmax.f32 %v7900_v13, %v6378_v63  ;;  %v5813_v41 = vpop.f32.mrf.mxu0 }
 0x782   : > { %v7628_v59 = vmax.f32 %v7627_v61, %v5813_v41  ;;  %v6380_v19 = vpop.f32.mrf.mxu1 }
 0x783   : > { %v8063_v52 = vmax.f32 %v8062_v50, %v6380_v19  ;;  %v5815_v20 = vpop.f32.mrf.mxu0 }
 0x784   : > { %v7790_v29 = vmax.f32 %v7789_v27, %v5815_v20  ;;  %v6384_v32 = vpop.f32.mrf.mxu1  ;;  %6623 = vmatmul.mubr.bf16.gmra.mxu1 %v12037_v4 }
 0x785   : > { %v7902_v16 = vmax.f32 %v7901_v11, %v6384_v32  ;;  %v5817_v48 = vpop.f32.mrf.mxu0  ;;  %6632 = vmatprep.mubr.bf16.mxu1 %v11938_v35 }
 0x786   : > { %v7629_v62 = vmax.f32 %v7628_v59, %v5817_v48  ;;  %v6386_v36 = vpop.f32.mrf.mxu1 }
 0x787   : > { %v8064_v14 = vmax.f32 %v8063_v52, %v6386_v36  ;;  %v5819_v23 = vpop.f32.mrf.mxu0 }
 0x788   : > { %v7791_v2 = vmax.f32 %v7790_v29, %v5819_v23  ;;  %v6388_v18 = vpop.f32.mrf.mxu1 }
 0x789   : > { %v7903_v24 = vmax.f32 %v7902_v16, %v6388_v18  ;;  %v5823_v51 = vpop.f32.mrf.mxu0 }
 0x78a   : > { %v7630_v9 = vmax.f32 %v7629_v62, %v5823_v51  ;;  %v6390_v44 = vpop.f32.mrf.mxu1 }
 0x78b   : > { %v8065_v40 = vmax.f32 %v8064_v14, %v6390_v44  ;;  %v5825_v37 = vpop.f32.mrf.mxu0 }
 0x78c   : > { %v7792_v5 = vmax.f32 %v7791_v2, %v5825_v37  ;;  %v6394_v45 = vpop.f32.mrf.mxu1  ;;  %6633 = vmatmul.mubr.bf16.gmra.mxu1 %v12038_v33 }
 0x78d   : > { %v7904_v4 = vmax.f32 %v7903_v24, %v6394_v45  ;;  %v5827_v30 = vpop.f32.mrf.mxu0  ;;  %6642 = vmatprep.mubr.bf16.mxu1 %v11938_v35 }
 0x78e   : > { %v7631_v43 = vmax.f32 %v7630_v9, %v5827_v30  ;;  %v6396_v3 = vpop.f32.mrf.mxu1 }
 0x78f   : > { %v8066_v13 = vmax.f32 %v8065_v40, %v6396_v3  ;;  %v5829_v56 = vpop.f32.mrf.mxu0 }
 0x790   : > { %v7793_v61 = vmax.f32 %v7792_v5, %v5829_v56  ;;  %v6398_v0 = vpop.f32.mrf.mxu1 }
 0x791   : > { %v7905_v50 = vmax.f32 %v7904_v4, %v6398_v0  ;;  %v5833_v8 = vpop.f32.mrf.mxu0 }
 0x792   : > { %v7632_v27 = vmax.f32 %v7631_v43, %v5833_v8  ;;  %v6400_v63 = vpop.f32.mrf.mxu1 }
 0x793   : > { %v8067_v11 = vmax.f32 %v8066_v13, %v6400_v63  ;;  %v5835_v41 = vpop.f32.mrf.mxu0 }
 0x794   : > { %v7794_v59 = vmax.f32 %v7793_v61, %v5835_v41  ;;  %v6404_v19 = vpop.f32.mrf.mxu1  ;;  %6643 = vmatmul.mubr.bf16.gmra.mxu1 %v12039_v12 }
 0x795   : > { %v7906_v33 = vmax.f32 %v7905_v50, %v6404_v19  ;;  %v5837_v52 = vpop.f32.mrf.mxu0  ;;  %6652 = vmatprep.mubr.bf16.mxu1 %v11938_v35 }
 0x796   : > { %v7633_v20 = vmax.f32 %v7632_v27, %v5837_v52  ;;  %v6406_v29 = vpop.f32.mrf.mxu1 }
 0x797   : > { %v8068_v32 = vmax.f32 %v8067_v11, %v6406_v29  ;;  %v5839_v16 = vpop.f32.mrf.mxu0 }
 0x798   : > { %v7795_v48 = vmax.f32 %v7794_v59, %v5839_v16  ;;  %v6408_v62 = vpop.f32.mrf.mxu1 }
 0x799   : > { %v7907_v36 = vmax.f32 %v7906_v33, %v6408_v62  ;;  %v5843_v14 = vpop.f32.mrf.mxu0 }
 0x79a   : > { %v7634_v23 = vmax.f32 %v7633_v20, %v5843_v14  ;;  %v6410_v2 = vpop.f32.mrf.mxu1 }
 0x79b   : > { %v8069_v18 = vmax.f32 %v8068_v32, %v6410_v2  ;;  %v5845_v24 = vpop.f32.mrf.mxu0 }
 0x79c   : > { %v7796_v51 = vmax.f32 %v7795_v48, %v5845_v24  ;;  %v6414_v9 = vpop.f32.mrf.mxu1  ;;  %6653 = vmatmul.mubr.bf16.gmra.mxu1 %v12040_v54 }
 0x79d   : > { %v7908_v12 = vmax.f32 %v7907_v36, %v6414_v9  ;;  %v5847_v44 = vpop.f32.mrf.mxu0  ;;  %6662 = vmatprep.mubr.bf16.mxu1 %v11938_v35 }
 0x79e   : > { %v7635_v40 = vmax.f32 %v7634_v23, %v5847_v44  ;;  %v6416_v37 = vpop.f32.mrf.mxu1 }
 0x79f   : > { %v8070_v5 = vmax.f32 %v8069_v18, %v6416_v37  ;;  %v5849_v45 = vpop.f32.mrf.mxu0 }
 0x7a0   : > { %v7797_v4 = vmax.f32 %v7796_v51, %v5849_v45  ;;  %v6418_v30 = vpop.f32.mrf.mxu1 }
 0x7a1   : > { %v7909_v43 = vmax.f32 %v7908_v12, %v6418_v30  ;;  %v5853_v3 = vpop.f32.mrf.mxu0 }
 0x7a2   : > { %v7636_v13 = vmax.f32 %v7635_v40, %v5853_v3  ;;  %v6420_v56 = vpop.f32.mrf.mxu1 }
 0x7a3   : > { %v8071_v61 = vmax.f32 %v8070_v5, %v6420_v56  ;;  %v5855_v0 = vpop.f32.mrf.mxu0 }
 0x7a4   : > { %v7798_v50 = vmax.f32 %v7797_v4, %v5855_v0  ;;  %v6424_v8 = vpop.f32.mrf.mxu1  ;;  %6663 = vmatmul.mubr.bf16.gmra.mxu1 %v12041_v38 }
 0x7a5   : > { %v7910_v54 = vmax.f32 %v7909_v43, %v6424_v8  ;;  %v5857_v27 = vpop.f32.mrf.mxu0  ;;  %6672 = vmatprep.mubr.bf16.mxu1 %v11938_v35 }
 0x7a6   : > { %v7637_v63 = vmax.f32 %v7636_v13, %v5857_v27  ;;  %v6426_v11 = vpop.f32.mrf.mxu1 }
 0x7a7   : > { %v8072_v41 = vmax.f32 %v8071_v61, %v6426_v11  ;;  %v5859_v59 = vpop.f32.mrf.mxu0 }
 0x7a8   : > { %v7799_v19 = vmax.f32 %v7798_v50, %v5859_v59  ;;  %v6428_v33 = vpop.f32.mrf.mxu1 }
 0x7a9   : > { %v7911_v52 = vmax.f32 %v7910_v54, %v6428_v33  ;;  %v5863_v20 = vpop.f32.mrf.mxu0 }
 0x7aa   : > { %v7638_v29 = vmax.f32 %v7637_v63, %v5863_v20  ;;  %v6430_v32 = vpop.f32.mrf.mxu1 }
 0x7ab   : > { %v8073_v16 = vmax.f32 %v8072_v41, %v6430_v32  ;;  %v5865_v48 = vpop.f32.mrf.mxu0 }
 0x7ac   : > { %v7800_v62 = vmax.f32 %v7799_v19, %v5865_v48  ;;  %v6434_v36 = vpop.f32.mrf.mxu1  ;;  %6673 = vmatmul.mubr.bf16.gmra.mxu1 %v12042_v58 }
 0x7ad   : > { %v7912_v38 = vmax.f32 %v7911_v52, %v6434_v36  ;;  %v5867_v14 = vpop.f32.mrf.mxu0  ;;  %6682 = vmatprep.mubr.bf16.mxu1 %v11938_v35 }
 0x7ae   : > { %v7639_v23 = vmax.f32 %v7638_v29, %v5867_v14  ;;  %v6436_v2 = vpop.f32.mrf.mxu1 }
 0x7af   : > { %v8074_v18 = vmax.f32 %v8073_v16, %v6436_v2  ;;  %v5869_v24 = vpop.f32.mrf.mxu0 }
 0x7b0   : > { %v7801_v51 = vmax.f32 %v7800_v62, %v5869_v24  ;;  %v6438_v9 = vpop.f32.mrf.mxu1 }
 0x7b1   : > { %v7913_v12 = vmax.f32 %v7912_v38, %v6438_v9  ;;  %v5873_v44 = vpop.f32.mrf.mxu0 }
 0x7b2   : > { %v7640_v40 = vmax.f32 %v7639_v23, %v5873_v44  ;;  %v6440_v37 = vpop.f32.mrf.mxu1 }
 0x7b3   : > { %v8075_v5 = vmax.f32 %v8074_v18, %v6440_v37  ;;  %v5875_v45 = vpop.f32.mrf.mxu0 }
 0x7b4   : > { %v7802_v4 = vmax.f32 %v7801_v51, %v5875_v45  ;;  %v6444_v30 = vpop.f32.mrf.mxu1  ;;  %6683 = vmatmul.mubr.bf16.gmra.mxu1 %v12043_v26 }
 0x7b5   : > { %v7914_v58 = vmax.f32 %v7913_v12, %v6444_v30  ;;  %v5877_v43 = vpop.f32.mrf.mxu0  ;;  %6692 = vmatprep.mubr.bf16.mxu1 %v11938_v35 }
 0x7b6   : > { %v7641_v3 = vmax.f32 %v7640_v40, %v5877_v43  ;;  %v6446_v13 = vpop.f32.mrf.mxu1 }
 0x7b7   : > { %v8076_v56 = vmax.f32 %v8075_v5, %v6446_v13  ;;  %v5879_v61 = vpop.f32.mrf.mxu0 }
 0x7b8   : > { %v7803_v0 = vmax.f32 %v7802_v4, %v5879_v61  ;;  %v6448_v50 = vpop.f32.mrf.mxu1 }
 0x7b9   : > { %v7915_v8 = vmax.f32 %v7914_v58, %v6448_v50  ;;  %v5883_v54 = vpop.f32.mrf.mxu0 }
 0x7ba   : > { %v7642_v27 = vmax.f32 %v7641_v3, %v5883_v54  ;;  %v6450_v63 = vpop.f32.mrf.mxu1 }
 0x7bb   : > { %v8077_v11 = vmax.f32 %v8076_v56, %v6450_v63  ;;  %v5885_v41 = vpop.f32.mrf.mxu0 }
 0x7bc   : > { %v7804_v59 = vmax.f32 %v7803_v0, %v5885_v41  ;;  %v6454_v19 = vpop.f32.mrf.mxu1  ;;  %6693 = vmatmul.mubr.bf16.gmra.mxu1 %v12044_v28 }
 0x7bd   : > { %v7916_v26 = vmax.f32 %v7915_v8, %v6454_v19  ;;  %v5887_v33 = vpop.f32.mrf.mxu0  ;;  %6702 = vmatprep.mubr.bf16.mxu1 %v11938_v35 }
 0x7be   : > { %v7643_v52 = vmax.f32 %v7642_v27, %v5887_v33  ;;  %v6456_v20 = vpop.f32.mrf.mxu1 }
 0x7bf   : > { %v8078_v29 = vmax.f32 %v8077_v11, %v6456_v20  ;;  %v5889_v32 = vpop.f32.mrf.mxu0 }
 0x7c0   : > { %v7805_v16 = vmax.f32 %v7804_v59, %v5889_v32  ;;  %v6458_v48 = vpop.f32.mrf.mxu1 }
 0x7c1   : > { %v7917_v62 = vmax.f32 %v7916_v26, %v6458_v48  ;;  %v5893_v36 = vpop.f32.mrf.mxu0 }
 0x7c2   : > { %v7644_v38 = vmax.f32 %v7643_v52, %v5893_v36  ;;  %v6460_v14 = vpop.f32.mrf.mxu1 }
 0x7c3   : > { %v8079_v23 = vmax.f32 %v8078_v29, %v6460_v14  ;;  %v5895_v2 = vpop.f32.mrf.mxu0 }
 0x7c4   : > { %v7806_v18 = vmax.f32 %v7805_v16, %v5895_v2  ;;  %v6464_v24 = vpop.f32.mrf.mxu1  ;;  %6703 = vmatmul.mubr.bf16.gmra.mxu1 %v12045_v34 }
 0x7c5   : > { %v7918_v28 = vmax.f32 %v7917_v62, %v6464_v24  ;;  %v5897_v51 = vpop.f32.mrf.mxu0  ;;  %6712 = vmatprep.mubr.bf16.mxu1 %v11938_v35 }
 0x7c6   : > { %v7645_v9 = vmax.f32 %v7644_v38, %v5897_v51  ;;  %v6466_v12 = vpop.f32.mrf.mxu1 }
 0x7c7   : > { %v8080_v44 = vmax.f32 %v8079_v23, %v6466_v12  ;;  %v5899_v40 = vpop.f32.mrf.mxu0 }
 0x7c8   : > { %v7807_v37 = vmax.f32 %v7806_v18, %v5899_v40  ;;  %v6468_v5 = vpop.f32.mrf.mxu1 }
 0x7c9   : > { %v7919_v45 = vmax.f32 %v7918_v28, %v6468_v5  ;;  %v5903_v4 = vpop.f32.mrf.mxu0 }
 0x7ca   : > { %v7646_v30 = vmax.f32 %v7645_v9, %v5903_v4  ;;  %v6470_v58 = vpop.f32.mrf.mxu1 }
 0x7cb   : > { %v8081_v43 = vmax.f32 %v8080_v44, %v6470_v58  ;;  %v5905_v3 = vpop.f32.mrf.mxu0 }
 0x7cc   : > { %v7808_v13 = vmax.f32 %v7807_v37, %v5905_v3  ;;  %v6474_v56 = vpop.f32.mrf.mxu1  ;;  %6713 = vmatmul.mubr.bf16.gmra.mxu1 %v12046_v39 }
 0x7cd   : > { %v7920_v34 = vmax.f32 %v7919_v45, %v6474_v56  ;;  %v5907_v61 = vpop.f32.mrf.mxu0  ;;  %6722 = vmatprep.mubr.bf16.mxu1 %v11938_v35 }
 0x7ce   : > { %v7647_v0 = vmax.f32 %v7646_v30, %v5907_v61  ;;  %v6476_v50 = vpop.f32.mrf.mxu1 }
 0x7cf   : > { %v8082_v8 = vmax.f32 %v8081_v43, %v6476_v50  ;;  %v5909_v54 = vpop.f32.mrf.mxu0 }
 0x7d0   : > { %v7809_v27 = vmax.f32 %v7808_v13, %v5909_v54  ;;  %v6478_v63 = vpop.f32.mrf.mxu1 }
 0x7d1   : > { %v7921_v11 = vmax.f32 %v7920_v34, %v6478_v63  ;;  %v5913_v41 = vpop.f32.mrf.mxu0 }
 0x7d2   : > { %v7648_v59 = vmax.f32 %v7647_v0, %v5913_v41  ;;  %v6480_v19 = vpop.f32.mrf.mxu1 }
 0x7d3   : > { %v8083_v26 = vmax.f32 %v8082_v8, %v6480_v19  ;;  %v5915_v33 = vpop.f32.mrf.mxu0 }
 0x7d4   : > { %v7810_v52 = vmax.f32 %v7809_v27, %v5915_v33  ;;  %v6484_v20 = vpop.f32.mrf.mxu1  ;;  %6723 = vmatmul.mubr.bf16.gmra.mxu1 %v12047_v10 }
 0x7d5   : > { %v7922_v39 = vmax.f32 %v7921_v11, %v6484_v20  ;;  %v5917_v29 = vpop.f32.mrf.mxu0  ;;  %6732 = vmatprep.mubr.bf16.mxu1 %v11938_v35 }
 0x7d6   : > { %v7649_v32 = vmax.f32 %v7648_v59, %v5917_v29  ;;  %v6486_v16 = vpop.f32.mrf.mxu1 }
 0x7d7   : > { %v8084_v48 = vmax.f32 %v8083_v26, %v6486_v16  ;;  %v5919_v62 = vpop.f32.mrf.mxu0 }
 0x7d8   : > { %v7811_v36 = vmax.f32 %v7810_v52, %v5919_v62  ;;  %v6488_v38 = vpop.f32.mrf.mxu1 }
 0x7d9   : > { %v7923_v14 = vmax.f32 %v7922_v39, %v6488_v38  ;;  %v5923_v23 = vpop.f32.mrf.mxu0 }
 0x7da   : > { %v7650_v2 = vmax.f32 %v7649_v32, %v5923_v23  ;;  %v6490_v18 = vpop.f32.mrf.mxu1 }
 0x7db   : > { %v8085_v24 = vmax.f32 %v8084_v48, %v6490_v18  ;;  %v5925_v28 = vpop.f32.mrf.mxu0 }
 0x7dc   : > { %v7812_v51 = vmax.f32 %v7811_v36, %v5925_v28  ;;  %v6494_v9 = vpop.f32.mrf.mxu1  ;;  %6733 = vmatmul.mubr.bf16.gmra.mxu1 %v12048_v55 }
 0x7dd   : > { %v7924_v10 = vmax.f32 %v7923_v14, %v6494_v9  ;;  %v5927_v12 = vpop.f32.mrf.mxu0  ;;  %6742 = vmatprep.mubr.bf16.mxu1 %v11938_v35 }
 0x7de   : > { %v7651_v44 = vmax.f32 %v7650_v2, %v5927_v12  ;;  %v6496_v40 = vpop.f32.mrf.mxu1 }
 0x7df   : > { %v8086_v37 = vmax.f32 %v8085_v24, %v6496_v40  ;;  %v5929_v5 = vpop.f32.mrf.mxu0 }
 0x7e0   : > { %v7813_v45 = vmax.f32 %v7812_v51, %v5929_v5  ;;  %v6498_v4 = vpop.f32.mrf.mxu1 }
 0x7e1   : > { %v7925_v30 = vmax.f32 %v7924_v10, %v6498_v4  ;;  %v5933_v58 = vpop.f32.mrf.mxu0 }
 0x7e2   : > { %v7652_v43 = vmax.f32 %v7651_v44, %v5933_v58  ;;  %v6500_v3 = vpop.f32.mrf.mxu1 }
 0x7e3   : > { %v8087_v13 = vmax.f32 %v8086_v37, %v6500_v3  ;;  %v5935_v56 = vpop.f32.mrf.mxu0 }
 0x7e4   : > { %v7814_v34 = vmax.f32 %v7813_v45, %v5935_v56  ;;  %v6504_v61 = vpop.f32.mrf.mxu1  ;;  %6743 = vmatmul.mubr.bf16.gmra.mxu1 %v12049_v25 }
 0x7e5   : > { %v7926_v55 = vmax.f32 %v7925_v30, %v6504_v61  ;;  %v5937_v0 = vpop.f32.mrf.mxu0  ;;  %6752 = vmatprep.mubr.bf16.mxu1 %v11938_v35 }
 0x7e6   : > { %v7653_v50 = vmax.f32 %v7652_v43, %v5937_v0  ;;  %v6506_v8 = vpop.f32.mrf.mxu1 }
 0x7e7   : > { %v8088_v54 = vmax.f32 %v8087_v13, %v6506_v8  ;;  %v5939_v27 = vpop.f32.mrf.mxu0 }
 0x7e8   : > { %v7815_v63 = vmax.f32 %v7814_v34, %v5939_v27  ;;  %v6508_v11 = vpop.f32.mrf.mxu1 }
 0x7e9   : > { %v7927_v41 = vmax.f32 %v7926_v55, %v6508_v11  ;;  %v5943_v59 = vpop.f32.mrf.mxu0 }
 0x7ea   : > { %v7654_v19 = vmax.f32 %v7653_v50, %v5943_v59  ;;  %v6510_v26 = vpop.f32.mrf.mxu1 }
 0x7eb   : > { %v8089_v33 = vmax.f32 %v8088_v54, %v6510_v26  ;;  %v5945_v52 = vpop.f32.mrf.mxu0 }
 0x7ec   : > { %v7816_v20 = vmax.f32 %v7815_v63, %v5945_v52  ;;  %v6514_v39 = vpop.f32.mrf.mxu1  ;;  %6753 = vmatmul.mubr.bf16.gmra.mxu1 %v12050_v57 }
 0x7ed   : > { %v7928_v25 = vmax.f32 %v7927_v41, %v6514_v39  ;;  %v5947_v29 = vpop.f32.mrf.mxu0  ;;  %6762 = vmatprep.mubr.bf16.mxu1 %v11938_v35 }
 0x7ee   : > { %v7655_v32 = vmax.f32 %v7654_v19, %v5947_v29  ;;  %v6516_v16 = vpop.f32.mrf.mxu1 }
 0x7ef   : > { %v8090_v48 = vmax.f32 %v8089_v33, %v6516_v16  ;;  %v5949_v62 = vpop.f32.mrf.mxu0 }
 0x7f0   : > { %v7817_v36 = vmax.f32 %v7816_v20, %v5949_v62  ;;  %v6518_v38 = vpop.f32.mrf.mxu1 }
 0x7f1   : > { %v7929_v14 = vmax.f32 %v7928_v25, %v6518_v38  ;;  %v5953_v23 = vpop.f32.mrf.mxu0 }
 0x7f2   : > { %v7656_v2 = vmax.f32 %v7655_v32, %v5953_v23  ;;  %v6520_v18 = vpop.f32.mrf.mxu1 }
 0x7f3   : > { %v8091_v24 = vmax.f32 %v8090_v48, %v6520_v18  ;;  %v5955_v28 = vpop.f32.mrf.mxu0 }
 0x7f4   : > { %v7818_v51 = vmax.f32 %v7817_v36, %v5955_v28  ;;  %v6524_v9 = vpop.f32.mrf.mxu1  ;;  %6763 = vmatmul.mubr.bf16.gmra.mxu1 %v12051_v15 }
 0x7f5   : > { %v7930_v57 = vmax.f32 %v7929_v14, %v6524_v9  ;;  %v5957_v10 = vpop.f32.mrf.mxu0  ;;  %6772 = vmatprep.mubr.bf16.mxu1 %v11938_v35 }
 0x7f6   : > { %v7657_v12 = vmax.f32 %v7656_v2, %v5957_v10  ;;  %v6526_v44 = vpop.f32.mrf.mxu1 }
 0x7f7   : > { %v8092_v40 = vmax.f32 %v8091_v24, %v6526_v44  ;;  %v5959_v37 = vpop.f32.mrf.mxu0 }
 0x7f8   : > { %v7819_v5 = vmax.f32 %v7818_v51, %v5959_v37  ;;  %v6528_v45 = vpop.f32.mrf.mxu1 }
 0x7f9   : > { %v7931_v4 = vmax.f32 %v7930_v57, %v6528_v45  ;;  %v5963_v30 = vpop.f32.mrf.mxu0 }
 0x7fa   : > { %v7658_v58 = vmax.f32 %v7657_v12, %v5963_v30  ;;  %v6530_v43 = vpop.f32.mrf.mxu1 }
 0x7fb   : > { %v8093_v3 = vmax.f32 %v8092_v40, %v6530_v43  ;;  %v5965_v13 = vpop.f32.mrf.mxu0 }
 0x7fc   : > { %v7820_v56 = vmax.f32 %v7819_v5, %v5965_v13  ;;  %v6534_v34 = vpop.f32.mrf.mxu1  ;;  %6773 = vmatmul.mubr.bf16.gmra.mxu1 %v12052_v22 }
 0x7fd   : > { %v7932_v15 = vmax.f32 %v7931_v4, %v6534_v34  ;;  %v5967_v61 = vpop.f32.mrf.mxu0  ;;  %6782 = vmatprep.mubr.bf16.mxu1 %v11938_v35 }
 0x7fe   : > { %v7659_v55 = vmax.f32 %v7658_v58, %v5967_v61  ;;  %v6536_v0 = vpop.f32.mrf.mxu1 }
 0x7ff   : > { %v8094_v50 = vmax.f32 %v8093_v3, %v6536_v0  ;;  %v5969_v8 = vpop.f32.mrf.mxu0 }
 0x800   : > { %v7821_v54 = vmax.f32 %v7820_v56, %v5969_v8  ;;  %v6538_v27 = vpop.f32.mrf.mxu1 }
 0x801   : > { %v7933_v63 = vmax.f32 %v7932_v15, %v6538_v27  ;;  %v5973_v11 = vpop.f32.mrf.mxu0 }
 0x802   : > { %v7660_v41 = vmax.f32 %v7659_v55, %v5973_v11  ;;  %v6540_v59 = vpop.f32.mrf.mxu1 }
 0x803   : > { %v8095_v19 = vmax.f32 %v8094_v50, %v6540_v59  ;;  %v5975_v26 = vpop.f32.mrf.mxu0 }
 0x804   : > { %v7822_v33 = vmax.f32 %v7821_v54, %v5975_v26  ;;  %v6544_v52 = vpop.f32.mrf.mxu1  ;;  %6783 = vmatmul.mubr.bf16.gmra.mxu1 %v12053_v31 }
 0x805   : > { %v7934_v22 = vmax.f32 %v7933_v63, %v6544_v52  ;;  %v5977_v20 = vpop.f32.mrf.mxu0  ;;  %6792 = vmatprep.mubr.bf16.mxu1 %v11938_v35 }
 0x806   : > { %v7661_v39 = vmax.f32 %v7660_v41, %v5977_v20  ;;  %v6546_v25 = vpop.f32.mrf.mxu1 }
 0x807   : > { %v8096_v29 = vmax.f32 %v8095_v19, %v6546_v25  ;;  %v5979_v32 = vpop.f32.mrf.mxu0 }
 0x808   : > { %v7823_v16 = vmax.f32 %v7822_v33, %v5979_v32  ;;  %v6548_v48 = vpop.f32.mrf.mxu1 }
 0x809   : > { %v7935_v62 = vmax.f32 %v7934_v22, %v6548_v48  ;;  %v5983_v36 = vpop.f32.mrf.mxu0 }
 0x80a   : > { %v7662_v38 = vmax.f32 %v7661_v39, %v5983_v36  ;;  %v6550_v14 = vpop.f32.mrf.mxu1 }
 0x80b   : > { %v8097_v23 = vmax.f32 %v8096_v29, %v6550_v14  ;;  %v5985_v2 = vpop.f32.mrf.mxu0 }
 0x80c   : > { %v7824_v18 = vmax.f32 %v7823_v16, %v5985_v2  ;;  %v6554_v24 = vpop.f32.mrf.mxu1  ;;  %6793 = vmatmul.mubr.bf16.gmra.mxu1 %v12054_v1 }
 0x80d   : > { %v7936_v31 = vmax.f32 %v7935_v62, %v6554_v24  ;;  %v5987_v28 = vpop.f32.mrf.mxu0  ;;  %6802 = vmatprep.mubr.bf16.mxu1 %v11938_v35 }
 0x80e   : > { %v7663_v51 = vmax.f32 %v7662_v38, %v5987_v28  ;;  %v6556_v9 = vpop.f32.mrf.mxu1 }
 0x80f   : > { %v8098_v57 = vmax.f32 %v8097_v23, %v6556_v9  ;;  %v5989_v10 = vpop.f32.mrf.mxu0 }
 0x810   : > { %v7825_v12 = vmax.f32 %v7824_v18, %v5989_v10  ;;  %v6558_v44 = vpop.f32.mrf.mxu1 }
 0x811   : > { %v7937_v40 = vmax.f32 %v7936_v31, %v6558_v44  ;;  %v5993_v37 = vpop.f32.mrf.mxu0 }
 0x812   : > { %v7664_v5 = vmax.f32 %v7663_v51, %v5993_v37  ;;  %v6560_v45 = vpop.f32.mrf.mxu1 }
 0x813   : > { %v8099_v4 = vmax.f32 %v8098_v57, %v6560_v45  ;;  %v5995_v30 = vpop.f32.mrf.mxu0 }
 0x814   : > { %v7826_v58 = vmax.f32 %v7825_v12, %v5995_v30  ;;  %v6564_v43 = vpop.f32.mrf.mxu1  ;;  %6803 = vmatmul.mubr.bf16.gmra.mxu1 %v12055_v60 }
 0x815   : > { %v7938_v1 = vmax.f32 %v7937_v40, %v6564_v43  ;;  %v5997_v3 = vpop.f32.mrf.mxu0  ;;  %6812 = vmatprep.mubr.bf16.mxu1 %v11938_v35 }
 0x816   : > { %v7665_v13 = vmax.f32 %v7664_v5, %v5997_v3  ;;  %v6566_v56 = vpop.f32.mrf.mxu1 }
 0x817   : > { %v8100_v34 = vmax.f32 %v8099_v4, %v6566_v56  ;;  %v5999_v15 = vpop.f32.mrf.mxu0 }
 0x818   : > { %v7827_v61 = vmax.f32 %v7826_v58, %v5999_v15  ;;  %v6568_v55 = vpop.f32.mrf.mxu1 }
 0x819   : > { %v7939_v0 = vmax.f32 %v7938_v1, %v6568_v55  ;;  %v6003_v50 = vpop.f32.mrf.mxu0 }
 0x81a   : > { %v7666_v8 = vmax.f32 %v7665_v13, %v6003_v50  ;;  %v6570_v54 = vpop.f32.mrf.mxu1 }
 0x81b   : > { %v8101_v27 = vmax.f32 %v8100_v34, %v6570_v54  ;;  %v6005_v63 = vpop.f32.mrf.mxu0 }
 0x81c   : > { %v7828_v11 = vmax.f32 %v7827_v61, %v6005_v63  ;;  %v6574_v41 = vpop.f32.mrf.mxu1  ;;  %6813 = vmatmul.mubr.bf16.gmra.mxu1 %v12056_v42 }
 0x81d   : > { %v7940_v60 = vmax.f32 %v7939_v0, %v6574_v41  ;;  %v6007_v59 = vpop.f32.mrf.mxu0  ;;  %6822 = vmatprep.mubr.bf16.mxu1 %v11938_v35 }
 0x81e   : > { %v7667_v19 = vmax.f32 %v7666_v8, %v6007_v59  ;;  %v6576_v26 = vpop.f32.mrf.mxu1 }
 0x81f   : > { %v8102_v33 = vmax.f32 %v8101_v27, %v6576_v26  ;;  %v6009_v52 = vpop.f32.mrf.mxu0 }
 0x820   : > { %v7829_v22 = vmax.f32 %v7828_v11, %v6009_v52  ;;  %v6578_v20 = vpop.f32.mrf.mxu1 }
 0x821   : > { %v7941_v39 = vmax.f32 %v7940_v60, %v6578_v20  ;;  %v6013_v25 = vpop.f32.mrf.mxu0 }
 0x822   : > { %v7668_v29 = vmax.f32 %v7667_v19, %v6013_v25  ;;  %v6580_v32 = vpop.f32.mrf.mxu1 }
 0x823   : > { %v8103_v16 = vmax.f32 %v8102_v33, %v6580_v32  ;;  %v6015_v48 = vpop.f32.mrf.mxu0 }
 0x824   : > { %v7830_v62 = vmax.f32 %v7829_v22, %v6015_v48  ;;  %v6584_v36 = vpop.f32.mrf.mxu1  ;;  %6823 = vmatmul.mubr.bf16.gmra.mxu1 %v12057_v46 }
 0x825   : > { %v7942_v42 = vmax.f32 %v7941_v39, %v6584_v36  ;;  %v6017_v38 = vpop.f32.mrf.mxu0  ;;  %6832 = vmatprep.mubr.bf16.mxu1 %v11938_v35 }
 0x826   : > { %v7669_v14 = vmax.f32 %v7668_v29, %v6017_v38  ;;  %v6586_v23 = vpop.f32.mrf.mxu1 }
 0x827   : > { %v8104_v2 = vmax.f32 %v8103_v16, %v6586_v23  ;;  %v6019_v18 = vpop.f32.mrf.mxu0 }
 0x828   : > { %v7831_v24 = vmax.f32 %v7830_v62, %v6019_v18  ;;  %v6588_v31 = vpop.f32.mrf.mxu1 }
 0x829   : > { %v7943_v28 = vmax.f32 %v7942_v42, %v6588_v31  ;;  %v6023_v51 = vpop.f32.mrf.mxu0 }
 0x82a   : > { %v7670_v9 = vmax.f32 %v7669_v14, %v6023_v51  ;;  %v6590_v57 = vpop.f32.mrf.mxu1 }
 0x82b   : > { %v8105_v10 = vmax.f32 %v8104_v2, %v6590_v57  ;;  %v6025_v12 = vpop.f32.mrf.mxu0 }
 0x82c   : > { %v7832_v44 = vmax.f32 %v7831_v24, %v6025_v12  ;;  %v6594_v40 = vpop.f32.mrf.mxu1  ;;  %6833 = vmatmul.mubr.bf16.gmra.mxu1 %v12058_v47 }
 0x82d   : > { %v7944_v46 = vmax.f32 %v7943_v28, %v6594_v40  ;;  %v6027_v37 = vpop.f32.mrf.mxu0  ;;  %6842 = vmatprep.mubr.bf16.mxu1 %v11938_v35 }
 0x82e   : > { %v7671_v5 = vmax.f32 %v7670_v9, %v6027_v37  ;;  %v6596_v45 = vpop.f32.mrf.mxu1 }
 0x82f   : > { %v8106_v4 = vmax.f32 %v8105_v10, %v6596_v45  ;;  %v6029_v30 = vpop.f32.mrf.mxu0 }
 0x830   : > { %v7833_v58 = vmax.f32 %v7832_v44, %v6029_v30  ;;  %v6598_v43 = vpop.f32.mrf.mxu1 }
 0x831   : > { %v7945_v1 = vmax.f32 %v7944_v46, %v6598_v43  ;;  %v6033_v3 = vpop.f32.mrf.mxu0 }
 0x832   : > { %v7672_v13 = vmax.f32 %v7671_v5, %v6033_v3  ;;  %v6600_v56 = vpop.f32.mrf.mxu1 }
 0x833   : > { %v8107_v34 = vmax.f32 %v8106_v4, %v6600_v56  ;;  %v6035_v15 = vpop.f32.mrf.mxu0 }
 0x834   : > { %v7834_v61 = vmax.f32 %v7833_v58, %v6035_v15  ;;  %v6604_v55 = vpop.f32.mrf.mxu1  ;;  %6843 = vmatmul.mubr.bf16.gmra.mxu1 %v12059_v53 }
 0x835   : > { %v7946_v47 = vmax.f32 %v7945_v1, %v6604_v55  ;;  %v6037_v0 = vpop.f32.mrf.mxu0  ;;  %6852 = vmatprep.mubr.bf16.mxu1 %v11938_v35 }
 0x836   : > { %v7673_v50 = vmax.f32 %v7672_v13, %v6037_v0  ;;  %v6606_v8 = vpop.f32.mrf.mxu1 }
 0x837   : > { %v8108_v54 = vmax.f32 %v8107_v34, %v6606_v8  ;;  %v6039_v27 = vpop.f32.mrf.mxu0 }
 0x838   : > { %v7835_v63 = vmax.f32 %v7834_v61, %v6039_v27  ;;  %v6608_v11 = vpop.f32.mrf.mxu1 }
 0x839   : > { %v7947_v41 = vmax.f32 %v7946_v47, %v6608_v11  ;;  %v6043_v60 = vpop.f32.mrf.mxu0 }
 0x83a   : > { %v7674_v59 = vmax.f32 %v7673_v50, %v6043_v60  ;;  %v6610_v19 = vpop.f32.mrf.mxu1 }
 0x83b   : > { %v8109_v26 = vmax.f32 %v8108_v54, %v6610_v19  ;;  %v6045_v33 = vpop.f32.mrf.mxu0 }
 0x83c   : > { %v7675_v52 = vrot.slane %v7674_v59, 4  ;;  %v7836_v22 = vmax.f32 %v7835_v63, %v6045_v33  ;;  %v6614_v20 = vpop.f32.mrf.mxu1  ;;  %6853 = vmatmul.mubr.bf16.gmra.mxu1 %v12060_v7 }
 0x83d   : > { %v7948_v53 = vmax.f32 %v7947_v41, %v6614_v20  ;;  %v6047_v39 = vpop.f32.mrf.mxu0  ;;  %6862 = vmatprep.mubr.bf16.mxu1 %v11938_v35 }
 0x83e   : > { %v7676_v25 = vmax.f32 %v7674_v59, %v7675_v52  ;;  %v7837_v29 = vrot.slane %v7836_v22, 4  ;;  %v6616_v32 = vpop.f32.mrf.mxu1 }
 0x83f   : > { %v8110_v16 = vmax.f32 %v8109_v26, %v6616_v32  ;;  %v6048_v48 = vpop.f32.mrf.mxu0 }
 0x840   : > { %v7677_v62 = vrot.slane %v7676_v25, 2  ;;  %v7838_v36 = vmax.f32 %v7836_v22, %v7837_v29  ;;  %v6618_v42 = vpop.f32.mrf.mxu1 }
 0x841   : > { %v7949_v38 = vmax.f32 %v7948_v53, %v6618_v42 }
 0x842   : > { %v7678_v14 = vmax.f32 %v7676_v25, %v7677_v62  ;;  %v7839_v23 = vrot.slane %v7838_v36, 2  ;;  %v6620_v2 = vpop.f32.mrf.mxu1 }
 0x843   : > { %v8111_v18 = vmax.f32 %v8110_v16, %v6620_v2 }
 0x844   : > { %v7679_v24 = vrot.slane %v7678_v14, 1  ;;  %v7840_v31 = vmax.f32 %v7838_v36, %v7839_v23  ;;  %v6624_v7 = vpop.f32.mrf.mxu1  ;;  %6863 = vmatmul.mubr.bf16.gmra.mxu1 %v12061_v21 }
 0x845   : > { %v7950_v28 = vmax.f32 %v7949_v38, %v6624_v7 }
 0x846   : > { %v11721_v35 = vmax.f32 %v7678_v14, %v7679_v24  ;;  %v7841_v51 = vrot.slane %v7840_v31, 1  ;;  %v6626_v9 = vpop.f32.mrf.mxu1 }
 0x847   : > { %v8112_v57 = vmax.f32 %v8111_v18, %v6626_v9 }
 0x848   : > { %v11723_v10 = vmax.f32 %v7840_v31, %v7841_v51  ;;  %v6628_v12 = vpop.f32.mrf.mxu1 }
 0x849   : > { %v7951_v44 = vmax.f32 %v7950_v28, %v6628_v12 }
 0x84a   : > { %v6630_v40 = vpop.f32.mrf.mxu1 }
 0x84b   : > { %v8113_v46 = vmax.f32 %v8112_v57, %v6630_v40 }
 0x84c   : > { %v6634_v37 = vpop.f32.mrf.mxu1 }
 0x84d   : > { %v7952_v5 = vmax.f32 %v7951_v44, %v6634_v37 }
 0x84e   : > { %v6636_v45 = vpop.f32.mrf.mxu1 }
 0x84f   : > { %v8114_v4 = vmax.f32 %v8113_v46, %v6636_v45 }
 0x850   : > { %v6638_v30 = vpop.f32.mrf.mxu1 }
 0x851   : > { %v7953_v58 = vmax.f32 %v7952_v5, %v6638_v30 }
 0x852   : > { %v6640_v43 = vpop.f32.mrf.mxu1 }
 0x853   : > { %v8115_v21 = vmax.f32 %v8114_v4, %v6640_v43 }
 0x854   : > { %v6644_v1 = vpop.f32.mrf.mxu1 }
 0x855   : > { %v7954_v3 = vmax.f32 %v7953_v58, %v6644_v1 }
 0x856   : > { %v6646_v13 = vpop.f32.mrf.mxu1 }
 0x857   : > { %v8116_v56 = vmax.f32 %v8115_v21, %v6646_v13 }
 0x858   : > { %v6648_v34 = vpop.f32.mrf.mxu1 }
 0x859   : > { %v7955_v15 = vmax.f32 %v7954_v3, %v6648_v34 }
 0x85a   : > { %v6650_v61 = vpop.f32.mrf.mxu1 }
 0x85b   : > { %v8117_v55 = vmax.f32 %v8116_v56, %v6650_v61 }
 0x85c   : > { %v6654_v47 = vpop.f32.mrf.mxu1 }
 0x85d   : > { %v7956_v0 = vmax.f32 %v7955_v15, %v6654_v47 }
 0x85e   : > { %v6656_v50 = vpop.f32.mrf.mxu1 }
 0x85f   : > { %v8118_v8 = vmax.f32 %v8117_v55, %v6656_v50 }
 0x860   : > { %v6658_v54 = vpop.f32.mrf.mxu1 }
 0x861   : > { %v7957_v27 = vmax.f32 %v7956_v0, %v6658_v54 }
 0x862   : > { %v6660_v63 = vpop.f32.mrf.mxu1 }
 0x863   : > { %v8119_v11 = vmax.f32 %v8118_v8, %v6660_v63 }
 0x864   : > { %v6664_v41 = vpop.f32.mrf.mxu1 }
 0x865   : > { %v7958_v60 = vmax.f32 %v7957_v27, %v6664_v41 }
 0x866   : > { %v6666_v59 = vpop.f32.mrf.mxu1 }
 0x867   : > { %v8120_v19 = vmax.f32 %v8119_v11, %v6666_v59 }
 0x868   : > { %v6668_v26 = vpop.f32.mrf.mxu1 }
 0x869   : > { %v7959_v33 = vmax.f32 %v7958_v60, %v6668_v26 }
 0x86a   : > { %v6670_v52 = vpop.f32.mrf.mxu1 }
 0x86b   : > { %v8121_v22 = vmax.f32 %v8120_v19, %v6670_v52 }
 0x86c   : > { %v6674_v20 = vpop.f32.mrf.mxu1 }
 0x86d   : > { %v7960_v53 = vmax.f32 %v7959_v33, %v6674_v20 }
 0x86e   : > { %v6676_v39 = vpop.f32.mrf.mxu1 }
 0x86f   : > { %v8122_v25 = vmax.f32 %v8121_v22, %v6676_v39 }
 0x870   : > { %v6678_v29 = vpop.f32.mrf.mxu1 }
 0x871   : > { %v7961_v32 = vmax.f32 %v7960_v53, %v6678_v29 }
 0x872   : > { %v6680_v16 = vpop.f32.mrf.mxu1 }
 0x873   : > { %v8123_v48 = vmax.f32 %v8122_v25, %v6680_v16 }
 0x874   : > { %v6684_v62 = vpop.f32.mrf.mxu1 }
 0x875   : > { %v7962_v36 = vmax.f32 %v7961_v32, %v6684_v62 }
 0x876   : > { %v6686_v42 = vpop.f32.mrf.mxu1 }
 0x877   : > { %v8124_v38 = vmax.f32 %v8123_v48, %v6686_v42 }
 0x878   : > { %v6688_v14 = vpop.f32.mrf.mxu1 }
 0x879   : > { %v7963_v23 = vmax.f32 %v7962_v36, %v6688_v14 }
 0x87a   : > { %v6690_v2 = vpop.f32.mrf.mxu1 }
 0x87b   : > { %v8125_v18 = vmax.f32 %v8124_v38, %v6690_v2 }
 0x87c   : > { %v6694_v24 = vpop.f32.mrf.mxu1 }
 0x87d   : > { %v7964_v31 = vmax.f32 %v7963_v23, %v6694_v24 }
 0x87e   : > { %v6696_v7 = vpop.f32.mrf.mxu1 }
 0x87f   : > { %v8126_v28 = vmax.f32 %v8125_v18, %v6696_v7 }
 0x880   : > { %v6698_v51 = vpop.f32.mrf.mxu1 }
 0x881   : > { %v7965_v9 = vmax.f32 %v7964_v31, %v6698_v51 }
 0x882   : > { %v6700_v57 = vpop.f32.mrf.mxu1 }
 0x883   : > { %v8127_v12 = vmax.f32 %v8126_v28, %v6700_v57 }
 0x884   : > { %v6704_v44 = vpop.f32.mrf.mxu1 }
 0x885   : > { %v7966_v40 = vmax.f32 %v7965_v9, %v6704_v44 }
 0x886   : > { %v6706_v46 = vpop.f32.mrf.mxu1 }
 0x887   : > { %v8128_v37 = vmax.f32 %v8127_v12, %v6706_v46 }
 0x888   : > { %v6708_v5 = vpop.f32.mrf.mxu1 }
 0x889   : > { %v7967_v45 = vmax.f32 %v7966_v40, %v6708_v5 }
 0x88a   : > { %v6710_v4 = vpop.f32.mrf.mxu1 }
 0x88b   : > { %v8129_v25 = vmax.f32 %v8128_v37, %v6710_v4 }
 0x88c   : > { %v6714_v30 = vpop.f32.mrf.mxu1 }
 0x88d   : > { %v7968_v29 = vmax.f32 %v7967_v45, %v6714_v30 }
 0x88e   : > { %v6716_v58 = vpop.f32.mrf.mxu1 }
 0x88f   : > { %v8130_v16 = vmax.f32 %v8129_v25, %v6716_v58 }
 0x890   : > { %v6718_v43 = vpop.f32.mrf.mxu1 }
 0x891   : > { %v7969_v48 = vmax.f32 %v7968_v29, %v6718_v43 }
 0x892   : > { %v6720_v21 = vpop.f32.mrf.mxu1 }
 0x893   : > { %v8131_v36 = vmax.f32 %v8130_v16, %v6720_v21 }
 0x894   : > { %v6724_v1 = vpop.f32.mrf.mxu1 }
 0x895   : > { %v7970_v42 = vmax.f32 %v7969_v48, %v6724_v1 }
 0x896   : > { %v6726_v3 = vpop.f32.mrf.mxu1 }
 0x897   : > { %v8132_v14 = vmax.f32 %v8131_v36, %v6726_v3 }
 0x898   : > { %v6728_v13 = vpop.f32.mrf.mxu1 }
 0x899   : > { %v7971_v23 = vmax.f32 %v7970_v42, %v6728_v13 }
 0x89a   : > { %v6730_v56 = vpop.f32.mrf.mxu1 }
 0x89b   : > { %v8133_v18 = vmax.f32 %v8132_v14, %v6730_v56 }
 0x89c   : > { %v6734_v34 = vpop.f32.mrf.mxu1 }
 0x89d   : > { %v7972_v24 = vmax.f32 %v7971_v23, %v6734_v34 }
 0x89e   : > { %v6736_v15 = vpop.f32.mrf.mxu1 }
 0x89f   : > { %v8134_v7 = vmax.f32 %v8133_v18, %v6736_v15 }
 0x8a0   : > { %v6738_v61 = vpop.f32.mrf.mxu1 }
 0x8a1   : > { %v7973_v28 = vmax.f32 %v7972_v24, %v6738_v61 }
 0x8a2   : > { %v6740_v55 = vpop.f32.mrf.mxu1 }
 0x8a3   : > { %v8135_v9 = vmax.f32 %v8134_v7, %v6740_v55 }
 0x8a4   : > { %v6744_v47 = vpop.f32.mrf.mxu1 }
 0x8a5   : > { %v7974_v57 = vmax.f32 %v7973_v28, %v6744_v47 }
 0x8a6   : > { %v6746_v0 = vpop.f32.mrf.mxu1 }
 0x8a7   : > { %v8136_v44 = vmax.f32 %v8135_v9, %v6746_v0 }
 0x8a8   : > { %v6748_v50 = vpop.f32.mrf.mxu1 }
 0x8a9   : > { %v7975_v40 = vmax.f32 %v7974_v57, %v6748_v50 }
 0x8aa   : > { %v6750_v8 = vpop.f32.mrf.mxu1 }
 0x8ab   : > { %v8137_v37 = vmax.f32 %v8136_v44, %v6750_v8 }
 0x8ac   : > { %v6754_v54 = vpop.f32.mrf.mxu1 }
 0x8ad   : > { %v7976_v5 = vmax.f32 %v7975_v40, %v6754_v54 }
 0x8ae   : > { %v6756_v27 = vpop.f32.mrf.mxu1 }
 0x8af   : > { %v8138_v4 = vmax.f32 %v8137_v37, %v6756_v27 }
 0x8b0   : > { %v6758_v63 = vpop.f32.mrf.mxu1 }
 0x8b1   : > { %v7977_v30 = vmax.f32 %v7976_v5, %v6758_v63 }
 0x8b2   : > { %v6760_v11 = vpop.f32.mrf.mxu1 }
 0x8b3   : > { %v8139_v43 = vmax.f32 %v8138_v4, %v6760_v11 }
 0x8b4   : > { %v6764_v41 = vpop.f32.mrf.mxu1 }
 0x8b5   : > { %v7978_v21 = vmax.f32 %v7977_v30, %v6764_v41 }
 0x8b6   : > { %v6766_v60 = vpop.f32.mrf.mxu1 }
 0x8b7   : > { %v8140_v3 = vmax.f32 %v8139_v43, %v6766_v60 }
 0x8b8   : > { %v6768_v59 = vpop.f32.mrf.mxu1 }
 0x8b9   : > { %v7979_v13 = vmax.f32 %v7978_v21, %v6768_v59 }
 0x8ba   : > { %v6770_v19 = vpop.f32.mrf.mxu1 }
 0x8bb   : > { %v8141_v34 = vmax.f32 %v8140_v3, %v6770_v19 }
 0x8bc   : > { %v6774_v26 = vpop.f32.mrf.mxu1 }
 0x8bd   : > { %v7980_v15 = vmax.f32 %v7979_v13, %v6774_v26 }
 0x8be   : > { %v6776_v33 = vpop.f32.mrf.mxu1 }
 0x8bf   : > { %v8142_v55 = vmax.f32 %v8141_v34, %v6776_v33 }
 0x8c0   : > { %v6778_v52 = vpop.f32.mrf.mxu1 }
 0x8c1   : > { %v7981_v47 = vmax.f32 %v7980_v15, %v6778_v52 }
 0x8c2   : > { %v6780_v22 = vpop.f32.mrf.mxu1 }
 0x8c3   : > { %v8143_v50 = vmax.f32 %v8142_v55, %v6780_v22 }
 0x8c4   : > { %v6784_v20 = vpop.f32.mrf.mxu1 }
 0x8c5   : > { %v7982_v25 = vmax.f32 %v7981_v47, %v6784_v20 }
 0x8c6   : > { %v6786_v53 = vpop.f32.mrf.mxu1 }
 0x8c7   : > { %v8144_v54 = vmax.f32 %v8143_v50, %v6786_v53 }
 0x8c8   : > { %v6788_v39 = vpop.f32.mrf.mxu1 }
 0x8c9   : > { %v7983_v29 = vmax.f32 %v7982_v25, %v6788_v39 }
 0x8ca   : > { %v6790_v32 = vpop.f32.mrf.mxu1 }
 0x8cb   : > { %v8145_v63 = vmax.f32 %v8144_v54, %v6790_v32 }
 0x8cc   : > { %v6794_v62 = vpop.f32.mrf.mxu1 }
 0x8cd   : > { %v7984_v16 = vmax.f32 %v7983_v29, %v6794_v62 }
 0x8ce   : > { %v6796_v38 = vpop.f32.mrf.mxu1 }
 0x8cf   : > { %v8146_v41 = vmax.f32 %v8145_v63, %v6796_v38 }
 0x8d0   : > { %v6798_v2 = vpop.f32.mrf.mxu1 }
 0x8d1   : > { %v7985_v48 = vmax.f32 %v7984_v16, %v6798_v2 }
 0x8d2   : > { %v6800_v31 = vpop.f32.mrf.mxu1 }
 0x8d3   : > { %v8147_v59 = vmax.f32 %v8146_v41, %v6800_v31 }
 0x8d4   : > { %v6804_v51 = vpop.f32.mrf.mxu1 }
 0x8d5   : > { %v7986_v36 = vmax.f32 %v7985_v48, %v6804_v51 }
 0x8d6   : > { %v6806_v12 = vpop.f32.mrf.mxu1 }
 0x8d7   : > { %v8148_v26 = vmax.f32 %v8147_v59, %v6806_v12 }
 0x8d8   : > { %v6808_v46 = vpop.f32.mrf.mxu1 }
 0x8d9   : > { %v7987_v42 = vmax.f32 %v7986_v36, %v6808_v46 }
 0x8da   : > { %v6810_v45 = vpop.f32.mrf.mxu1 }
 0x8db   : > { %v8149_v52 = vmax.f32 %v8148_v26, %v6810_v45 }
 0x8dc   : > { %v6814_v58 = vpop.f32.mrf.mxu1 }
 0x8dd   : > { %v7988_v14 = vmax.f32 %v7987_v42, %v6814_v58 }
 0x8de   : > { %v6816_v1 = vpop.f32.mrf.mxu1 }
 0x8df   : > { %v8150_v20 = vmax.f32 %v8149_v52, %v6816_v1 }
 0x8e0   : > { %v6818_v56 = vpop.f32.mrf.mxu1 }
 0x8e1   : > { %v7989_v23 = vmax.f32 %v7988_v14, %v6818_v56 }
 0x8e2   : > { %v6820_v61 = vpop.f32.mrf.mxu1 }
 0x8e3   : > { %v8151_v39 = vmax.f32 %v8150_v20, %v6820_v61 }
 0x8e4   : > { %v6824_v0 = vpop.f32.mrf.mxu1 }
 0x8e5   : > { %v7990_v18 = vmax.f32 %v7989_v23, %v6824_v0 }
 0x8e6   : > { %v6826_v8 = vpop.f32.mrf.mxu1 }
 0x8e7   : > { %v8152_v62 = vmax.f32 %v8151_v39, %v6826_v8 }
 0x8e8   : > { %v6828_v27 = vpop.f32.mrf.mxu1 }
 0x8e9   : > { %v7991_v24 = vmax.f32 %v7990_v18, %v6828_v27 }
 0x8ea   : > { %v6830_v11 = vpop.f32.mrf.mxu1 }
 0x8eb   : > { %v8153_v2 = vmax.f32 %v8152_v62, %v6830_v11 }
 0x8ec   : > { %v6834_v60 = vpop.f32.mrf.mxu1 }
 0x8ed   : > { %v7992_v7 = vmax.f32 %v7991_v24, %v6834_v60 }
 0x8ee   : > { %v6836_v19 = vpop.f32.mrf.mxu1 }
 0x8ef   : > { %v8154_v28 = vmax.f32 %v8153_v2, %v6836_v19 }
 0x8f0   : > { %v6838_v33 = vpop.f32.mrf.mxu1 }
 0x8f1   : > { %v7993_v51 = vmax.f32 %v7992_v7, %v6838_v33 }
 0x8f2   : > { %v6840_v22 = vpop.f32.mrf.mxu1 }
 0x8f3   : > { %v8155_v57 = vmax.f32 %v8154_v28, %v6840_v22 }
 0x8f4   : > { %v6844_v53 = vpop.f32.mrf.mxu1 }
 0x8f5   : > { %v7994_v12 = vmax.f32 %v7993_v51, %v6844_v53 }
 0x8f6   : > { %v6846_v32 = vpop.f32.mrf.mxu1 }
 0x8f7   : > { %v8156_v40 = vmax.f32 %v8155_v57, %v6846_v32 }
 0x8f8   : > { %v6848_v38 = vpop.f32.mrf.mxu1 }
 0x8f9   : > { %v7995_v46 = vmax.f32 %v7994_v12, %v6848_v38 }
 0x8fa   : > { %v6850_v31 = vpop.f32.mrf.mxu1 }
 0x8fb   : > { %v8157_v5 = vmax.f32 %v8156_v40, %v6850_v31 }
 0x8fc   : > { %v6854_v9 = vpop.f32.mrf.mxu1 }
 0x8fd   : > { %v7996_v45 = vmax.f32 %v7995_v46, %v6854_v9 }
 0x8fe   : > { %v6856_v44 = vpop.f32.mrf.mxu1 }
 0x8ff   : > { %v8158_v30 = vmax.f32 %v8157_v5, %v6856_v44 }
 0x900   : > { %v6858_v37 = vpop.f32.mrf.mxu1 }
 0x901   : > { %v7997_v58 = vmax.f32 %v7996_v45, %v6858_v37 }
 0x902   : > { %v6860_v4 = vpop.f32.mrf.mxu1 }
 0x903   : > { %v8159_v21 = vmax.f32 %v8158_v30, %v6860_v4 }
 0x904   : > { %v6864_v43 = vpop.f32.mrf.mxu1 }
 0x905   : > { %v7998_v1 = vmax.f32 %v7997_v58, %v6864_v43 }
 0x906   : > { %v6866_v3 = vpop.f32.mrf.mxu1 }
 0x907   : > { %v7999_v13 = vrot.slane %v7998_v1, 4  ;;  %v8160_v56 = vmax.f32 %v8159_v21, %v6866_v3 }
 0x908   : > { %v6868_v34 = vpop.f32.mrf.mxu1 }
 0x909   : > { %v8000_v15 = vmax.f32 %v7998_v1, %v7999_v13  ;;  %v8161_v61 = vrot.slane %v8160_v56, 4 }
 0x90a   : > { %v6869_v55 = vpop.f32.mrf.mxu1 }
 0x90b   : > { %v8001_v47 = vrot.slane %v8000_v15, 2  ;;  %v8162_v0 = vmax.f32 %v8160_v56, %v8161_v61 }
 0x90d   : > { %v8002_v50 = vmax.f32 %v8000_v15, %v8001_v47  ;;  %v8163_v25 = vrot.slane %v8162_v0, 2 }
 0x90f   : > { %v8003_v8 = vrot.slane %v8002_v50, 1  ;;  %v8164_v54 = vmax.f32 %v8162_v0, %v8163_v25  ;;  %8170 = sbr.rel (%p8701_p7) target bundleno = 2340 (0x924), region = 52 }
 0x911   : > { %v8004_v29 = vmax.f32 %v8002_v50, %v8003_v8  ;;  %v8165_v27 = vrot.slane %v8164_v54, 1 }
 0x913   : > { %v8166_v63 = vmax.f32 %v8164_v54, %v8165_v27 }
 0x914   : > { %v8186_v16 = vlaneseq  ;;  %v9692_v11 = vmov 1966171168   ;;  %v12062_v48 = vld [vmem:[#allocation2_spill] sm:$0xff]  ;;  %v8180_v36 = vcombine.low %v11553_v6, %v11557_v49  ;;  %v8181_v19 = vcombine.low %v11721_v35, %v11723_v10 }
 0x915   : > { %v8184_v41 = vunpack.c.l.s4 %v9692_v11  ;;  %v8179_v60 = vcombine.low %v12062_v48, %v11451_v17  ;;  %v8182_v26 = vcombine.low %v8004_v29, %v8166_v63 }
 0x916   : > { %v8187_v59 = vshrl.u32 %v8186_v16, 7 }
 0x917   : > { %v8185_v42 = vunpack.c.0.s8 %v8184_v41 }
 0x919   : > { %v8188_v33 = vsub.s32 %v8185_v42, %v8187_v59 }
 0x91b   : > { %v8189_v52 = vrot.slane %v8179_v60, %v8188_v33  ;;  %v8196_v14 = vrot.slane %v8180_v36, %v8188_v33  ;;  %v8203_v22 = vrot.slane %v8181_v19, %v8188_v33  ;;  %v8210_v20 = vrot.slane %v8182_v26, %v8188_v33 }
 0x91d   : > { %v8211_v23 = vcombine.low %v8189_v52, %v8196_v14  ;;  %v8212_v53 = vcombine.low %v8203_v22, %v8210_v20 }
 0x91f   : > { %v8219_v39 = vrot.slane %v8211_v23, %v8188_v33  ;;  %v8226_v18 = vrot.slane %v8212_v53, %v8188_v33 }
 0x921   : > { %v8227_v32 = vcombine.low %v8219_v39, %v8226_v18 }
 0x923   : > { %8229 = vst [vmem:[%s9779_s18] sm:$0xff] %v8227_v32 }
 0x924 PF: > { %p8702_p8 = scmp.le.s32.totalorder %s9670_s24, 0 }
 0x926   : > { %8233 = sbr.rel (%p8702_p8) target bundleno = 2365 (0x93d), region = 56 }
 0x92b   : > { %v8250_v62 = vlaneseq  ;;  %v9693_v24 = vmov 1966171168   ;;  %v12063_v2 = vld [vmem:[#allocation2_spill] sm:$0xff]  ;;  %v8244_v28 = vcombine.low %v11553_v6, %v11557_v49  ;;  %v8245_v51 = vcombine.low %v11721_v35, %v11723_v10 }
 0x92c   : > { %v8248_v38 = vunpack.c.l.s4 %v9693_v24  ;;  %v8243_v7 = vcombine.low %v12063_v2, %v11451_v17  ;;  %v8246_v9 = vcombine.low %v8004_v29, %v8166_v63  ;;  %v8234_v17 = vld [vmem:[%s9779_s18] sm:$0xff] }
 0x92d   : > { %v8251_v31 = vshrl.u32 %v8250_v62, 7 }
 0x92e   : > { %v8249_v57 = vunpack.c.0.s8 %v8248_v38 }
 0x930   : > { %v8252_v12 = vsub.s32 %v8249_v57, %v8251_v31 }
 0x932   : > { %v8253_v44 = vrot.slane %v8243_v7, %v8252_v12  ;;  %v8260_v40 = vrot.slane %v8244_v28, %v8252_v12  ;;  %v8267_v46 = vrot.slane %v8245_v51, %v8252_v12  ;;  %v8274_v37 = vrot.slane %v8246_v9, %v8252_v12 }
 0x934   : > { %v8275_v5 = vcombine.low %v8253_v44, %v8260_v40  ;;  %v8276_v45 = vcombine.low %v8267_v46, %v8274_v37 }
 0x936   : > { %v8283_v4 = vrot.slane %v8275_v5, %v8252_v12  ;;  %v8290_v30 = vrot.slane %v8276_v45, %v8252_v12 }
 0x938   : > { %v8291_v58 = vcombine.low %v8283_v4, %v8290_v30 }
 0x93a   : > { %v8293_v43 = vmax.f32 %v8234_v17, %v8291_v58 }
 0x93c   : > { %8294 = vst [vmem:[%s9779_s18] sm:$0xff] %v8293_v43 }
 0x93d PF: > { %p8703_p9 = scmp.ne.s32.totalorder %s9670_s24, 1 }
 0x93f   : > { %8298 = sbr.rel (%p8703_p9) target bundleno = 2379 (0x94b), region = 60 }
 0x944   : > { %v8299_v6 = vld [vmem:[%s9779_s18] sm:$0xff] }
 0x945   : > { %v8300_v49 = vld [vmem:[%s11769_s6] sm:$0xff] }
 0x946   : > { %v8301_v35 = vadd.f32 %v8300_v49, %v8299_v6 }
 0x948   : > { %v8302_v10 = vmax.f32 %v8301_v35, 0.0 }
 0x94a   : > { %8303 = vst [vmem:[%s9779_s18] sm:$0xff] %v8302_v10 }
 0x94b PF: > { %s17_s28 = sadd.s32 1, %s9686_s28   ;;  %s12064_s24 = smov %s9678_s26 }
 0x94c   : > { %p14_p10 = scmp.ge.s32.totalorder %s17_s28, 6   ;;  %s12065_s25 = smov %s9682_s27 }
 0x94d   : > { %s12066_s26 = smov %s12069_s29  ;;  %s12067_s27 = smov %s12073_s30 }
 0x94e   :  { %16 = sbr.rel (!%p14_p10) target bundleno = 3 (0x3), region = 93 }

// kernel: pointnet_cls_forward.5
= control target key start
LH: loop header
LB: loop body
LE: loop exit
PB: predicated region body
PF: predicated region fallthrough
CT: control target
= control target key end

     0   :  { %v3495_v36 = vmov 1983009808   ;;  %v35_v38 = vlaneseq  ;;  %s4639_s1 = inlined_call_operand.vmem [shape: bf16[1024,512], index: 1, kind: input, shape index: {}]   ;;  %s4640_s0 = inlined_call_operand.vmem [shape: f32[2,1024], index: 0, kind: input, shape index: {}]   ;;  %s4641_s3 = inlined_call_operand.vmem [shape: bf16[512,256], index: 3, kind: input, shape index: {}]   ;;  %s4642_s2 = inlined_call_operand.vmem [shape: f32[1,512], index: 2, kind: input, shape index: {}]   ;;  %s4643_s5 = inlined_call_operand.vmem [shape: bf16[256,128], index: 5, kind: input, shape index: {}]   ;;  %s4644_s4 = inlined_call_operand.vmem [shape: f32[1,256], index: 4, kind: input, shape index: {}]   ;;  %s4645_s6 = inlined_call_operand.vmem [shape: f32[1,128], index: 6, kind: input, shape index: {}]   ;;  %s4646_s7 = inlined_call_operand.vmem [shape: f32[2,128], index: 7, kind: output, shape index: {}]  }
   0x1   :  { %v2997_v0 = vld [vmem:[%s4639_s1 + $0xe4] ss:$16 sps:$4 sm:$0xff]   ;;  %v3001_v2 = vld [vmem:[%s4639_s1 + $0xe0] ss:$16 sps:$4 sm:$0xff]   ;;  %v33_v37 = vunpack.c.l.s4 %v3495_v36 }
   0x2   :  { %v2999_v1 = vld [vmem:[%s4639_s1 + $0x2e4] ss:$16 sps:$4 sm:$0xff]   ;;  %1639 = vmatprep.subr.bf16.mxu0 %v2997_v0  ;;  %v3002_v3 = vld [vmem:[%s4639_s1 + $0x2e0] ss:$16 sps:$4 sm:$0xff]   ;;  %v3653_v43 = vshrl.u32 %v35_v38, 7 }
   0x3   :  { %1680 = vmatprep.subr.bf16.mxu1 %v2999_v1  ;;  %v3003_v4 = vld [vmem:[%s4639_s1 + $0xc4] ss:$16 sps:$4 sm:$0xff]   ;;  %1640 = vmatpush1.bf16.msra.mxu0 %v3001_v2  ;;  %v3007_v6 = vld [vmem:[%s4639_s1 + $0xc0] ss:$16 sps:$4 sm:$0xff]   ;;  %v34_v42 = vunpack.c.0.s8 %v33_v37 }
   0x4   :  { %1681 = vmatpush1.bf16.msra.mxu1 %v3002_v3  ;;  %v3005_v5 = vld [vmem:[%s4639_s1 + $0x2c4] ss:$16 sps:$4 sm:$0xff]   ;;  %1641 = vmatprep.subr.bf16.mxu0 %v3003_v4  ;;  %v3008_v7 = vld [vmem:[%s4639_s1 + $0x2c0] ss:$16 sps:$4 sm:$0xff]   ;;  %v28_v4 = vld [vmem:[%s4640_s0 + $0x8] sm:$0xff] }
   0x5   :  { %1682 = vmatprep.subr.bf16.mxu1 %v3005_v5  ;;  %v3009_v8 = vld [vmem:[%s4639_s1 + $0xa4] ss:$16 sps:$4 sm:$0xff]   ;;  %v3013_v10 = vld [vmem:[%s4639_s1 + $0xa0] ss:$16 sps:$4 sm:$0xff]   ;;  %v37_v49 = vsub.s32 %v34_v42, %v3653_v43 }
   0x6   :  { %v3011_v9 = vld [vmem:[%s4639_s1 + $0x2a4] ss:$16 sps:$4 sm:$0xff]   ;;  %v3014_v11 = vld [vmem:[%s4639_s1 + $0x2a0] ss:$16 sps:$4 sm:$0xff]  }
   0x7   :  { %1642 = vmatpush1.bf16.msra.mxu0 %v3007_v6  ;;  %v3015_v12 = vld [vmem:[%s4639_s1 + $0x84] ss:$16 sps:$4 sm:$0xff]   ;;  %v3019_v14 = vld [vmem:[%s4639_s1 + $0x80] ss:$16 sps:$4 sm:$0xff]  }
   0x8   :  { %1683 = vmatpush1.bf16.msra.mxu1 %v3008_v7  ;;  %1643 = vmatprep.subr.bf16.mxu0 %v3009_v8  ;;  %v3017_v13 = vld [vmem:[%s4639_s1 + $0x284] ss:$16 sps:$4 sm:$0xff]   ;;  %v3020_v15 = vld [vmem:[%s4639_s1 + $0x280] ss:$16 sps:$4 sm:$0xff]  }
   0x9   :  { %1684 = vmatprep.subr.bf16.mxu1 %v3011_v9  ;;  %v3021_v16 = vld [vmem:[%s4639_s1 + $0x64] ss:$16 sps:$4 sm:$0xff]   ;;  %v3025_v18 = vld [vmem:[%s4639_s1 + $0x60] ss:$16 sps:$4 sm:$0xff]   ;;  %v48_v9 = vcombine.high %v28_v4, %v28_v4 }
   0xa   :  { %v3023_v17 = vld [vmem:[%s4639_s1 + $0x264] ss:$16 sps:$4 sm:$0xff]   ;;  %v3026_v19 = vld [vmem:[%s4639_s1 + $0x260] ss:$16 sps:$4 sm:$0xff]  }
   0xb   :  { %1644 = vmatpush1.bf16.msra.mxu0 %v3013_v10  ;;  %v3027_v20 = vld [vmem:[%s4639_s1 + $0x44] ss:$16 sps:$4 sm:$0xff]   ;;  %v3031_v22 = vld [vmem:[%s4639_s1 + $0x40] ss:$16 sps:$4 sm:$0xff]  }
   0xc   :  { %1685 = vmatpush1.bf16.msra.mxu1 %v3014_v11  ;;  %1645 = vmatprep.subr.bf16.mxu0 %v3015_v12  ;;  %v3029_v21 = vld [vmem:[%s4639_s1 + $0x244] ss:$16 sps:$4 sm:$0xff]   ;;  %v3032_v23 = vld [vmem:[%s4639_s1 + $0x240] ss:$16 sps:$4 sm:$0xff]  }
   0xd   :  { %1686 = vmatprep.subr.bf16.mxu1 %v3017_v13  ;;  %v3033_v24 = vld [vmem:[%s4639_s1 + $0x24] ss:$16 sps:$4 sm:$0xff]   ;;  %v3037_v26 = vld [vmem:[%s4639_s1 + $0x20] ss:$16 sps:$4 sm:$0xff]  }
   0xe   :  { %v3035_v25 = vld [vmem:[%s4639_s1 + $0x224] ss:$16 sps:$4 sm:$0xff]   ;;  %v3038_v27 = vld [vmem:[%s4639_s1 + $0x220] ss:$16 sps:$4 sm:$0xff]  }
   0xf   :  { %1646 = vmatpush1.bf16.msra.mxu0 %v3019_v14  ;;  %v3039_v28 = vld [vmem:[%s4639_s1 + $0x4] ss:$16 sps:$4 sm:$0xff]   ;;  %v3043_v30 = vld [vmem:[%s4639_s1] ss:$16 sps:$4 sm:$0xff]   ;;  %v3737_v14 = vrot.slane %v28_v4, %v37_v49 }
  0x10   :  { %1687 = vmatpush1.bf16.msra.mxu1 %v3020_v15  ;;  %1647 = vmatprep.subr.bf16.mxu0 %v3021_v16  ;;  %v3041_v29 = vld [vmem:[%s4639_s1 + $0x204] ss:$16 sps:$4 sm:$0xff]   ;;  %v3044_v31 = vld [vmem:[%s4639_s1 + $0x200] ss:$16 sps:$4 sm:$0xff]   ;;  %v3739_v15 = vrot.slane %v48_v9, %v37_v49 }
  0x11   :  { %1688 = vmatprep.subr.bf16.mxu1 %v3023_v17  ;;  %v3045_v32 = vld [vmem:[%s4639_s1 + $0x1e4] ss:$16 sps:$4 sm:$0xff]   ;;  %v3049_v34 = vld [vmem:[%s4639_s1 + $0x1e0] ss:$16 sps:$4 sm:$0xff]  }
  0x12   :  { %v3047_v33 = vld [vmem:[%s4639_s1 + $0x3e4] ss:$16 sps:$4 sm:$0xff]   ;;  %v3050_v35 = vld [vmem:[%s4639_s1 + $0x3e0] ss:$16 sps:$4 sm:$0xff]  }
  0x13   :  { %1648 = vmatpush1.bf16.msra.mxu0 %v3025_v18  ;;  %v3051_v39 = vld [vmem:[%s4639_s1 + $0x1c4] ss:$16 sps:$4 sm:$0xff]   ;;  %v3055_v41 = vld [vmem:[%s4639_s1 + $0x1c0] ss:$16 sps:$4 sm:$0xff]  }
  0x14   :  { %1689 = vmatpush1.bf16.msra.mxu1 %v3026_v19  ;;  %1649 = vmatprep.subr.bf16.mxu0 %v3027_v20  ;;  %v3053_v40 = vld [vmem:[%s4639_s1 + $0x3c4] ss:$16 sps:$4 sm:$0xff]   ;;  %v3056_v44 = vld [vmem:[%s4639_s1 + $0x3c0] ss:$16 sps:$4 sm:$0xff]   ;;  %v63_v20 = vcombine.high %v3737_v14, %v3737_v14 }
  0x15   :  { %1690 = vmatprep.subr.bf16.mxu1 %v3029_v21  ;;  %v3057_v45 = vld [vmem:[%s4639_s1 + $0x1a4] ss:$16 sps:$4 sm:$0xff]   ;;  %v3061_v47 = vld [vmem:[%s4639_s1 + $0x1a0] ss:$16 sps:$4 sm:$0xff]   ;;  %v64_v21 = vcombine.high %v3739_v15, %v3739_v15 }
  0x16   :  { %v3059_v46 = vld [vmem:[%s4639_s1 + $0x3a4] ss:$16 sps:$4 sm:$0xff]   ;;  %v3062_v48 = vld [vmem:[%s4639_s1 + $0x3a0] ss:$16 sps:$4 sm:$0xff]  }
  0x17   :  { %1650 = vmatpush1.bf16.msra.mxu0 %v3031_v22  ;;  %v3063_v50 = vld [vmem:[%s4639_s1 + $0x184] ss:$16 sps:$4 sm:$0xff]   ;;  %v3067_v55 = vld [vmem:[%s4639_s1 + $0x180] ss:$16 sps:$4 sm:$0xff]  }
  0x18   :  { %1691 = vmatpush1.bf16.msra.mxu1 %v3032_v23  ;;  %1651 = vmatprep.subr.bf16.mxu0 %v3033_v24  ;;  %v3065_v51 = vld [vmem:[%s4639_s1 + $0x384] ss:$16 sps:$4 sm:$0xff]   ;;  %v3068_v56 = vld [vmem:[%s4639_s1 + $0x380] ss:$16 sps:$4 sm:$0xff]  }
  0x19   :  { %1692 = vmatprep.subr.bf16.mxu1 %v3035_v25  ;;  %v27_v52 = vld [vmem:[%s4640_s0] sm:$0xff] }
  0x1a   :  { %v38_v53 = vrot.slane %v27_v52, %v37_v49  ;;  %v31_v54 = vcombine.high %v27_v52, %v27_v52  ;;  %v3069_v57 = vld [vmem:[%s4639_s1 + $0x164] ss:$16 sps:$4 sm:$0xff]   ;;  %v3073_v63 = vld [vmem:[%s4639_s1 + $0x160] ss:$16 sps:$4 sm:$0xff]  }
  0x1b   :  { %1652 = vmatpush1.bf16.msra.mxu0 %v3037_v26  ;;  %v3071_v58 = vld [vmem:[%s4639_s1 + $0x364] ss:$16 sps:$4 sm:$0xff]   ;;  %v3074_v0 = vld [vmem:[%s4639_s1 + $0x360] ss:$16 sps:$4 sm:$0xff]  }
  0x1c   :  { %1693 = vmatpush1.bf16.msra.mxu1 %v3038_v27  ;;  %1653 = vmatprep.subr.bf16.mxu0 %v3039_v28  ;;  %v46_v59 = vcombine.high %v38_v53, %v38_v53  ;;  %v45_v60 = vrot.slane %v31_v54, %v37_v49  ;;  %v3075_v1 = vld [vmem:[%s4639_s1 + $0x144] ss:$16 sps:$4 sm:$0xff]   ;;  %v3079_v5 = vld [vmem:[%s4639_s1 + $0x140] ss:$16 sps:$4 sm:$0xff]   ;;  %v3757_v22 = vpack.c.bf16 %v38_v53, %v38_v53 }
  0x1d   :  { %1694 = vmatprep.subr.bf16.mxu1 %v3041_v29  ;;  %v3077_v2 = vld [vmem:[%s4639_s1 + $0x344] ss:$16 sps:$4 sm:$0xff]   ;;  %v3080_v6 = vld [vmem:[%s4639_s1 + $0x340] ss:$16 sps:$4 sm:$0xff]   ;;  %v3773_v28 = vpack.c.bf16 %v63_v20, %v63_v20  ;;  %v3775_v29 = vpack.c.bf16 %v64_v21, %v64_v21 }
  0x1e   :  { %v3692_v61 = vpack.c.bf16 %v46_v59, %v46_v59  ;;  %v47_v62 = vcombine.high %v45_v60, %v45_v60  ;;  %v3081_v7 = vld [vmem:[%s4639_s1 + $0x124] ss:$16 sps:$4 sm:$0xff]   ;;  %v3085_v10 = vld [vmem:[%s4639_s1 + $0x120] ss:$16 sps:$4 sm:$0xff]   ;;  %v3759_v23 = vpack.c.bf16 %v45_v60, %v45_v60 }
  0x1f   :  { %1654 = vmatpush1.bf16.msra.mxu0 %v3043_v30  ;;  %v3083_v8 = vld [vmem:[%s4639_s1 + $0x324] ss:$16 sps:$4 sm:$0xff]   ;;  %v3086_v11 = vld [vmem:[%s4639_s1 + $0x320] ss:$16 sps:$4 sm:$0xff]  }
  0x20   :  { %1695 = vmatpush1.bf16.msra.mxu1 %v3044_v31  ;;  %1655 = vmatprep.subr.bf16.mxu0 %v3045_v32  ;;  %v3706_v3 = vpack.c.bf16 %v47_v62, %v47_v62  ;;  %v3087_v12 = vld [vmem:[%s4639_s1 + $0x104] ss:$16 sps:$4 sm:$0xff]   ;;  %v3091_v16 = vld [vmem:[%s4639_s1 + $0x100] ss:$16 sps:$4 sm:$0xff]  }
  0x21   :  { %1696 = vmatprep.subr.bf16.mxu1 %v3047_v33  ;;  %1671 = vmatprep.mubr.bf16.mxu0 %v3692_v61  ;;  %v3089_v13 = vld [vmem:[%s4639_s1 + $0x304] ss:$16 sps:$4 sm:$0xff]   ;;  %v3092_v17 = vld [vmem:[%s4639_s1 + $0x300] ss:$16 sps:$4 sm:$0xff]  }
  0x22   :  { %1712 = vmatprep.mubr.bf16.mxu1 %v3706_v3  ;;  %v3097_v18 = vld [vmem:[%s4639_s1 + $0x4e4] ss:$16 sps:$4 sm:$0xff]   ;;  %v3095_v24 = vld [vmem:[%s4639_s1 + $0x4e0] ss:$16 sps:$4 sm:$0xff]  }
  0x23   :  { %1656 = vmatpush2.bf16.msra.mxu0 %v3049_v34  ;;  %v3100_v19 = vld [vmem:[%s4639_s1 + $0x6e4] ss:$16 sps:$4 sm:$0xff]   ;;  %v3098_v25 = vld [vmem:[%s4639_s1 + $0x6e0] ss:$16 sps:$4 sm:$0xff]  }
  0x24   :  { %1697 = vmatpush2.bf16.msra.mxu1 %v3050_v35  ;;  %1657 = vmatprep.subr.bf16.mxu0 %v3051_v39  ;;  %v3103_v26 = vld [vmem:[%s4639_s1 + $0x4c4] ss:$16 sps:$4 sm:$0xff]   ;;  %v3101_v30 = vld [vmem:[%s4639_s1 + $0x4c0] ss:$16 sps:$4 sm:$0xff]  }
  0x25   :  { %1698 = vmatprep.subr.bf16.mxu1 %v3053_v40  ;;  %v3106_v27 = vld [vmem:[%s4639_s1 + $0x6c4] ss:$16 sps:$4 sm:$0xff]   ;;  %v3104_v31 = vld [vmem:[%s4639_s1 + $0x6c0] ss:$16 sps:$4 sm:$0xff]  }
  0x26   :  { %v3109_v32 = vld [vmem:[%s4639_s1 + $0x4a4] ss:$16 sps:$4 sm:$0xff]   ;;  %v3107_v34 = vld [vmem:[%s4639_s1 + $0x4a0] ss:$16 sps:$4 sm:$0xff]  }
  0x27   :  { %1658 = vmatpush2.bf16.msra.mxu0 %v3055_v41  ;;  %v3112_v33 = vld [vmem:[%s4639_s1 + $0x6a4] ss:$16 sps:$4 sm:$0xff]   ;;  %v3110_v35 = vld [vmem:[%s4639_s1 + $0x6a0] ss:$16 sps:$4 sm:$0xff]  }
  0x28   :  { %1699 = vmatpush2.bf16.msra.mxu1 %v3056_v44  ;;  %1659 = vmatprep.subr.bf16.mxu0 %v3057_v45  ;;  %v3115_v36 = vld [vmem:[%s4639_s1 + $0x484] ss:$16 sps:$4 sm:$0xff]   ;;  %v3113_v38 = vld [vmem:[%s4639_s1 + $0x480] ss:$16 sps:$4 sm:$0xff]  }
  0x29   :  { %1700 = vmatprep.subr.bf16.mxu1 %v3059_v46  ;;  %v3118_v37 = vld [vmem:[%s4639_s1 + $0x684] ss:$16 sps:$4 sm:$0xff]   ;;  %v3116_v39 = vld [vmem:[%s4639_s1 + $0x680] ss:$16 sps:$4 sm:$0xff]  }
  0x2a   :  { %v3121_v40 = vld [vmem:[%s4639_s1 + $0x464] ss:$16 sps:$4 sm:$0xff]   ;;  %v3119_v42 = vld [vmem:[%s4639_s1 + $0x460] ss:$16 sps:$4 sm:$0xff]  }
  0x2b   :  { %1660 = vmatpush2.bf16.msra.mxu0 %v3061_v47  ;;  %v3124_v41 = vld [vmem:[%s4639_s1 + $0x664] ss:$16 sps:$4 sm:$0xff]   ;;  %v3122_v44 = vld [vmem:[%s4639_s1 + $0x660] ss:$16 sps:$4 sm:$0xff]  }
  0x2c   :  { %1701 = vmatpush2.bf16.msra.mxu1 %v3062_v48  ;;  %1661 = vmatprep.subr.bf16.mxu0 %v3063_v50  ;;  %v3127_v45 = vld [vmem:[%s4639_s1 + $0x444] ss:$16 sps:$4 sm:$0xff]   ;;  %v3125_v47 = vld [vmem:[%s4639_s1 + $0x440] ss:$16 sps:$4 sm:$0xff]  }
  0x2d   :  { %1702 = vmatprep.subr.bf16.mxu1 %v3065_v51  ;;  %v3130_v46 = vld [vmem:[%s4639_s1 + $0x644] ss:$16 sps:$4 sm:$0xff]   ;;  %v3128_v48 = vld [vmem:[%s4639_s1 + $0x640] ss:$16 sps:$4 sm:$0xff]  }
  0x2e   :  { %v3133_v49 = vld [vmem:[%s4639_s1 + $0x424] ss:$16 sps:$4 sm:$0xff]   ;;  %v3131_v51 = vld [vmem:[%s4639_s1 + $0x420] ss:$16 sps:$4 sm:$0xff]  }
  0x2f   :  { %1662 = vmatpush2.bf16.msra.mxu0 %v3067_v55  ;;  %v3136_v50 = vld [vmem:[%s4639_s1 + $0x624] ss:$16 sps:$4 sm:$0xff]   ;;  %v3134_v52 = vld [vmem:[%s4639_s1 + $0x620] ss:$16 sps:$4 sm:$0xff]  }
  0x30   :  { %1703 = vmatpush2.bf16.msra.mxu1 %v3068_v56  ;;  %1663 = vmatprep.subr.bf16.mxu0 %v3069_v57  ;;  %v3139_v53 = vld [vmem:[%s4639_s1 + $0x404] ss:$16 sps:$4 sm:$0xff]   ;;  %v3137_v55 = vld [vmem:[%s4639_s1 + $0x400] ss:$16 sps:$4 sm:$0xff]  }
  0x31   :  { %1704 = vmatprep.subr.bf16.mxu1 %v3071_v58  ;;  %v3142_v54 = vld [vmem:[%s4639_s1 + $0x604] ss:$16 sps:$4 sm:$0xff]   ;;  %v3140_v56 = vld [vmem:[%s4639_s1 + $0x600] ss:$16 sps:$4 sm:$0xff]  }
  0x32   :  { %v3145_v57 = vld [vmem:[%s4639_s1 + $0x5e4] ss:$16 sps:$4 sm:$0xff]   ;;  %v3143_v59 = vld [vmem:[%s4639_s1 + $0x5e0] ss:$16 sps:$4 sm:$0xff]  }
  0x33   :  { %1664 = vmatpush2.bf16.msra.mxu0 %v3073_v63  ;;  %v3148_v58 = vld [vmem:[%s4639_s1 + $0x7e4] ss:$16 sps:$4 sm:$0xff]   ;;  %v3146_v60 = vld [vmem:[%s4639_s1 + $0x7e0] ss:$16 sps:$4 sm:$0xff]  }
  0x34   :  { %1705 = vmatpush2.bf16.msra.mxu1 %v3074_v0  ;;  %1665 = vmatprep.subr.bf16.mxu0 %v3075_v1  ;;  %v3151_v62 = vld [vmem:[%s4639_s1 + $0x5c4] ss:$16 sps:$4 sm:$0xff]   ;;  %v3149_v0 = vld [vmem:[%s4639_s1 + $0x5c0] ss:$16 sps:$4 sm:$0xff]  }
  0x35   :  { %1706 = vmatprep.subr.bf16.mxu1 %v3077_v2  ;;  %v3154_v63 = vld [vmem:[%s4639_s1 + $0x7c4] ss:$16 sps:$4 sm:$0xff]   ;;  %v3152_v1 = vld [vmem:[%s4639_s1 + $0x7c0] ss:$16 sps:$4 sm:$0xff]  }
  0x36   :  { %v3157_v2 = vld [vmem:[%s4639_s1 + $0x5a4] ss:$16 sps:$4 sm:$0xff]   ;;  %v3161_v9 = vld [vmem:[%s4639_s1 + $0x580] ss:$16 sps:$4 sm:$0xff]  }
  0x37   :  { %1666 = vmatpush2.bf16.msra.mxu0 %v3079_v5  ;;  %v3160_v4 = vld [vmem:[%s4639_s1 + $0x7a4] ss:$16 sps:$4 sm:$0xff]   ;;  %v3155_v5 = vld [vmem:[%s4639_s1 + $0x5a0] ss:$16 sps:$4 sm:$0xff]  }
  0x38   :  { %1707 = vmatpush2.bf16.msra.mxu1 %v3080_v6  ;;  %1667 = vmatprep.subr.bf16.mxu0 %v3081_v7  ;;  %v3158_v6 = vld [vmem:[%s4639_s1 + $0x7a0] ss:$16 sps:$4 sm:$0xff]   ;;  %v3163_v7 = vld [vmem:[%s4639_s1 + $0x584] ss:$16 sps:$4 sm:$0xff]  }
  0x39   :  { %1708 = vmatprep.subr.bf16.mxu1 %v3083_v8  ;;  %v3166_v8 = vld [vmem:[%s4639_s1 + $0x784] ss:$16 sps:$4 sm:$0xff]   ;;  %v3176_v20 = vld [vmem:[%s4639_s1 + $0x740] ss:$16 sps:$4 sm:$0xff]  }
  0x3a   :  { %v3181_v21 = vld [vmem:[%s4639_s1 + $0x524] ss:$16 sps:$4 sm:$0xff]  }
  0x3b   :  { %1668 = vmatpush2.bf16.msra.mxu0 %v3085_v10  ;;  %v3164_v10 = vld [vmem:[%s4639_s1 + $0x780] ss:$16 sps:$4 sm:$0xff]  }
  0x3c   :  { %1709 = vmatpush2.bf16.msra.mxu1 %v3086_v11  ;;  %1669 = vmatprep.subr.bf16.mxu0 %v3087_v12  ;;  %v3169_v11 = vld [vmem:[%s4639_s1 + $0x564] ss:$16 sps:$4 sm:$0xff]  }
  0x3d   :  { %1710 = vmatprep.subr.bf16.mxu1 %v3089_v13  ;;  %v3172_v12 = vld [vmem:[%s4639_s1 + $0x764] ss:$16 sps:$4 sm:$0xff]   ;;  %v3167_v13 = vld [vmem:[%s4639_s1 + $0x560] ss:$16 sps:$4 sm:$0xff]  }
  0x3f   :  { %1670 = vmatpush2.bf16.msra.mxu0 %v3091_v16  ;;  %v3170_v16 = vld [vmem:[%s4639_s1 + $0x760] ss:$16 sps:$4 sm:$0xff]  }
  0x40   :  { %1711 = vmatpush2.bf16.msra.mxu1 %v3092_v17  ;;  %1721 = vmatprep.subr.bf16.mxu0 %v3097_v18  ;;  %v3175_v17 = vld [vmem:[%s4639_s1 + $0x544] ss:$16 sps:$4 sm:$0xff]  }
  0x41   :  { %1762 = vmatprep.subr.bf16.mxu1 %v3100_v19  ;;  %v3178_v18 = vld [vmem:[%s4639_s1 + $0x744] ss:$16 sps:$4 sm:$0xff]   ;;  %v3173_v19 = vld [vmem:[%s4639_s1 + $0x540] ss:$16 sps:$4 sm:$0xff]  }
  0x42   :  { %1672 = vmatmul.mubr.bf16.vlgmr.msra.gmra.mxu0 %v3757_v22 }
  0x43   :  { %1713 = vmatmul.mubr.bf16.vlgmr.msra.gmra.mxu1 %v3759_v23  ;;  %1722 = vmatpush1.bf16.msra.mxu0 %v3095_v24  ;;  %v3184_v24 = vld [vmem:[%s4639_s1 + $0x724] ss:$16 sps:$4 sm:$0xff]  }
  0x44   :  { %1763 = vmatpush1.bf16.msra.mxu1 %v3098_v25  ;;  %1723 = vmatprep.subr.bf16.mxu0 %v3103_v26  ;;  %v3179_v25 = vld [vmem:[%s4639_s1 + $0x520] ss:$16 sps:$4 sm:$0xff]  }
  0x45   :  { %1764 = vmatprep.subr.bf16.mxu1 %v3106_v27  ;;  %1753 = vmatprep.mubr.bf16.mxu0 %v3773_v28  ;;  %v3182_v26 = vld [vmem:[%s4639_s1 + $0x720] ss:$16 sps:$4 sm:$0xff]   ;;  %v3187_v27 = vld [vmem:[%s4639_s1 + $0x504] ss:$16 sps:$4 sm:$0xff]  }
  0x46   :  { %1794 = vmatprep.mubr.bf16.mxu1 %v3775_v29 }
  0x47   :  { %1724 = vmatpush1.bf16.msra.mxu0 %v3101_v30  ;;  %v3190_v30 = vld [vmem:[%s4639_s1 + $0x704] ss:$16 sps:$4 sm:$0xff]  }
  0x48   :  { %1765 = vmatpush1.bf16.msra.mxu1 %v3104_v31  ;;  %1725 = vmatprep.subr.bf16.mxu0 %v3109_v32  ;;  %v3185_v31 = vld [vmem:[%s4639_s1 + $0x500] ss:$16 sps:$4 sm:$0xff]  }
  0x49   :  { %1766 = vmatprep.subr.bf16.mxu1 %v3112_v33  ;;  %v3188_v32 = vld [vmem:[%s4639_s1 + $0x700] ss:$16 sps:$4 sm:$0xff]   ;;  %v3193_v33 = vld [vmem:[%s4639_s1 + $0xec] ss:$16 sps:$4 sm:$0xff]  }
  0x4b   :  { %1726 = vmatpush1.bf16.msra.mxu0 %v3107_v34  ;;  %v3196_v34 = vld [vmem:[%s4639_s1 + $0x2ec] ss:$16 sps:$4 sm:$0xff]  }
  0x4c   :  { %1767 = vmatpush1.bf16.msra.mxu1 %v3110_v35  ;;  %1727 = vmatprep.subr.bf16.mxu0 %v3115_v36  ;;  %v3963_v35 = vpack.c.bf16 %v3737_v14, %v3737_v14  ;;  %v3967_v36 = vpack.c.bf16 %v3739_v15, %v3739_v15  ;;  %v3199_v14 = vld [vmem:[%s4639_s1 + $0xcc] ss:$16 sps:$4 sm:$0xff]  }
  0x4d   :  { %1768 = vmatprep.subr.bf16.mxu1 %v3118_v37  ;;  %v3191_v37 = vld [vmem:[%s4639_s1 + $0xe8] ss:$16 sps:$4 sm:$0xff]   ;;  %v3202_v15 = vld [vmem:[%s4639_s1 + $0x2cc] ss:$16 sps:$4 sm:$0xff]  }
  0x4f   :  { %1728 = vmatpush1.bf16.msra.mxu0 %v3113_v38  ;;  %v3194_v38 = vld [vmem:[%s4639_s1 + $0x2e8] ss:$16 sps:$4 sm:$0xff]  }
  0x50   :  { %1769 = vmatpush1.bf16.msra.mxu1 %v3116_v39  ;;  %1729 = vmatprep.subr.bf16.mxu0 %v3121_v40  ;;  %v3197_v39 = vld [vmem:[%s4639_s1 + $0xc8] ss:$16 sps:$4 sm:$0xff]  }
  0x51   :  { %1770 = vmatprep.subr.bf16.mxu1 %v3124_v41  ;;  %v3200_v40 = vld [vmem:[%s4639_s1 + $0x2c8] ss:$16 sps:$4 sm:$0xff]   ;;  %v3205_v41 = vld [vmem:[%s4639_s1 + $0xac] ss:$16 sps:$4 sm:$0xff]  }
  0x53   :  { %1730 = vmatpush1.bf16.msra.mxu0 %v3119_v42  ;;  %v3208_v42 = vld [vmem:[%s4639_s1 + $0x2ac] ss:$16 sps:$4 sm:$0xff]  }
  0x54   :  { %1771 = vmatpush1.bf16.msra.mxu1 %v3122_v44  ;;  %1731 = vmatprep.subr.bf16.mxu0 %v3127_v45  ;;  %v3203_v44 = vld [vmem:[%s4639_s1 + $0xa8] ss:$16 sps:$4 sm:$0xff]  }
  0x55   :  { %1772 = vmatprep.subr.bf16.mxu1 %v3130_v46  ;;  %v3206_v45 = vld [vmem:[%s4639_s1 + $0x2a8] ss:$16 sps:$4 sm:$0xff]   ;;  %v3211_v46 = vld [vmem:[%s4639_s1 + $0x8c] ss:$16 sps:$4 sm:$0xff]  }
  0x57   :  { %1732 = vmatpush1.bf16.msra.mxu0 %v3125_v47  ;;  %v3212_v47 = vld [vmem:[%s4639_s1 + $0x288] ss:$16 sps:$4 sm:$0xff]  }
  0x58   :  { %1773 = vmatpush1.bf16.msra.mxu1 %v3128_v48  ;;  %1733 = vmatprep.subr.bf16.mxu0 %v3133_v49  ;;  %v3217_v48 = vld [vmem:[%s4639_s1 + $0x6c] ss:$16 sps:$4 sm:$0xff]  }
  0x59   :  { %1774 = vmatprep.subr.bf16.mxu1 %v3136_v50  ;;  %v3220_v49 = vld [vmem:[%s4639_s1 + $0x26c] ss:$16 sps:$4 sm:$0xff]   ;;  %v3215_v50 = vld [vmem:[%s4639_s1 + $0x68] ss:$16 sps:$4 sm:$0xff]  }
  0x5b   :  { %1734 = vmatpush1.bf16.msra.mxu0 %v3131_v51  ;;  %v3218_v51 = vld [vmem:[%s4639_s1 + $0x268] ss:$16 sps:$4 sm:$0xff]  }
  0x5c   :  { %1775 = vmatpush1.bf16.msra.mxu1 %v3134_v52  ;;  %1735 = vmatprep.subr.bf16.mxu0 %v3139_v53  ;;  %v3223_v52 = vld [vmem:[%s4639_s1 + $0x4c] ss:$16 sps:$4 sm:$0xff]  }
  0x5d   :  { %1776 = vmatprep.subr.bf16.mxu1 %v3142_v54  ;;  %v3226_v53 = vld [vmem:[%s4639_s1 + $0x24c] ss:$16 sps:$4 sm:$0xff]   ;;  %v3221_v54 = vld [vmem:[%s4639_s1 + $0x48] ss:$16 sps:$4 sm:$0xff]  }
  0x5f   :  { %1736 = vmatpush1.bf16.msra.mxu0 %v3137_v55  ;;  %v3224_v55 = vld [vmem:[%s4639_s1 + $0x248] ss:$16 sps:$4 sm:$0xff]  }
  0x60   :  { %1777 = vmatpush1.bf16.msra.mxu1 %v3140_v56  ;;  %1737 = vmatprep.subr.bf16.mxu0 %v3145_v57  ;;  %v3229_v56 = vld [vmem:[%s4639_s1 + $0x2c] ss:$16 sps:$4 sm:$0xff]  }
  0x61   :  { %1778 = vmatprep.subr.bf16.mxu1 %v3148_v58  ;;  %v3232_v57 = vld [vmem:[%s4639_s1 + $0x22c] ss:$16 sps:$4 sm:$0xff]   ;;  %v3227_v58 = vld [vmem:[%s4639_s1 + $0x28] ss:$16 sps:$4 sm:$0xff]  }
  0x63   :  { %1738 = vmatpush2.bf16.msra.mxu0 %v3143_v59  ;;  %v3230_v59 = vld [vmem:[%s4639_s1 + $0x228] ss:$16 sps:$4 sm:$0xff]  }
  0x64   :  { %1779 = vmatpush2.bf16.msra.mxu1 %v3146_v60  ;;  %1739 = vmatprep.subr.bf16.mxu0 %v3151_v62  ;;  %v3235_v60 = vld [vmem:[%s4639_s1 + $0xc] ss:$16 sps:$4 sm:$0xff]  }
  0x65   :  { %1780 = vmatprep.subr.bf16.mxu1 %v3154_v63  ;;  %v3238_v62 = vld [vmem:[%s4639_s1 + $0x20c] ss:$16 sps:$4 sm:$0xff]   ;;  %v3233_v63 = vld [vmem:[%s4639_s1 + $0x8] ss:$16 sps:$4 sm:$0xff]  }
  0x67   :  { %1740 = vmatpush2.bf16.msra.mxu0 %v3149_v0  ;;  %v3236_v0 = vld [vmem:[%s4639_s1 + $0x208] ss:$16 sps:$4 sm:$0xff]  }
  0x68   :  { %1781 = vmatpush2.bf16.msra.mxu1 %v3152_v1  ;;  %1741 = vmatprep.subr.bf16.mxu0 %v3157_v2  ;;  %v3241_v1 = vld [vmem:[%s4639_s1 + $0x1ec] ss:$16 sps:$4 sm:$0xff]  }
  0x69   :  { %1782 = vmatprep.subr.bf16.mxu1 %v3160_v4  ;;  %v3244_v2 = vld [vmem:[%s4639_s1 + $0x3ec] ss:$16 sps:$4 sm:$0xff]   ;;  %v3239_v4 = vld [vmem:[%s4639_s1 + $0x1e8] ss:$16 sps:$4 sm:$0xff]  }
  0x6b   :  { %1742 = vmatpush2.bf16.msra.mxu0 %v3155_v5  ;;  %v3242_v5 = vld [vmem:[%s4639_s1 + $0x3e8] ss:$16 sps:$4 sm:$0xff]  }
  0x6c   :  { %1783 = vmatpush2.bf16.msra.mxu1 %v3158_v6  ;;  %1743 = vmatprep.subr.bf16.mxu0 %v3163_v7  ;;  %v3247_v6 = vld [vmem:[%s4639_s1 + $0x1cc] ss:$16 sps:$4 sm:$0xff]  }
  0x6d   :  { %1784 = vmatprep.subr.bf16.mxu1 %v3166_v8  ;;  %v3250_v7 = vld [vmem:[%s4639_s1 + $0x3cc] ss:$16 sps:$4 sm:$0xff]   ;;  %v3245_v8 = vld [vmem:[%s4639_s1 + $0x1c8] ss:$16 sps:$4 sm:$0xff]  }
  0x6f   :  { %1744 = vmatpush2.bf16.msra.mxu0 %v3161_v9  ;;  %v3248_v9 = vld [vmem:[%s4639_s1 + $0x3c8] ss:$16 sps:$4 sm:$0xff]  }
  0x70   :  { %1785 = vmatpush2.bf16.msra.mxu1 %v3164_v10  ;;  %1745 = vmatprep.subr.bf16.mxu0 %v3169_v11  ;;  %v3253_v10 = vld [vmem:[%s4639_s1 + $0x1ac] ss:$16 sps:$4 sm:$0xff]  }
  0x71   :  { %1786 = vmatprep.subr.bf16.mxu1 %v3172_v12  ;;  %v3256_v11 = vld [vmem:[%s4639_s1 + $0x3ac] ss:$16 sps:$4 sm:$0xff]   ;;  %v3251_v12 = vld [vmem:[%s4639_s1 + $0x1a8] ss:$16 sps:$4 sm:$0xff]  }
  0x73   :  { %1746 = vmatpush2.bf16.msra.mxu0 %v3167_v13  ;;  %v3254_v13 = vld [vmem:[%s4639_s1 + $0x3a8] ss:$16 sps:$4 sm:$0xff]  }
  0x74   :  { %1787 = vmatpush2.bf16.msra.mxu1 %v3170_v16  ;;  %1747 = vmatprep.subr.bf16.mxu0 %v3175_v17  ;;  %v3259_v16 = vld [vmem:[%s4639_s1 + $0x18c] ss:$16 sps:$4 sm:$0xff]  }
  0x75   :  { %1788 = vmatprep.subr.bf16.mxu1 %v3178_v18  ;;  %v3262_v17 = vld [vmem:[%s4639_s1 + $0x38c] ss:$16 sps:$4 sm:$0xff]   ;;  %v3257_v18 = vld [vmem:[%s4639_s1 + $0x188] ss:$16 sps:$4 sm:$0xff]  }
  0x77   :  { %1748 = vmatpush2.bf16.msra.mxu0 %v3173_v19  ;;  %v3260_v19 = vld [vmem:[%s4639_s1 + $0x388] ss:$16 sps:$4 sm:$0xff]  }
  0x78   :  { %1789 = vmatpush2.bf16.msra.mxu1 %v3176_v20  ;;  %1749 = vmatprep.subr.bf16.mxu0 %v3181_v21  ;;  %v3265_v20 = vld [vmem:[%s4639_s1 + $0x16c] ss:$16 sps:$4 sm:$0xff]  }
  0x79   :  { %1790 = vmatprep.subr.bf16.mxu1 %v3184_v24  ;;  %v3268_v21 = vld [vmem:[%s4639_s1 + $0x36c] ss:$16 sps:$4 sm:$0xff]   ;;  %v3263_v24 = vld [vmem:[%s4639_s1 + $0x168] ss:$16 sps:$4 sm:$0xff]  }
  0x7b   :  { %1750 = vmatpush2.bf16.msra.mxu0 %v3179_v25  ;;  %v3266_v25 = vld [vmem:[%s4639_s1 + $0x368] ss:$16 sps:$4 sm:$0xff]  }
  0x7c   :  { %1791 = vmatpush2.bf16.msra.mxu1 %v3182_v26  ;;  %1751 = vmatprep.subr.bf16.mxu0 %v3187_v27  ;;  %v3271_v26 = vld [vmem:[%s4639_s1 + $0x14c] ss:$16 sps:$4 sm:$0xff]  }
  0x7d   :  { %1792 = vmatprep.subr.bf16.mxu1 %v3190_v30  ;;  %v3274_v27 = vld [vmem:[%s4639_s1 + $0x34c] ss:$16 sps:$4 sm:$0xff]   ;;  %v3269_v30 = vld [vmem:[%s4639_s1 + $0x148] ss:$16 sps:$4 sm:$0xff]  }
  0x7f   :  { %1752 = vmatpush2.bf16.msra.mxu0 %v3185_v31  ;;  %v3272_v31 = vld [vmem:[%s4639_s1 + $0x348] ss:$16 sps:$4 sm:$0xff]  }
  0x80   :  { %1793 = vmatpush2.bf16.msra.mxu1 %v3188_v32  ;;  %1803 = vmatprep.subr.bf16.mxu0 %v3193_v33  ;;  %v3277_v32 = vld [vmem:[%s4639_s1 + $0x12c] ss:$16 sps:$4 sm:$0xff]  }
  0x81   :  { %1844 = vmatprep.subr.bf16.mxu1 %v3196_v34  ;;  %v3280_v33 = vld [vmem:[%s4639_s1 + $0x32c] ss:$16 sps:$4 sm:$0xff]   ;;  %v3275_v34 = vld [vmem:[%s4639_s1 + $0x128] ss:$16 sps:$4 sm:$0xff]  }
  0x82   :  { %1754 = vmatmul.mubr.bf16.vlgmr.msra.gmra.mxu0 %v3963_v35 }
  0x83   :  { %1795 = vmatmul.mubr.bf16.vlgmr.msra.gmra.mxu1 %v3967_v36  ;;  %1804 = vmatpush1.bf16.msra.mxu0 %v3191_v37  ;;  %v3278_v37 = vld [vmem:[%s4639_s1 + $0x328] ss:$16 sps:$4 sm:$0xff]  }
  0x84   :  { %1845 = vmatpush1.bf16.msra.mxu1 %v3194_v38  ;;  %1805 = vmatprep.subr.bf16.mxu0 %v3199_v14  ;;  %v3283_v38 = vld [vmem:[%s4639_s1 + $0x10c] ss:$16 sps:$4 sm:$0xff]  }
  0x85   :  { %1846 = vmatprep.subr.bf16.mxu1 %v3202_v15  ;;  %1835 = vmatprep.mubr.bf16.mxu0 %v3692_v61  ;;  %v3214_v61 = vld [vmem:[%s4639_s1 + $0x28c] ss:$16 sps:$4 sm:$0xff]   ;;  %v3281_v15 = vld [vmem:[%s4639_s1 + $0x108] ss:$16 sps:$4 sm:$0xff]  }
  0x86   :  { %1876 = vmatprep.mubr.bf16.mxu1 %v3706_v3  ;;  %v3209_v3 = vld [vmem:[%s4639_s1 + $0x88] ss:$16 sps:$4 sm:$0xff]   ;;  %v3286_v14 = vld [vmem:[%s4639_s1 + $0x30c] ss:$16 sps:$4 sm:$0xff]  }
  0x87   :  { %1806 = vmatpush1.bf16.msra.mxu0 %v3197_v39  ;;  %v3284_v39 = vld [vmem:[%s4639_s1 + $0x308] ss:$16 sps:$4 sm:$0xff]  }
  0x88   :  { %1847 = vmatpush1.bf16.msra.mxu1 %v3200_v40  ;;  %1807 = vmatprep.subr.bf16.mxu0 %v3205_v41  ;;  %v3289_v40 = vld [vmem:[%s4639_s1 + $0x4ec] ss:$16 sps:$4 sm:$0xff]  }
  0x89   :  { %1848 = vmatprep.subr.bf16.mxu1 %v3208_v42  ;;  %v3292_v41 = vld [vmem:[%s4639_s1 + $0x6ec] ss:$16 sps:$4 sm:$0xff]   ;;  %v3287_v42 = vld [vmem:[%s4639_s1 + $0x4e8] ss:$16 sps:$4 sm:$0xff]  }
  0x8b   :  { %1808 = vmatpush1.bf16.msra.mxu0 %v3203_v44  ;;  %v3290_v44 = vld [vmem:[%s4639_s1 + $0x6e8] ss:$16 sps:$4 sm:$0xff]  }
  0x8c   :  { %1849 = vmatpush1.bf16.msra.mxu1 %v3206_v45  ;;  %1809 = vmatprep.subr.bf16.mxu0 %v3211_v46  ;;  %v3295_v45 = vld [vmem:[%s4639_s1 + $0x4cc] ss:$16 sps:$4 sm:$0xff]  }
  0x8d   :  { %1850 = vmatprep.subr.bf16.mxu1 %v3214_v61  ;;  %v3298_v46 = vld [vmem:[%s4639_s1 + $0x6cc] ss:$16 sps:$4 sm:$0xff]   ;;  %v3293_v61 = vld [vmem:[%s4639_s1 + $0x4c8] ss:$16 sps:$4 sm:$0xff]  }
  0x8f   :  { %1810 = vmatpush1.bf16.msra.mxu0 %v3209_v3  ;;  %v3296_v3 = vld [vmem:[%s4639_s1 + $0x6c8] ss:$16 sps:$4 sm:$0xff]  }
  0x90   :  { %1851 = vmatpush1.bf16.msra.mxu1 %v3212_v47  ;;  %1811 = vmatprep.subr.bf16.mxu0 %v3217_v48  ;;  %v3301_v47 = vld [vmem:[%s4639_s1 + $0x4ac] ss:$16 sps:$4 sm:$0xff]  }
  0x91   :  { %1852 = vmatprep.subr.bf16.mxu1 %v3220_v49  ;;  %v3304_v48 = vld [vmem:[%s4639_s1 + $0x6ac] ss:$16 sps:$4 sm:$0xff]   ;;  %v3299_v49 = vld [vmem:[%s4639_s1 + $0x4a8] ss:$16 sps:$4 sm:$0xff]  }
  0x93   :  { %1812 = vmatpush1.bf16.msra.mxu0 %v3215_v50  ;;  %v3310_v50 = vld [vmem:[%s4639_s1 + $0x68c] ss:$16 sps:$4 sm:$0xff]  }
  0x94   :  { %1853 = vmatpush1.bf16.msra.mxu1 %v3218_v51  ;;  %1813 = vmatprep.subr.bf16.mxu0 %v3223_v52  ;;  %v3313_v51 = vld [vmem:[%s4639_s1 + $0x46c] ss:$16 sps:$4 sm:$0xff]  }
  0x95   :  { %1854 = vmatprep.subr.bf16.mxu1 %v3226_v53  ;;  %v3316_v52 = vld [vmem:[%s4639_s1 + $0x66c] ss:$16 sps:$4 sm:$0xff]   ;;  %v3311_v53 = vld [vmem:[%s4639_s1 + $0x468] ss:$16 sps:$4 sm:$0xff]  }
  0x97   :  { %1814 = vmatpush1.bf16.msra.mxu0 %v3221_v54  ;;  %v3314_v54 = vld [vmem:[%s4639_s1 + $0x668] ss:$16 sps:$4 sm:$0xff]  }
  0x98   :  { %1855 = vmatpush1.bf16.msra.mxu1 %v3224_v55  ;;  %1815 = vmatprep.subr.bf16.mxu0 %v3229_v56  ;;  %v3319_v55 = vld [vmem:[%s4639_s1 + $0x44c] ss:$16 sps:$4 sm:$0xff]  }
  0x99   :  { %1856 = vmatprep.subr.bf16.mxu1 %v3232_v57  ;;  %v3322_v56 = vld [vmem:[%s4639_s1 + $0x64c] ss:$16 sps:$4 sm:$0xff]   ;;  %v3317_v57 = vld [vmem:[%s4639_s1 + $0x448] ss:$16 sps:$4 sm:$0xff]  }
  0x9b   :  { %1816 = vmatpush1.bf16.msra.mxu0 %v3227_v58  ;;  %v3320_v58 = vld [vmem:[%s4639_s1 + $0x648] ss:$16 sps:$4 sm:$0xff]  }
  0x9c   :  { %1857 = vmatpush1.bf16.msra.mxu1 %v3230_v59  ;;  %1817 = vmatprep.subr.bf16.mxu0 %v3235_v60  ;;  %v3325_v59 = vld [vmem:[%s4639_s1 + $0x42c] ss:$16 sps:$4 sm:$0xff]  }
  0x9d   :  { %1858 = vmatprep.subr.bf16.mxu1 %v3238_v62  ;;  %v3328_v60 = vld [vmem:[%s4639_s1 + $0x62c] ss:$16 sps:$4 sm:$0xff]   ;;  %v3323_v62 = vld [vmem:[%s4639_s1 + $0x428] ss:$16 sps:$4 sm:$0xff]  }
  0x9f   :  { %1818 = vmatpush1.bf16.msra.mxu0 %v3233_v63  ;;  %v3326_v63 = vld [vmem:[%s4639_s1 + $0x628] ss:$16 sps:$4 sm:$0xff]  }
  0xa0   :  { %1859 = vmatpush1.bf16.msra.mxu1 %v3236_v0  ;;  %1819 = vmatprep.subr.bf16.mxu0 %v3241_v1  ;;  %v3331_v0 = vld [vmem:[%s4639_s1 + $0x40c] ss:$16 sps:$4 sm:$0xff]  }
  0xa1   :  { %1860 = vmatprep.subr.bf16.mxu1 %v3244_v2  ;;  %v3334_v1 = vld [vmem:[%s4639_s1 + $0x60c] ss:$16 sps:$4 sm:$0xff]   ;;  %v3329_v2 = vld [vmem:[%s4639_s1 + $0x408] ss:$16 sps:$4 sm:$0xff]  }
  0xa3   :  { %1820 = vmatpush2.bf16.msra.mxu0 %v3239_v4  ;;  %v3332_v4 = vld [vmem:[%s4639_s1 + $0x608] ss:$16 sps:$4 sm:$0xff]  }
  0xa4   :  { %1861 = vmatpush2.bf16.msra.mxu1 %v3242_v5  ;;  %1821 = vmatprep.subr.bf16.mxu0 %v3247_v6  ;;  %v3337_v5 = vld [vmem:[%s4639_s1 + $0x5ec] ss:$16 sps:$4 sm:$0xff]  }
  0xa5   :  { %1862 = vmatprep.subr.bf16.mxu1 %v3250_v7  ;;  %v3340_v6 = vld [vmem:[%s4639_s1 + $0x7ec] ss:$16 sps:$4 sm:$0xff]   ;;  %v3335_v7 = vld [vmem:[%s4639_s1 + $0x5e8] ss:$16 sps:$4 sm:$0xff]  }
  0xa7   :  { %1822 = vmatpush2.bf16.msra.mxu0 %v3245_v8  ;;  %v3338_v8 = vld [vmem:[%s4639_s1 + $0x7e8] ss:$16 sps:$4 sm:$0xff]  }
  0xa8   :  { %1863 = vmatpush2.bf16.msra.mxu1 %v3248_v9  ;;  %1823 = vmatprep.subr.bf16.mxu0 %v3253_v10  ;;  %v3343_v9 = vld [vmem:[%s4639_s1 + $0x5cc] ss:$16 sps:$4 sm:$0xff]  }
  0xa9   :  { %1864 = vmatprep.subr.bf16.mxu1 %v3256_v11  ;;  %v3346_v10 = vld [vmem:[%s4639_s1 + $0x7cc] ss:$16 sps:$4 sm:$0xff]   ;;  %v3341_v11 = vld [vmem:[%s4639_s1 + $0x5c8] ss:$16 sps:$4 sm:$0xff]  }
  0xab   :  { %1824 = vmatpush2.bf16.msra.mxu0 %v3251_v12  ;;  %v3344_v12 = vld [vmem:[%s4639_s1 + $0x7c8] ss:$16 sps:$4 sm:$0xff]  }
  0xac   :  { %1865 = vmatpush2.bf16.msra.mxu1 %v3254_v13  ;;  %1825 = vmatprep.subr.bf16.mxu0 %v3259_v16  ;;  %v3349_v13 = vld [vmem:[%s4639_s1 + $0x5ac] ss:$16 sps:$4 sm:$0xff]  }
  0xad   :  { %1866 = vmatprep.subr.bf16.mxu1 %v3262_v17  ;;  %v3352_v16 = vld [vmem:[%s4639_s1 + $0x7ac] ss:$16 sps:$4 sm:$0xff]   ;;  %v3347_v17 = vld [vmem:[%s4639_s1 + $0x5a8] ss:$16 sps:$4 sm:$0xff]  }
  0xaf   :  { %1826 = vmatpush2.bf16.msra.mxu0 %v3257_v18  ;;  %v3350_v18 = vld [vmem:[%s4639_s1 + $0x7a8] ss:$16 sps:$4 sm:$0xff]  }
  0xb0   :  { %1867 = vmatpush2.bf16.msra.mxu1 %v3260_v19  ;;  %1827 = vmatprep.subr.bf16.mxu0 %v3265_v20  ;;  %v3355_v19 = vld [vmem:[%s4639_s1 + $0x58c] ss:$16 sps:$4 sm:$0xff]  }
  0xb1   :  { %1868 = vmatprep.subr.bf16.mxu1 %v3268_v21  ;;  %v3358_v20 = vld [vmem:[%s4639_s1 + $0x78c] ss:$16 sps:$4 sm:$0xff]   ;;  %v3353_v21 = vld [vmem:[%s4639_s1 + $0x588] ss:$16 sps:$4 sm:$0xff]  }
  0xb3   :  { %1828 = vmatpush2.bf16.msra.mxu0 %v3263_v24  ;;  %v3356_v24 = vld [vmem:[%s4639_s1 + $0x788] ss:$16 sps:$4 sm:$0xff]  }
  0xb4   :  { %1869 = vmatpush2.bf16.msra.mxu1 %v3266_v25  ;;  %1829 = vmatprep.subr.bf16.mxu0 %v3271_v26  ;;  %v3361_v25 = vld [vmem:[%s4639_s1 + $0x56c] ss:$16 sps:$4 sm:$0xff]  }
  0xb5   :  { %1870 = vmatprep.subr.bf16.mxu1 %v3274_v27  ;;  %v3364_v26 = vld [vmem:[%s4639_s1 + $0x76c] ss:$16 sps:$4 sm:$0xff]   ;;  %v3359_v27 = vld [vmem:[%s4639_s1 + $0x568] ss:$16 sps:$4 sm:$0xff]  }
  0xb7   :  { %1830 = vmatpush2.bf16.msra.mxu0 %v3269_v30  ;;  %v3362_v30 = vld [vmem:[%s4639_s1 + $0x768] ss:$16 sps:$4 sm:$0xff]  }
  0xb8   :  { %1871 = vmatpush2.bf16.msra.mxu1 %v3272_v31  ;;  %1831 = vmatprep.subr.bf16.mxu0 %v3277_v32  ;;  %v3367_v31 = vld [vmem:[%s4639_s1 + $0x54c] ss:$16 sps:$4 sm:$0xff]  }
  0xb9   :  { %1872 = vmatprep.subr.bf16.mxu1 %v3280_v33  ;;  %v3370_v32 = vld [vmem:[%s4639_s1 + $0x74c] ss:$16 sps:$4 sm:$0xff]   ;;  %v3365_v33 = vld [vmem:[%s4639_s1 + $0x548] ss:$16 sps:$4 sm:$0xff]  }
  0xbb   :  { %1832 = vmatpush2.bf16.msra.mxu0 %v3275_v34  ;;  %v3368_v34 = vld [vmem:[%s4639_s1 + $0x748] ss:$16 sps:$4 sm:$0xff]  }
  0xbc   :  { %1873 = vmatpush2.bf16.msra.mxu1 %v3278_v37  ;;  %1833 = vmatprep.subr.bf16.mxu0 %v3283_v38  ;;  %v3373_v37 = vld [vmem:[%s4639_s1 + $0x52c] ss:$16 sps:$4 sm:$0xff]  }
  0xbd   :  { %1874 = vmatprep.subr.bf16.mxu1 %v3286_v14  ;;  %v3376_v38 = vld [vmem:[%s4639_s1 + $0x72c] ss:$16 sps:$4 sm:$0xff]   ;;  %v3371_v14 = vld [vmem:[%s4639_s1 + $0x528] ss:$16 sps:$4 sm:$0xff]  }
  0xbf   :  { %1834 = vmatpush2.bf16.msra.mxu0 %v3281_v15  ;;  %v3374_v15 = vld [vmem:[%s4639_s1 + $0x728] ss:$16 sps:$4 sm:$0xff]  }
  0xc0   :  { %1875 = vmatpush2.bf16.msra.mxu1 %v3284_v39  ;;  %1885 = vmatprep.subr.bf16.mxu0 %v3289_v40  ;;  %v3379_v39 = vld [vmem:[%s4639_s1 + $0x50c] ss:$16 sps:$4 sm:$0xff]  }
  0xc1   :  { %1926 = vmatprep.subr.bf16.mxu1 %v3292_v41  ;;  %v3382_v40 = vld [vmem:[%s4639_s1 + $0x70c] ss:$16 sps:$4 sm:$0xff]   ;;  %v3377_v41 = vld [vmem:[%s4639_s1 + $0x508] ss:$16 sps:$4 sm:$0xff]  }
  0xc2   :  { %1836 = vmatmul.mubr.bf16.vlgmr.msra.gmra.mxu0 %v3757_v22  ;;  %v3302_v22 = vld [vmem:[%s4639_s1 + $0x6a8] ss:$16 sps:$4 sm:$0xff]  }
  0xc3   :  { %1877 = vmatmul.mubr.bf16.vlgmr.msra.gmra.mxu1 %v3759_v23  ;;  %1886 = vmatpush1.bf16.msra.mxu0 %v3287_v42  ;;  %v3307_v23 = vld [vmem:[%s4639_s1 + $0x48c] ss:$16 sps:$4 sm:$0xff]   ;;  %v3380_v42 = vld [vmem:[%s4639_s1 + $0x708] ss:$16 sps:$4 sm:$0xff]  }
  0xc4   :  { %1927 = vmatpush1.bf16.msra.mxu1 %v3290_v44  ;;  %1887 = vmatprep.subr.bf16.mxu0 %v3295_v45  ;;  %v3385_v44 = vld [vmem:[%s4641_s3 + $0x74] ss:$8 sps:$4 sm:$0xff]   ;;  %v3383_v45 = vld [vmem:[%s4641_s3 + $0x70] ss:$8 sps:$4 sm:$0xff]  }
  0xc5   :  { %1928 = vmatprep.subr.bf16.mxu1 %v3298_v46  ;;  %1917 = vmatprep.mubr.bf16.mxu0 %v3773_v28  ;;  %v3305_v28 = vld [vmem:[%s4639_s1 + $0x488] ss:$16 sps:$4 sm:$0xff]   ;;  %v3388_v46 = vld [vmem:[%s4641_s3 + $0x64] ss:$8 sps:$4 sm:$0xff]  }
  0xc6   :  { %1958 = vmatprep.mubr.bf16.mxu1 %v3775_v29  ;;  %v3308_v29 = vld [vmem:[%s4639_s1 + $0x688] ss:$16 sps:$4 sm:$0xff]  }
  0xc7   :  { %1888 = vmatpush1.bf16.msra.mxu0 %v3293_v61 }
  0xc8   :  { %1929 = vmatpush1.bf16.msra.mxu1 %v3296_v3  ;;  %1889 = vmatprep.subr.bf16.mxu0 %v3301_v47  ;;  %v3386_v47 = vld [vmem:[%s4641_s3 + $0x60] ss:$8 sps:$4 sm:$0xff]  }
  0xc9   :  { %1930 = vmatprep.subr.bf16.mxu1 %v3304_v48 }
  0xcb   :  { %1890 = vmatpush1.bf16.msra.mxu0 %v3299_v49 }
  0xcc   :  { %1931 = vmatpush1.bf16.msra.mxu1 %v3302_v22  ;;  %1891 = vmatprep.subr.bf16.mxu0 %v3307_v23  ;;  %v3391_v22 = vld [vmem:[%s4641_s3 + $0x54] ss:$8 sps:$4 sm:$0xff]  }
  0xcd   :  { %1932 = vmatprep.subr.bf16.mxu1 %v3310_v50 }
  0xcf   :  { %1892 = vmatpush1.bf16.msra.mxu0 %v3305_v28 }
  0xd0   :  { %1933 = vmatpush1.bf16.msra.mxu1 %v3308_v29  ;;  %1893 = vmatprep.subr.bf16.mxu0 %v3313_v51  ;;  %v3394_v29 = vld [vmem:[%s4641_s3 + $0x44] ss:$8 sps:$4 sm:$0xff]   ;;  %v3431_v51 = vld [vmem:[%s4641_s3 + $0x170] ss:$8 sps:$4 sm:$0xff]  }
  0xd1   :  { %1934 = vmatprep.subr.bf16.mxu1 %v3316_v52  ;;  %v3433_v52 = vld [vmem:[%s4641_s3 + $0x174] ss:$8 sps:$4 sm:$0xff]  }
  0xd3   :  { %1894 = vmatpush1.bf16.msra.mxu0 %v3311_v53  ;;  %v3436_v53 = vld [vmem:[%s4641_s3 + $0x164] ss:$8 sps:$4 sm:$0xff]  }
  0xd4   :  { %1935 = vmatpush1.bf16.msra.mxu1 %v3314_v54  ;;  %1895 = vmatprep.subr.bf16.mxu0 %v3319_v55  ;;  %v3392_v54 = vld [vmem:[%s4641_s3 + $0x40] ss:$8 sps:$4 sm:$0xff]  }
  0xd5   :  { %1936 = vmatprep.subr.bf16.mxu1 %v3322_v56  ;;  %v3434_v55 = vld [vmem:[%s4641_s3 + $0x160] ss:$8 sps:$4 sm:$0xff]   ;;  %v3397_v56 = vld [vmem:[%s4641_s3 + $0x34] ss:$8 sps:$4 sm:$0xff]  }
  0xd7   :  { %1896 = vmatpush1.bf16.msra.mxu0 %v3317_v57  ;;  %v3439_v57 = vld [vmem:[%s4641_s3 + $0x154] ss:$8 sps:$4 sm:$0xff]  }
  0xd8   :  { %1937 = vmatpush1.bf16.msra.mxu1 %v3320_v58  ;;  %1897 = vmatprep.subr.bf16.mxu0 %v3325_v59  ;;  %v3395_v58 = vld [vmem:[%s4641_s3 + $0x30] ss:$8 sps:$4 sm:$0xff]  }
  0xd9   :  { %1938 = vmatprep.subr.bf16.mxu1 %v3328_v60  ;;  %v3437_v59 = vld [vmem:[%s4641_s3 + $0x150] ss:$8 sps:$4 sm:$0xff]   ;;  %v3400_v60 = vld [vmem:[%s4641_s3 + $0x24] ss:$8 sps:$4 sm:$0xff]  }
  0xdb   :  { %1898 = vmatpush1.bf16.msra.mxu0 %v3323_v62  ;;  %v3442_v62 = vld [vmem:[%s4641_s3 + $0x144] ss:$8 sps:$4 sm:$0xff]  }
  0xdc   :  { %1939 = vmatpush1.bf16.msra.mxu1 %v3326_v63  ;;  %1899 = vmatprep.subr.bf16.mxu0 %v3331_v0  ;;  %v3398_v63 = vld [vmem:[%s4641_s3 + $0x20] ss:$8 sps:$4 sm:$0xff]  }
  0xdd   :  { %1940 = vmatprep.subr.bf16.mxu1 %v3334_v1  ;;  %v3440_v0 = vld [vmem:[%s4641_s3 + $0x140] ss:$8 sps:$4 sm:$0xff]   ;;  %v3403_v1 = vld [vmem:[%s4641_s3 + $0x14] ss:$8 sps:$4 sm:$0xff]  }
  0xdf   :  { %1900 = vmatpush1.bf16.msra.mxu0 %v3329_v2  ;;  %v3445_v2 = vld [vmem:[%s4641_s3 + $0x134] ss:$8 sps:$4 sm:$0xff]  }
  0xe0   :  { %1941 = vmatpush1.bf16.msra.mxu1 %v3332_v4  ;;  %1901 = vmatprep.subr.bf16.mxu0 %v3337_v5  ;;  %v3401_v4 = vld [vmem:[%s4641_s3 + $0x10] ss:$8 sps:$4 sm:$0xff]  }
  0xe1   :  { %1942 = vmatprep.subr.bf16.mxu1 %v3340_v6  ;;  %v3443_v5 = vld [vmem:[%s4641_s3 + $0x130] ss:$8 sps:$4 sm:$0xff]   ;;  %v3406_v6 = vld [vmem:[%s4641_s3 + $0x4] ss:$8 sps:$4 sm:$0xff]  }
  0xe3   :  { %1902 = vmatpush2.bf16.msra.mxu0 %v3335_v7  ;;  %v3448_v7 = vld [vmem:[%s4641_s3 + $0x124] ss:$8 sps:$4 sm:$0xff]  }
  0xe4   :  { %1943 = vmatpush2.bf16.msra.mxu1 %v3338_v8  ;;  %1903 = vmatprep.subr.bf16.mxu0 %v3343_v9  ;;  %v3404_v8 = vld [vmem:[%s4641_s3] ss:$8 sps:$4 sm:$0xff]  }
  0xe5   :  { %1944 = vmatprep.subr.bf16.mxu1 %v3346_v10  ;;  %v3446_v9 = vld [vmem:[%s4641_s3 + $0x120] ss:$8 sps:$4 sm:$0xff]   ;;  %v3409_v10 = vld [vmem:[%s4641_s3 + $0xf4] ss:$8 sps:$4 sm:$0xff]  }
  0xe7   :  { %1904 = vmatpush2.bf16.msra.mxu0 %v3341_v11  ;;  %v3451_v11 = vld [vmem:[%s4641_s3 + $0x114] ss:$8 sps:$4 sm:$0xff]  }
  0xe8   :  { %1945 = vmatpush2.bf16.msra.mxu1 %v3344_v12  ;;  %1905 = vmatprep.subr.bf16.mxu0 %v3349_v13  ;;  %v3407_v12 = vld [vmem:[%s4641_s3 + $0xf0] ss:$8 sps:$4 sm:$0xff]  }
  0xe9   :  { %1946 = vmatprep.subr.bf16.mxu1 %v3352_v16  ;;  %v3449_v13 = vld [vmem:[%s4641_s3 + $0x110] ss:$8 sps:$4 sm:$0xff]   ;;  %v3412_v16 = vld [vmem:[%s4641_s3 + $0xe4] ss:$8 sps:$4 sm:$0xff]  }
  0xeb   :  { %1906 = vmatpush2.bf16.msra.mxu0 %v3347_v17  ;;  %v3454_v17 = vld [vmem:[%s4641_s3 + $0x104] ss:$8 sps:$4 sm:$0xff]  }
  0xec   :  { %1947 = vmatpush2.bf16.msra.mxu1 %v3350_v18  ;;  %1907 = vmatprep.subr.bf16.mxu0 %v3355_v19  ;;  %v3410_v18 = vld [vmem:[%s4641_s3 + $0xe0] ss:$8 sps:$4 sm:$0xff]  }
  0xed   :  { %1948 = vmatprep.subr.bf16.mxu1 %v3358_v20  ;;  %v3452_v19 = vld [vmem:[%s4641_s3 + $0x100] ss:$8 sps:$4 sm:$0xff]   ;;  %v3415_v20 = vld [vmem:[%s4641_s3 + $0xd4] ss:$8 sps:$4 sm:$0xff]  }
  0xef   :  { %1908 = vmatpush2.bf16.msra.mxu0 %v3353_v21  ;;  %v3457_v21 = vld [vmem:[%s4641_s3 + $0x1f4] ss:$8 sps:$4 sm:$0xff]  }
  0xf0   :  { %1949 = vmatpush2.bf16.msra.mxu1 %v3356_v24  ;;  %1909 = vmatprep.subr.bf16.mxu0 %v3361_v25  ;;  %v3413_v24 = vld [vmem:[%s4641_s3 + $0xd0] ss:$8 sps:$4 sm:$0xff]  }
  0xf1   :  { %1950 = vmatprep.subr.bf16.mxu1 %v3364_v26  ;;  %v3455_v25 = vld [vmem:[%s4641_s3 + $0x1f0] ss:$8 sps:$4 sm:$0xff]   ;;  %v3418_v26 = vld [vmem:[%s4641_s3 + $0xc4] ss:$8 sps:$4 sm:$0xff]  }
  0xf3   :  { %1910 = vmatpush2.bf16.msra.mxu0 %v3359_v27  ;;  %v3460_v27 = vld [vmem:[%s4641_s3 + $0x1e4] ss:$8 sps:$4 sm:$0xff]  }
  0xf4   :  { %1951 = vmatpush2.bf16.msra.mxu1 %v3362_v30  ;;  %1911 = vmatprep.subr.bf16.mxu0 %v3367_v31  ;;  %v3416_v30 = vld [vmem:[%s4641_s3 + $0xc0] ss:$8 sps:$4 sm:$0xff]  }
  0xf5   :  { %1952 = vmatprep.subr.bf16.mxu1 %v3370_v32  ;;  %v3458_v31 = vld [vmem:[%s4641_s3 + $0x1e0] ss:$8 sps:$4 sm:$0xff]   ;;  %v3421_v32 = vld [vmem:[%s4641_s3 + $0xb4] ss:$8 sps:$4 sm:$0xff]  }
  0xf7   :  { %1912 = vmatpush2.bf16.msra.mxu0 %v3365_v33  ;;  %v3463_v33 = vld [vmem:[%s4641_s3 + $0x1d4] ss:$8 sps:$4 sm:$0xff]  }
  0xf8   :  { %1953 = vmatpush2.bf16.msra.mxu1 %v3368_v34  ;;  %1913 = vmatprep.subr.bf16.mxu0 %v3373_v37  ;;  %v3419_v34 = vld [vmem:[%s4641_s3 + $0xb0] ss:$8 sps:$4 sm:$0xff]  }
  0xf9   :  { %1954 = vmatprep.subr.bf16.mxu1 %v3376_v38  ;;  %v3461_v37 = vld [vmem:[%s4641_s3 + $0x1d0] ss:$8 sps:$4 sm:$0xff]   ;;  %v3424_v38 = vld [vmem:[%s4641_s3 + $0xa4] ss:$8 sps:$4 sm:$0xff]  }
  0xfb   :  { %1914 = vmatpush2.bf16.msra.mxu0 %v3371_v14  ;;  %v3466_v14 = vld [vmem:[%s4641_s3 + $0x1c4] ss:$8 sps:$4 sm:$0xff]  }
  0xfc   :  { %1955 = vmatpush2.bf16.msra.mxu1 %v3374_v15  ;;  %1915 = vmatprep.subr.bf16.mxu0 %v3379_v39  ;;  %v3422_v15 = vld [vmem:[%s4641_s3 + $0xa0] ss:$8 sps:$4 sm:$0xff]  }
  0xfd   :  { %1956 = vmatprep.subr.bf16.mxu1 %v3382_v40  ;;  %v3464_v39 = vld [vmem:[%s4641_s3 + $0x1c0] ss:$8 sps:$4 sm:$0xff]   ;;  %v3427_v40 = vld [vmem:[%s4641_s3 + $0x94] ss:$8 sps:$4 sm:$0xff]  }
  0xff   :  { %1916 = vmatpush2.bf16.msra.mxu0 %v3377_v41  ;;  %v3469_v41 = vld [vmem:[%s4641_s3 + $0x1b4] ss:$8 sps:$4 sm:$0xff]  }
 0x100   :  { %1957 = vmatpush2.bf16.msra.mxu1 %v3380_v42  ;;  %2371 = vmatprep.subr.bf16.mxu0 %v3385_v44  ;;  %v341_v42 = vsub.s32 0, %v3653_v43  ;;  %v4531_v44 = vld [vmem:[%s4642_s2] sm:$0xf] }
 0x101   :  { %2412 = vmatprep.subr.bf16.mxu1 %v3433_v52  ;;  %v3470_v52 = vld [vmem:[%s4641_s3 + $0x1a0] ss:$8 sps:$4 sm:$0xff]  }
 0x102   :  { %v4364_v61 = vpop.f32.mrf.mxu0  ;;  %1918 = vmatmul.mubr.bf16.vlgmr.msra.gmra.mxu0 %v3963_v35  ;;  %v3389_v35 = vld [vmem:[%s4641_s3 + $0x50] ss:$8 sps:$4 sm:$0xff]  }
 0x103   :  { %v4366_v3 = vpop.f32.mrf.mxu1  ;;  %1959 = vmatmul.mubr.bf16.vlgmr.msra.gmra.mxu1 %v3967_v36  ;;  %2372 = vmatpush1.bf16.msra.mxu0 %v3383_v45  ;;  %v345_v45 = vsub.s32 1, %v3653_v43 }
 0x104   :  { %v4373_v48 = vpop.f32.mrf.mxu0  ;;  %2373 = vmatprep.subr.bf16.mxu0 %v3388_v46  ;;  %2413 = vmatpush1.bf16.msra.mxu1 %v3431_v51  ;;  %v3425_v46 = vld [vmem:[%s4641_s3 + $0x90] ss:$8 sps:$4 sm:$0xff]  }
 0x105   :  { %v4375_v49 = vpop.f32.mrf.mxu1  ;;  %2414 = vmatprep.subr.bf16.mxu1 %v3436_v53 }
 0x106   :  { %v1677_v23 = vpop.f32.mrf.mxu0 }
 0x107   :  { %v1718_v50 = vpop.f32.mrf.mxu1  ;;  %2374 = vmatpush1.bf16.msra.mxu0 %v3386_v47  ;;  %v3467_v47 = vld [vmem:[%s4641_s3 + $0x1b0] ss:$8 sps:$4 sm:$0xff]   ;;  %v342_v23 = vrot.slane %v4531_v44, %v341_v42 }
 0x108   :  { %v1678_v36 = vpop.f32.mrf.mxu0  ;;  %2375 = vmatprep.subr.bf16.mxu0 %v3391_v22  ;;  %2415 = vmatpush1.bf16.msra.mxu1 %v3434_v55  ;;  %v3430_v22 = vld [vmem:[%s4641_s3 + $0x84] ss:$8 sps:$4 sm:$0xff]   ;;  %v346_v50 = vrot.slane %v4531_v44, %v345_v45 }
 0x109   :  { %v1719_v28 = vpop.f32.mrf.mxu1  ;;  %2416 = vmatprep.subr.bf16.mxu1 %v3439_v57  ;;  %v1674_v36 = vadd.f32 %v4364_v61, %v342_v23  ;;  %v3475_v57 = vld [vmem:[%s4641_s3 + $0x194] ss:$8 sps:$4 sm:$0xff]  }
 0x10a   :  { %v1676_v28 = vadd.f32 %v4373_v48, %v346_v50 }
 0x10b   :  { %2376 = vmatpush1.bf16.msra.mxu0 %v3389_v35  ;;  %v3428_v35 = vld [vmem:[%s4641_s3 + $0x80] ss:$8 sps:$4 sm:$0xff]   ;;  %v1715_v51 = vadd.f32 %v4366_v3, %v1674_v36  ;;  %v3473_v3 = vld [vmem:[%s4641_s3 + $0x190] ss:$8 sps:$4 sm:$0xff]  }
 0x10c   :  { %2377 = vmatprep.subr.bf16.mxu0 %v3394_v29  ;;  %2417 = vmatpush1.bf16.msra.mxu1 %v3437_v59  ;;  %v3472_v29 = vld [vmem:[%s4641_s3 + $0x1a4] ss:$8 sps:$4 sm:$0xff]   ;;  %v1717_v55 = vadd.f32 %v4375_v49, %v1676_v28 }
 0x10d   :  { %2418 = vmatprep.subr.bf16.mxu1 %v3442_v62 }
 0x10f   :  { %2378 = vmatpush1.bf16.msra.mxu0 %v3392_v54 }
 0x110   :  { %2379 = vmatprep.subr.bf16.mxu0 %v3397_v56  ;;  %2419 = vmatpush1.bf16.msra.mxu1 %v3440_v0 }
 0x111   :  { %2420 = vmatprep.subr.bf16.mxu1 %v3445_v2  ;;  %v3478_v2 = vld [vmem:[%s4641_s3 + $0x184] ss:$8 sps:$4 sm:$0xff]  }
 0x113   :  { %2380 = vmatpush1.bf16.msra.mxu0 %v3395_v58 }
 0x114   :  { %2381 = vmatprep.subr.bf16.mxu0 %v3400_v60  ;;  %2421 = vmatpush1.bf16.msra.mxu1 %v3443_v5  ;;  %v3476_v5 = vld [vmem:[%s4641_s3 + $0x180] ss:$8 sps:$4 sm:$0xff]  }
 0x115   :  { %2422 = vmatprep.subr.bf16.mxu1 %v3448_v7 }
 0x117   :  { %2382 = vmatpush1.bf16.msra.mxu0 %v3398_v63 }
 0x118   :  { %2383 = vmatprep.subr.bf16.mxu0 %v3403_v1  ;;  %2423 = vmatpush1.bf16.msra.mxu1 %v3446_v9 }
 0x119   :  { %2424 = vmatprep.subr.bf16.mxu1 %v3451_v11 }
 0x11b   :  { %2384 = vmatpush1.bf16.msra.mxu0 %v3401_v4 }
 0x11c   :  { %2385 = vmatprep.subr.bf16.mxu0 %v3406_v6  ;;  %2425 = vmatpush1.bf16.msra.mxu1 %v3449_v13 }
 0x11d   :  { %2426 = vmatprep.subr.bf16.mxu1 %v3454_v17 }
 0x11f   :  { %2386 = vmatpush1.bf16.msra.mxu0 %v3404_v8 }
 0x120   :  { %2387 = vmatprep.subr.bf16.mxu0 %v3409_v10  ;;  %2427 = vmatpush1.bf16.msra.mxu1 %v3452_v19  ;;  %v3480_v19 = vld [vmem:[%s4643_s5 + $0x38] sm:$0xff]  }
 0x121   :  { %2428 = vmatprep.subr.bf16.mxu1 %v3457_v21  ;;  %v3482_v21 = vld [vmem:[%s4643_s5 + $0x30] sm:$0xff]  }
 0x123   :  { %2388 = vmatpush2.bf16.msra.mxu0 %v3407_v12 }
 0x124   :  { %2389 = vmatprep.subr.bf16.mxu0 %v3412_v16  ;;  %2429 = vmatpush2.bf16.msra.mxu1 %v3455_v25  ;;  %v3484_v25 = vld [vmem:[%s4643_s5 + $0x28] sm:$0xff]  }
 0x125   :  { %2430 = vmatprep.subr.bf16.mxu1 %v3460_v27  ;;  %v3486_v27 = vld [vmem:[%s4643_s5 + $0x20] sm:$0xff]  }
 0x127   :  { %2390 = vmatpush2.bf16.msra.mxu0 %v3410_v18  ;;  %v3479_v18 = vld [vmem:[%s4643_s5 + $0x78] sm:$0xff]  }
 0x128   :  { %2391 = vmatprep.subr.bf16.mxu0 %v3415_v20  ;;  %2431 = vmatpush2.bf16.msra.mxu1 %v3458_v31  ;;  %v3481_v20 = vld [vmem:[%s4643_s5 + $0x70] sm:$0xff]   ;;  %v3488_v31 = vld [vmem:[%s4643_s5 + $0x18] sm:$0xff]  }
 0x129   :  { %2432 = vmatprep.subr.bf16.mxu1 %v3463_v33  ;;  %v3490_v33 = vld [vmem:[%s4643_s5 + $0x10] sm:$0xff]  }
 0x12b   :  { %2392 = vmatpush2.bf16.msra.mxu0 %v3413_v24  ;;  %v3483_v24 = vld [vmem:[%s4643_s5 + $0x68] sm:$0xff]  }
 0x12c   :  { %2393 = vmatprep.subr.bf16.mxu0 %v3418_v26  ;;  %2433 = vmatpush2.bf16.msra.mxu1 %v3461_v37  ;;  %v3485_v26 = vld [vmem:[%s4643_s5 + $0x60] sm:$0xff]   ;;  %v353_v37 = vsub.s32 3, %v3653_v43 }
 0x12d   :  { %2434 = vmatprep.subr.bf16.mxu1 %v3466_v14 }
 0x12e   :  { %v354_v14 = vrot.slane %v4531_v44, %v353_v37 }
 0x12f   :  { %2394 = vmatpush2.bf16.msra.mxu0 %v3416_v30  ;;  %v3487_v30 = vld [vmem:[%s4643_s5 + $0x58] sm:$0xff]  }
 0x130   :  { %2395 = vmatprep.subr.bf16.mxu0 %v3421_v32  ;;  %2435 = vmatpush2.bf16.msra.mxu1 %v3464_v39  ;;  %v3489_v32 = vld [vmem:[%s4643_s5 + $0x50] sm:$0xff]  }
 0x131   :  { %2436 = vmatprep.subr.bf16.mxu1 %v3469_v41 }
 0x133   :  { %2396 = vmatpush2.bf16.msra.mxu0 %v3419_v34  ;;  %v349_v34 = vsub.s32 2, %v3653_v43  ;;  %v2957_v43 = vld [vmem:[%s4645_s6] ss:$0 sm:$0xff] }
 0x134   :  { %2397 = vmatprep.subr.bf16.mxu0 %v3424_v38  ;;  %2437 = vmatpush2.bf16.msra.mxu1 %v3467_v47 }
 0x135   :  { %2438 = vmatprep.subr.bf16.mxu1 %v3472_v29  ;;  %v350_v38 = vrot.slane %v4531_v44, %v349_v34 }
 0x137   :  { %2398 = vmatpush2.bf16.msra.mxu0 %v3422_v15 }
 0x138   :  { %2399 = vmatprep.subr.bf16.mxu0 %v3427_v40  ;;  %2439 = vmatpush2.bf16.msra.mxu1 %v3470_v52 }
 0x139   :  { %2440 = vmatprep.subr.bf16.mxu1 %v3475_v57  ;;  %v3492_v57 = vld [vmem:[%s4643_s5 + $0x8] sm:$0xff]  }
 0x13b   :  { %2400 = vmatpush2.bf16.msra.mxu0 %v3425_v46 }
 0x13c   :  { %2401 = vmatprep.subr.bf16.mxu0 %v3430_v22  ;;  %2441 = vmatpush2.bf16.msra.mxu1 %v3473_v3  ;;  %v3493_v3 = vld [vmem:[%s4643_s5 + $0x40] sm:$0xff]  }
 0x13d   :  { %2442 = vmatprep.subr.bf16.mxu1 %v3478_v2 }
 0x13f   :  { %2402 = vmatpush2.bf16.msra.mxu0 %v3428_v35 }
 0x140   :  { %2443 = vmatpush2.bf16.msra.mxu1 %v3476_v5  ;;  %2974 = vmatprep.subr.bf16.mxu0 %v3479_v18 }
 0x142   :  { %v1755_v53 = vpop.f32.mrf.mxu0 }
 0x143   :  { %v1796_v54 = vpop.f32.mrf.mxu1  ;;  %v1756_v56 = vadd.f32 %v1755_v53, %v1715_v51 }
 0x144   :  { %v1757_v61 = vpop.f32.mrf.mxu0 }
 0x145   :  { %v1798_v48 = vpop.f32.mrf.mxu1  ;;  %v1797_v58 = vadd.f32 %v1796_v54, %v1756_v56  ;;  %v1758_v59 = vadd.f32 %v1757_v61, %v1717_v55 }
 0x146   :  { %v1759_v60 = vpop.f32.mrf.mxu0 }
 0x147   :  { %v1800_v62 = vpop.f32.mrf.mxu1  ;;  %v1799_v63 = vadd.f32 %v1798_v48, %v1758_v59  ;;  %v1967_v49 = vmax.f32 %v1797_v58, 0.0  ;;  %v3491_v48 = vld [vmem:[%s4643_s5 + $0x48] sm:$0xff]   ;;  %v3494_v60 = vld [vmem:[%s4643_s5] sm:$0xff]  }
 0x148   :  { %v1760_v0 = vpop.f32.mrf.mxu0 }
 0x149   :  { %v1801_v1 = vpop.f32.mrf.mxu1  ;;  %v1968_v4 = vmax.f32 %v1799_v63, 0.0  ;;  %v1971_v7 = vpack.c.bf16 %v1967_v49, %v1967_v49  ;;  %v2039_v63 = vld [vmem:[%s4644_s4] sm:$0x3] }
 0x14a   :  { %v2044_v49 = vrot.slane %v2039_v63, %v341_v42  ;;  %v2048_v0 = vrot.slane %v2039_v63, %v345_v45 }
 0x14b   :  { %v1972_v6 = vpack.c.bf16 %v1968_v4, %v1968_v4 }
 0x14d   :  { %2403 = vmatprep.mubr.bf16.mxu0 %v1972_v6 }
 0x14e   :  { %2404 = vmatmul.mubr.bf16.vlgmr.msra.gmra.mxu0 %v1971_v7 }
 0x14f   :  { %2975 = vmatpush3.bf16.msra.mxu0 %v3480_v19 }
 0x150   :  { %2976 = vmatprep.subr.bf16.mxu0 %v3481_v20 }
 0x153   :  { %2977 = vmatpush3.bf16.msra.mxu0 %v3482_v21 }
 0x154   :  { %2978 = vmatprep.subr.bf16.mxu0 %v3483_v24 }
 0x157   :  { %2979 = vmatpush3.bf16.msra.mxu0 %v3484_v25 }
 0x158   :  { %2980 = vmatprep.subr.bf16.mxu0 %v3485_v26 }
 0x15b   :  { %2981 = vmatpush3.bf16.msra.mxu0 %v3486_v27 }
 0x15c   :  { %2982 = vmatprep.subr.bf16.mxu0 %v3487_v30 }
 0x15f   :  { %2983 = vmatpush3.bf16.msra.mxu0 %v3488_v31 }
 0x160   :  { %2984 = vmatprep.subr.bf16.mxu0 %v3489_v32 }
 0x163   :  { %2985 = vmatpush3.bf16.msra.mxu0 %v3490_v33 }
 0x164   :  { %2986 = vmatprep.subr.bf16.mxu0 %v3491_v48 }
 0x167   :  { %2987 = vmatpush3.bf16.msra.mxu0 %v3492_v57 }
 0x168   :  { %2988 = vmatprep.subr.bf16.mxu0 %v3493_v3 }
 0x16b   :  { %2989 = vmatpush3.bf16.msra.mxu0 %v3494_v60 }
 0x182   :  { %v1837_v8 = vpop.f32.mrf.mxu0 }
 0x183   :  { %v1878_v9 = vpop.f32.mrf.mxu1  ;;  %v1838_v15 = vadd.f32 %v1837_v8, %v350_v38 }
 0x184   :  { %v1839_v10 = vpop.f32.mrf.mxu0 }
 0x185   :  { %v1880_v11 = vpop.f32.mrf.mxu1  ;;  %v1840_v39 = vadd.f32 %v1839_v10, %v354_v14  ;;  %v1879_v40 = vadd.f32 %v1878_v9, %v1838_v15 }
 0x186   :  { %v1841_v12 = vpop.f32.mrf.mxu0 }
 0x187   :  { %v1882_v13 = vpop.f32.mrf.mxu1  ;;  %v1881_v47 = vadd.f32 %v1880_v11, %v1840_v39 }
 0x188   :  { %v1842_v16 = vpop.f32.mrf.mxu0 }
 0x189   :  { %v1883_v17 = vpop.f32.mrf.mxu1 }
 0x1c2   :  { %v1919_v41 = vpop.f32.mrf.mxu0 }
 0x1c3   :  { %v1960_v46 = vpop.f32.mrf.mxu1  ;;  %v1920_v22 = vadd.f32 %v1919_v41, %v1879_v40 }
 0x1c4   :  { %v1921_v23 = vpop.f32.mrf.mxu0 }
 0x1c5   :  { %v1962_v50 = vpop.f32.mrf.mxu1  ;;  %v1961_v35 = vadd.f32 %v1960_v46, %v1920_v22  ;;  %v1922_v36 = vadd.f32 %v1921_v23, %v1881_v47 }
 0x1c6   :  { %v1923_v28 = vpop.f32.mrf.mxu0 }
 0x1c7   :  { %v1964_v29 = vpop.f32.mrf.mxu1  ;;  %v1963_v51 = vadd.f32 %v1962_v50, %v1922_v36  ;;  %v1969_v52 = vmax.f32 %v1961_v35, 0.0 }
 0x1c8   :  { %v1924_v53 = vpop.f32.mrf.mxu0 }
 0x1c9   :  { %v1965_v54 = vpop.f32.mrf.mxu1  ;;  %v1970_v55 = vmax.f32 %v1963_v51, 0.0  ;;  %v1973_v44 = vpack.c.bf16 %v1969_v52, %v1969_v52 }
 0x1cb   :  { %v1974_v56 = vpack.c.bf16 %v1970_v55, %v1970_v55 }
 0x1cd   :  { %2444 = vmatprep.mubr.bf16.mxu1 %v1974_v56 }
 0x1ce   :  { %2445 = vmatmul.mubr.bf16.vlgmr.msra.gmra.mxu1 %v1973_v44 }
 0x20e   :  { %v2405_v61 = vpop.f32.mrf.mxu0 }
 0x20f   :  { %v2406_v1 = vadd.f32 %v2405_v61, %v2044_v49 }
 0x210   :  { %v2407_v58 = vpop.f32.mrf.mxu0 }
 0x211   :  { %v2408_v4 = vadd.f32 %v2407_v58, %v2048_v0 }
 0x212   :  { %v2409_v59 = vpop.f32.mrf.mxu0 }
 0x214   :  { %v2410_v62 = vpop.f32.mrf.mxu0 }
 0x28e   :  { %v2446_v2 = vpop.f32.mrf.mxu1 }
 0x28f   :  { %v2447_v5 = vadd.f32 %v2446_v2, %v2406_v1 }
 0x290   :  { %v2448_v6 = vpop.f32.mrf.mxu1 }
 0x291   :  { %v2449_v7 = vadd.f32 %v2448_v6, %v2408_v4  ;;  %v2453_v8 = vmax.f32 %v2447_v5, 0.0 }
 0x292   :  { %v2450_v9 = vpop.f32.mrf.mxu1 }
 0x293   :  { %v2454_v10 = vmax.f32 %v2449_v7, 0.0  ;;  %v2455_v13 = vpack.c.bf16 %v2453_v8, %v2453_v8 }
 0x294   :  { %v2451_v11 = vpop.f32.mrf.mxu1 }
 0x295   :  { %v2456_v12 = vpack.c.bf16 %v2454_v10, %v2454_v10 }
 0x297   :  { %2624 = vmatprep.mubr.bf16.mxu0 %v2456_v12 }
 0x298   :  { %2625 = vmatmul.mubr.bf16.vlgmr.msra.gmra.mxu0 %v2455_v13 }
 0x358   :  { %v2990_v16 = vpop.f32.mrf.mxu0 }
 0x35a   :  { %v2991_v42 = vpop.f32.mrf.mxu0 }
 0x35b   :  { %v2992_v45 = vadd.f32 %v2991_v42, %v2990_v16 }
 0x35c   :  { %v2993_v17 = vpop.f32.mrf.mxu0 }
 0x35d   :  { %v2627_v18 = vadd.f32 %v2992_v45, %v2957_v43 }
 0x35e   :  { %v2994_v19 = vpop.f32.mrf.mxu0 }
 0x35f   :  { %2632 = vst [vmem:[%s4646_s7] sm:$0x3] %v2627_v18 }

// kernel: pointnet_cls_forward.7
= control target key start
LH: loop header
LB: loop body
LE: loop exit
PB: predicated region body
PF: predicated region fallthrough
CT: control target
= control target key end

     0   :  { %v3529_v36 = vmov 1983009808   ;;  %v36_v38 = vlaneseq  ;;  %s4680_s0 = inlined_call_operand.vmem [shape: f32[2,1024], index: 0, kind: input, shape index: {}]   ;;  %s4681_s1 = inlined_call_operand.vmem [shape: bf16[1024,512], index: 1, kind: input, shape index: {}]   ;;  %s4682_s2 = inlined_call_operand.vmem [shape: f32[1,512], index: 2, kind: input, shape index: {}]   ;;  %s4683_s3 = inlined_call_operand.vmem [shape: bf16[512,256], index: 3, kind: input, shape index: {}]   ;;  %s4684_s4 = inlined_call_operand.vmem [shape: f32[1,256], index: 4, kind: input, shape index: {}]   ;;  %s4685_s5 = inlined_call_operand.vmem [shape: bf16[256,128], index: 5, kind: input, shape index: {}]   ;;  %s4686_s6 = inlined_call_operand.vmem [shape: f32[1,128], index: 6, kind: input, shape index: {}]   ;;  %s4687_s7 = inlined_call_operand.hbm [shape: f32[2,128], index: 7, kind: output, shape index: {}]  }
   0x1   :  { %v3009_v0 = vld [vmem:[%s4681_s1 + $0xe4] ss:$16 sps:$4 sm:$0xff]   ;;  %v3013_v2 = vld [vmem:[%s4681_s1 + $0xe0] ss:$16 sps:$4 sm:$0xff]   ;;  %v34_v37 = vunpack.c.l.s4 %v3529_v36 }
   0x2   :  { %v3011_v1 = vld [vmem:[%s4681_s1 + $0x2e4] ss:$16 sps:$4 sm:$0xff]   ;;  %1640 = vmatprep.subr.bf16.mxu0 %v3009_v0  ;;  %v3014_v3 = vld [vmem:[%s4681_s1 + $0x2e0] ss:$16 sps:$4 sm:$0xff]   ;;  %v3688_v43 = vshrl.u32 %v36_v38, 7 }
   0x3   :  { %1681 = vmatprep.subr.bf16.mxu1 %v3011_v1  ;;  %v3015_v4 = vld [vmem:[%s4681_s1 + $0xc4] ss:$16 sps:$4 sm:$0xff]   ;;  %1641 = vmatpush1.bf16.msra.mxu0 %v3013_v2  ;;  %v3019_v6 = vld [vmem:[%s4681_s1 + $0xc0] ss:$16 sps:$4 sm:$0xff]   ;;  %v35_v42 = vunpack.c.0.s8 %v34_v37 }
   0x4   :  { %1682 = vmatpush1.bf16.msra.mxu1 %v3014_v3  ;;  %v3017_v5 = vld [vmem:[%s4681_s1 + $0x2c4] ss:$16 sps:$4 sm:$0xff]   ;;  %1642 = vmatprep.subr.bf16.mxu0 %v3015_v4  ;;  %v3020_v7 = vld [vmem:[%s4681_s1 + $0x2c0] ss:$16 sps:$4 sm:$0xff]  }
   0x5   :  { %1683 = vmatprep.subr.bf16.mxu1 %v3017_v5  ;;  %v3021_v8 = vld [vmem:[%s4681_s1 + $0xa4] ss:$16 sps:$4 sm:$0xff]   ;;  %v3025_v10 = vld [vmem:[%s4681_s1 + $0xa0] ss:$16 sps:$4 sm:$0xff]   ;;  %v3706_v49 = vsub.s32 %v35_v42, %v3688_v43  ;;  %v29_v42 = vld [vmem:[%s4680_s0 + $0x8] sm:$0xff] }
   0x6   :  { %v3023_v9 = vld [vmem:[%s4681_s1 + $0x2a4] ss:$16 sps:$4 sm:$0xff]   ;;  %v3026_v11 = vld [vmem:[%s4681_s1 + $0x2a0] ss:$16 sps:$4 sm:$0xff]  }
   0x7   :  { %1643 = vmatpush1.bf16.msra.mxu0 %v3019_v6  ;;  %v3027_v12 = vld [vmem:[%s4681_s1 + $0x84] ss:$16 sps:$4 sm:$0xff]   ;;  %v3031_v14 = vld [vmem:[%s4681_s1 + $0x80] ss:$16 sps:$4 sm:$0xff]  }
   0x8   :  { %1684 = vmatpush1.bf16.msra.mxu1 %v3020_v7  ;;  %1644 = vmatprep.subr.bf16.mxu0 %v3021_v8  ;;  %v3029_v13 = vld [vmem:[%s4681_s1 + $0x284] ss:$16 sps:$4 sm:$0xff]   ;;  %v3032_v15 = vld [vmem:[%s4681_s1 + $0x280] ss:$16 sps:$4 sm:$0xff]  }
   0x9   :  { %1685 = vmatprep.subr.bf16.mxu1 %v3023_v9  ;;  %v3033_v16 = vld [vmem:[%s4681_s1 + $0x64] ss:$16 sps:$4 sm:$0xff]   ;;  %v3037_v18 = vld [vmem:[%s4681_s1 + $0x60] ss:$16 sps:$4 sm:$0xff]  }
   0xa   :  { %v3035_v17 = vld [vmem:[%s4681_s1 + $0x264] ss:$16 sps:$4 sm:$0xff]   ;;  %v3038_v19 = vld [vmem:[%s4681_s1 + $0x260] ss:$16 sps:$4 sm:$0xff]  }
   0xb   :  { %1645 = vmatpush1.bf16.msra.mxu0 %v3025_v10  ;;  %v3039_v20 = vld [vmem:[%s4681_s1 + $0x44] ss:$16 sps:$4 sm:$0xff]   ;;  %v3043_v22 = vld [vmem:[%s4681_s1 + $0x40] ss:$16 sps:$4 sm:$0xff]  }
   0xc   :  { %1686 = vmatpush1.bf16.msra.mxu1 %v3026_v11  ;;  %1646 = vmatprep.subr.bf16.mxu0 %v3027_v12  ;;  %v3041_v21 = vld [vmem:[%s4681_s1 + $0x244] ss:$16 sps:$4 sm:$0xff]   ;;  %v3044_v23 = vld [vmem:[%s4681_s1 + $0x240] ss:$16 sps:$4 sm:$0xff]  }
   0xd   :  { %1687 = vmatprep.subr.bf16.mxu1 %v3029_v13  ;;  %v3045_v24 = vld [vmem:[%s4681_s1 + $0x24] ss:$16 sps:$4 sm:$0xff]   ;;  %v3049_v26 = vld [vmem:[%s4681_s1 + $0x20] ss:$16 sps:$4 sm:$0xff]  }
   0xe   :  { %v3047_v25 = vld [vmem:[%s4681_s1 + $0x224] ss:$16 sps:$4 sm:$0xff]   ;;  %v3050_v27 = vld [vmem:[%s4681_s1 + $0x220] ss:$16 sps:$4 sm:$0xff]  }
   0xf   :  { %1647 = vmatpush1.bf16.msra.mxu0 %v3031_v14  ;;  %v3051_v28 = vld [vmem:[%s4681_s1 + $0x4] ss:$16 sps:$4 sm:$0xff]   ;;  %v3055_v30 = vld [vmem:[%s4681_s1] ss:$16 sps:$4 sm:$0xff]  }
  0x10   :  { %1688 = vmatpush1.bf16.msra.mxu1 %v3032_v15  ;;  %1648 = vmatprep.subr.bf16.mxu0 %v3033_v16  ;;  %v3053_v29 = vld [vmem:[%s4681_s1 + $0x204] ss:$16 sps:$4 sm:$0xff]   ;;  %v3056_v31 = vld [vmem:[%s4681_s1 + $0x200] ss:$16 sps:$4 sm:$0xff]  }
  0x11   :  { %1689 = vmatprep.subr.bf16.mxu1 %v3035_v17  ;;  %v3057_v32 = vld [vmem:[%s4681_s1 + $0x1e4] ss:$16 sps:$4 sm:$0xff]   ;;  %v3061_v34 = vld [vmem:[%s4681_s1 + $0x1e0] ss:$16 sps:$4 sm:$0xff]  }
  0x12   :  { %v3059_v33 = vld [vmem:[%s4681_s1 + $0x3e4] ss:$16 sps:$4 sm:$0xff]   ;;  %v3062_v35 = vld [vmem:[%s4681_s1 + $0x3e0] ss:$16 sps:$4 sm:$0xff]  }
  0x13   :  { %1649 = vmatpush1.bf16.msra.mxu0 %v3037_v18  ;;  %v3063_v39 = vld [vmem:[%s4681_s1 + $0x1c4] ss:$16 sps:$4 sm:$0xff]   ;;  %v3067_v41 = vld [vmem:[%s4681_s1 + $0x1c0] ss:$16 sps:$4 sm:$0xff]  }
  0x14   :  { %1690 = vmatpush1.bf16.msra.mxu1 %v3038_v19  ;;  %1650 = vmatprep.subr.bf16.mxu0 %v3039_v20  ;;  %v3065_v40 = vld [vmem:[%s4681_s1 + $0x3c4] ss:$16 sps:$4 sm:$0xff]   ;;  %v3068_v44 = vld [vmem:[%s4681_s1 + $0x3c0] ss:$16 sps:$4 sm:$0xff]  }
  0x15   :  { %1691 = vmatprep.subr.bf16.mxu1 %v3041_v21  ;;  %v3069_v45 = vld [vmem:[%s4681_s1 + $0x1a4] ss:$16 sps:$4 sm:$0xff]   ;;  %v3073_v47 = vld [vmem:[%s4681_s1 + $0x1a0] ss:$16 sps:$4 sm:$0xff]  }
  0x16   :  { %v3071_v46 = vld [vmem:[%s4681_s1 + $0x3a4] ss:$16 sps:$4 sm:$0xff]   ;;  %v3074_v48 = vld [vmem:[%s4681_s1 + $0x3a0] ss:$16 sps:$4 sm:$0xff]  }
  0x17   :  { %1651 = vmatpush1.bf16.msra.mxu0 %v3043_v22  ;;  %v3075_v50 = vld [vmem:[%s4681_s1 + $0x184] ss:$16 sps:$4 sm:$0xff]   ;;  %v3079_v53 = vld [vmem:[%s4681_s1 + $0x180] ss:$16 sps:$4 sm:$0xff]  }
  0x18   :  { %1692 = vmatpush1.bf16.msra.mxu1 %v3044_v23  ;;  %1652 = vmatprep.subr.bf16.mxu0 %v3045_v24  ;;  %v3077_v51 = vld [vmem:[%s4681_s1 + $0x384] ss:$16 sps:$4 sm:$0xff]   ;;  %v3080_v56 = vld [vmem:[%s4681_s1 + $0x380] ss:$16 sps:$4 sm:$0xff]  }
  0x19   :  { %1693 = vmatprep.subr.bf16.mxu1 %v3047_v25  ;;  %v28_v52 = vld [vmem:[%s4680_s0] sm:$0xff] }
  0x1a   :  { %v39_v54 = vrot.slane %v28_v52, %v3706_v49  ;;  %v32_v55 = vcombine.high %v28_v52, %v28_v52  ;;  %v3081_v57 = vld [vmem:[%s4681_s1 + $0x164] ss:$16 sps:$4 sm:$0xff]   ;;  %v3085_v61 = vld [vmem:[%s4681_s1 + $0x160] ss:$16 sps:$4 sm:$0xff]  }
  0x1b   :  { %1653 = vmatpush1.bf16.msra.mxu0 %v3049_v26  ;;  %v3083_v58 = vld [vmem:[%s4681_s1 + $0x364] ss:$16 sps:$4 sm:$0xff]   ;;  %v3086_v0 = vld [vmem:[%s4681_s1 + $0x360] ss:$16 sps:$4 sm:$0xff]  }
  0x1c   :  { %1694 = vmatpush1.bf16.msra.mxu1 %v3050_v27  ;;  %1654 = vmatprep.subr.bf16.mxu0 %v3051_v28  ;;  %v47_v59 = vcombine.high %v39_v54, %v39_v54  ;;  %v46_v60 = vrot.slane %v32_v55, %v3706_v49  ;;  %v3087_v1 = vld [vmem:[%s4681_s1 + $0x144] ss:$16 sps:$4 sm:$0xff]   ;;  %v3091_v4 = vld [vmem:[%s4681_s1 + $0x140] ss:$16 sps:$4 sm:$0xff]   ;;  %v3785_v16 = vpack.c.bf16 %v39_v54, %v39_v54 }
  0x1d   :  { %1695 = vmatprep.subr.bf16.mxu1 %v3053_v29  ;;  %v3089_v2 = vld [vmem:[%s4681_s1 + $0x344] ss:$16 sps:$4 sm:$0xff]   ;;  %v3092_v5 = vld [vmem:[%s4681_s1 + $0x340] ss:$16 sps:$4 sm:$0xff]  }
  0x1e   :  { %v3734_v62 = vpack.c.bf16 %v47_v59, %v47_v59  ;;  %v48_v63 = vcombine.high %v46_v60, %v46_v60  ;;  %v3093_v6 = vld [vmem:[%s4681_s1 + $0x124] ss:$16 sps:$4 sm:$0xff]   ;;  %v3097_v8 = vld [vmem:[%s4681_s1 + $0x120] ss:$16 sps:$4 sm:$0xff]   ;;  %v3787_v17 = vpack.c.bf16 %v46_v60, %v46_v60 }
  0x1f   :  { %1655 = vmatpush1.bf16.msra.mxu0 %v3055_v30  ;;  %v3095_v7 = vld [vmem:[%s4681_s1 + $0x324] ss:$16 sps:$4 sm:$0xff]   ;;  %v3098_v9 = vld [vmem:[%s4681_s1 + $0x320] ss:$16 sps:$4 sm:$0xff]  }
  0x20   :  { %1696 = vmatpush1.bf16.msra.mxu1 %v3056_v31  ;;  %1656 = vmatprep.subr.bf16.mxu0 %v3057_v32  ;;  %v3745_v3 = vpack.c.bf16 %v48_v63, %v48_v63  ;;  %v3099_v10 = vld [vmem:[%s4681_s1 + $0x104] ss:$16 sps:$4 sm:$0xff]   ;;  %v3103_v12 = vld [vmem:[%s4681_s1 + $0x100] ss:$16 sps:$4 sm:$0xff]  }
  0x21   :  { %1697 = vmatprep.subr.bf16.mxu1 %v3059_v33  ;;  %1672 = vmatprep.mubr.bf16.mxu0 %v3734_v62  ;;  %v3101_v11 = vld [vmem:[%s4681_s1 + $0x304] ss:$16 sps:$4 sm:$0xff]   ;;  %v3104_v13 = vld [vmem:[%s4681_s1 + $0x300] ss:$16 sps:$4 sm:$0xff]  }
  0x22   :  { %1713 = vmatprep.mubr.bf16.mxu1 %v3745_v3  ;;  %v3108_v14 = vld [vmem:[%s4681_s1 + $0x4e4] ss:$16 sps:$4 sm:$0xff]   ;;  %v3106_v18 = vld [vmem:[%s4681_s1 + $0x4e0] ss:$16 sps:$4 sm:$0xff]  }
  0x23   :  { %1657 = vmatpush2.bf16.msra.mxu0 %v3061_v34  ;;  %v3111_v15 = vld [vmem:[%s4681_s1 + $0x6e4] ss:$16 sps:$4 sm:$0xff]   ;;  %v3109_v19 = vld [vmem:[%s4681_s1 + $0x6e0] ss:$16 sps:$4 sm:$0xff]  }
  0x24   :  { %1698 = vmatpush2.bf16.msra.mxu1 %v3062_v35  ;;  %1658 = vmatprep.subr.bf16.mxu0 %v3063_v39  ;;  %v3114_v20 = vld [vmem:[%s4681_s1 + $0x4c4] ss:$16 sps:$4 sm:$0xff]   ;;  %v3112_v22 = vld [vmem:[%s4681_s1 + $0x4c0] ss:$16 sps:$4 sm:$0xff]  }
  0x25   :  { %1699 = vmatprep.subr.bf16.mxu1 %v3065_v40  ;;  %v3117_v21 = vld [vmem:[%s4681_s1 + $0x6c4] ss:$16 sps:$4 sm:$0xff]   ;;  %v3115_v23 = vld [vmem:[%s4681_s1 + $0x6c0] ss:$16 sps:$4 sm:$0xff]  }
  0x26   :  { %v3120_v24 = vld [vmem:[%s4681_s1 + $0x4a4] ss:$16 sps:$4 sm:$0xff]   ;;  %v3118_v26 = vld [vmem:[%s4681_s1 + $0x4a0] ss:$16 sps:$4 sm:$0xff]  }
  0x27   :  { %1659 = vmatpush2.bf16.msra.mxu0 %v3067_v41  ;;  %v3123_v25 = vld [vmem:[%s4681_s1 + $0x6a4] ss:$16 sps:$4 sm:$0xff]   ;;  %v3121_v27 = vld [vmem:[%s4681_s1 + $0x6a0] ss:$16 sps:$4 sm:$0xff]  }
  0x28   :  { %1700 = vmatpush2.bf16.msra.mxu1 %v3068_v44  ;;  %1660 = vmatprep.subr.bf16.mxu0 %v3069_v45  ;;  %v3126_v28 = vld [vmem:[%s4681_s1 + $0x484] ss:$16 sps:$4 sm:$0xff]   ;;  %v3124_v30 = vld [vmem:[%s4681_s1 + $0x480] ss:$16 sps:$4 sm:$0xff]   ;;  %v3867_v44 = vrot.slane %v29_v42, %v3706_v49  ;;  %v49_v45 = vcombine.high %v29_v42, %v29_v42  ;;  %v3218_v42 = vld [vmem:[%s4681_s1 + $0x2a8] ss:$16 sps:$4 sm:$0xff]  }
  0x29   :  { %1701 = vmatprep.subr.bf16.mxu1 %v3071_v46  ;;  %v3129_v29 = vld [vmem:[%s4681_s1 + $0x684] ss:$16 sps:$4 sm:$0xff]   ;;  %v3127_v31 = vld [vmem:[%s4681_s1 + $0x680] ss:$16 sps:$4 sm:$0xff]  }
  0x2a   :  { %v3132_v32 = vld [vmem:[%s4681_s1 + $0x464] ss:$16 sps:$4 sm:$0xff]   ;;  %v3130_v34 = vld [vmem:[%s4681_s1 + $0x460] ss:$16 sps:$4 sm:$0xff]  }
  0x2b   :  { %1661 = vmatpush2.bf16.msra.mxu0 %v3073_v47  ;;  %v3135_v33 = vld [vmem:[%s4681_s1 + $0x664] ss:$16 sps:$4 sm:$0xff]   ;;  %v3133_v35 = vld [vmem:[%s4681_s1 + $0x660] ss:$16 sps:$4 sm:$0xff]  }
  0x2c   :  { %1702 = vmatpush2.bf16.msra.mxu1 %v3074_v48  ;;  %1662 = vmatprep.subr.bf16.mxu0 %v3075_v50  ;;  %v3138_v36 = vld [vmem:[%s4681_s1 + $0x444] ss:$16 sps:$4 sm:$0xff]   ;;  %v3136_v38 = vld [vmem:[%s4681_s1 + $0x440] ss:$16 sps:$4 sm:$0xff]   ;;  %v64_v48 = vcombine.high %v3867_v44, %v3867_v44  ;;  %v3878_v50 = vrot.slane %v49_v45, %v3706_v49  ;;  %v3224_v45 = vld [vmem:[%s4681_s1 + $0x288] ss:$16 sps:$4 sm:$0xff]  }
  0x2d   :  { %1703 = vmatprep.subr.bf16.mxu1 %v3077_v51  ;;  %v3141_v37 = vld [vmem:[%s4681_s1 + $0x644] ss:$16 sps:$4 sm:$0xff]   ;;  %v3139_v39 = vld [vmem:[%s4681_s1 + $0x640] ss:$16 sps:$4 sm:$0xff]  }
  0x2e   :  { %v3144_v40 = vld [vmem:[%s4681_s1 + $0x424] ss:$16 sps:$4 sm:$0xff]   ;;  %v3142_v46 = vld [vmem:[%s4681_s1 + $0x420] ss:$16 sps:$4 sm:$0xff]   ;;  %v65_v54 = vcombine.high %v3878_v50, %v3878_v50 }
  0x2f   :  { %1663 = vmatpush2.bf16.msra.mxu0 %v3079_v53  ;;  %v3147_v41 = vld [vmem:[%s4681_s1 + $0x624] ss:$16 sps:$4 sm:$0xff]   ;;  %v3145_v47 = vld [vmem:[%s4681_s1 + $0x620] ss:$16 sps:$4 sm:$0xff]   ;;  %v3886_v53 = vpack.c.bf16 %v64_v48, %v64_v48  ;;  %v3227_v48 = vld [vmem:[%s4681_s1 + $0x68] ss:$16 sps:$4 sm:$0xff]  }
  0x30   :  { %1704 = vmatpush2.bf16.msra.mxu1 %v3080_v56  ;;  %1664 = vmatprep.subr.bf16.mxu0 %v3081_v57  ;;  %v3150_v51 = vld [vmem:[%s4681_s1 + $0x404] ss:$16 sps:$4 sm:$0xff]   ;;  %v3148_v49 = vld [vmem:[%s4681_s1 + $0x400] ss:$16 sps:$4 sm:$0xff]   ;;  %v3896_v56 = vpack.c.bf16 %v65_v54, %v65_v54  ;;  %v3233_v54 = vld [vmem:[%s4681_s1 + $0x48] ss:$16 sps:$4 sm:$0xff]  }
  0x31   :  { %1705 = vmatprep.subr.bf16.mxu1 %v3083_v58  ;;  %v3153_v52 = vld [vmem:[%s4681_s1 + $0x604] ss:$16 sps:$4 sm:$0xff]   ;;  %v3151_v55 = vld [vmem:[%s4681_s1 + $0x600] ss:$16 sps:$4 sm:$0xff]  }
  0x32   :  { %v3156_v57 = vld [vmem:[%s4681_s1 + $0x5e4] ss:$16 sps:$4 sm:$0xff]   ;;  %v3154_v59 = vld [vmem:[%s4681_s1 + $0x5e0] ss:$16 sps:$4 sm:$0xff]  }
  0x33   :  { %1665 = vmatpush2.bf16.msra.mxu0 %v3085_v61  ;;  %v3159_v58 = vld [vmem:[%s4681_s1 + $0x7e4] ss:$16 sps:$4 sm:$0xff]   ;;  %v3157_v60 = vld [vmem:[%s4681_s1 + $0x7e0] ss:$16 sps:$4 sm:$0xff]  }
  0x34   :  { %1706 = vmatpush2.bf16.msra.mxu1 %v3086_v0  ;;  %1666 = vmatprep.subr.bf16.mxu0 %v3087_v1  ;;  %v3162_v61 = vld [vmem:[%s4681_s1 + $0x5c4] ss:$16 sps:$4 sm:$0xff]   ;;  %v3160_v0 = vld [vmem:[%s4681_s1 + $0x5c0] ss:$16 sps:$4 sm:$0xff]  }
  0x35   :  { %1707 = vmatprep.subr.bf16.mxu1 %v3089_v2  ;;  %v3165_v63 = vld [vmem:[%s4681_s1 + $0x7c4] ss:$16 sps:$4 sm:$0xff]   ;;  %v3163_v1 = vld [vmem:[%s4681_s1 + $0x7c0] ss:$16 sps:$4 sm:$0xff]  }
  0x36   :  { %v3168_v2 = vld [vmem:[%s4681_s1 + $0x5a4] ss:$16 sps:$4 sm:$0xff]  }
  0x37   :  { %1667 = vmatpush2.bf16.msra.mxu0 %v3091_v4  ;;  %v3171_v4 = vld [vmem:[%s4681_s1 + $0x7a4] ss:$16 sps:$4 sm:$0xff]  }
  0x38   :  { %1708 = vmatpush2.bf16.msra.mxu1 %v3092_v5  ;;  %1668 = vmatprep.subr.bf16.mxu0 %v3093_v6  ;;  %v3166_v5 = vld [vmem:[%s4681_s1 + $0x5a0] ss:$16 sps:$4 sm:$0xff]  }
  0x39   :  { %1709 = vmatprep.subr.bf16.mxu1 %v3095_v7  ;;  %v3169_v6 = vld [vmem:[%s4681_s1 + $0x7a0] ss:$16 sps:$4 sm:$0xff]   ;;  %v3174_v7 = vld [vmem:[%s4681_s1 + $0x584] ss:$16 sps:$4 sm:$0xff]  }
  0x3b   :  { %1669 = vmatpush2.bf16.msra.mxu0 %v3097_v8  ;;  %v3177_v8 = vld [vmem:[%s4681_s1 + $0x784] ss:$16 sps:$4 sm:$0xff]  }
  0x3c   :  { %1710 = vmatpush2.bf16.msra.mxu1 %v3098_v9  ;;  %1670 = vmatprep.subr.bf16.mxu0 %v3099_v10  ;;  %v3172_v9 = vld [vmem:[%s4681_s1 + $0x580] ss:$16 sps:$4 sm:$0xff]  }
  0x3d   :  { %1711 = vmatprep.subr.bf16.mxu1 %v3101_v11  ;;  %v3175_v10 = vld [vmem:[%s4681_s1 + $0x780] ss:$16 sps:$4 sm:$0xff]   ;;  %v3180_v11 = vld [vmem:[%s4681_s1 + $0x564] ss:$16 sps:$4 sm:$0xff]  }
  0x3f   :  { %1671 = vmatpush2.bf16.msra.mxu0 %v3103_v12  ;;  %v3183_v12 = vld [vmem:[%s4681_s1 + $0x764] ss:$16 sps:$4 sm:$0xff]  }
  0x40   :  { %1712 = vmatpush2.bf16.msra.mxu1 %v3104_v13  ;;  %1722 = vmatprep.subr.bf16.mxu0 %v3108_v14  ;;  %v3178_v13 = vld [vmem:[%s4681_s1 + $0x560] ss:$16 sps:$4 sm:$0xff]  }
  0x41   :  { %1763 = vmatprep.subr.bf16.mxu1 %v3111_v15  ;;  %v3181_v14 = vld [vmem:[%s4681_s1 + $0x760] ss:$16 sps:$4 sm:$0xff]   ;;  %v3186_v15 = vld [vmem:[%s4681_s1 + $0x544] ss:$16 sps:$4 sm:$0xff]  }
  0x42   :  { %1673 = vmatmul.mubr.bf16.vlgmr.msra.gmra.mxu0 %v3785_v16 }
  0x43   :  { %1714 = vmatmul.mubr.bf16.vlgmr.msra.gmra.mxu1 %v3787_v17  ;;  %1723 = vmatpush1.bf16.msra.mxu0 %v3106_v18  ;;  %v3189_v18 = vld [vmem:[%s4681_s1 + $0x744] ss:$16 sps:$4 sm:$0xff]  }
  0x44   :  { %1764 = vmatpush1.bf16.msra.mxu1 %v3109_v19  ;;  %1724 = vmatprep.subr.bf16.mxu0 %v3114_v20  ;;  %v3184_v19 = vld [vmem:[%s4681_s1 + $0x540] ss:$16 sps:$4 sm:$0xff]  }
  0x45   :  { %1765 = vmatprep.subr.bf16.mxu1 %v3117_v21  ;;  %1754 = vmatprep.mubr.bf16.mxu0 %v3886_v53  ;;  %v3187_v20 = vld [vmem:[%s4681_s1 + $0x740] ss:$16 sps:$4 sm:$0xff]   ;;  %v3192_v21 = vld [vmem:[%s4681_s1 + $0x524] ss:$16 sps:$4 sm:$0xff]  }
  0x46   :  { %1795 = vmatprep.mubr.bf16.mxu1 %v3896_v56 }
  0x47   :  { %1725 = vmatpush1.bf16.msra.mxu0 %v3112_v22  ;;  %v3195_v22 = vld [vmem:[%s4681_s1 + $0x724] ss:$16 sps:$4 sm:$0xff]  }
  0x48   :  { %1766 = vmatpush1.bf16.msra.mxu1 %v3115_v23  ;;  %1726 = vmatprep.subr.bf16.mxu0 %v3120_v24  ;;  %v3190_v23 = vld [vmem:[%s4681_s1 + $0x520] ss:$16 sps:$4 sm:$0xff]  }
  0x49   :  { %1767 = vmatprep.subr.bf16.mxu1 %v3123_v25  ;;  %v3193_v24 = vld [vmem:[%s4681_s1 + $0x720] ss:$16 sps:$4 sm:$0xff]   ;;  %v3198_v25 = vld [vmem:[%s4681_s1 + $0x504] ss:$16 sps:$4 sm:$0xff]  }
  0x4b   :  { %1727 = vmatpush1.bf16.msra.mxu0 %v3118_v26  ;;  %v3201_v26 = vld [vmem:[%s4681_s1 + $0x704] ss:$16 sps:$4 sm:$0xff]  }
  0x4c   :  { %1768 = vmatpush1.bf16.msra.mxu1 %v3121_v27  ;;  %1728 = vmatprep.subr.bf16.mxu0 %v3126_v28  ;;  %v3196_v27 = vld [vmem:[%s4681_s1 + $0x500] ss:$16 sps:$4 sm:$0xff]  }
  0x4d   :  { %1769 = vmatprep.subr.bf16.mxu1 %v3129_v29  ;;  %v3199_v28 = vld [vmem:[%s4681_s1 + $0x700] ss:$16 sps:$4 sm:$0xff]   ;;  %v3205_v29 = vld [vmem:[%s4681_s1 + $0xec] ss:$16 sps:$4 sm:$0xff]  }
  0x4f   :  { %1729 = vmatpush1.bf16.msra.mxu0 %v3124_v30  ;;  %v3208_v30 = vld [vmem:[%s4681_s1 + $0x2ec] ss:$16 sps:$4 sm:$0xff]  }
  0x50   :  { %1770 = vmatpush1.bf16.msra.mxu1 %v3127_v31  ;;  %1730 = vmatprep.subr.bf16.mxu0 %v3132_v32  ;;  %v4004_v31 = vpack.c.bf16 %v3867_v44, %v3867_v44  ;;  %v4008_v32 = vpack.c.bf16 %v3878_v50, %v3878_v50  ;;  %v3223_v44 = vld [vmem:[%s4681_s1 + $0x8c] ss:$16 sps:$4 sm:$0xff]   ;;  %v3230_v50 = vld [vmem:[%s4681_s1 + $0x268] ss:$16 sps:$4 sm:$0xff]  }
  0x51   :  { %1771 = vmatprep.subr.bf16.mxu1 %v3135_v33  ;;  %v3203_v33 = vld [vmem:[%s4681_s1 + $0xe8] ss:$16 sps:$4 sm:$0xff]  }
  0x53   :  { %1731 = vmatpush1.bf16.msra.mxu0 %v3130_v34  ;;  %v3206_v34 = vld [vmem:[%s4681_s1 + $0x2e8] ss:$16 sps:$4 sm:$0xff]  }
  0x54   :  { %1772 = vmatpush1.bf16.msra.mxu1 %v3133_v35  ;;  %1732 = vmatprep.subr.bf16.mxu0 %v3138_v36  ;;  %v3211_v35 = vld [vmem:[%s4681_s1 + $0xcc] ss:$16 sps:$4 sm:$0xff]  }
  0x55   :  { %1773 = vmatprep.subr.bf16.mxu1 %v3141_v37  ;;  %v3214_v36 = vld [vmem:[%s4681_s1 + $0x2cc] ss:$16 sps:$4 sm:$0xff]   ;;  %v3209_v37 = vld [vmem:[%s4681_s1 + $0xc8] ss:$16 sps:$4 sm:$0xff]  }
  0x57   :  { %1733 = vmatpush1.bf16.msra.mxu0 %v3136_v38  ;;  %v3212_v38 = vld [vmem:[%s4681_s1 + $0x2c8] ss:$16 sps:$4 sm:$0xff]  }
  0x58   :  { %1774 = vmatpush1.bf16.msra.mxu1 %v3139_v39  ;;  %1734 = vmatprep.subr.bf16.mxu0 %v3144_v40  ;;  %v3217_v39 = vld [vmem:[%s4681_s1 + $0xac] ss:$16 sps:$4 sm:$0xff]  }
  0x59   :  { %1775 = vmatprep.subr.bf16.mxu1 %v3147_v41  ;;  %v3220_v40 = vld [vmem:[%s4681_s1 + $0x2ac] ss:$16 sps:$4 sm:$0xff]   ;;  %v3215_v41 = vld [vmem:[%s4681_s1 + $0xa8] ss:$16 sps:$4 sm:$0xff]  }
  0x5b   :  { %1735 = vmatpush1.bf16.msra.mxu0 %v3142_v46  ;;  %v3229_v46 = vld [vmem:[%s4681_s1 + $0x6c] ss:$16 sps:$4 sm:$0xff]  }
  0x5c   :  { %1776 = vmatpush1.bf16.msra.mxu1 %v3145_v47  ;;  %1736 = vmatprep.subr.bf16.mxu0 %v3150_v51  ;;  %v3232_v47 = vld [vmem:[%s4681_s1 + $0x26c] ss:$16 sps:$4 sm:$0xff]  }
  0x5d   :  { %1777 = vmatprep.subr.bf16.mxu1 %v3153_v52  ;;  %v3235_v51 = vld [vmem:[%s4681_s1 + $0x4c] ss:$16 sps:$4 sm:$0xff]  }
  0x5e   :  { %v3238_v52 = vld [vmem:[%s4681_s1 + $0x24c] ss:$16 sps:$4 sm:$0xff]  }
  0x5f   :  { %1737 = vmatpush1.bf16.msra.mxu0 %v3148_v49  ;;  %v3236_v49 = vld [vmem:[%s4681_s1 + $0x248] ss:$16 sps:$4 sm:$0xff]  }
  0x60   :  { %1778 = vmatpush1.bf16.msra.mxu1 %v3151_v55  ;;  %1738 = vmatprep.subr.bf16.mxu0 %v3156_v57  ;;  %v3241_v55 = vld [vmem:[%s4681_s1 + $0x2c] ss:$16 sps:$4 sm:$0xff]  }
  0x61   :  { %1779 = vmatprep.subr.bf16.mxu1 %v3159_v58  ;;  %v3244_v57 = vld [vmem:[%s4681_s1 + $0x22c] ss:$16 sps:$4 sm:$0xff]   ;;  %v3239_v58 = vld [vmem:[%s4681_s1 + $0x28] ss:$16 sps:$4 sm:$0xff]  }
  0x63   :  { %1739 = vmatpush2.bf16.msra.mxu0 %v3154_v59  ;;  %v3242_v59 = vld [vmem:[%s4681_s1 + $0x228] ss:$16 sps:$4 sm:$0xff]  }
  0x64   :  { %1780 = vmatpush2.bf16.msra.mxu1 %v3157_v60  ;;  %1740 = vmatprep.subr.bf16.mxu0 %v3162_v61  ;;  %v3247_v60 = vld [vmem:[%s4681_s1 + $0xc] ss:$16 sps:$4 sm:$0xff]  }
  0x65   :  { %1781 = vmatprep.subr.bf16.mxu1 %v3165_v63  ;;  %v3250_v61 = vld [vmem:[%s4681_s1 + $0x20c] ss:$16 sps:$4 sm:$0xff]   ;;  %v3245_v63 = vld [vmem:[%s4681_s1 + $0x8] ss:$16 sps:$4 sm:$0xff]  }
  0x67   :  { %1741 = vmatpush2.bf16.msra.mxu0 %v3160_v0  ;;  %v3248_v0 = vld [vmem:[%s4681_s1 + $0x208] ss:$16 sps:$4 sm:$0xff]  }
  0x68   :  { %1782 = vmatpush2.bf16.msra.mxu1 %v3163_v1  ;;  %1742 = vmatprep.subr.bf16.mxu0 %v3168_v2  ;;  %v3253_v1 = vld [vmem:[%s4681_s1 + $0x1ec] ss:$16 sps:$4 sm:$0xff]  }
  0x69   :  { %1783 = vmatprep.subr.bf16.mxu1 %v3171_v4  ;;  %v3256_v2 = vld [vmem:[%s4681_s1 + $0x3ec] ss:$16 sps:$4 sm:$0xff]   ;;  %v3251_v4 = vld [vmem:[%s4681_s1 + $0x1e8] ss:$16 sps:$4 sm:$0xff]  }
  0x6b   :  { %1743 = vmatpush2.bf16.msra.mxu0 %v3166_v5  ;;  %v3254_v5 = vld [vmem:[%s4681_s1 + $0x3e8] ss:$16 sps:$4 sm:$0xff]  }
  0x6c   :  { %1784 = vmatpush2.bf16.msra.mxu1 %v3169_v6  ;;  %1744 = vmatprep.subr.bf16.mxu0 %v3174_v7  ;;  %v3259_v6 = vld [vmem:[%s4681_s1 + $0x1cc] ss:$16 sps:$4 sm:$0xff]  }
  0x6d   :  { %1785 = vmatprep.subr.bf16.mxu1 %v3177_v8  ;;  %v3262_v7 = vld [vmem:[%s4681_s1 + $0x3cc] ss:$16 sps:$4 sm:$0xff]   ;;  %v3257_v8 = vld [vmem:[%s4681_s1 + $0x1c8] ss:$16 sps:$4 sm:$0xff]  }
  0x6f   :  { %1745 = vmatpush2.bf16.msra.mxu0 %v3172_v9  ;;  %v3260_v9 = vld [vmem:[%s4681_s1 + $0x3c8] ss:$16 sps:$4 sm:$0xff]  }
  0x70   :  { %1786 = vmatpush2.bf16.msra.mxu1 %v3175_v10  ;;  %1746 = vmatprep.subr.bf16.mxu0 %v3180_v11  ;;  %v3265_v10 = vld [vmem:[%s4681_s1 + $0x1ac] ss:$16 sps:$4 sm:$0xff]  }
  0x71   :  { %1787 = vmatprep.subr.bf16.mxu1 %v3183_v12  ;;  %v3268_v11 = vld [vmem:[%s4681_s1 + $0x3ac] ss:$16 sps:$4 sm:$0xff]   ;;  %v3263_v12 = vld [vmem:[%s4681_s1 + $0x1a8] ss:$16 sps:$4 sm:$0xff]  }
  0x73   :  { %1747 = vmatpush2.bf16.msra.mxu0 %v3178_v13  ;;  %v3266_v13 = vld [vmem:[%s4681_s1 + $0x3a8] ss:$16 sps:$4 sm:$0xff]  }
  0x74   :  { %1788 = vmatpush2.bf16.msra.mxu1 %v3181_v14  ;;  %1748 = vmatprep.subr.bf16.mxu0 %v3186_v15  ;;  %v3271_v14 = vld [vmem:[%s4681_s1 + $0x18c] ss:$16 sps:$4 sm:$0xff]  }
  0x75   :  { %1789 = vmatprep.subr.bf16.mxu1 %v3189_v18  ;;  %v3274_v15 = vld [vmem:[%s4681_s1 + $0x38c] ss:$16 sps:$4 sm:$0xff]   ;;  %v3269_v18 = vld [vmem:[%s4681_s1 + $0x188] ss:$16 sps:$4 sm:$0xff]  }
  0x77   :  { %1749 = vmatpush2.bf16.msra.mxu0 %v3184_v19  ;;  %v3272_v19 = vld [vmem:[%s4681_s1 + $0x388] ss:$16 sps:$4 sm:$0xff]  }
  0x78   :  { %1790 = vmatpush2.bf16.msra.mxu1 %v3187_v20  ;;  %1750 = vmatprep.subr.bf16.mxu0 %v3192_v21  ;;  %v3277_v20 = vld [vmem:[%s4681_s1 + $0x16c] ss:$16 sps:$4 sm:$0xff]  }
  0x79   :  { %1791 = vmatprep.subr.bf16.mxu1 %v3195_v22  ;;  %v3280_v21 = vld [vmem:[%s4681_s1 + $0x36c] ss:$16 sps:$4 sm:$0xff]   ;;  %v3275_v22 = vld [vmem:[%s4681_s1 + $0x168] ss:$16 sps:$4 sm:$0xff]  }
  0x7b   :  { %1751 = vmatpush2.bf16.msra.mxu0 %v3190_v23  ;;  %v3278_v23 = vld [vmem:[%s4681_s1 + $0x368] ss:$16 sps:$4 sm:$0xff]  }
  0x7c   :  { %1792 = vmatpush2.bf16.msra.mxu1 %v3193_v24  ;;  %1752 = vmatprep.subr.bf16.mxu0 %v3198_v25  ;;  %v3283_v24 = vld [vmem:[%s4681_s1 + $0x14c] ss:$16 sps:$4 sm:$0xff]  }
  0x7d   :  { %1793 = vmatprep.subr.bf16.mxu1 %v3201_v26  ;;  %v3286_v25 = vld [vmem:[%s4681_s1 + $0x34c] ss:$16 sps:$4 sm:$0xff]   ;;  %v3281_v26 = vld [vmem:[%s4681_s1 + $0x148] ss:$16 sps:$4 sm:$0xff]  }
  0x7f   :  { %1753 = vmatpush2.bf16.msra.mxu0 %v3196_v27  ;;  %v3284_v27 = vld [vmem:[%s4681_s1 + $0x348] ss:$16 sps:$4 sm:$0xff]  }
  0x80   :  { %1794 = vmatpush2.bf16.msra.mxu1 %v3199_v28  ;;  %1804 = vmatprep.subr.bf16.mxu0 %v3205_v29  ;;  %v3289_v28 = vld [vmem:[%s4681_s1 + $0x12c] ss:$16 sps:$4 sm:$0xff]  }
  0x81   :  { %1845 = vmatprep.subr.bf16.mxu1 %v3208_v30  ;;  %v3292_v29 = vld [vmem:[%s4681_s1 + $0x32c] ss:$16 sps:$4 sm:$0xff]   ;;  %v3287_v30 = vld [vmem:[%s4681_s1 + $0x128] ss:$16 sps:$4 sm:$0xff]  }
  0x82   :  { %1755 = vmatmul.mubr.bf16.vlgmr.msra.gmra.mxu0 %v4004_v31 }
  0x83   :  { %1796 = vmatmul.mubr.bf16.vlgmr.msra.gmra.mxu1 %v4008_v32  ;;  %1805 = vmatpush1.bf16.msra.mxu0 %v3203_v33  ;;  %v3290_v33 = vld [vmem:[%s4681_s1 + $0x328] ss:$16 sps:$4 sm:$0xff]  }
  0x84   :  { %1846 = vmatpush1.bf16.msra.mxu1 %v3206_v34  ;;  %1806 = vmatprep.subr.bf16.mxu0 %v3211_v35  ;;  %v3295_v34 = vld [vmem:[%s4681_s1 + $0x10c] ss:$16 sps:$4 sm:$0xff]  }
  0x85   :  { %1847 = vmatprep.subr.bf16.mxu1 %v3214_v36  ;;  %1836 = vmatprep.mubr.bf16.mxu0 %v3734_v62  ;;  %v3226_v62 = vld [vmem:[%s4681_s1 + $0x28c] ss:$16 sps:$4 sm:$0xff]   ;;  %v3293_v36 = vld [vmem:[%s4681_s1 + $0x108] ss:$16 sps:$4 sm:$0xff]  }
  0x86   :  { %1877 = vmatprep.mubr.bf16.mxu1 %v3745_v3  ;;  %v3221_v3 = vld [vmem:[%s4681_s1 + $0x88] ss:$16 sps:$4 sm:$0xff]   ;;  %v3298_v35 = vld [vmem:[%s4681_s1 + $0x30c] ss:$16 sps:$4 sm:$0xff]  }
  0x87   :  { %1807 = vmatpush1.bf16.msra.mxu0 %v3209_v37  ;;  %v3296_v37 = vld [vmem:[%s4681_s1 + $0x308] ss:$16 sps:$4 sm:$0xff]  }
  0x88   :  { %1848 = vmatpush1.bf16.msra.mxu1 %v3212_v38  ;;  %1808 = vmatprep.subr.bf16.mxu0 %v3217_v39  ;;  %v3301_v38 = vld [vmem:[%s4681_s1 + $0x4ec] ss:$16 sps:$4 sm:$0xff]  }
  0x89   :  { %1849 = vmatprep.subr.bf16.mxu1 %v3220_v40  ;;  %v3304_v39 = vld [vmem:[%s4681_s1 + $0x6ec] ss:$16 sps:$4 sm:$0xff]   ;;  %v3299_v40 = vld [vmem:[%s4681_s1 + $0x4e8] ss:$16 sps:$4 sm:$0xff]  }
  0x8b   :  { %1809 = vmatpush1.bf16.msra.mxu0 %v3215_v41  ;;  %v3302_v41 = vld [vmem:[%s4681_s1 + $0x6e8] ss:$16 sps:$4 sm:$0xff]  }
  0x8c   :  { %1850 = vmatpush1.bf16.msra.mxu1 %v3218_v42  ;;  %1810 = vmatprep.subr.bf16.mxu0 %v3223_v44  ;;  %v3307_v42 = vld [vmem:[%s4681_s1 + $0x4cc] ss:$16 sps:$4 sm:$0xff]  }
  0x8d   :  { %1851 = vmatprep.subr.bf16.mxu1 %v3226_v62  ;;  %v3310_v44 = vld [vmem:[%s4681_s1 + $0x6cc] ss:$16 sps:$4 sm:$0xff]   ;;  %v3305_v62 = vld [vmem:[%s4681_s1 + $0x4c8] ss:$16 sps:$4 sm:$0xff]  }
  0x8f   :  { %1811 = vmatpush1.bf16.msra.mxu0 %v3221_v3  ;;  %v3308_v3 = vld [vmem:[%s4681_s1 + $0x6c8] ss:$16 sps:$4 sm:$0xff]  }
  0x90   :  { %1852 = vmatpush1.bf16.msra.mxu1 %v3224_v45  ;;  %1812 = vmatprep.subr.bf16.mxu0 %v3229_v46  ;;  %v3313_v45 = vld [vmem:[%s4681_s1 + $0x4ac] ss:$16 sps:$4 sm:$0xff]  }
  0x91   :  { %1853 = vmatprep.subr.bf16.mxu1 %v3232_v47  ;;  %v3316_v46 = vld [vmem:[%s4681_s1 + $0x6ac] ss:$16 sps:$4 sm:$0xff]   ;;  %v3311_v47 = vld [vmem:[%s4681_s1 + $0x4a8] ss:$16 sps:$4 sm:$0xff]  }
  0x93   :  { %1813 = vmatpush1.bf16.msra.mxu0 %v3227_v48  ;;  %v3322_v48 = vld [vmem:[%s4681_s1 + $0x68c] ss:$16 sps:$4 sm:$0xff]  }
  0x94   :  { %1854 = vmatpush1.bf16.msra.mxu1 %v3230_v50  ;;  %1814 = vmatprep.subr.bf16.mxu0 %v3235_v51  ;;  %v3317_v50 = vld [vmem:[%s4681_s1 + $0x488] ss:$16 sps:$4 sm:$0xff]   ;;  %v3328_v51 = vld [vmem:[%s4681_s1 + $0x66c] ss:$16 sps:$4 sm:$0xff]  }
  0x95   :  { %1855 = vmatprep.subr.bf16.mxu1 %v3238_v52  ;;  %v3323_v52 = vld [vmem:[%s4681_s1 + $0x468] ss:$16 sps:$4 sm:$0xff]  }
  0x97   :  { %1815 = vmatpush1.bf16.msra.mxu0 %v3233_v54  ;;  %v3326_v54 = vld [vmem:[%s4681_s1 + $0x668] ss:$16 sps:$4 sm:$0xff]  }
  0x98   :  { %1856 = vmatpush1.bf16.msra.mxu1 %v3236_v49  ;;  %1816 = vmatprep.subr.bf16.mxu0 %v3241_v55  ;;  %v3331_v49 = vld [vmem:[%s4681_s1 + $0x44c] ss:$16 sps:$4 sm:$0xff]  }
  0x99   :  { %1857 = vmatprep.subr.bf16.mxu1 %v3244_v57  ;;  %v3334_v55 = vld [vmem:[%s4681_s1 + $0x64c] ss:$16 sps:$4 sm:$0xff]   ;;  %v3329_v57 = vld [vmem:[%s4681_s1 + $0x448] ss:$16 sps:$4 sm:$0xff]  }
  0x9b   :  { %1817 = vmatpush1.bf16.msra.mxu0 %v3239_v58  ;;  %v3332_v58 = vld [vmem:[%s4681_s1 + $0x648] ss:$16 sps:$4 sm:$0xff]  }
  0x9c   :  { %1858 = vmatpush1.bf16.msra.mxu1 %v3242_v59  ;;  %1818 = vmatprep.subr.bf16.mxu0 %v3247_v60  ;;  %v3337_v59 = vld [vmem:[%s4681_s1 + $0x42c] ss:$16 sps:$4 sm:$0xff]  }
  0x9d   :  { %1859 = vmatprep.subr.bf16.mxu1 %v3250_v61  ;;  %v3340_v60 = vld [vmem:[%s4681_s1 + $0x62c] ss:$16 sps:$4 sm:$0xff]  }
  0x9f   :  { %1819 = vmatpush1.bf16.msra.mxu0 %v3245_v63 }
  0xa0   :  { %1860 = vmatpush1.bf16.msra.mxu1 %v3248_v0  ;;  %1820 = vmatprep.subr.bf16.mxu0 %v3253_v1 }
  0xa1   :  { %1861 = vmatprep.subr.bf16.mxu1 %v3256_v2 }
  0xa3   :  { %1821 = vmatpush2.bf16.msra.mxu0 %v3251_v4 }
  0xa4   :  { %1862 = vmatpush2.bf16.msra.mxu1 %v3254_v5  ;;  %1822 = vmatprep.subr.bf16.mxu0 %v3259_v6 }
  0xa5   :  { %1863 = vmatprep.subr.bf16.mxu1 %v3262_v7 }
  0xa7   :  { %1823 = vmatpush2.bf16.msra.mxu0 %v3257_v8 }
  0xa8   :  { %1864 = vmatpush2.bf16.msra.mxu1 %v3260_v9  ;;  %1824 = vmatprep.subr.bf16.mxu0 %v3265_v10 }
  0xa9   :  { %1865 = vmatprep.subr.bf16.mxu1 %v3268_v11 }
  0xab   :  { %1825 = vmatpush2.bf16.msra.mxu0 %v3263_v12 }
  0xac   :  { %1866 = vmatpush2.bf16.msra.mxu1 %v3266_v13  ;;  %1826 = vmatprep.subr.bf16.mxu0 %v3271_v14 }
  0xad   :  { %1867 = vmatprep.subr.bf16.mxu1 %v3274_v15 }
  0xaf   :  { %1827 = vmatpush2.bf16.msra.mxu0 %v3269_v18 }
  0xb0   :  { %1868 = vmatpush2.bf16.msra.mxu1 %v3272_v19  ;;  %1828 = vmatprep.subr.bf16.mxu0 %v3277_v20 }
  0xb1   :  { %1869 = vmatprep.subr.bf16.mxu1 %v3280_v21 }
  0xb3   :  { %1829 = vmatpush2.bf16.msra.mxu0 %v3275_v22 }
  0xb4   :  { %1870 = vmatpush2.bf16.msra.mxu1 %v3278_v23  ;;  %1830 = vmatprep.subr.bf16.mxu0 %v3283_v24 }
  0xb5   :  { %1871 = vmatprep.subr.bf16.mxu1 %v3286_v25 }
  0xb7   :  { %1831 = vmatpush2.bf16.msra.mxu0 %v3281_v26 }
  0xb8   :  { %1872 = vmatpush2.bf16.msra.mxu1 %v3284_v27  ;;  %1832 = vmatprep.subr.bf16.mxu0 %v3289_v28 }
  0xb9   :  { %1873 = vmatprep.subr.bf16.mxu1 %v3292_v29 }
  0xbb   :  { %1833 = vmatpush2.bf16.msra.mxu0 %v3287_v30 }
  0xbc   :  { %1874 = vmatpush2.bf16.msra.mxu1 %v3290_v33  ;;  %1834 = vmatprep.subr.bf16.mxu0 %v3295_v34 }
  0xbd   :  { %1875 = vmatprep.subr.bf16.mxu1 %v3298_v35 }
  0xbf   :  { %1835 = vmatpush2.bf16.msra.mxu0 %v3293_v36 }
  0xc0   :  { %1876 = vmatpush2.bf16.msra.mxu1 %v3296_v37  ;;  %1886 = vmatprep.subr.bf16.mxu0 %v3301_v38 }
  0xc1   :  { %1927 = vmatprep.subr.bf16.mxu1 %v3304_v39 }
  0xc2   :  { %1837 = vmatmul.mubr.bf16.vlgmr.msra.gmra.mxu0 %v3785_v16  ;;  %v3314_v16 = vld [vmem:[%s4681_s1 + $0x6a8] ss:$16 sps:$4 sm:$0xff]  }
  0xc3   :  { %1878 = vmatmul.mubr.bf16.vlgmr.msra.gmra.mxu1 %v3787_v17  ;;  %1887 = vmatpush1.bf16.msra.mxu0 %v3299_v40  ;;  %v3319_v17 = vld [vmem:[%s4681_s1 + $0x48c] ss:$16 sps:$4 sm:$0xff]  }
  0xc4   :  { %1928 = vmatpush1.bf16.msra.mxu1 %v3302_v41  ;;  %1888 = vmatprep.subr.bf16.mxu0 %v3307_v42 }
  0xc5   :  { %1929 = vmatprep.subr.bf16.mxu1 %v3310_v44  ;;  %1918 = vmatprep.mubr.bf16.mxu0 %v3886_v53  ;;  %v3320_v53 = vld [vmem:[%s4681_s1 + $0x688] ss:$16 sps:$4 sm:$0xff]  }
  0xc6   :  { %1959 = vmatprep.mubr.bf16.mxu1 %v3896_v56  ;;  %v3325_v56 = vld [vmem:[%s4681_s1 + $0x46c] ss:$16 sps:$4 sm:$0xff]  }
  0xc7   :  { %1889 = vmatpush1.bf16.msra.mxu0 %v3305_v62 }
  0xc8   :  { %1930 = vmatpush1.bf16.msra.mxu1 %v3308_v3  ;;  %1890 = vmatprep.subr.bf16.mxu0 %v3313_v45 }
  0xc9   :  { %1931 = vmatprep.subr.bf16.mxu1 %v3316_v46 }
  0xcb   :  { %1891 = vmatpush1.bf16.msra.mxu0 %v3311_v47 }
  0xcc   :  { %1932 = vmatpush1.bf16.msra.mxu1 %v3314_v16  ;;  %1892 = vmatprep.subr.bf16.mxu0 %v3319_v17 }
  0xcd   :  { %1933 = vmatprep.subr.bf16.mxu1 %v3322_v48 }
  0xcf   :  { %1893 = vmatpush1.bf16.msra.mxu0 %v3317_v50 }
  0xd0   :  { %1934 = vmatpush1.bf16.msra.mxu1 %v3320_v53  ;;  %1894 = vmatprep.subr.bf16.mxu0 %v3325_v56 }
  0xd1   :  { %1935 = vmatprep.subr.bf16.mxu1 %v3328_v51 }
  0xd3   :  { %1895 = vmatpush1.bf16.msra.mxu0 %v3323_v52 }
  0xd4   :  { %1936 = vmatpush1.bf16.msra.mxu1 %v3326_v54  ;;  %1896 = vmatprep.subr.bf16.mxu0 %v3331_v49 }
  0xd5   :  { %1937 = vmatprep.subr.bf16.mxu1 %v3334_v55 }
  0xd6   :  { %12 = vsyncpa [#allocation3], 0  ;;  %v3335_v61 = vld [vmem:[%s4681_s1 + $0x428] ss:$16 sps:$4 sm:$0xff]   ;;  %v3343_v0 = vld [vmem:[%s4681_s1 + $0x40c] ss:$16 sps:$4 sm:$0xff]  }
  0xd7   :  { %1897 = vmatpush1.bf16.msra.mxu0 %v3329_v57  ;;  %v3338_v63 = vld [vmem:[%s4681_s1 + $0x628] ss:$16 sps:$4 sm:$0xff]   ;;  %v3346_v1 = vld [vmem:[%s4681_s1 + $0x60c] ss:$16 sps:$4 sm:$0xff]   ;;  %s3530_s28 = smov [#allocation2]  }
  0xd8   :  { %1938 = vmatpush1.bf16.msra.mxu1 %v3332_v58  ;;  %1898 = vmatprep.subr.bf16.mxu0 %v3337_v59  ;;  %v3341_v2 = vld [vmem:[%s4681_s1 + $0x408] ss:$16 sps:$4 sm:$0xff]   ;;  %v3349_v5 = vld [vmem:[%s4681_s1 + $0x5ec] ss:$16 sps:$4 sm:$0xff]   ;;  %s2640_s29 = sshll.u32 %s3530_s28, 4  ;;  %s2641_s29 = int_to_ptr.vmem [resolvable:$true] %s2640_s29 }
  0xd9   :  { %1939 = vmatprep.subr.bf16.mxu1 %v3340_v60  ;;  %v3344_v4 = vld [vmem:[%s4681_s1 + $0x608] ss:$16 sps:$4 sm:$0xff]   ;;  %v3352_v6 = vld [vmem:[%s4681_s1 + $0x7ec] ss:$16 sps:$4 sm:$0xff]   ;;  %s3507_s30 = scalar_lea.vmem %s2641_s29, 32  ;;  %p3512_p1 = scmp.lt.s32.totalorder %s2641_s29, %s2641_s29 }
  0xda   :  { %v3347_v7 = vld [vmem:[%s4681_s1 + $0x5e8] ss:$16 sps:$4 sm:$0xff]   ;;  %v3355_v9 = vld [vmem:[%s4681_s1 + $0x5cc] ss:$16 sps:$4 sm:$0xff]   ;;  %p3508_p0 = scmp.ne.s32.totalorder %s2641_s29, %s3507_s30  ;;  %p3513_p2 = scmp.lt.s32.totalorder %s3507_s30, %s3507_s30 }
  0xdb   :  { %1899 = vmatpush1.bf16.msra.mxu0 %v3335_v61  ;;  %v3350_v8 = vld [vmem:[%s4681_s1 + $0x7e8] ss:$16 sps:$4 sm:$0xff]   ;;  %v3358_v10 = vld [vmem:[%s4681_s1 + $0x7cc] ss:$16 sps:$4 sm:$0xff]  }
  0xdc   :  { %1940 = vmatpush1.bf16.msra.mxu1 %v3338_v63  ;;  %1900 = vmatprep.subr.bf16.mxu0 %v3343_v0  ;;  %v3353_v11 = vld [vmem:[%s4681_s1 + $0x5c8] ss:$16 sps:$4 sm:$0xff]   ;;  %v3361_v13 = vld [vmem:[%s4681_s1 + $0x5ac] ss:$16 sps:$4 sm:$0xff]   ;;  %p3514_p3 = por %p3513_p2, %p3512_p1 }
  0xdd   :  { %1941 = vmatprep.subr.bf16.mxu1 %v3346_v1  ;;  %v3356_v12 = vld [vmem:[%s4681_s1 + $0x7c8] ss:$16 sps:$4 sm:$0xff]   ;;  %v3364_v14 = vld [vmem:[%s4681_s1 + $0x7ac] ss:$16 sps:$4 sm:$0xff]  }
  0xde   :  { %v3359_v15 = vld [vmem:[%s4681_s1 + $0x5a8] ss:$16 sps:$4 sm:$0xff]   ;;  %v3367_v19 = vld [vmem:[%s4681_s1 + $0x58c] ss:$16 sps:$4 sm:$0xff]   ;;  %p3515_p4 = pnand %p3514_p3, %p3508_p0 }
  0xdf   :  { %1901 = vmatpush1.bf16.msra.mxu0 %v3341_v2  ;;  %v3362_v18 = vld [vmem:[%s4681_s1 + $0x7a8] ss:$16 sps:$4 sm:$0xff]   ;;  %v3370_v20 = vld [vmem:[%s4681_s1 + $0x78c] ss:$16 sps:$4 sm:$0xff]  }
  0xe0   :  { %1942 = vmatpush1.bf16.msra.mxu1 %v3344_v4  ;;  %1902 = vmatprep.subr.bf16.mxu0 %v3349_v5  ;;  %v3365_v21 = vld [vmem:[%s4681_s1 + $0x588] ss:$16 sps:$4 sm:$0xff]   ;;  %v3373_v23 = vld [vmem:[%s4681_s1 + $0x56c] ss:$16 sps:$4 sm:$0xff]  }
  0xe1   :  { %1943 = vmatprep.subr.bf16.mxu1 %v3352_v6  ;;  %v3368_v22 = vld [vmem:[%s4681_s1 + $0x788] ss:$16 sps:$4 sm:$0xff]   ;;  %v3376_v24 = vld [vmem:[%s4681_s1 + $0x76c] ss:$16 sps:$4 sm:$0xff]  }
  0xe2   :  { %v3371_v25 = vld [vmem:[%s4681_s1 + $0x568] ss:$16 sps:$4 sm:$0xff]   ;;  %v3379_v27 = vld [vmem:[%s4681_s1 + $0x54c] ss:$16 sps:$4 sm:$0xff]  }
  0xe3   :  { %1903 = vmatpush2.bf16.msra.mxu0 %v3347_v7  ;;  %v3374_v26 = vld [vmem:[%s4681_s1 + $0x768] ss:$16 sps:$4 sm:$0xff]   ;;  %v3382_v28 = vld [vmem:[%s4681_s1 + $0x74c] ss:$16 sps:$4 sm:$0xff]  }
  0xe4   :  { %1944 = vmatpush2.bf16.msra.mxu1 %v3350_v8  ;;  %1904 = vmatprep.subr.bf16.mxu0 %v3355_v9  ;;  %v3377_v29 = vld [vmem:[%s4681_s1 + $0x548] ss:$16 sps:$4 sm:$0xff]   ;;  %v3385_v33 = vld [vmem:[%s4681_s1 + $0x52c] ss:$16 sps:$4 sm:$0xff]  }
  0xe5   :  { %1945 = vmatprep.subr.bf16.mxu1 %v3358_v10  ;;  %v3380_v30 = vld [vmem:[%s4681_s1 + $0x748] ss:$16 sps:$4 sm:$0xff]   ;;  %v3388_v34 = vld [vmem:[%s4681_s1 + $0x72c] ss:$16 sps:$4 sm:$0xff]  }
  0xe6   :  { %v3383_v35 = vld [vmem:[%s4681_s1 + $0x528] ss:$16 sps:$4 sm:$0xff]   ;;  %v3391_v37 = vld [vmem:[%s4681_s1 + $0x50c] ss:$16 sps:$4 sm:$0xff]  }
  0xe7   :  { %1905 = vmatpush2.bf16.msra.mxu0 %v3353_v11  ;;  %v3386_v36 = vld [vmem:[%s4681_s1 + $0x728] ss:$16 sps:$4 sm:$0xff]   ;;  %v3394_v38 = vld [vmem:[%s4681_s1 + $0x70c] ss:$16 sps:$4 sm:$0xff]  }
  0xe8   :  { %1946 = vmatpush2.bf16.msra.mxu1 %v3356_v12  ;;  %1906 = vmatprep.subr.bf16.mxu0 %v3361_v13  ;;  %v3389_v39 = vld [vmem:[%s4681_s1 + $0x508] ss:$16 sps:$4 sm:$0xff]   ;;  %v3397_v41 = vld [vmem:[%s4683_s3 + $0x74] ss:$8 sps:$4 sm:$0xff]   ;;  %v3400_v44 = vld [vmem:[%s4683_s3 + $0x64] ss:$8 sps:$4 sm:$0xff]  }
  0xe9   :  { %1947 = vmatprep.subr.bf16.mxu1 %v3364_v14  ;;  %v3392_v40 = vld [vmem:[%s4681_s1 + $0x708] ss:$16 sps:$4 sm:$0xff]   ;;  %v3403_v16 = vld [vmem:[%s4683_s3 + $0x54] ss:$8 sps:$4 sm:$0xff]   ;;  %v3406_v53 = vld [vmem:[%s4683_s3 + $0x44] ss:$8 sps:$4 sm:$0xff]  }
  0xea   :  { %v3395_v42 = vld [vmem:[%s4683_s3 + $0x70] ss:$8 sps:$4 sm:$0xff]   ;;  %v3398_v45 = vld [vmem:[%s4683_s3 + $0x60] ss:$8 sps:$4 sm:$0xff]   ;;  %v3445_v51 = vld [vmem:[%s4683_s3 + $0x174] ss:$8 sps:$4 sm:$0xff]  }
  0xeb   :  { %1907 = vmatpush2.bf16.msra.mxu0 %v3359_v15  ;;  %v3443_v56 = vld [vmem:[%s4683_s3 + $0x170] ss:$8 sps:$4 sm:$0xff]   ;;  %v3448_v52 = vld [vmem:[%s4683_s3 + $0x164] ss:$8 sps:$4 sm:$0xff]   ;;  %v3404_v54 = vld [vmem:[%s4683_s3 + $0x40] ss:$8 sps:$4 sm:$0xff]  }
  0xec   :  { %1948 = vmatpush2.bf16.msra.mxu1 %v3362_v18  ;;  %1908 = vmatprep.subr.bf16.mxu0 %v3367_v19  ;;  %v3446_v49 = vld [vmem:[%s4683_s3 + $0x160] ss:$8 sps:$4 sm:$0xff]   ;;  %v3409_v55 = vld [vmem:[%s4683_s3 + $0x34] ss:$8 sps:$4 sm:$0xff]   ;;  %v3407_v58 = vld [vmem:[%s4683_s3 + $0x30] ss:$8 sps:$4 sm:$0xff]  }
  0xed   :  { %1949 = vmatprep.subr.bf16.mxu1 %v3370_v20  ;;  %v3451_v57 = vld [vmem:[%s4683_s3 + $0x154] ss:$8 sps:$4 sm:$0xff]   ;;  %v3449_v59 = vld [vmem:[%s4683_s3 + $0x150] ss:$8 sps:$4 sm:$0xff]   ;;  %v3412_v60 = vld [vmem:[%s4683_s3 + $0x24] ss:$8 sps:$4 sm:$0xff]  }
  0xee   :  { %v3454_v61 = vld [vmem:[%s4683_s3 + $0x144] ss:$8 sps:$4 sm:$0xff]   ;;  %v3410_v63 = vld [vmem:[%s4683_s3 + $0x20] ss:$8 sps:$4 sm:$0xff]   ;;  %v3415_v1 = vld [vmem:[%s4683_s3 + $0x14] ss:$8 sps:$4 sm:$0xff]  }
  0xef   :  { %1909 = vmatpush2.bf16.msra.mxu0 %v3365_v21  ;;  %v3452_v0 = vld [vmem:[%s4683_s3 + $0x140] ss:$8 sps:$4 sm:$0xff]   ;;  %v3457_v2 = vld [vmem:[%s4683_s3 + $0x134] ss:$8 sps:$4 sm:$0xff]   ;;  %v3413_v4 = vld [vmem:[%s4683_s3 + $0x10] ss:$8 sps:$4 sm:$0xff]  }
  0xf0   :  { %1950 = vmatpush2.bf16.msra.mxu1 %v3368_v22  ;;  %1910 = vmatprep.subr.bf16.mxu0 %v3373_v23  ;;  %v3455_v5 = vld [vmem:[%s4683_s3 + $0x130] ss:$8 sps:$4 sm:$0xff]   ;;  %v3418_v6 = vld [vmem:[%s4683_s3 + $0x4] ss:$8 sps:$4 sm:$0xff]   ;;  %v3416_v8 = vld [vmem:[%s4683_s3] ss:$8 sps:$4 sm:$0xff]  }
  0xf1   :  { %1951 = vmatprep.subr.bf16.mxu1 %v3376_v24  ;;  %v3460_v7 = vld [vmem:[%s4683_s3 + $0x124] ss:$8 sps:$4 sm:$0xff]   ;;  %v3458_v9 = vld [vmem:[%s4683_s3 + $0x120] ss:$8 sps:$4 sm:$0xff]   ;;  %v3421_v10 = vld [vmem:[%s4683_s3 + $0xf4] ss:$8 sps:$4 sm:$0xff]  }
  0xf2   :  { %v3463_v11 = vld [vmem:[%s4683_s3 + $0x114] ss:$8 sps:$4 sm:$0xff]   ;;  %v3419_v12 = vld [vmem:[%s4683_s3 + $0xf0] ss:$8 sps:$4 sm:$0xff]   ;;  %v3424_v14 = vld [vmem:[%s4683_s3 + $0xe4] ss:$8 sps:$4 sm:$0xff]  }
  0xf3   :  { %1911 = vmatpush2.bf16.msra.mxu0 %v3371_v25  ;;  %v3461_v13 = vld [vmem:[%s4683_s3 + $0x110] ss:$8 sps:$4 sm:$0xff]   ;;  %v3466_v15 = vld [vmem:[%s4683_s3 + $0x104] ss:$8 sps:$4 sm:$0xff]   ;;  %v3422_v18 = vld [vmem:[%s4683_s3 + $0xe0] ss:$8 sps:$4 sm:$0xff]  }
  0xf4   :  { %1952 = vmatpush2.bf16.msra.mxu1 %v3374_v26  ;;  %1912 = vmatprep.subr.bf16.mxu0 %v3379_v27  ;;  %v3464_v19 = vld [vmem:[%s4683_s3 + $0x100] ss:$8 sps:$4 sm:$0xff]   ;;  %v3427_v20 = vld [vmem:[%s4683_s3 + $0xd4] ss:$8 sps:$4 sm:$0xff]   ;;  %v3425_v22 = vld [vmem:[%s4683_s3 + $0xd0] ss:$8 sps:$4 sm:$0xff]  }
  0xf5   :  { %1953 = vmatprep.subr.bf16.mxu1 %v3382_v28  ;;  %v3469_v21 = vld [vmem:[%s4683_s3 + $0x1f4] ss:$8 sps:$4 sm:$0xff]   ;;  %v3467_v23 = vld [vmem:[%s4683_s3 + $0x1f0] ss:$8 sps:$4 sm:$0xff]   ;;  %v3430_v24 = vld [vmem:[%s4683_s3 + $0xc4] ss:$8 sps:$4 sm:$0xff]  }
  0xf6   :  { %v3472_v25 = vld [vmem:[%s4683_s3 + $0x1e4] ss:$8 sps:$4 sm:$0xff]   ;;  %v3428_v26 = vld [vmem:[%s4683_s3 + $0xc0] ss:$8 sps:$4 sm:$0xff]   ;;  %v3433_v28 = vld [vmem:[%s4683_s3 + $0xb4] ss:$8 sps:$4 sm:$0xff]  }
  0xf7   :  { %1913 = vmatpush2.bf16.msra.mxu0 %v3377_v29  ;;  %v3470_v27 = vld [vmem:[%s4683_s3 + $0x1e0] ss:$8 sps:$4 sm:$0xff]   ;;  %v3475_v29 = vld [vmem:[%s4683_s3 + $0x1d4] ss:$8 sps:$4 sm:$0xff]  }
  0xf8   :  { %1954 = vmatpush2.bf16.msra.mxu1 %v3380_v30  ;;  %1914 = vmatprep.subr.bf16.mxu0 %v3385_v33  ;;  %v3431_v30 = vld [vmem:[%s4683_s3 + $0xb0] ss:$8 sps:$4 sm:$0xff]  }
  0xf9   :  { %1955 = vmatprep.subr.bf16.mxu1 %v3388_v34  ;;  %v3473_v33 = vld [vmem:[%s4683_s3 + $0x1d0] ss:$8 sps:$4 sm:$0xff]   ;;  %v3436_v34 = vld [vmem:[%s4683_s3 + $0xa4] ss:$8 sps:$4 sm:$0xff]  }
  0xfb   :  { %1915 = vmatpush2.bf16.msra.mxu0 %v3383_v35  ;;  %v3478_v35 = vld [vmem:[%s4683_s3 + $0x1c4] ss:$8 sps:$4 sm:$0xff]  }
  0xfc   :  { %1956 = vmatpush2.bf16.msra.mxu1 %v3386_v36  ;;  %1916 = vmatprep.subr.bf16.mxu0 %v3391_v37  ;;  %v3434_v36 = vld [vmem:[%s4683_s3 + $0xa0] ss:$8 sps:$4 sm:$0xff]  }
  0xfd   :  { %1957 = vmatprep.subr.bf16.mxu1 %v3394_v38  ;;  %v3476_v37 = vld [vmem:[%s4683_s3 + $0x1c0] ss:$8 sps:$4 sm:$0xff]   ;;  %v3439_v38 = vld [vmem:[%s4683_s3 + $0x94] ss:$8 sps:$4 sm:$0xff]  }
  0xff   :  { %1917 = vmatpush2.bf16.msra.mxu0 %v3389_v39  ;;  %v3481_v39 = vld [vmem:[%s4683_s3 + $0x1b4] ss:$8 sps:$4 sm:$0xff]  }
 0x100   :  { %1958 = vmatpush2.bf16.msra.mxu1 %v3392_v40  ;;  %2372 = vmatprep.subr.bf16.mxu0 %v3397_v41  ;;  %v342_v40 = vsub.s32 0, %v3688_v43  ;;  %v4572_v41 = vld [vmem:[%s4682_s2] sm:$0xf] }
 0x101   :  { %2413 = vmatprep.subr.bf16.mxu1 %v3445_v51  ;;  %v3482_v51 = vld [vmem:[%s4683_s3 + $0x1a0] ss:$8 sps:$4 sm:$0xff]  }
 0x102   :  { %v4405_v62 = vpop.f32.mrf.mxu0  ;;  %1919 = vmatmul.mubr.bf16.vlgmr.msra.gmra.mxu0 %v4004_v31  ;;  %v3401_v31 = vld [vmem:[%s4683_s3 + $0x50] ss:$8 sps:$4 sm:$0xff]  }
 0x103   :  { %v4407_v3 = vpop.f32.mrf.mxu1  ;;  %1960 = vmatmul.mubr.bf16.vlgmr.msra.gmra.mxu1 %v4008_v32  ;;  %2373 = vmatpush1.bf16.msra.mxu0 %v3395_v42  ;;  %v346_v42 = vsub.s32 1, %v3688_v43 }
 0x104   :  { %v4414_v46 = vpop.f32.mrf.mxu0  ;;  %2374 = vmatprep.subr.bf16.mxu0 %v3400_v44  ;;  %2414 = vmatpush1.bf16.msra.mxu1 %v3443_v56  ;;  %v3437_v44 = vld [vmem:[%s4683_s3 + $0x90] ss:$8 sps:$4 sm:$0xff]  }
 0x105   :  { %v4416_v47 = vpop.f32.mrf.mxu1  ;;  %2415 = vmatprep.subr.bf16.mxu1 %v3448_v52 }
 0x106   :  { %v1678_v17 = vpop.f32.mrf.mxu0 }
 0x107   :  { %v1719_v48 = vpop.f32.mrf.mxu1  ;;  %2375 = vmatpush1.bf16.msra.mxu0 %v3398_v45  ;;  %v3479_v45 = vld [vmem:[%s4683_s3 + $0x1b0] ss:$8 sps:$4 sm:$0xff]   ;;  %v343_v17 = vrot.slane %v4572_v41, %v342_v40 }
 0x108   :  { %v1679_v32 = vpop.f32.mrf.mxu0  ;;  %2376 = vmatprep.subr.bf16.mxu0 %v3403_v16  ;;  %2416 = vmatpush1.bf16.msra.mxu1 %v3446_v49  ;;  %v3442_v16 = vld [vmem:[%s4683_s3 + $0x84] ss:$8 sps:$4 sm:$0xff]   ;;  %v347_v48 = vrot.slane %v4572_v41, %v346_v42 }
 0x109   :  { %v1720_v50 = vpop.f32.mrf.mxu1  ;;  %2417 = vmatprep.subr.bf16.mxu1 %v3451_v57  ;;  %v1675_v32 = vadd.f32 %v4405_v62, %v343_v17  ;;  %v3487_v57 = vld [vmem:[%s4683_s3 + $0x194] ss:$8 sps:$4 sm:$0xff]  }
 0x10a   :  { %v1677_v50 = vadd.f32 %v4414_v46, %v347_v48 }
 0x10b   :  { %2377 = vmatpush1.bf16.msra.mxu0 %v3401_v31  ;;  %v3440_v31 = vld [vmem:[%s4683_s3 + $0x80] ss:$8 sps:$4 sm:$0xff]   ;;  %v1716_v56 = vadd.f32 %v4407_v3, %v1675_v32  ;;  %v3485_v3 = vld [vmem:[%s4683_s3 + $0x190] ss:$8 sps:$4 sm:$0xff]  }
 0x10c   :  { %2378 = vmatprep.subr.bf16.mxu0 %v3406_v53  ;;  %2418 = vmatpush1.bf16.msra.mxu1 %v3449_v59  ;;  %v3484_v53 = vld [vmem:[%s4683_s3 + $0x1a4] ss:$8 sps:$4 sm:$0xff]   ;;  %v1718_v49 = vadd.f32 %v4416_v47, %v1677_v50 }
 0x10d   :  { %2419 = vmatprep.subr.bf16.mxu1 %v3454_v61 }
 0x10f   :  { %2379 = vmatpush1.bf16.msra.mxu0 %v3404_v54 }
 0x110   :  { %2380 = vmatprep.subr.bf16.mxu0 %v3409_v55  ;;  %2420 = vmatpush1.bf16.msra.mxu1 %v3452_v0 }
 0x111   :  { %2421 = vmatprep.subr.bf16.mxu1 %v3457_v2  ;;  %v3490_v2 = vld [vmem:[%s4683_s3 + $0x184] ss:$8 sps:$4 sm:$0xff]  }
 0x113   :  { %2381 = vmatpush1.bf16.msra.mxu0 %v3407_v58 }
 0x114   :  { %2382 = vmatprep.subr.bf16.mxu0 %v3412_v60  ;;  %2422 = vmatpush1.bf16.msra.mxu1 %v3455_v5  ;;  %v3488_v5 = vld [vmem:[%s4683_s3 + $0x180] ss:$8 sps:$4 sm:$0xff]  }
 0x115   :  { %2423 = vmatprep.subr.bf16.mxu1 %v3460_v7 }
 0x117   :  { %2383 = vmatpush1.bf16.msra.mxu0 %v3410_v63 }
 0x118   :  { %2384 = vmatprep.subr.bf16.mxu0 %v3415_v1  ;;  %2424 = vmatpush1.bf16.msra.mxu1 %v3458_v9 }
 0x119   :  { %2425 = vmatprep.subr.bf16.mxu1 %v3463_v11 }
 0x11b   :  { %2385 = vmatpush1.bf16.msra.mxu0 %v3413_v4 }
 0x11c   :  { %2386 = vmatprep.subr.bf16.mxu0 %v3418_v6  ;;  %2426 = vmatpush1.bf16.msra.mxu1 %v3461_v13 }
 0x11d   :  { %2427 = vmatprep.subr.bf16.mxu1 %v3466_v15 }
 0x11f   :  { %2387 = vmatpush1.bf16.msra.mxu0 %v3416_v8 }
 0x120   :  { %2388 = vmatprep.subr.bf16.mxu0 %v3421_v10  ;;  %2428 = vmatpush1.bf16.msra.mxu1 %v3464_v19  ;;  %v3492_v19 = vld [vmem:[%s4685_s5 + $0x38] sm:$0xff]  }
 0x121   :  { %2429 = vmatprep.subr.bf16.mxu1 %v3469_v21  ;;  %v3494_v21 = vld [vmem:[%s4685_s5 + $0x30] sm:$0xff]  }
 0x123   :  { %2389 = vmatpush2.bf16.msra.mxu0 %v3419_v12 }
 0x124   :  { %2390 = vmatprep.subr.bf16.mxu0 %v3424_v14  ;;  %2430 = vmatpush2.bf16.msra.mxu1 %v3467_v23  ;;  %v3496_v23 = vld [vmem:[%s4685_s5 + $0x28] sm:$0xff]  }
 0x125   :  { %2431 = vmatprep.subr.bf16.mxu1 %v3472_v25  ;;  %v3498_v25 = vld [vmem:[%s4685_s5 + $0x20] sm:$0xff]  }
 0x127   :  { %2391 = vmatpush2.bf16.msra.mxu0 %v3422_v18  ;;  %v3491_v18 = vld [vmem:[%s4685_s5 + $0x78] sm:$0xff]  }
 0x128   :  { %2392 = vmatprep.subr.bf16.mxu0 %v3427_v20  ;;  %2432 = vmatpush2.bf16.msra.mxu1 %v3470_v27  ;;  %v3493_v20 = vld [vmem:[%s4685_s5 + $0x70] sm:$0xff]   ;;  %v3500_v27 = vld [vmem:[%s4685_s5 + $0x18] sm:$0xff]  }
 0x129   :  { %2433 = vmatprep.subr.bf16.mxu1 %v3475_v29  ;;  %v3502_v29 = vld [vmem:[%s4685_s5 + $0x10] sm:$0xff]  }
 0x12b   :  { %2393 = vmatpush2.bf16.msra.mxu0 %v3425_v22  ;;  %v3495_v22 = vld [vmem:[%s4685_s5 + $0x68] sm:$0xff]  }
 0x12c   :  { %2394 = vmatprep.subr.bf16.mxu0 %v3430_v24  ;;  %2434 = vmatpush2.bf16.msra.mxu1 %v3473_v33  ;;  %v3497_v24 = vld [vmem:[%s4685_s5 + $0x60] sm:$0xff]   ;;  %v354_v33 = vsub.s32 3, %v3688_v43 }
 0x12d   :  { %2435 = vmatprep.subr.bf16.mxu1 %v3478_v35 }
 0x12e   :  { %v355_v35 = vrot.slane %v4572_v41, %v354_v33 }
 0x12f   :  { %2395 = vmatpush2.bf16.msra.mxu0 %v3428_v26  ;;  %v3499_v26 = vld [vmem:[%s4685_s5 + $0x58] sm:$0xff]  }
 0x130   :  { %2396 = vmatprep.subr.bf16.mxu0 %v3433_v28  ;;  %2436 = vmatpush2.bf16.msra.mxu1 %v3476_v37  ;;  %v3501_v28 = vld [vmem:[%s4685_s5 + $0x50] sm:$0xff]  }
 0x131   :  { %2437 = vmatprep.subr.bf16.mxu1 %v3481_v39 }
 0x133   :  { %2397 = vmatpush2.bf16.msra.mxu0 %v3431_v30  ;;  %v350_v30 = vsub.s32 2, %v3688_v43  ;;  %v2968_v43 = vld [vmem:[%s4686_s6] ss:$0 sm:$0xff] }
 0x134   :  { %2398 = vmatprep.subr.bf16.mxu0 %v3436_v34  ;;  %2438 = vmatpush2.bf16.msra.mxu1 %v3479_v45 }
 0x135   :  { %2439 = vmatprep.subr.bf16.mxu1 %v3484_v53  ;;  %v351_v34 = vrot.slane %v4572_v41, %v350_v30 }
 0x137   :  { %2399 = vmatpush2.bf16.msra.mxu0 %v3434_v36 }
 0x138   :  { %2400 = vmatprep.subr.bf16.mxu0 %v3439_v38  ;;  %2440 = vmatpush2.bf16.msra.mxu1 %v3482_v51 }
 0x139   :  { %2441 = vmatprep.subr.bf16.mxu1 %v3487_v57  ;;  %v3504_v57 = vld [vmem:[%s4685_s5 + $0x8] sm:$0xff]  }
 0x13b   :  { %2401 = vmatpush2.bf16.msra.mxu0 %v3437_v44 }
 0x13c   :  { %2402 = vmatprep.subr.bf16.mxu0 %v3442_v16  ;;  %2442 = vmatpush2.bf16.msra.mxu1 %v3485_v3  ;;  %v3505_v3 = vld [vmem:[%s4685_s5 + $0x40] sm:$0xff]  }
 0x13d   :  { %2443 = vmatprep.subr.bf16.mxu1 %v3490_v2 }
 0x13f   :  { %2403 = vmatpush2.bf16.msra.mxu0 %v3440_v31 }
 0x140   :  { %2444 = vmatpush2.bf16.msra.mxu1 %v3488_v5  ;;  %2985 = vmatprep.subr.bf16.mxu0 %v3491_v18 }
 0x142   :  { %v1756_v52 = vpop.f32.mrf.mxu0 }
 0x143   :  { %v1797_v54 = vpop.f32.mrf.mxu1  ;;  %v1757_v55 = vadd.f32 %v1756_v52, %v1716_v56 }
 0x144   :  { %v1758_v62 = vpop.f32.mrf.mxu0 }
 0x145   :  { %v1799_v46 = vpop.f32.mrf.mxu1  ;;  %v1798_v58 = vadd.f32 %v1797_v54, %v1757_v55  ;;  %v1759_v59 = vadd.f32 %v1758_v62, %v1718_v49 }
 0x146   :  { %v1760_v60 = vpop.f32.mrf.mxu0 }
 0x147   :  { %v1801_v61 = vpop.f32.mrf.mxu1  ;;  %v1800_v63 = vadd.f32 %v1799_v46, %v1759_v59  ;;  %v1968_v47 = vmax.f32 %v1798_v58, 0.0  ;;  %v3503_v46 = vld [vmem:[%s4685_s5 + $0x48] sm:$0xff]   ;;  %v3506_v60 = vld [vmem:[%s4685_s5] sm:$0xff]  }
 0x148   :  { %v1761_v0 = vpop.f32.mrf.mxu0 }
 0x149   :  { %v1802_v1 = vpop.f32.mrf.mxu1  ;;  %v1969_v4 = vmax.f32 %v1800_v63, 0.0  ;;  %v1972_v7 = vpack.c.bf16 %v1968_v47, %v1968_v47  ;;  %v2040_v63 = vld [vmem:[%s4684_s4] sm:$0x3] }
 0x14a   :  { %v2045_v47 = vrot.slane %v2040_v63, %v342_v40  ;;  %v2049_v0 = vrot.slane %v2040_v63, %v346_v42 }
 0x14b   :  { %v1973_v6 = vpack.c.bf16 %v1969_v4, %v1969_v4 }
 0x14d   :  { %2404 = vmatprep.mubr.bf16.mxu0 %v1973_v6 }
 0x14e   :  { %2405 = vmatmul.mubr.bf16.vlgmr.msra.gmra.mxu0 %v1972_v7 }
 0x14f   :  { %2986 = vmatpush3.bf16.msra.mxu0 %v3492_v19 }
 0x150   :  { %2987 = vmatprep.subr.bf16.mxu0 %v3493_v20 }
 0x153   :  { %2988 = vmatpush3.bf16.msra.mxu0 %v3494_v21 }
 0x154   :  { %2989 = vmatprep.subr.bf16.mxu0 %v3495_v22 }
 0x157   :  { %2990 = vmatpush3.bf16.msra.mxu0 %v3496_v23 }
 0x158   :  { %2991 = vmatprep.subr.bf16.mxu0 %v3497_v24 }
 0x15b   :  { %2992 = vmatpush3.bf16.msra.mxu0 %v3498_v25 }
 0x15c   :  { %2993 = vmatprep.subr.bf16.mxu0 %v3499_v26 }
 0x15f   :  { %2994 = vmatpush3.bf16.msra.mxu0 %v3500_v27 }
 0x160   :  { %2995 = vmatprep.subr.bf16.mxu0 %v3501_v28 }
 0x163   :  { %2996 = vmatpush3.bf16.msra.mxu0 %v3502_v29 }
 0x164   :  { %2997 = vmatprep.subr.bf16.mxu0 %v3503_v46 }
 0x167   :  { %2998 = vmatpush3.bf16.msra.mxu0 %v3504_v57 }
 0x168   :  { %2999 = vmatprep.subr.bf16.mxu0 %v3505_v3 }
 0x16b   :  { %3000 = vmatpush3.bf16.msra.mxu0 %v3506_v60 }
 0x182   :  { %v1838_v8 = vpop.f32.mrf.mxu0 }
 0x183   :  { %v1879_v9 = vpop.f32.mrf.mxu1  ;;  %v1839_v36 = vadd.f32 %v1838_v8, %v351_v34 }
 0x184   :  { %v1840_v10 = vpop.f32.mrf.mxu0 }
 0x185   :  { %v1881_v11 = vpop.f32.mrf.mxu1  ;;  %v1841_v37 = vadd.f32 %v1840_v10, %v355_v35  ;;  %v1880_v38 = vadd.f32 %v1879_v9, %v1839_v36 }
 0x186   :  { %v1842_v12 = vpop.f32.mrf.mxu0 }
 0x187   :  { %v1883_v13 = vpop.f32.mrf.mxu1  ;;  %v1882_v45 = vadd.f32 %v1881_v11, %v1841_v37 }
 0x188   :  { %v1843_v14 = vpop.f32.mrf.mxu0 }
 0x189   :  { %v1884_v15 = vpop.f32.mrf.mxu1 }
 0x1c2   :  { %v1920_v39 = vpop.f32.mrf.mxu0 }
 0x1c3   :  { %v1961_v44 = vpop.f32.mrf.mxu1  ;;  %v1921_v16 = vadd.f32 %v1920_v39, %v1880_v38 }
 0x1c4   :  { %v1922_v17 = vpop.f32.mrf.mxu0 }
 0x1c5   :  { %v1963_v48 = vpop.f32.mrf.mxu1  ;;  %v1962_v31 = vadd.f32 %v1961_v44, %v1921_v16  ;;  %v1923_v32 = vadd.f32 %v1922_v17, %v1882_v45 }
 0x1c6   :  { %v1924_v50 = vpop.f32.mrf.mxu0 }
 0x1c7   :  { %v1965_v53 = vpop.f32.mrf.mxu1  ;;  %v1964_v56 = vadd.f32 %v1963_v48, %v1923_v32  ;;  %v1970_v51 = vmax.f32 %v1962_v31, 0.0 }
 0x1c8   :  { %v1925_v52 = vpop.f32.mrf.mxu0 }
 0x1c9   :  { %v1966_v54 = vpop.f32.mrf.mxu1  ;;  %v1971_v49 = vmax.f32 %v1964_v56, 0.0  ;;  %v1974_v41 = vpack.c.bf16 %v1970_v51, %v1970_v51 }
 0x1cb   :  { %v1975_v55 = vpack.c.bf16 %v1971_v49, %v1971_v49 }
 0x1cd   :  { %2445 = vmatprep.mubr.bf16.mxu1 %v1975_v55 }
 0x1ce   :  { %2446 = vmatmul.mubr.bf16.vlgmr.msra.gmra.mxu1 %v1974_v41 }
 0x20e   :  { %v2406_v62 = vpop.f32.mrf.mxu0 }
 0x20f   :  { %v2407_v1 = vadd.f32 %v2406_v62, %v2045_v47 }
 0x210   :  { %v2408_v58 = vpop.f32.mrf.mxu0 }
 0x211   :  { %v2409_v4 = vadd.f32 %v2408_v58, %v2049_v0 }
 0x212   :  { %v2410_v59 = vpop.f32.mrf.mxu0 }
 0x214   :  { %v2411_v61 = vpop.f32.mrf.mxu0 }
 0x28e   :  { %v2447_v2 = vpop.f32.mrf.mxu1 }
 0x28f   :  { %v2448_v5 = vadd.f32 %v2447_v2, %v2407_v1 }
 0x290   :  { %v2449_v6 = vpop.f32.mrf.mxu1 }
 0x291   :  { %v2450_v7 = vadd.f32 %v2449_v6, %v2409_v4  ;;  %v2454_v8 = vmax.f32 %v2448_v5, 0.0 }
 0x292   :  { %v2451_v9 = vpop.f32.mrf.mxu1 }
 0x293   :  { %v2455_v10 = vmax.f32 %v2450_v7, 0.0  ;;  %v2456_v13 = vpack.c.bf16 %v2454_v8, %v2454_v8 }
 0x294   :  { %v2452_v11 = vpop.f32.mrf.mxu1 }
 0x295   :  { %v2457_v12 = vpack.c.bf16 %v2455_v10, %v2455_v10 }
 0x297   :  { %2625 = vmatprep.mubr.bf16.mxu0 %v2457_v12 }
 0x298   :  { %2626 = vmatmul.mubr.bf16.vlgmr.msra.gmra.mxu0 %v2456_v13 }
 0x358   :  { %v3001_v14 = vpop.f32.mrf.mxu0 }
 0x35a   :  { %v3002_v15 = vpop.f32.mrf.mxu0 }
 0x35b   :  { %v3003_v40 = vadd.f32 %v3002_v15, %v3001_v14 }
 0x35c   :  { %v3004_v42 = vpop.f32.mrf.mxu0 }
 0x35d   :  { %v2628_v18 = vadd.f32 %v3003_v40, %v2968_v43 }
 0x35e   :  { %v3005_v19 = vpop.f32.mrf.mxu0 }
 0x35f   :  { %2633 = vst [vmem:[#allocation2] sm:$0x3] %v2628_v18 }
 0x360   :  { %3518 = shalt.err (!%p3515_p4)
}
 0x361   :  { %2643 = dma.vmem_to_hbm [thread:$0]  %s2641_s29, 32, %s4687_s7, [#allocation3]  }
 0x362   :  { %3527 = dma.done.wait [#allocation3], 32  }
 0x363   :  { %3528 = vsyncadd [#allocation3], 4294967264 }
 0x364   :  { %2647 = vsyncpa [#allocation3], 1 }

</bundles_post_ra>
